<compile_context>
chip_gen: v6e
topology: v6e:2x2x1
jax: 0.10.0
libtpu: 0.0.40
codegen_flags: <defaults>
</compile_context>

<pallas_src>
import functools

import jax
import jax.numpy as jnp
from jax import lax
from jax.experimental import pallas as pl
from jax.experimental.pallas import tpu as pltpu


# ---------------------------------------------------------------------------
# Fused stage kernel
#   grid = (n_steps,) over M-tiles of the im2col patch matrix ("arbitrary").
#   Every step: matmul+bias on its tile, stash pre-BN activations into a VMEM
#   scratch, accumulate per-channel sum / sum-of-squares.
#   Last step: BN(batch stats) + ReLU + MaxPool (max over pk*pk row blocks),
#   optionally the folded 1x1-conv + sigmoid head, then write the output.
# ---------------------------------------------------------------------------
def _stage_kernel(a_ref, w_ref, b_ref, g_ref, be_ref, *rest,
                  n_steps, tm, m_rows, m_out, pkk, eps, head):
    if head:
        hw_ref, hb_ref, o_ref, y_ref, s_ref, ss_ref = rest
    else:
        o_ref, y_ref, s_ref, ss_ref = rest

    step = pl.program_id(0)

    @pl.when(step == 0)
    def _init():
        s_ref[...] = jnp.zeros_like(s_ref)
        ss_ref[...] = jnp.zeros_like(ss_ref)

    # Conv tile: matmul + bias on the MXU.
    yt = jnp.dot(a_ref[...], w_ref[...],
                 preferred_element_type=jnp.float32) + b_ref[...]
    row0 = pl.multiple_of(step * tm, 8)
    y_ref[pl.ds(row0, tm), :] = yt
    # One-pass batch statistics (biased variance later via E[x^2] - mean^2).
    s_ref[...] += jnp.sum(yt, axis=0, keepdims=True)
    ss_ref[...] += jnp.sum(yt * yt, axis=0, keepdims=True)

    @pl.when(step == n_steps - 1)
    def _finalize():
        inv_m = 1.0 / float(m_rows)
        mean = s_ref[...] * inv_m
        var = ss_ref[...] * inv_m - mean * mean            # biased (PyTorch fwd)
        scale = g_ref[...] * lax.rsqrt(var + eps)
        shift = be_ref[...] - mean * scale
        # MaxPool: row block t of y holds pooling-window offset t for every
        # pooled output position, so pooling = elementwise max over the blocks.
        # ReLU output >= 0, so 0 is a valid identity for the running max.
        acc = jnp.zeros((m_out, s_ref.shape[-1]), jnp.float32)
        for t in range(pkk):
            ys = y_ref[t * m_out:(t + 1) * m_out, :]
            acc = jnp.maximum(acc, jnp.maximum(ys * scale + shift, 0.0))
        if head:
            # Folded f4: 1x1 conv to 1 channel (VPU mul + lane reduction) + sigmoid.
            z = jnp.sum(acc * hw_ref[...], axis=1, keepdims=True) + hb_ref[...]
            o_ref[...] = 0.5 * (jnp.tanh(0.5 * z) + 1.0)   # stable sigmoid (EUP)
        else:
            o_ref[...] = acc


def fused_stage(patches, w2d, bias, gamma, beta, *, m_out, pkk, tm=None,
                head_w=None, head_b=None, eps=1e-5):
    """patches: (M, K) pool-window-grouped im2col rows; w2d: (K, Cout)."""
    M, K = patches.shape
    Cout = w2d.shape[1]
    if tm is None or tm > M:
        tm = M
    assert M % tm == 0 and tm % 8 == 0
    n_steps = M // tm

    head = head_w is not None
    out_cols = 1 if head else Cout

    kern = functools.partial(
        _stage_kernel, n_steps=n_steps, tm=tm, m_rows=M, m_out=m_out,
        pkk=pkk, eps=eps, head=head)

    in_specs = [
        pl.BlockSpec((tm, K), lambda i: (i, 0)),
        pl.BlockSpec((K, Cout), lambda i: (0, 0)),
        pl.BlockSpec((1, Cout), lambda i: (0, 0)),
        pl.BlockSpec((1, Cout), lambda i: (0, 0)),
        pl.BlockSpec((1, Cout), lambda i: (0, 0)),
    ]
    args = [patches, w2d, bias.reshape(1, Cout), gamma.reshape(1, Cout),
            beta.reshape(1, Cout)]
    if head:
        in_specs += [pl.BlockSpec((1, Cout), lambda i: (0, 0)),
                     pl.BlockSpec((1, 1), lambda i: (0, 0))]
        args += [head_w.reshape(1, Cout), head_b.reshape(1, 1)]

    return pl.pallas_call(
        kern,
        out_shape=jax.ShapeDtypeStruct((m_out, out_cols), jnp.float32),
        grid=(n_steps,),
        in_specs=in_specs,
        out_specs=pl.BlockSpec((m_out, out_cols), lambda i: (0, 0)),
        scratch_shapes=[
            pltpu.VMEM((M, Cout), jnp.float32),   # pre-BN conv activations
            pltpu.VMEM((1, Cout), jnp.float32),   # per-channel sum
            pltpu.VMEM((1, Cout), jnp.float32),   # per-channel sum of squares
        ],
        compiler_params=pltpu.CompilerParams(
            dimension_semantics=("arbitrary",),
            vmem_limit_bytes=32 * 1024 * 1024),
    )(*args)


# ---------------------------------------------------------------------------
# Wrapper-side glue (slicing / concatenation only, no data replication beyond
# the standard im2col volume; rows are grouped by pooling-window offset).
# ---------------------------------------------------------------------------
def pooled_conv_patches(x, ck, cs, pk, ps):
    """x: (N, H, W, Cin) NHWC -> (A, (N, Po, Pw)).

    A has shape (pk*pk * N*Po*Pw, ck*ck*Cin): rows grouped by the pooling-window
    offset (di, dj), and within each group ordered (n, po, pw).  Every conv
    output position appears in exactly one pooling window for all stages of
    discriminator3, so BN batch statistics over A's rows equal statistics over
    the full conv output.  Feature order is (ki, kj, cin) to match the
    (kh, kw, cin, cout) weight reshape."""
    N, H, W, Cin = x.shape
    Ho = (H - ck) // cs + 1
    Wo = (W - ck) // cs + 1
    Po = (Ho - pk) // ps + 1
    Pw = (Wo - pk) // ps + 1
    assert pk * pk * Po * Pw == Ho * Wo, "pool windows must tile the conv output"
    st = cs * ps
    blocks = []
    for di in range(pk):
        for dj in range(pk):
            feats = []
            for ki in range(ck):
                for kj in range(ck):
                    r0 = cs * di + ki
                    c0 = cs * dj + kj
                    feats.append(x[:, r0:r0 + st * Po:st, c0:c0 + st * Pw:st, :])
            blk = jnp.concatenate(feats, axis=-1)            # (N, Po, Pw, ck*ck*Cin)
            blocks.append(blk.reshape(N * Po * Pw, ck * ck * Cin))
    return jnp.concatenate(blocks, axis=0), (N, Po, Pw)


def discriminator3_forward(x_nchw, params):
    x = jnp.transpose(x_nchw, (0, 2, 3, 1)).astype(jnp.float32)   # NCHW -> NHWC

    # f1: conv5_layer(3, 128):  Conv(k5, s3) + BN + ReLU + MaxPool(k3, s3)
    w, b, g, be = params["f1"]
    A, (N, Po, Pw) = pooled_conv_patches(x, ck=5, cs=3, pk=3, ps=3)
    K, Kp = 5 * 5 * 3, 128                     # pad K 75 -> 128 (lane-dense MXU)
    A = jnp.pad(A, ((0, 0), (0, Kp - K)))
    w2d = jnp.pad(w.reshape(K, -1), ((0, Kp - K), (0, 0)))
    y = fused_stage(A, w2d, b, g, be, m_out=N * Po * Pw, pkk=9, tm=504)
    x = y.reshape(N, Po, Pw, -1)

    # f2: conv3_layer(128, 256): Conv(k3, s1) + BN + ReLU + MaxPool(k3, s3)
    w, b, g, be = params["f2"]
    A, (N, Po, Pw) = pooled_conv_patches(x, ck=3, cs=1, pk=3, ps=3)
    y = fused_stage(A, w.reshape(A.shape[1], -1), b, g, be,
                    m_out=N * Po * Pw, pkk=9)
    x = y.reshape(N, Po, Pw, -1)

    # f3: conv2_layer(256, 512): Conv(k2, s2) + BN + ReLU + MaxPool(k2, s1)
    #     + folded f4: conv1_layer(512): 1x1 Conv -> 1 channel + Sigmoid
    w, b, g, be = params["f3"]
    w4, b4 = params["f4"]
    A, (N, Po, Pw) = pooled_conv_patches(x, ck=2, cs=2, pk=2, ps=1)
    y = fused_stage(A, w.reshape(A.shape[1], -1), b, g, be,
                    m_out=N * Po * Pw, pkk=4,
                    head_w=w4.reshape(-1), head_b=b4)
    y = y.reshape(N, Po, Pw, 1)
    return jnp.transpose(y, (0, 3, 1, 2))                         # NHWC -> NCHW


# ---------------------------------------------------------------------------
# Deterministic parameter init (PyTorch-style uniform bounds; BN gamma=1, beta=0)
# ---------------------------------------------------------------------------
def init_conv(key, k, cin, cout):
    kw, kb = jax.random.split(key)
    bound = 1.0 / float(k * k * cin) ** 0.5
    w = jax.random.uniform(kw, (k, k, cin, cout), jnp.float32, -bound, bound)
    b = jax.random.uniform(kb, (cout,), jnp.float32, -bound, bound)
    return w, b


def init_params(key):
    k1, k2, k3, k4 = jax.random.split(key, 4)
    w1, b1 = init_conv(k1, 5, 3, 128)
    w2, b2 = init_conv(k2, 3, 128, 256)
    w3, b3 = init_conv(k3, 2, 256, 512)
    w4, b4 = init_conv(k4, 1, 512, 1)
    ones = lambda c: jnp.ones((c,), jnp.float32)
    zeros = lambda c: jnp.zeros((c,), jnp.float32)
    return {
        "f1": (w1, b1, ones(128), zeros(128)),
        "f2": (w2, b2, ones(256), zeros(256)),
        "f3": (w3, b3, ones(512), zeros(512)),
        "f4": (w4, b4),
    }


if __name__ == "__main__":
    root = jax.random.PRNGKey(0)
    kx, kp = jax.random.split(root)
    # 128x128 is the smallest spatial size this stack of strides/pools admits
    # (final feature map is exactly 1x1); batch kept small at 2.
    x = jax.random.normal(kx, (2, 3, 128, 128), dtype=jnp.float32)  # NCHW input
    params = init_params(kp)

    y = jax.jit(discriminator3_forward)(x, params)
    y = jax.block_until_ready(y)

    assert y.shape == (2, 1, 1, 1), y.shape
    assert bool(jnp.all(jnp.isfinite(y)))
    assert bool(jnp.all((y >= 0.0) & (y <= 1.0)))   # sigmoid output range
    print("KERNEL_OK")
</pallas_src>

<mosaic_0001>
module attributes {stable_mosaic.version = 11 : i64} {
  func.func @_stage_kernel(%arg0: i32, %arg1: memref<504x128xf32, #tpu.memory_space<vmem>>, %arg2: memref<128x128xf32, #tpu.memory_space<vmem>>, %arg3: memref<1x128xf32, #tpu.memory_space<vmem>>, %arg4: memref<1x128xf32, #tpu.memory_space<vmem>>, %arg5: memref<1x128xf32, #tpu.memory_space<vmem>>, %arg6: memref<392x128xf32, #tpu.memory_space<vmem>>, %arg7: memref<3528x128xf32, #tpu.memory_space<vmem>>, %arg8: memref<1x128xf32, #tpu.memory_space<vmem>>, %arg9: memref<1x128xf32, #tpu.memory_space<vmem>>) attributes {dimension_semantics = [#tpu.dimension_semantics<arbitrary>], iteration_bounds = array<i64: 7>, scalar_prefetch = 0 : i64, scratch_operands = 3 : i64, tpu.core_type = #tpu.core_type<tc>, window_params = [{transform_indices = @transform_0, window_bounds = array<i64: 504, 128>}, {pipeline_mode = #tpu.pipeline_mode<synchronous>, transform_indices = @transform_1, window_bounds = array<i64: 128, 128>}, {pipeline_mode = #tpu.pipeline_mode<synchronous>, transform_indices = @transform_2, window_bounds = array<i64: 1, 128>}, {pipeline_mode = #tpu.pipeline_mode<synchronous>, transform_indices = @transform_3, window_bounds = array<i64: 1, 128>}, {pipeline_mode = #tpu.pipeline_mode<synchronous>, transform_indices = @transform_4, window_bounds = array<i64: 1, 128>}, {pipeline_mode = #tpu.pipeline_mode<synchronous>, transform_indices = @transform_5, window_bounds = array<i64: 392, 128>}]} {
    %c0_i32 = arith.constant 0 : i32
    %0 = arith.cmpi eq, %arg0, %c0_i32 : i32
    %1 = arith.extui %0 : i1 to i32
    %c0_i32_0 = arith.constant 0 : i32
    %2 = arith.cmpi ne, %1, %c0_i32_0 : i32
    scf.if %2 {
      %cst_18 = arith.constant 0.000000e+00 : f32
      %27 = vector.broadcast %cst_18 : f32 to vector<1x128xf32>
      %c0_19 = arith.constant 0 : index
      %c0_20 = arith.constant 0 : index
      %28 = vector.load %arg8[%c0_19, %c0_20] : memref<1x128xf32, #tpu.memory_space<vmem>>, vector<1x128xf32>
      tpu.vector_store %arg8[%c0_19, %c0_20], %27 {strides = array<i32>} : memref<1x128xf32, #tpu.memory_space<vmem>>, vector<1x128xf32>,
      %cst_21 = arith.constant 0.000000e+00 : f32
      %29 = vector.broadcast %cst_21 : f32 to vector<1x128xf32>
      %c0_22 = arith.constant 0 : index
      %c0_23 = arith.constant 0 : index
      %30 = vector.load %arg9[%c0_22, %c0_23] : memref<1x128xf32, #tpu.memory_space<vmem>>, vector<1x128xf32>
      tpu.vector_store %arg9[%c0_22, %c0_23], %29 {strides = array<i32>} : memref<1x128xf32, #tpu.memory_space<vmem>>, vector<1x128xf32>,
    } else {
    }
    %c0 = arith.constant 0 : index
    %c0_1 = arith.constant 0 : index
    %3 = vector.load %arg1[%c0, %c0_1] : memref<504x128xf32, #tpu.memory_space<vmem>>, vector<504x128xf32>
    %c0_2 = arith.constant 0 : index
    %c0_3 = arith.constant 0 : index
    %4 = vector.load %arg2[%c0_2, %c0_3] : memref<128x128xf32, #tpu.memory_space<vmem>>, vector<128x128xf32>
    %cst = arith.constant dense<0.000000e+00> : vector<504x128xf32>
    %5 = tpu.matmul %3, %4, %cst {dimension_numbers = #tpu.dot_dimension_numbers<[1], [0], [0], [1], [0, 0, 1, 1], [], []>} : vector<504x128xf32>, vector<128x128xf32>, vector<504x128xf32> -> vector<504x128xf32>
    %c0_4 = arith.constant 0 : index
    %c0_5 = arith.constant 0 : index
    %6 = vector.load %arg3[%c0_4, %c0_5] : memref<1x128xf32, #tpu.memory_space<vmem>>, vector<1x128xf32>
    %7 = vector.broadcast %6 : vector<1x128xf32> to vector<504x128xf32>
    %8 = arith.addf %5, %7 : vector<504x128xf32>
    %c504_i32 = arith.constant 504 : i32
    %9 = arith.muli %arg0, %c504_i32 : i32
    %10 = tpu.assume_multiple %9, 8 : i32
    %11 = arith.index_cast %10 : i32 to index
    %c0_6 = arith.constant 0 : index
    %12 = vector.load %arg7[%11, %c0_6] : memref<3528x128xf32, #tpu.memory_space<vmem>>, vector<504x128xf32>
    tpu.vector_store %arg7[%11, %c0_6], %8 {strides = array<i32>} : memref<3528x128xf32, #tpu.memory_space<vmem>>, vector<504x128xf32>,
    %c0_7 = arith.constant 0 : index
    %c0_8 = arith.constant 0 : index
    %13 = vector.load %arg8[%c0_7, %c0_8] : memref<1x128xf32, #tpu.memory_space<vmem>>, vector<1x128xf32>
    %cst_9 = arith.constant dense<0.000000e+00> : vector<128xf32>
    %14 = vector.multi_reduction <add>, %8, %cst_9 [0] : vector<504x128xf32> to vector<128xf32>
    %15 = vector.shape_cast %14 : vector<128xf32> to vector<1x128xf32>
    %16 = arith.addf %13, %15 : vector<1x128xf32>
    %c0_10 = arith.constant 0 : index
    %c0_11 = arith.constant 0 : index
    %17 = vector.load %arg8[%c0_10, %c0_11] : memref<1x128xf32, #tpu.memory_space<vmem>>, vector<1x128xf32>
    tpu.vector_store %arg8[%c0_10, %c0_11], %16 {strides = array<i32>} : memref<1x128xf32, #tpu.memory_space<vmem>>, vector<1x128xf32>,
    %c0_12 = arith.constant 0 : index
    %c0_13 = arith.constant 0 : index
    %18 = vector.load %arg9[%c0_12, %c0_13] : memref<1x128xf32, #tpu.memory_space<vmem>>, vector<1x128xf32>
    %19 = arith.mulf %8, %8 : vector<504x128xf32>
    %cst_14 = arith.constant dense<0.000000e+00> : vector<128xf32>
    %20 = vector.multi_reduction <add>, %19, %cst_14 [0] : vector<504x128xf32> to vector<128xf32>
    %21 = vector.shape_cast %20 : vector<128xf32> to vector<1x128xf32>
    %22 = arith.addf %18, %21 : vector<1x128xf32>
    %c0_15 = arith.constant 0 : index
    %c0_16 = arith.constant 0 : index
    %23 = vector.load %arg9[%c0_15, %c0_16] : memref<1x128xf32, #tpu.memory_space<vmem>>, vector<1x128xf32>
    tpu.vector_store %arg9[%c0_15, %c0_16], %22 {strides = array<i32>} : memref<1x128xf32, #tpu.memory_space<vmem>>, vector<1x128xf32>,
    %c6_i32 = arith.constant 6 : i32
    %24 = arith.cmpi eq, %arg0, %c6_i32 : i32
    %25 = arith.extui %24 : i1 to i32
    %c0_i32_17 = arith.constant 0 : i32
    %26 = arith.cmpi ne, %25, %c0_i32_17 : i32
    scf.if %26 {
      %c0_18 = arith.constant 0 : index
      %c0_19 = arith.constant 0 : index
      %27 = vector.load %arg8[%c0_18, %c0_19] : memref<1x128xf32, #tpu.memory_space<vmem>>, vector<1x128xf32>
      %cst_20 = arith.constant 2.83446716E-4 : f32
      %28 = vector.broadcast %cst_20 : f32 to vector<1x128xf32>
      %29 = arith.mulf %27, %28 : vector<1x128xf32>
      %c0_21 = arith.constant 0 : index
      %c0_22 = arith.constant 0 : index
      %30 = vector.load %arg9[%c0_21, %c0_22] : memref<1x128xf32, #tpu.memory_space<vmem>>, vector<1x128xf32>
      %cst_23 = arith.constant 2.83446716E-4 : f32
      %31 = vector.broadcast %cst_23 : f32 to vector<1x128xf32>
      %32 = arith.mulf %30, %31 : vector<1x128xf32>
      %33 = arith.mulf %29, %29 : vector<1x128xf32>
      %34 = arith.subf %32, %33 : vector<1x128xf32>
      %c0_24 = arith.constant 0 : index
      %c0_25 = arith.constant 0 : index
      %35 = vector.load %arg4[%c0_24, %c0_25] : memref<1x128xf32, #tpu.memory_space<vmem>>, vector<1x128xf32>
      %cst_26 = arith.constant 9.99999974E-6 : f32
      %36 = vector.broadcast %cst_26 : f32 to vector<1x128xf32>
      %37 = arith.addf %34, %36 : vector<1x128xf32>
      %38 = math.rsqrt %37 : vector<1x128xf32>
      %39 = arith.mulf %35, %38 : vector<1x128xf32>
      %c0_27 = arith.constant 0 : index
      %c0_28 = arith.constant 0 : index
      %40 = vector.load %arg5[%c0_27, %c0_28] : memref<1x128xf32, #tpu.memory_space<vmem>>, vector<1x128xf32>
      %41 = arith.mulf %29, %39 : vector<1x128xf32>
      %42 = arith.subf %40, %41 : vector<1x128xf32>
      %cst_29 = arith.constant 0.000000e+00 : f32
      %43 = vector.broadcast %cst_29 : f32 to vector<392x128xf32>
      %c0_30 = arith.constant 0 : index
      %c0_31 = arith.constant 0 : index
      %44 = vector.load %arg7[%c0_30, %c0_31] : memref<3528x128xf32, #tpu.memory_space<vmem>>, vector<392x128xf32>
      %45 = vector.broadcast %39 : vector<1x128xf32> to vector<392x128xf32>
      %46 = arith.mulf %44, %45 : vector<392x128xf32>
      %47 = vector.broadcast %42 : vector<1x128xf32> to vector<392x128xf32>
      %48 = arith.addf %46, %47 : vector<392x128xf32>
      %cst_32 = arith.constant 0.000000e+00 : f32
      %49 = vector.broadcast %cst_32 : f32 to vector<392x128xf32>
      %50 = arith.maximumf %48, %49 : vector<392x128xf32>
      %51 = arith.maximumf %43, %50 : vector<392x128xf32>
      %c392 = arith.constant 392 : index
      %c0_33 = arith.constant 0 : index
      %52 = vector.load %arg7[%c392, %c0_33] : memref<3528x128xf32, #tpu.memory_space<vmem>>, vector<392x128xf32>
      %53 = vector.broadcast %39 : vector<1x128xf32> to vector<392x128xf32>
      %54 = arith.mulf %52, %53 : vector<392x128xf32>
      %55 = vector.broadcast %42 : vector<1x128xf32> to vector<392x128xf32>
      %56 = arith.addf %54, %55 : vector<392x128xf32>
      %cst_34 = arith.constant 0.000000e+00 : f32
      %57 = vector.broadcast %cst_34 : f32 to vector<392x128xf32>
      %58 = arith.maximumf %56, %57 : vector<392x128xf32>
      %59 = arith.maximumf %51, %58 : vector<392x128xf32>
      %c784 = arith.constant 784 : index
      %c0_35 = arith.constant 0 : index
      %60 = vector.load %arg7[%c784, %c0_35] : memref<3528x128xf32, #tpu.memory_space<vmem>>, vector<392x128xf32>
      %61 = vector.broadcast %39 : vector<1x128xf32> to vector<392x128xf32>
      %62 = arith.mulf %60, %61 : vector<392x128xf32>
      %63 = vector.broadcast %42 : vector<1x128xf32> to vector<392x128xf32>
      %64 = arith.addf %62, %63 : vector<392x128xf32>
      %cst_36 = arith.constant 0.000000e+00 : f32
      %65 = vector.broadcast %cst_36 : f32 to vector<392x128xf32>
      %66 = arith.maximumf %64, %65 : vector<392x128xf32>
      %67 = arith.maximumf %59, %66 : vector<392x128xf32>
      %c1176 = arith.constant 1176 : index
      %c0_37 = arith.constant 0 : index
      %68 = vector.load %arg7[%c1176, %c0_37] : memref<3528x128xf32, #tpu.memory_space<vmem>>, vector<392x128xf32>
      %69 = vector.broadcast %39 : vector<1x128xf32> to vector<392x128xf32>
      %70 = arith.mulf %68, %69 : vector<392x128xf32>
      %71 = vector.broadcast %42 : vector<1x128xf32> to vector<392x128xf32>
      %72 = arith.addf %70, %71 : vector<392x128xf32>
      %cst_38 = arith.constant 0.000000e+00 : f32
      %73 = vector.broadcast %cst_38 : f32 to vector<392x128xf32>
      %74 = arith.maximumf %72, %73 : vector<392x128xf32>
      %75 = arith.maximumf %67, %74 : vector<392x128xf32>
      %c1568 = arith.constant 1568 : index
      %c0_39 = arith.constant 0 : index
      %76 = vector.load %arg7[%c1568, %c0_39] : memref<3528x128xf32, #tpu.memory_space<vmem>>, vector<392x128xf32>
      %77 = vector.broadcast %39 : vector<1x128xf32> to vector<392x128xf32>
      %78 = arith.mulf %76, %77 : vector<392x128xf32>
      %79 = vector.broadcast %42 : vector<1x128xf32> to vector<392x128xf32>
      %80 = arith.addf %78, %79 : vector<392x128xf32>
      %cst_40 = arith.constant 0.000000e+00 : f32
      %81 = vector.broadcast %cst_40 : f32 to vector<392x128xf32>
      %82 = arith.maximumf %80, %81 : vector<392x128xf32>
      %83 = arith.maximumf %75, %82 : vector<392x128xf32>
      %c1960 = arith.constant 1960 : index
      %c0_41 = arith.constant 0 : index
      %84 = vector.load %arg7[%c1960, %c0_41] : memref<3528x128xf32, #tpu.memory_space<vmem>>, vector<392x128xf32>
      %85 = vector.broadcast %39 : vector<1x128xf32> to vector<392x128xf32>
      %86 = arith.mulf %84, %85 : vector<392x128xf32>
      %87 = vector.broadcast %42 : vector<1x128xf32> to vector<392x128xf32>
      %88 = arith.addf %86, %87 : vector<392x128xf32>
      %cst_42 = arith.constant 0.000000e+00 : f32
      %89 = vector.broadcast %cst_42 : f32 to vector<392x128xf32>
      %90 = arith.maximumf %88, %89 : vector<392x128xf32>
      %91 = arith.maximumf %83, %90 : vector<392x128xf32>
      %c2352 = arith.constant 2352 : index
      %c0_43 = arith.constant 0 : index
      %92 = vector.load %arg7[%c2352, %c0_43] : memref<3528x128xf32, #tpu.memory_space<vmem>>, vector<392x128xf32>
      %93 = vector.broadcast %39 : vector<1x128xf32> to vector<392x128xf32>
      %94 = arith.mulf %92, %93 : vector<392x128xf32>
      %95 = vector.broadcast %42 : vector<1x128xf32> to vector<392x128xf32>
      %96 = arith.addf %94, %95 : vector<392x128xf32>
      %cst_44 = arith.constant 0.000000e+00 : f32
      %97 = vector.broadcast %cst_44 : f32 to vector<392x128xf32>
      %98 = arith.maximumf %96, %97 : vector<392x128xf32>
      %99 = arith.maximumf %91, %98 : vector<392x128xf32>
      %c2744 = arith.constant 2744 : index
      %c0_45 = arith.constant 0 : index
      %100 = vector.load %arg7[%c2744, %c0_45] : memref<3528x128xf32, #tpu.memory_space<vmem>>, vector<392x128xf32>
      %101 = vector.broadcast %39 : vector<1x128xf32> to vector<392x128xf32>
      %102 = arith.mulf %100, %101 : vector<392x128xf32>
      %103 = vector.broadcast %42 : vector<1x128xf32> to vector<392x128xf32>
      %104 = arith.addf %102, %103 : vector<392x128xf32>
      %cst_46 = arith.constant 0.000000e+00 : f32
      %105 = vector.broadcast %cst_46 : f32 to vector<392x128xf32>
      %106 = arith.maximumf %104, %105 : vector<392x128xf32>
      %107 = arith.maximumf %99, %106 : vector<392x128xf32>
      %c3136 = arith.constant 3136 : index
      %c0_47 = arith.constant 0 : index
      %108 = vector.load %arg7[%c3136, %c0_47] : memref<3528x128xf32, #tpu.memory_space<vmem>>, vector<392x128xf32>
      %109 = vector.broadcast %39 : vector<1x128xf32> to vector<392x128xf32>
      %110 = arith.mulf %108, %109 : vector<392x128xf32>
      %111 = vector.broadcast %42 : vector<1x128xf32> to vector<392x128xf32>
      %112 = arith.addf %110, %111 : vector<392x128xf32>
      %cst_48 = arith.constant 0.000000e+00 : f32
      %113 = vector.broadcast %cst_48 : f32 to vector<392x128xf32>
      %114 = arith.maximumf %112, %113 : vector<392x128xf32>
      %115 = arith.maximumf %107, %114 : vector<392x128xf32>
      %c0_49 = arith.constant 0 : index
      %c0_50 = arith.constant 0 : index
      %116 = vector.load %arg6[%c0_49, %c0_50] : memref<392x128xf32, #tpu.memory_space<vmem>>, vector<392x128xf32>
      tpu.vector_store %arg6[%c0_49, %c0_50], %115 {strides = array<i32>} : memref<392x128xf32, #tpu.memory_space<vmem>>, vector<392x128xf32>,
    } else {
    }
    return
  }
  func.func @transform_0(%arg0: i32) -> (i32, i32) {
    %c0_i32 = arith.constant 0 : i32
    %c0_i32_0 = arith.constant 0 : i32
    return %arg0, %c0_i32 : i32, i32
  }
  func.func @transform_1(%arg0: i32) -> (i32, i32) {
    %c0_i32 = arith.constant 0 : i32
    %c0_i32_0 = arith.constant 0 : i32
    %c0_i32_1 = arith.constant 0 : i32
    return %c0_i32, %c0_i32_0 : i32, i32
  }
  func.func @transform_2(%arg0: i32) -> (i32, i32) {
    %c0_i32 = arith.constant 0 : i32
    %c0_i32_0 = arith.constant 0 : i32
    %c0_i32_1 = arith.constant 0 : i32
    return %c0_i32, %c0_i32_0 : i32, i32
  }
  func.func @transform_3(%arg0: i32) -> (i32, i32) {
    %c0_i32 = arith.constant 0 : i32
    %c0_i32_0 = arith.constant 0 : i32
    %c0_i32_1 = arith.constant 0 : i32
    return %c0_i32, %c0_i32_0 : i32, i32
  }
  func.func @transform_4(%arg0: i32) -> (i32, i32) {
    %c0_i32 = arith.constant 0 : i32
    %c0_i32_0 = arith.constant 0 : i32
    %c0_i32_1 = arith.constant 0 : i32
    return %c0_i32, %c0_i32_0 : i32, i32
  }
  func.func @transform_5(%arg0: i32) -> (i32, i32) {
    %c0_i32 = arith.constant 0 : i32
    %c0_i32_0 = arith.constant 0 : i32
    %c0_i32_1 = arith.constant 0 : i32
    return %c0_i32, %c0_i32_0 : i32, i32
  }
}

module attributes {stable_mosaic.version = 11 : i64} {
  func.func @_stage_kernel(%arg0: i32, %arg1: memref<288x1152xf32, #tpu.memory_space<vmem>>, %arg2: memref<1152x256xf32, #tpu.memory_space<vmem>>, %arg3: memref<1x256xf32, #tpu.memory_space<vmem>>, %arg4: memref<1x256xf32, #tpu.memory_space<vmem>>, %arg5: memref<1x256xf32, #tpu.memory_space<vmem>>, %arg6: memref<32x256xf32, #tpu.memory_space<vmem>>, %arg7: memref<288x256xf32, #tpu.memory_space<vmem>>, %arg8: memref<1x256xf32, #tpu.memory_space<vmem>>, %arg9: memref<1x256xf32, #tpu.memory_space<vmem>>) attributes {dimension_semantics = [#tpu.dimension_semantics<arbitrary>], iteration_bounds = array<i64: 1>, scalar_prefetch = 0 : i64, scratch_operands = 3 : i64, tpu.core_type = #tpu.core_type<tc>, window_params = [{transform_indices = @transform_0, window_bounds = array<i64: 288, 1152>}, {pipeline_mode = #tpu.pipeline_mode<synchronous>, transform_indices = @transform_1, window_bounds = array<i64: 1152, 256>}, {pipeline_mode = #tpu.pipeline_mode<synchronous>, transform_indices = @transform_2, window_bounds = array<i64: 1, 256>}, {pipeline_mode = #tpu.pipeline_mode<synchronous>, transform_indices = @transform_3, window_bounds = array<i64: 1, 256>}, {pipeline_mode = #tpu.pipeline_mode<synchronous>, transform_indices = @transform_4, window_bounds = array<i64: 1, 256>}, {pipeline_mode = #tpu.pipeline_mode<synchronous>, transform_indices = @transform_5, window_bounds = array<i64: 32, 256>}]} {
    %c0_i32 = arith.constant 0 : i32
    %0 = arith.cmpi eq, %arg0, %c0_i32 : i32
    %1 = arith.extui %0 : i1 to i32
    %c0_i32_0 = arith.constant 0 : i32
    %2 = arith.cmpi ne, %1, %c0_i32_0 : i32
    scf.if %2 {
      %cst_19 = arith.constant 0.000000e+00 : f32
      %27 = vector.broadcast %cst_19 : f32 to vector<1x256xf32>
      %c0_20 = arith.constant 0 : index
      %c0_21 = arith.constant 0 : index
      %28 = vector.load %arg8[%c0_20, %c0_21] : memref<1x256xf32, #tpu.memory_space<vmem>>, vector<1x256xf32>
      tpu.vector_store %arg8[%c0_20, %c0_21], %27 {strides = array<i32>} : memref<1x256xf32, #tpu.memory_space<vmem>>, vector<1x256xf32>,
      %cst_22 = arith.constant 0.000000e+00 : f32
      %29 = vector.broadcast %cst_22 : f32 to vector<1x256xf32>
      %c0_23 = arith.constant 0 : index
      %c0_24 = arith.constant 0 : index
      %30 = vector.load %arg9[%c0_23, %c0_24] : memref<1x256xf32, #tpu.memory_space<vmem>>, vector<1x256xf32>
      tpu.vector_store %arg9[%c0_23, %c0_24], %29 {strides = array<i32>} : memref<1x256xf32, #tpu.memory_space<vmem>>, vector<1x256xf32>,
    } else {
    }
    %c0 = arith.constant 0 : index
    %c0_1 = arith.constant 0 : index
    %3 = vector.load %arg1[%c0, %c0_1] : memref<288x1152xf32, #tpu.memory_space<vmem>>, vector<288x1152xf32>
    %c0_2 = arith.constant 0 : index
    %c0_3 = arith.constant 0 : index
    %4 = vector.load %arg2[%c0_2, %c0_3] : memref<1152x256xf32, #tpu.memory_space<vmem>>, vector<1152x256xf32>
    %cst = arith.constant dense<0.000000e+00> : vector<288x256xf32>
    %5 = tpu.matmul %3, %4, %cst {dimension_numbers = #tpu.dot_dimension_numbers<[1], [0], [0], [1], [0, 0, 1, 1], [], []>} : vector<288x1152xf32>, vector<1152x256xf32>, vector<288x256xf32> -> vector<288x256xf32>
    %c0_4 = arith.constant 0 : index
    %c0_5 = arith.constant 0 : index
    %6 = vector.load %arg3[%c0_4, %c0_5] : memref<1x256xf32, #tpu.memory_space<vmem>>, vector<1x256xf32>
    %7 = vector.broadcast %6 : vector<1x256xf32> to vector<288x256xf32>
    %8 = arith.addf %5, %7 : vector<288x256xf32>
    %c288_i32 = arith.constant 288 : i32
    %9 = arith.muli %arg0, %c288_i32 : i32
    %10 = tpu.assume_multiple %9, 8 : i32
    %11 = arith.index_cast %10 : i32 to index
    %c0_6 = arith.constant 0 : index
    %12 = vector.load %arg7[%11, %c0_6] : memref<288x256xf32, #tpu.memory_space<vmem>>, vector<288x256xf32>
    tpu.vector_store %arg7[%11, %c0_6], %8 {strides = array<i32>} : memref<288x256xf32, #tpu.memory_space<vmem>>, vector<288x256xf32>,
    %c0_7 = arith.constant 0 : index
    %c0_8 = arith.constant 0 : index
    %13 = vector.load %arg8[%c0_7, %c0_8] : memref<1x256xf32, #tpu.memory_space<vmem>>, vector<1x256xf32>
    %cst_9 = arith.constant dense<0.000000e+00> : vector<256xf32>
    %14 = vector.multi_reduction <add>, %8, %cst_9 [0] : vector<288x256xf32> to vector<256xf32>
    %15 = vector.shape_cast %14 : vector<256xf32> to vector<1x256xf32>
    %16 = arith.addf %13, %15 : vector<1x256xf32>
    %c0_10 = arith.constant 0 : index
    %c0_11 = arith.constant 0 : index
    %17 = vector.load %arg8[%c0_10, %c0_11] : memref<1x256xf32, #tpu.memory_space<vmem>>, vector<1x256xf32>
    tpu.vector_store %arg8[%c0_10, %c0_11], %16 {strides = array<i32>} : memref<1x256xf32, #tpu.memory_space<vmem>>, vector<1x256xf32>,
    %c0_12 = arith.constant 0 : index
    %c0_13 = arith.constant 0 : index
    %18 = vector.load %arg9[%c0_12, %c0_13] : memref<1x256xf32, #tpu.memory_space<vmem>>, vector<1x256xf32>
    %19 = arith.mulf %8, %8 : vector<288x256xf32>
    %cst_14 = arith.constant dense<0.000000e+00> : vector<256xf32>
    %20 = vector.multi_reduction <add>, %19, %cst_14 [0] : vector<288x256xf32> to vector<256xf32>
    %21 = vector.shape_cast %20 : vector<256xf32> to vector<1x256xf32>
    %22 = arith.addf %18, %21 : vector<1x256xf32>
    %c0_15 = arith.constant 0 : index
    %c0_16 = arith.constant 0 : index
    %23 = vector.load %arg9[%c0_15, %c0_16] : memref<1x256xf32, #tpu.memory_space<vmem>>, vector<1x256xf32>
    tpu.vector_store %arg9[%c0_15, %c0_16], %22 {strides = array<i32>} : memref<1x256xf32, #tpu.memory_space<vmem>>, vector<1x256xf32>,
    %c0_i32_17 = arith.constant 0 : i32
    %24 = arith.cmpi eq, %arg0, %c0_i32_17 : i32
    %25 = arith.extui %24 : i1 to i32
    %c0_i32_18 = arith.constant 0 : i32
    %26 = arith.cmpi ne, %25, %c0_i32_18 : i32
    scf.if %26 {
      %c0_19 = arith.constant 0 : index
      %c0_20 = arith.constant 0 : index
      %27 = vector.load %arg8[%c0_19, %c0_20] : memref<1x256xf32, #tpu.memory_space<vmem>>, vector<1x256xf32>
      %cst_21 = arith.constant 0.00347222225 : f32
      %28 = vector.broadcast %cst_21 : f32 to vector<1x256xf32>
      %29 = arith.mulf %27, %28 : vector<1x256xf32>
      %c0_22 = arith.constant 0 : index
      %c0_23 = arith.constant 0 : index
      %30 = vector.load %arg9[%c0_22, %c0_23] : memref<1x256xf32, #tpu.memory_space<vmem>>, vector<1x256xf32>
      %cst_24 = arith.constant 0.00347222225 : f32
      %31 = vector.broadcast %cst_24 : f32 to vector<1x256xf32>
      %32 = arith.mulf %30, %31 : vector<1x256xf32>
      %33 = arith.mulf %29, %29 : vector<1x256xf32>
      %34 = arith.subf %32, %33 : vector<1x256xf32>
      %c0_25 = arith.constant 0 : index
      %c0_26 = arith.constant 0 : index
      %35 = vector.load %arg4[%c0_25, %c0_26] : memref<1x256xf32, #tpu.memory_space<vmem>>, vector<1x256xf32>
      %cst_27 = arith.constant 9.99999974E-6 : f32
      %36 = vector.broadcast %cst_27 : f32 to vector<1x256xf32>
      %37 = arith.addf %34, %36 : vector<1x256xf32>
      %38 = math.rsqrt %37 : vector<1x256xf32>
      %39 = arith.mulf %35, %38 : vector<1x256xf32>
      %c0_28 = arith.constant 0 : index
      %c0_29 = arith.constant 0 : index
      %40 = vector.load %arg5[%c0_28, %c0_29] : memref<1x256xf32, #tpu.memory_space<vmem>>, vector<1x256xf32>
      %41 = arith.mulf %29, %39 : vector<1x256xf32>
      %42 = arith.subf %40, %41 : vector<1x256xf32>
      %cst_30 = arith.constant 0.000000e+00 : f32
      %43 = vector.broadcast %cst_30 : f32 to vector<32x256xf32>
      %c0_31 = arith.constant 0 : index
      %c0_32 = arith.constant 0 : index
      %44 = vector.load %arg7[%c0_31, %c0_32] : memref<288x256xf32, #tpu.memory_space<vmem>>, vector<32x256xf32>
      %45 = vector.broadcast %39 : vector<1x256xf32> to vector<32x256xf32>
      %46 = arith.mulf %44, %45 : vector<32x256xf32>
      %47 = vector.broadcast %42 : vector<1x256xf32> to vector<32x256xf32>
      %48 = arith.addf %46, %47 : vector<32x256xf32>
      %cst_33 = arith.constant 0.000000e+00 : f32
      %49 = vector.broadcast %cst_33 : f32 to vector<32x256xf32>
      %50 = arith.maximumf %48, %49 : vector<32x256xf32>
      %51 = arith.maximumf %43, %50 : vector<32x256xf32>
      %c32 = arith.constant 32 : index
      %c0_34 = arith.constant 0 : index
      %52 = vector.load %arg7[%c32, %c0_34] : memref<288x256xf32, #tpu.memory_space<vmem>>, vector<32x256xf32>
      %53 = vector.broadcast %39 : vector<1x256xf32> to vector<32x256xf32>
      %54 = arith.mulf %52, %53 : vector<32x256xf32>
      %55 = vector.broadcast %42 : vector<1x256xf32> to vector<32x256xf32>
      %56 = arith.addf %54, %55 : vector<32x256xf32>
      %cst_35 = arith.constant 0.000000e+00 : f32
      %57 = vector.broadcast %cst_35 : f32 to vector<32x256xf32>
      %58 = arith.maximumf %56, %57 : vector<32x256xf32>
      %59 = arith.maximumf %51, %58 : vector<32x256xf32>
      %c64 = arith.constant 64 : index
      %c0_36 = arith.constant 0 : index
      %60 = vector.load %arg7[%c64, %c0_36] : memref<288x256xf32, #tpu.memory_space<vmem>>, vector<32x256xf32>
      %61 = vector.broadcast %39 : vector<1x256xf32> to vector<32x256xf32>
      %62 = arith.mulf %60, %61 : vector<32x256xf32>
      %63 = vector.broadcast %42 : vector<1x256xf32> to vector<32x256xf32>
      %64 = arith.addf %62, %63 : vector<32x256xf32>
      %cst_37 = arith.constant 0.000000e+00 : f32
      %65 = vector.broadcast %cst_37 : f32 to vector<32x256xf32>
      %66 = arith.maximumf %64, %65 : vector<32x256xf32>
      %67 = arith.maximumf %59, %66 : vector<32x256xf32>
      %c96 = arith.constant 96 : index
      %c0_38 = arith.constant 0 : index
      %68 = vector.load %arg7[%c96, %c0_38] : memref<288x256xf32, #tpu.memory_space<vmem>>, vector<32x256xf32>
      %69 = vector.broadcast %39 : vector<1x256xf32> to vector<32x256xf32>
      %70 = arith.mulf %68, %69 : vector<32x256xf32>
      %71 = vector.broadcast %42 : vector<1x256xf32> to vector<32x256xf32>
      %72 = arith.addf %70, %71 : vector<32x256xf32>
      %cst_39 = arith.constant 0.000000e+00 : f32
      %73 = vector.broadcast %cst_39 : f32 to vector<32x256xf32>
      %74 = arith.maximumf %72, %73 : vector<32x256xf32>
      %75 = arith.maximumf %67, %74 : vector<32x256xf32>
      %c128 = arith.constant 128 : index
      %c0_40 = arith.constant 0 : index
      %76 = vector.load %arg7[%c128, %c0_40] : memref<288x256xf32, #tpu.memory_space<vmem>>, vector<32x256xf32>
      %77 = vector.broadcast %39 : vector<1x256xf32> to vector<32x256xf32>
      %78 = arith.mulf %76, %77 : vector<32x256xf32>
      %79 = vector.broadcast %42 : vector<1x256xf32> to vector<32x256xf32>
      %80 = arith.addf %78, %79 : vector<32x256xf32>
      %cst_41 = arith.constant 0.000000e+00 : f32
      %81 = vector.broadcast %cst_41 : f32 to vector<32x256xf32>
      %82 = arith.maximumf %80, %81 : vector<32x256xf32>
      %83 = arith.maximumf %75, %82 : vector<32x256xf32>
      %c160 = arith.constant 160 : index
      %c0_42 = arith.constant 0 : index
      %84 = vector.load %arg7[%c160, %c0_42] : memref<288x256xf32, #tpu.memory_space<vmem>>, vector<32x256xf32>
      %85 = vector.broadcast %39 : vector<1x256xf32> to vector<32x256xf32>
      %86 = arith.mulf %84, %85 : vector<32x256xf32>
      %87 = vector.broadcast %42 : vector<1x256xf32> to vector<32x256xf32>
      %88 = arith.addf %86, %87 : vector<32x256xf32>
      %cst_43 = arith.constant 0.000000e+00 : f32
      %89 = vector.broadcast %cst_43 : f32 to vector<32x256xf32>
      %90 = arith.maximumf %88, %89 : vector<32x256xf32>
      %91 = arith.maximumf %83, %90 : vector<32x256xf32>
      %c192 = arith.constant 192 : index
      %c0_44 = arith.constant 0 : index
      %92 = vector.load %arg7[%c192, %c0_44] : memref<288x256xf32, #tpu.memory_space<vmem>>, vector<32x256xf32>
      %93 = vector.broadcast %39 : vector<1x256xf32> to vector<32x256xf32>
      %94 = arith.mulf %92, %93 : vector<32x256xf32>
      %95 = vector.broadcast %42 : vector<1x256xf32> to vector<32x256xf32>
      %96 = arith.addf %94, %95 : vector<32x256xf32>
      %cst_45 = arith.constant 0.000000e+00 : f32
      %97 = vector.broadcast %cst_45 : f32 to vector<32x256xf32>
      %98 = arith.maximumf %96, %97 : vector<32x256xf32>
      %99 = arith.maximumf %91, %98 : vector<32x256xf32>
      %c224 = arith.constant 224 : index
      %c0_46 = arith.constant 0 : index
      %100 = vector.load %arg7[%c224, %c0_46] : memref<288x256xf32, #tpu.memory_space<vmem>>, vector<32x256xf32>
      %101 = vector.broadcast %39 : vector<1x256xf32> to vector<32x256xf32>
      %102 = arith.mulf %100, %101 : vector<32x256xf32>
      %103 = vector.broadcast %42 : vector<1x256xf32> to vector<32x256xf32>
      %104 = arith.addf %102, %103 : vector<32x256xf32>
      %cst_47 = arith.constant 0.000000e+00 : f32
      %105 = vector.broadcast %cst_47 : f32 to vector<32x256xf32>
      %106 = arith.maximumf %104, %105 : vector<32x256xf32>
      %107 = arith.maximumf %99, %106 : vector<32x256xf32>
      %c256 = arith.constant 256 : index
      %c0_48 = arith.constant 0 : index
      %108 = vector.load %arg7[%c256, %c0_48] : memref<288x256xf32, #tpu.memory_space<vmem>>, vector<32x256xf32>
      %109 = vector.broadcast %39 : vector<1x256xf32> to vector<32x256xf32>
      %110 = arith.mulf %108, %109 : vector<32x256xf32>
      %111 = vector.broadcast %42 : vector<1x256xf32> to vector<32x256xf32>
      %112 = arith.addf %110, %111 : vector<32x256xf32>
      %cst_49 = arith.constant 0.000000e+00 : f32
      %113 = vector.broadcast %cst_49 : f32 to vector<32x256xf32>
      %114 = arith.maximumf %112, %113 : vector<32x256xf32>
      %115 = arith.maximumf %107, %114 : vector<32x256xf32>
      %c0_50 = arith.constant 0 : index
      %c0_51 = arith.constant 0 : index
      %116 = vector.load %arg6[%c0_50, %c0_51] : memref<32x256xf32, #tpu.memory_space<vmem>>, vector<32x256xf32>
      tpu.vector_store %arg6[%c0_50, %c0_51], %115 {strides = array<i32>} : memref<32x256xf32, #tpu.memory_space<vmem>>, vector<32x256xf32>,
    } else {
    }
    return
  }
  func.func @transform_0(%arg0: i32) -> (i32, i32) {
    %c0_i32 = arith.constant 0 : i32
    %c0_i32_0 = arith.constant 0 : i32
    return %arg0, %c0_i32 : i32, i32
  }
  func.func @transform_1(%arg0: i32) -> (i32, i32) {
    %c0_i32 = arith.constant 0 : i32
    %c0_i32_0 = arith.constant 0 : i32
    %c0_i32_1 = arith.constant 0 : i32
    return %c0_i32, %c0_i32_0 : i32, i32
  }
  func.func @transform_2(%arg0: i32) -> (i32, i32) {
    %c0_i32 = arith.constant 0 : i32
    %c0_i32_0 = arith.constant 0 : i32
    %c0_i32_1 = arith.constant 0 : i32
    return %c0_i32, %c0_i32_0 : i32, i32
  }
  func.func @transform_3(%arg0: i32) -> (i32, i32) {
    %c0_i32 = arith.constant 0 : i32
    %c0_i32_0 = arith.constant 0 : i32
    %c0_i32_1 = arith.constant 0 : i32
    return %c0_i32, %c0_i32_0 : i32, i32
  }
  func.func @transform_4(%arg0: i32) -> (i32, i32) {
    %c0_i32 = arith.constant 0 : i32
    %c0_i32_0 = arith.constant 0 : i32
    %c0_i32_1 = arith.constant 0 : i32
    return %c0_i32, %c0_i32_0 : i32, i32
  }
  func.func @transform_5(%arg0: i32) -> (i32, i32) {
    %c0_i32 = arith.constant 0 : i32
    %c0_i32_0 = arith.constant 0 : i32
    %c0_i32_1 = arith.constant 0 : i32
    return %c0_i32, %c0_i32_0 : i32, i32
  }
}

module attributes {stable_mosaic.version = 11 : i64} {
  func.func @_stage_kernel(%arg0: i32, %arg1: memref<8x1024xf32, #tpu.memory_space<vmem>>, %arg2: memref<1024x512xf32, #tpu.memory_space<vmem>>, %arg3: memref<1x512xf32, #tpu.memory_space<vmem>>, %arg4: memref<1x512xf32, #tpu.memory_space<vmem>>, %arg5: memref<1x512xf32, #tpu.memory_space<vmem>>, %arg6: memref<1x512xf32, #tpu.memory_space<vmem>>, %arg7: memref<1x1xf32, #tpu.memory_space<vmem>>, %arg8: memref<2x1xf32, #tpu.memory_space<vmem>>, %arg9: memref<8x512xf32, #tpu.memory_space<vmem>>, %arg10: memref<1x512xf32, #tpu.memory_space<vmem>>, %arg11: memref<1x512xf32, #tpu.memory_space<vmem>>) attributes {dimension_semantics = [#tpu.dimension_semantics<arbitrary>], iteration_bounds = array<i64: 1>, scalar_prefetch = 0 : i64, scratch_operands = 3 : i64, tpu.core_type = #tpu.core_type<tc>, window_params = [{transform_indices = @transform_0, window_bounds = array<i64: 8, 1024>}, {pipeline_mode = #tpu.pipeline_mode<synchronous>, transform_indices = @transform_1, window_bounds = array<i64: 1024, 512>}, {pipeline_mode = #tpu.pipeline_mode<synchronous>, transform_indices = @transform_2, window_bounds = array<i64: 1, 512>}, {pipeline_mode = #tpu.pipeline_mode<synchronous>, transform_indices = @transform_3, window_bounds = array<i64: 1, 512>}, {pipeline_mode = #tpu.pipeline_mode<synchronous>, transform_indices = @transform_4, window_bounds = array<i64: 1, 512>}, {pipeline_mode = #tpu.pipeline_mode<synchronous>, transform_indices = @transform_5, window_bounds = array<i64: 1, 512>}, {pipeline_mode = #tpu.pipeline_mode<synchronous>, transform_indices = @transform_6, window_bounds = array<i64: 1, 1>}, {pipeline_mode = #tpu.pipeline_mode<synchronous>, transform_indices = @transform_7, window_bounds = array<i64: 2, 1>}]} {
    %c0_i32 = arith.constant 0 : i32
    %0 = arith.cmpi eq, %arg0, %c0_i32 : i32
    %1 = arith.extui %0 : i1 to i32
    %c0_i32_0 = arith.constant 0 : i32
    %2 = arith.cmpi ne, %1, %c0_i32_0 : i32
    scf.if %2 {
      %cst_19 = arith.constant 0.000000e+00 : f32
      %27 = vector.broadcast %cst_19 : f32 to vector<1x512xf32>
      %c0_20 = arith.constant 0 : index
      %c0_21 = arith.constant 0 : index
      %28 = vector.load %arg10[%c0_20, %c0_21] : memref<1x512xf32, #tpu.memory_space<vmem>>, vector<1x512xf32>
      tpu.vector_store %arg10[%c0_20, %c0_21], %27 {strides = array<i32>} : memref<1x512xf32, #tpu.memory_space<vmem>>, vector<1x512xf32>,
      %cst_22 = arith.constant 0.000000e+00 : f32
      %29 = vector.broadcast %cst_22 : f32 to vector<1x512xf32>
      %c0_23 = arith.constant 0 : index
      %c0_24 = arith.constant 0 : index
      %30 = vector.load %arg11[%c0_23, %c0_24] : memref<1x512xf32, #tpu.memory_space<vmem>>, vector<1x512xf32>
      tpu.vector_store %arg11[%c0_23, %c0_24], %29 {strides = array<i32>} : memref<1x512xf32, #tpu.memory_space<vmem>>, vector<1x512xf32>,
    } else {
    }
    %c0 = arith.constant 0 : index
    %c0_1 = arith.constant 0 : index
    %3 = vector.load %arg1[%c0, %c0_1] : memref<8x1024xf32, #tpu.memory_space<vmem>>, vector<8x1024xf32>
    %c0_2 = arith.constant 0 : index
    %c0_3 = arith.constant 0 : index
    %4 = vector.load %arg2[%c0_2, %c0_3] : memref<1024x512xf32, #tpu.memory_space<vmem>>, vector<1024x512xf32>
    %cst = arith.constant dense<0.000000e+00> : vector<8x512xf32>
    %5 = tpu.matmul %3, %4, %cst {dimension_numbers = #tpu.dot_dimension_numbers<[1], [0], [0], [1], [0, 0, 1, 1], [], []>} : vector<8x1024xf32>, vector<1024x512xf32>, vector<8x512xf32> -> vector<8x512xf32>
    %c0_4 = arith.constant 0 : index
    %c0_5 = arith.constant 0 : index
    %6 = vector.load %arg3[%c0_4, %c0_5] : memref<1x512xf32, #tpu.memory_space<vmem>>, vector<1x512xf32>
    %7 = vector.broadcast %6 : vector<1x512xf32> to vector<8x512xf32>
    %8 = arith.addf %5, %7 : vector<8x512xf32>
    %c8_i32 = arith.constant 8 : i32
    %9 = arith.muli %arg0, %c8_i32 : i32
    %10 = tpu.assume_multiple %9, 8 : i32
    %11 = arith.index_cast %10 : i32 to index
    %c0_6 = arith.constant 0 : index
    %12 = vector.load %arg9[%11, %c0_6] : memref<8x512xf32, #tpu.memory_space<vmem>>, vector<8x512xf32>
    tpu.vector_store %arg9[%11, %c0_6], %8 {strides = array<i32>} : memref<8x512xf32, #tpu.memory_space<vmem>>, vector<8x512xf32>,
    %c0_7 = arith.constant 0 : index
    %c0_8 = arith.constant 0 : index
    %13 = vector.load %arg10[%c0_7, %c0_8] : memref<1x512xf32, #tpu.memory_space<vmem>>, vector<1x512xf32>
    %cst_9 = arith.constant dense<0.000000e+00> : vector<512xf32>
    %14 = vector.multi_reduction <add>, %8, %cst_9 [0] : vector<8x512xf32> to vector<512xf32>
    %15 = vector.shape_cast %14 : vector<512xf32> to vector<1x512xf32>
    %16 = arith.addf %13, %15 : vector<1x512xf32>
    %c0_10 = arith.constant 0 : index
    %c0_11 = arith.constant 0 : index
    %17 = vector.load %arg10[%c0_10, %c0_11] : memref<1x512xf32, #tpu.memory_space<vmem>>, vector<1x512xf32>
    tpu.vector_store %arg10[%c0_10, %c0_11], %16 {strides = array<i32>} : memref<1x512xf32, #tpu.memory_space<vmem>>, vector<1x512xf32>,
    %c0_12 = arith.constant 0 : index
    %c0_13 = arith.constant 0 : index
    %18 = vector.load %arg11[%c0_12, %c0_13] : memref<1x512xf32, #tpu.memory_space<vmem>>, vector<1x512xf32>
    %19 = arith.mulf %8, %8 : vector<8x512xf32>
    %cst_14 = arith.constant dense<0.000000e+00> : vector<512xf32>
    %20 = vector.multi_reduction <add>, %19, %cst_14 [0] : vector<8x512xf32> to vector<512xf32>
    %21 = vector.shape_cast %20 : vector<512xf32> to vector<1x512xf32>
    %22 = arith.addf %18, %21 : vector<1x512xf32>
    %c0_15 = arith.constant 0 : index
    %c0_16 = arith.constant 0 : index
    %23 = vector.load %arg11[%c0_15, %c0_16] : memref<1x512xf32, #tpu.memory_space<vmem>>, vector<1x512xf32>
    tpu.vector_store %arg11[%c0_15, %c0_16], %22 {strides = array<i32>} : memref<1x512xf32, #tpu.memory_space<vmem>>, vector<1x512xf32>,
    %c0_i32_17 = arith.constant 0 : i32
    %24 = arith.cmpi eq, %arg0, %c0_i32_17 : i32
    %25 = arith.extui %24 : i1 to i32
    %c0_i32_18 = arith.constant 0 : i32
    %26 = arith.cmpi ne, %25, %c0_i32_18 : i32
    scf.if %26 {
      %c0_19 = arith.constant 0 : index
      %c0_20 = arith.constant 0 : index
      %27 = vector.load %arg10[%c0_19, %c0_20] : memref<1x512xf32, #tpu.memory_space<vmem>>, vector<1x512xf32>
      %cst_21 = arith.constant 1.250000e-01 : f32
      %28 = vector.broadcast %cst_21 : f32 to vector<1x512xf32>
      %29 = arith.mulf %27, %28 : vector<1x512xf32>
      %c0_22 = arith.constant 0 : index
      %c0_23 = arith.constant 0 : index
      %30 = vector.load %arg11[%c0_22, %c0_23] : memref<1x512xf32, #tpu.memory_space<vmem>>, vector<1x512xf32>
      %cst_24 = arith.constant 1.250000e-01 : f32
      %31 = vector.broadcast %cst_24 : f32 to vector<1x512xf32>
      %32 = arith.mulf %30, %31 : vector<1x512xf32>
      %33 = arith.mulf %29, %29 : vector<1x512xf32>
      %34 = arith.subf %32, %33 : vector<1x512xf32>
      %c0_25 = arith.constant 0 : index
      %c0_26 = arith.constant 0 : index
      %35 = vector.load %arg4[%c0_25, %c0_26] : memref<1x512xf32, #tpu.memory_space<vmem>>, vector<1x512xf32>
      %cst_27 = arith.constant 9.99999974E-6 : f32
      %36 = vector.broadcast %cst_27 : f32 to vector<1x512xf32>
      %37 = arith.addf %34, %36 : vector<1x512xf32>
      %38 = math.rsqrt %37 : vector<1x512xf32>
      %39 = arith.mulf %35, %38 : vector<1x512xf32>
      %c0_28 = arith.constant 0 : index
      %c0_29 = arith.constant 0 : index
      %40 = vector.load %arg5[%c0_28, %c0_29] : memref<1x512xf32, #tpu.memory_space<vmem>>, vector<1x512xf32>
      %41 = arith.mulf %29, %39 : vector<1x512xf32>
      %42 = arith.subf %40, %41 : vector<1x512xf32>
      %cst_30 = arith.constant 0.000000e+00 : f32
      %43 = vector.broadcast %cst_30 : f32 to vector<2x512xf32>
      %c0_31 = arith.constant 0 : index
      %c0_32 = arith.constant 0 : index
      %44 = vector.load %arg9[%c0_31, %c0_32] : memref<8x512xf32, #tpu.memory_space<vmem>>, vector<2x512xf32>
      %45 = vector.broadcast %39 : vector<1x512xf32> to vector<2x512xf32>
      %46 = arith.mulf %44, %45 : vector<2x512xf32>
      %47 = vector.broadcast %42 : vector<1x512xf32> to vector<2x512xf32>
      %48 = arith.addf %46, %47 : vector<2x512xf32>
      %cst_33 = arith.constant 0.000000e+00 : f32
      %49 = vector.broadcast %cst_33 : f32 to vector<2x512xf32>
      %50 = arith.maximumf %48, %49 : vector<2x512xf32>
      %51 = arith.maximumf %43, %50 : vector<2x512xf32>
      %c2 = arith.constant 2 : index
      %c0_34 = arith.constant 0 : index
      %52 = vector.load %arg9[%c2, %c0_34] : memref<8x512xf32, #tpu.memory_space<vmem>>, vector<2x512xf32>
      %53 = vector.broadcast %39 : vector<1x512xf32> to vector<2x512xf32>
      %54 = arith.mulf %52, %53 : vector<2x512xf32>
      %55 = vector.broadcast %42 : vector<1x512xf32> to vector<2x512xf32>
      %56 = arith.addf %54, %55 : vector<2x512xf32>
      %cst_35 = arith.constant 0.000000e+00 : f32
      %57 = vector.broadcast %cst_35 : f32 to vector<2x512xf32>
      %58 = arith.maximumf %56, %57 : vector<2x512xf32>
      %59 = arith.maximumf %51, %58 : vector<2x512xf32>
      %c4 = arith.constant 4 : index
      %c0_36 = arith.constant 0 : index
      %60 = vector.load %arg9[%c4, %c0_36] : memref<8x512xf32, #tpu.memory_space<vmem>>, vector<2x512xf32>
      %61 = vector.broadcast %39 : vector<1x512xf32> to vector<2x512xf32>
      %62 = arith.mulf %60, %61 : vector<2x512xf32>
      %63 = vector.broadcast %42 : vector<1x512xf32> to vector<2x512xf32>
      %64 = arith.addf %62, %63 : vector<2x512xf32>
      %cst_37 = arith.constant 0.000000e+00 : f32
      %65 = vector.broadcast %cst_37 : f32 to vector<2x512xf32>
      %66 = arith.maximumf %64, %65 : vector<2x512xf32>
      %67 = arith.maximumf %59, %66 : vector<2x512xf32>
      %c6 = arith.constant 6 : index
      %c0_38 = arith.constant 0 : index
      %68 = vector.load %arg9[%c6, %c0_38] : memref<8x512xf32, #tpu.memory_space<vmem>>, vector<2x512xf32>
      %69 = vector.broadcast %39 : vector<1x512xf32> to vector<2x512xf32>
      %70 = arith.mulf %68, %69 : vector<2x512xf32>
      %71 = vector.broadcast %42 : vector<1x512xf32> to vector<2x512xf32>
      %72 = arith.addf %70, %71 : vector<2x512xf32>
      %cst_39 = arith.constant 0.000000e+00 : f32
      %73 = vector.broadcast %cst_39 : f32 to vector<2x512xf32>
      %74 = arith.maximumf %72, %73 : vector<2x512xf32>
      %75 = arith.maximumf %67, %74 : vector<2x512xf32>
      %c0_40 = arith.constant 0 : index
      %c0_41 = arith.constant 0 : index
      %76 = vector.load %arg6[%c0_40, %c0_41] : memref<1x512xf32, #tpu.memory_space<vmem>>, vector<1x512xf32>
      %77 = vector.broadcast %76 : vector<1x512xf32> to vector<2x512xf32>
      %78 = arith.mulf %75, %77 : vector<2x512xf32>
      %cst_42 = arith.constant dense<0.000000e+00> : vector<2xf32>
      %79 = vector.multi_reduction <add>, %78, %cst_42 [1] : vector<2x512xf32> to vector<2xf32>
      %80 = vector.shape_cast %79 : vector<2xf32> to vector<2x1xf32>
      %c0_43 = arith.constant 0 : index
      %c0_44 = arith.constant 0 : index
      %81 = vector.load %arg7[%c0_43, %c0_44] : memref<1x1xf32, #tpu.memory_space<vmem>>, vector<1x1xf32>
      %82 = vector.broadcast %81 : vector<1x1xf32> to vector<2x1xf32>
      %83 = arith.addf %80, %82 : vector<2x1xf32>
      %cst_45 = arith.constant 5.000000e-01 : f32
      %84 = vector.broadcast %cst_45 : f32 to vector<2x1xf32>
      %85 = arith.mulf %84, %83 : vector<2x1xf32>
      %86 = math.tanh %85 : vector<2x1xf32>
      %cst_46 = arith.constant 1.000000e+00 : f32
      %87 = vector.broadcast %cst_46 : f32 to vector<2x1xf32>
      %88 = arith.addf %86, %87 : vector<2x1xf32>
      %cst_47 = arith.constant 5.000000e-01 : f32
      %89 = vector.broadcast %cst_47 : f32 to vector<2x1xf32>
      %90 = arith.mulf %89, %88 : vector<2x1xf32>
      %c0_48 = arith.constant 0 : index
      %c0_49 = arith.constant 0 : index
      %91 = vector.load %arg8[%c0_48, %c0_49] : memref<2x1xf32, #tpu.memory_space<vmem>>, vector<2x1xf32>
      tpu.vector_store %arg8[%c0_48, %c0_49], %90 {strides = array<i32>} : memref<2x1xf32, #tpu.memory_space<vmem>>, vector<2x1xf32>,
    } else {
    }
    return
  }
  func.func @transform_0(%arg0: i32) -> (i32, i32) {
    %c0_i32 = arith.constant 0 : i32
    %c0_i32_0 = arith.constant 0 : i32
    return %arg0, %c0_i32 : i32, i32
  }
  func.func @transform_1(%arg0: i32) -> (i32, i32) {
    %c0_i32 = arith.constant 0 : i32
    %c0_i32_0 = arith.constant 0 : i32
    %c0_i32_1 = arith.constant 0 : i32
    return %c0_i32, %c0_i32_0 : i32, i32
  }
  func.func @transform_2(%arg0: i32) -> (i32, i32) {
    %c0_i32 = arith.constant 0 : i32
    %c0_i32_0 = arith.constant 0 : i32
    %c0_i32_1 = arith.constant 0 : i32
    return %c0_i32, %c0_i32_0 : i32, i32
  }
  func.func @transform_3(%arg0: i32) -> (i32, i32) {
    %c0_i32 = arith.constant 0 : i32
    %c0_i32_0 = arith.constant 0 : i32
    %c0_i32_1 = arith.constant 0 : i32
    return %c0_i32, %c0_i32_0 : i32, i32
  }
  func.func @transform_4(%arg0: i32) -> (i32, i32) {
    %c0_i32 = arith.constant 0 : i32
    %c0_i32_0 = arith.constant 0 : i32
    %c0_i32_1 = arith.constant 0 : i32
    return %c0_i32, %c0_i32_0 : i32, i32
  }
  func.func @transform_5(%arg0: i32) -> (i32, i32) {
    %c0_i32 = arith.constant 0 : i32
    %c0_i32_0 = arith.constant 0 : i32
    %c0_i32_1 = arith.constant 0 : i32
    return %c0_i32, %c0_i32_0 : i32, i32
  }
  func.func @transform_6(%arg0: i32) -> (i32, i32) {
    %c0_i32 = arith.constant 0 : i32
    %c0_i32_0 = arith.constant 0 : i32
    %c0_i32_1 = arith.constant 0 : i32
    return %c0_i32, %c0_i32_0 : i32, i32
  }
  func.func @transform_7(%arg0: i32) -> (i32, i32) {
    %c0_i32 = arith.constant 0 : i32
    %c0_i32_0 = arith.constant 0 : i32
    %c0_i32_1 = arith.constant 0 : i32
    return %c0_i32, %c0_i32_0 : i32, i32
  }
}

</mosaic_0001>

<bundles_post_ra>
// kernel: discriminator3_forward.3
= control target key start
LH: loop header
LB: loop body
LE: loop exit
PB: predicated region body
PF: predicated region fallthrough
CT: control target
= control target key end

     0   :  { %s3663_s18 = smov 0   ;;  %s5464_s0 = inlined_call_operand.vmem [shape: f32[3528,128], index: 0, kind: input, shape index: {}]   ;;  %s5465_s1 = inlined_call_operand.vmem [shape: f32[128,128], index: 1, kind: input, shape index: {}]   ;;  %s5466_s2 = inlined_call_operand.vmem [shape: f32[1,128], index: 2, kind: input, shape index: {}]   ;;  %s5467_s3 = inlined_call_operand.vmem [shape: f32[1,128], index: 3, kind: input, shape index: {}]   ;;  %s5468_s4 = inlined_call_operand.vmem [shape: f32[1,128], index: 4, kind: input, shape index: {}]   ;;  %s5469_s5 = inlined_call_operand.vmem [shape: f32[392,128], index: 5, kind: output, shape index: {}]  }
   0x1 LB: > { %s3669_s19 = sadd.s32 4294967295, %s3628_s18   ;;  %p3270_p0 = scmp.ge.s32.totalorder %s3628_s18, 1  ;;  %s3628_s18 = sphi %s3663_s18, %s15_s18  }
   0x2   : > { %p183_p1 = scmp.lt.s32.totalorder %s3628_s18, 8 }
   0x4   : > { %p184_p2 = pnand %p3270_p0, %p183_p1 }
   0x5   : > { %s206_s20 = smul.u32 (!%p184_p2), 63, %s3669_s19  ;;  %p3272_p4 = scmp.ne.s32.totalorder (!%p184_p2), %s3669_s19, 0 }
   0x6   : > { %187 = sbr.rel (%p184_p2) target bundleno = 934 (0x3a6), region = 40 }
   0x7   : > { %p207_p3 = scmp.lt.s32.totalorder (!%p184_p2), %s206_s20, 440 }
   0xb   : > { %s5471_s20 = smov (!%p207_p3, %s206_s20), 440  ;;  %215 = sbr.rel (%p3272_p4) target bundleno = 18 (0x12), region = 44 }
   0xc   : > { %s3271_s21 = sshll.u32 %s5471_s20, 3 }
   0xd   : > { %s3677_s24 = scalar_lea.vmem %s5464_s0, %s3271_s21 }
  0x10   : > { %v3630_v0 = vmov 0.0  }
  0x11   : > { %216 = vst [vmem:[#allocation3] sm:$0x1] %v3630_v0  ;;  %217 = vst [vmem:[#allocation4] sm:$0x1] %v3630_v0 }
  0x12 PF: > { %v296_v1 = vld [vmem:[%s5465_s1 + $0x78] sm:$0xff]  ;;  %v3631_v2 = vmov 0.0   ;;  %v295_v3 = vld [vmem:[%s5465_s1 + $0x70] sm:$0xff]  ;;  %vm3632_vm0 = vmmov 0   ;;  %v294_v4 = vld [vmem:[%s5465_s1 + $0x68] sm:$0xff]  ;;  %s684_s10 = smul.u32 504, %s3669_s19 }
  0x13   : > { %3356 = vmatprep.subr.mxu0 %v3631_v2  ;;  %3388 = vmatprep.mubr.msk.f32.mxu0 %vm3632_vm0, %v3631_v2  ;;  %v293_v5 = vld [vmem:[%s5465_s1 + $0x60] sm:$0xff]  ;;  %v292_v6 = vld [vmem:[%s5465_s1 + $0x58] sm:$0xff]  ;;  %v291_v7 = vld [vmem:[%s5465_s1 + $0x50] sm:$0xff]  ;;  %p3274_p5 = scmp.ne.s32.totalorder %s3669_s19, 6 }
  0x14   : > { %3357 = vmatpush3.msra.mxu0 %v296_v1  ;;  %3577 = vmatprep.subr.mxu1 %v3631_v2  ;;  %v290_v8 = vld [vmem:[%s5465_s1 + $0x48] sm:$0xff]  ;;  %v289_v9 = vld [vmem:[%s5465_s1 + $0x40] sm:$0xff]  ;;  %v288_v10 = vld [vmem:[%s5465_s1 + $0x38] sm:$0xff]  ;;  %s3958_s13 = scalar_lea.vmem [#allocation2], %s684_s10 }
  0x15   : > { %3358 = vmatprep.subr.mxu0 %v3631_v2  ;;  %3593 = vmatpush3.msra.mxu1 %v296_v1  ;;  %v287_v11 = vld [vmem:[%s5465_s1 + $0x30] sm:$0xff]  ;;  %v286_v12 = vld [vmem:[%s5465_s1 + $0x28] sm:$0xff]  ;;  %v285_v13 = vld [vmem:[%s5465_s1 + $0x20] sm:$0xff] }
  0x16   : > { %3359 = vmatpush3.msra.mxu0 %v295_v3  ;;  %3578 = vmatprep.subr.mxu1 %v3631_v2  ;;  %v284_v14 = vld [vmem:[%s5465_s1 + $0x18] sm:$0xff]  ;;  %v283_v15 = vld [vmem:[%s5465_s1 + $0x10] sm:$0xff]  ;;  %v282_v16 = vld [vmem:[%s5465_s1 + $0x8] sm:$0xff] }
  0x17   : > { %3360 = vmatprep.subr.mxu0 %v3631_v2  ;;  %3594 = vmatpush3.msra.mxu1 %v295_v3  ;;  %v281_v17 = vld [vmem:[%s5465_s1] sm:$0xff]  ;;  %v219_v20 = vld [vmem:[%s3677_s24 + $0x8] sm:$0xff]  ;;  %v220_v22 = vld [vmem:[%s3677_s24 + $0x10] sm:$0xff] }
  0x18   : > { %3361 = vmatpush3.msra.mxu0 %v294_v4  ;;  %3579 = vmatprep.subr.mxu1 %v3631_v2  ;;  %v218_v18 = vld [vmem:[%s3677_s24] sm:$0xff]  ;;  %v251_v21 = vld [vmem:[%s3677_s24 + $0x108] sm:$0xff]  ;;  %v252_v23 = vld [vmem:[%s3677_s24 + $0x110] sm:$0xff] }
  0x19   : > { %3362 = vmatprep.subr.mxu0 %v3631_v2  ;;  %3595 = vmatpush3.msra.mxu1 %v294_v4  ;;  %v250_v19 = vld [vmem:[%s3677_s24 + $0x100] sm:$0xff]  ;;  %v221_v24 = vld [vmem:[%s3677_s24 + $0x18] sm:$0xff]  ;;  %v223_v28 = vld [vmem:[%s3677_s24 + $0x28] sm:$0xff] }
  0x1a   : > { %3363 = vmatpush3.msra.mxu0 %v293_v5  ;;  %3580 = vmatprep.subr.mxu1 %v3631_v2  ;;  %v253_v25 = vld [vmem:[%s3677_s24 + $0x118] sm:$0xff]  ;;  %v222_v26 = vld [vmem:[%s3677_s24 + $0x20] sm:$0xff]  ;;  %v255_v29 = vld [vmem:[%s3677_s24 + $0x128] sm:$0xff] }
  0x1b   : > { %3364 = vmatprep.subr.mxu0 %v3631_v2  ;;  %3596 = vmatpush3.msra.mxu1 %v293_v5  ;;  %v254_v27 = vld [vmem:[%s3677_s24 + $0x120] sm:$0xff]  ;;  %v224_v30 = vld [vmem:[%s3677_s24 + $0x30] sm:$0xff]  ;;  %v225_v32 = vld [vmem:[%s3677_s24 + $0x38] sm:$0xff] }
  0x1c   : > { %3365 = vmatpush3.msra.mxu0 %v292_v6  ;;  %3581 = vmatprep.subr.mxu1 %v3631_v2  ;;  %v256_v31 = vld [vmem:[%s3677_s24 + $0x130] sm:$0xff]  ;;  %v257_v33 = vld [vmem:[%s3677_s24 + $0x138] sm:$0xff]  ;;  %v226_v34 = vld [vmem:[%s3677_s24 + $0x40] sm:$0xff] }
  0x1d   : > { %3366 = vmatprep.subr.mxu0 %v3631_v2  ;;  %3597 = vmatpush3.msra.mxu1 %v292_v6  ;;  %v258_v35 = vld [vmem:[%s3677_s24 + $0x140] sm:$0xff]  ;;  %v227_v36 = vld [vmem:[%s3677_s24 + $0x48] sm:$0xff]  ;;  %v228_v38 = vld [vmem:[%s3677_s24 + $0x50] sm:$0xff] }
  0x1e   : > { %3367 = vmatpush3.msra.mxu0 %v291_v7  ;;  %3582 = vmatprep.subr.mxu1 %v3631_v2  ;;  %v259_v37 = vld [vmem:[%s3677_s24 + $0x148] sm:$0xff]  ;;  %v260_v39 = vld [vmem:[%s3677_s24 + $0x150] sm:$0xff]  ;;  %v229_v40 = vld [vmem:[%s3677_s24 + $0x58] sm:$0xff] }
  0x1f   : > { %3368 = vmatprep.subr.mxu0 %v3631_v2  ;;  %3598 = vmatpush3.msra.mxu1 %v291_v7  ;;  %v261_v41 = vld [vmem:[%s3677_s24 + $0x158] sm:$0xff]  ;;  %v230_v42 = vld [vmem:[%s3677_s24 + $0x60] sm:$0xff]  ;;  %v231_v44 = vld [vmem:[%s3677_s24 + $0x68] sm:$0xff] }
  0x20   : > { %3369 = vmatpush3.msra.mxu0 %v290_v8  ;;  %3583 = vmatprep.subr.mxu1 %v3631_v2  ;;  %v262_v43 = vld [vmem:[%s3677_s24 + $0x160] sm:$0xff]  ;;  %v263_v45 = vld [vmem:[%s3677_s24 + $0x168] sm:$0xff]  ;;  %v232_v46 = vld [vmem:[%s3677_s24 + $0x70] sm:$0xff] }
  0x21   : > { %3370 = vmatprep.subr.mxu0 %v3631_v2  ;;  %3599 = vmatpush3.msra.mxu1 %v290_v8  ;;  %v264_v47 = vld [vmem:[%s3677_s24 + $0x170] sm:$0xff]  ;;  %v233_v48 = vld [vmem:[%s3677_s24 + $0x78] sm:$0xff]  ;;  %v234_v50 = vld [vmem:[%s3677_s24 + $0x80] sm:$0xff] }
  0x22   : > { %3371 = vmatpush3.msra.mxu0 %v289_v9  ;;  %3584 = vmatprep.subr.mxu1 %v3631_v2  ;;  %v265_v49 = vld [vmem:[%s3677_s24 + $0x178] sm:$0xff]  ;;  %v266_v51 = vld [vmem:[%s3677_s24 + $0x180] sm:$0xff]  ;;  %v235_v52 = vld [vmem:[%s3677_s24 + $0x88] sm:$0xff] }
  0x23   : > { %3372 = vmatprep.subr.mxu0 %v3631_v2  ;;  %3600 = vmatpush3.msra.mxu1 %v289_v9  ;;  %v267_v53 = vld [vmem:[%s3677_s24 + $0x188] sm:$0xff]  ;;  %v236_v54 = vld [vmem:[%s3677_s24 + $0x90] sm:$0xff]  ;;  %v237_v56 = vld [vmem:[%s3677_s24 + $0x98] sm:$0xff] }
  0x24   : > { %3373 = vmatpush3.msra.mxu0 %v288_v10  ;;  %3585 = vmatprep.subr.mxu1 %v3631_v2  ;;  %v268_v55 = vld [vmem:[%s3677_s24 + $0x190] sm:$0xff]  ;;  %v269_v57 = vld [vmem:[%s3677_s24 + $0x198] sm:$0xff]  ;;  %v238_v58 = vld [vmem:[%s3677_s24 + $0xa0] sm:$0xff] }
  0x25   : > { %3374 = vmatprep.subr.mxu0 %v3631_v2  ;;  %3601 = vmatpush3.msra.mxu1 %v288_v10  ;;  %v270_v59 = vld [vmem:[%s3677_s24 + $0x1a0] sm:$0xff]  ;;  %v239_v60 = vld [vmem:[%s3677_s24 + $0xa8] sm:$0xff]  ;;  %v240_v62 = vld [vmem:[%s3677_s24 + $0xb0] sm:$0xff] }
  0x26   : > { %3375 = vmatpush3.msra.mxu0 %v287_v11  ;;  %3586 = vmatprep.subr.mxu1 %v3631_v2  ;;  %v271_v61 = vld [vmem:[%s3677_s24 + $0x1a8] sm:$0xff]  ;;  %v272_v63 = vld [vmem:[%s3677_s24 + $0x1b0] sm:$0xff]  ;;  %v241_v0 = vld [vmem:[%s3677_s24 + $0xb8] sm:$0xff] }
  0x27   : > { %3376 = vmatprep.subr.mxu0 %v3631_v2  ;;  %3602 = vmatpush3.msra.mxu1 %v287_v11  ;;  %v273_v1 = vld [vmem:[%s3677_s24 + $0x1b8] sm:$0xff]  ;;  %v242_v3 = vld [vmem:[%s3677_s24 + $0xc0] sm:$0xff]  ;;  %v243_v5 = vld [vmem:[%s3677_s24 + $0xc8] sm:$0xff] }
  0x28   : > { %3377 = vmatpush3.msra.mxu0 %v286_v12  ;;  %3587 = vmatprep.subr.mxu1 %v3631_v2  ;;  %v274_v4 = vld [vmem:[%s3677_s24 + $0x1c0] sm:$0xff]  ;;  %v275_v6 = vld [vmem:[%s3677_s24 + $0x1c8] sm:$0xff]  ;;  %v244_v7 = vld [vmem:[%s3677_s24 + $0xd0] sm:$0xff] }
  0x29   : > { %3378 = vmatprep.subr.mxu0 %v3631_v2  ;;  %3603 = vmatpush3.msra.mxu1 %v286_v12  ;;  %v276_v8 = vld [vmem:[%s3677_s24 + $0x1d0] sm:$0xff]  ;;  %v245_v9 = vld [vmem:[%s3677_s24 + $0xd8] sm:$0xff]  ;;  %v246_v11 = vld [vmem:[%s3677_s24 + $0xe0] sm:$0xff] }
  0x2a   : > { %3379 = vmatpush3.msra.mxu0 %v285_v13  ;;  %3588 = vmatprep.subr.mxu1 %v3631_v2  ;;  %v277_v10 = vld [vmem:[%s3677_s24 + $0x1d8] sm:$0xff]  ;;  %v278_v12 = vld [vmem:[%s3677_s24 + $0x1e0] sm:$0xff] }
  0x2b   : > { %3380 = vmatprep.subr.mxu0 %v3631_v2  ;;  %3604 = vmatpush3.msra.mxu1 %v285_v13  ;;  %v247_v13 = vld [vmem:[%s3677_s24 + $0xe8] sm:$0xff] }
  0x2c   : > { %3381 = vmatpush3.msra.mxu0 %v284_v14  ;;  %3589 = vmatprep.subr.mxu1 %v3631_v2 }
  0x2d   : > { %3382 = vmatprep.subr.mxu0 %v3631_v2  ;;  %3605 = vmatpush3.msra.mxu1 %v284_v14  ;;  %v279_v14 = vld [vmem:[%s3677_s24 + $0x1e8] sm:$0xff] }
  0x2e   : > { %3383 = vmatpush3.msra.mxu0 %v283_v15  ;;  %3590 = vmatprep.subr.mxu1 %v3631_v2 }
  0x2f   : > { %3384 = vmatprep.subr.mxu0 %v3631_v2  ;;  %3606 = vmatpush3.msra.mxu1 %v283_v15  ;;  %v248_v15 = vld [vmem:[%s3677_s24 + $0xf0] sm:$0xff] }
  0x30   : > { %3385 = vmatpush3.msra.mxu0 %v282_v16  ;;  %3591 = vmatprep.subr.mxu1 %v3631_v2 }
  0x31   : > { %3386 = vmatprep.subr.mxu0 %v3631_v2  ;;  %3607 = vmatpush3.msra.mxu1 %v282_v16  ;;  %v280_v16 = vld [vmem:[%s3677_s24 + $0x1f0] sm:$0xff] }
  0x32   : > { %3387 = vmatpush3.msra.mxu0 %v281_v17  ;;  %3592 = vmatprep.subr.mxu1 %v3631_v2 }
  0x33   : > { %3389 = vmatmul.mubr.f32.vlgmr.msra.gmra.mxu0 %v218_v18  ;;  %3608 = vmatpush3.msra.mxu1 %v281_v17  ;;  %v249_v17 = vld [vmem:[%s3677_s24 + $0xf8] sm:$0xff]  ;;  %v3953_v18 = vld [vmem:[%s5466_s2] ss:$0 sm:$0xff] }
  0x34   : > { %3391 = vmatprep.mubr.msk.f32.mxu0 %vm3632_vm0, %v3631_v2  ;;  %3484 = vmatprep.mubr.msk.f32.mxu1 %vm3632_vm0, %v3631_v2 }
  0x35   : > { %3485 = vmatmul.mubr.f32.vlgmr.msra.gmra.mxu1 %v250_v19 }
  0x36   : > { %3487 = vmatprep.mubr.msk.f32.mxu1 %vm3632_vm0, %v3631_v2 }
  0x37   : > { %3392 = vmatmul.mubr.f32.gmra.mxu0 %v219_v20 }
  0x38   : > { %3394 = vmatprep.mubr.msk.f32.mxu0 %vm3632_vm0, %v3631_v2 }
  0x39   : > { %3488 = vmatmul.mubr.f32.gmra.mxu1 %v251_v21 }
  0x3a   : > { %3490 = vmatprep.mubr.msk.f32.mxu1 %vm3632_vm0, %v3631_v2 }
  0x3b   : > { %3395 = vmatmul.mubr.f32.gmra.mxu0 %v220_v22 }
  0x3c   : > { %3397 = vmatprep.mubr.msk.f32.mxu0 %vm3632_vm0, %v3631_v2 }
  0x3d   : > { %3491 = vmatmul.mubr.f32.gmra.mxu1 %v252_v23 }
  0x3e   : > { %3493 = vmatprep.mubr.msk.f32.mxu1 %vm3632_vm0, %v3631_v2 }
  0x3f   : > { %3398 = vmatmul.mubr.f32.gmra.mxu0 %v221_v24 }
  0x40   : > { %3400 = vmatprep.mubr.msk.f32.mxu0 %vm3632_vm0, %v3631_v2 }
  0x41   : > { %3494 = vmatmul.mubr.f32.gmra.mxu1 %v253_v25 }
  0x42   : > { %3496 = vmatprep.mubr.msk.f32.mxu1 %vm3632_vm0, %v3631_v2 }
  0x43   : > { %3401 = vmatmul.mubr.f32.gmra.mxu0 %v222_v26 }
  0x44   : > { %3403 = vmatprep.mubr.msk.f32.mxu0 %vm3632_vm0, %v3631_v2 }
  0x45   : > { %3497 = vmatmul.mubr.f32.gmra.mxu1 %v254_v27 }
  0x46   : > { %3499 = vmatprep.mubr.msk.f32.mxu1 %vm3632_vm0, %v3631_v2 }
  0x47   : > { %3404 = vmatmul.mubr.f32.gmra.mxu0 %v223_v28 }
  0x48   : > { %3406 = vmatprep.mubr.msk.f32.mxu0 %vm3632_vm0, %v3631_v2 }
  0x49   : > { %3500 = vmatmul.mubr.f32.gmra.mxu1 %v255_v29 }
  0x4a   : > { %3502 = vmatprep.mubr.msk.f32.mxu1 %vm3632_vm0, %v3631_v2 }
  0x4b   : > { %3407 = vmatmul.mubr.f32.gmra.mxu0 %v224_v30 }
  0x4c   : > { %3409 = vmatprep.mubr.msk.f32.mxu0 %vm3632_vm0, %v3631_v2 }
  0x4d   : > { %3503 = vmatmul.mubr.f32.gmra.mxu1 %v256_v31 }
  0x4e   : > { %3505 = vmatprep.mubr.msk.f32.mxu1 %vm3632_vm0, %v3631_v2 }
  0x4f   : > { %3410 = vmatmul.mubr.f32.gmra.mxu0 %v225_v32 }
  0x50   : > { %3412 = vmatprep.mubr.msk.f32.mxu0 %vm3632_vm0, %v3631_v2 }
  0x51   : > { %3506 = vmatmul.mubr.f32.gmra.mxu1 %v257_v33 }
  0x52   : > { %3508 = vmatprep.mubr.msk.f32.mxu1 %vm3632_vm0, %v3631_v2 }
  0x53   : > { %3413 = vmatmul.mubr.f32.gmra.mxu0 %v226_v34 }
  0x54   : > { %3415 = vmatprep.mubr.msk.f32.mxu0 %vm3632_vm0, %v3631_v2 }
  0x55   : > { %3509 = vmatmul.mubr.f32.gmra.mxu1 %v258_v35 }
  0x56   : > { %3511 = vmatprep.mubr.msk.f32.mxu1 %vm3632_vm0, %v3631_v2 }
  0x57   : > { %3416 = vmatmul.mubr.f32.gmra.mxu0 %v227_v36 }
  0x58   : > { %3418 = vmatprep.mubr.msk.f32.mxu0 %vm3632_vm0, %v3631_v2 }
  0x59   : > { %3512 = vmatmul.mubr.f32.gmra.mxu1 %v259_v37 }
  0x5a   : > { %3514 = vmatprep.mubr.msk.f32.mxu1 %vm3632_vm0, %v3631_v2 }
  0x5b   : > { %3419 = vmatmul.mubr.f32.gmra.mxu0 %v228_v38 }
  0x5c   : > { %3421 = vmatprep.mubr.msk.f32.mxu0 %vm3632_vm0, %v3631_v2 }
  0x5d   : > { %3515 = vmatmul.mubr.f32.gmra.mxu1 %v260_v39 }
  0x5e   : > { %3517 = vmatprep.mubr.msk.f32.mxu1 %vm3632_vm0, %v3631_v2 }
  0x5f   : > { %3422 = vmatmul.mubr.f32.gmra.mxu0 %v229_v40 }
  0x60   : > { %3424 = vmatprep.mubr.msk.f32.mxu0 %vm3632_vm0, %v3631_v2 }
  0x61   : > { %3518 = vmatmul.mubr.f32.gmra.mxu1 %v261_v41 }
  0x62   : > { %3520 = vmatprep.mubr.msk.f32.mxu1 %vm3632_vm0, %v3631_v2 }
  0x63   : > { %3425 = vmatmul.mubr.f32.gmra.mxu0 %v230_v42 }
  0x64   : > { %3427 = vmatprep.mubr.msk.f32.mxu0 %vm3632_vm0, %v3631_v2 }
  0x65   : > { %3521 = vmatmul.mubr.f32.gmra.mxu1 %v262_v43 }
  0x66   : > { %3523 = vmatprep.mubr.msk.f32.mxu1 %vm3632_vm0, %v3631_v2 }
  0x67   : > { %3428 = vmatmul.mubr.f32.gmra.mxu0 %v231_v44 }
  0x68   : > { %3430 = vmatprep.mubr.msk.f32.mxu0 %vm3632_vm0, %v3631_v2 }
  0x69   : > { %3524 = vmatmul.mubr.f32.gmra.mxu1 %v263_v45 }
  0x6a   : > { %3526 = vmatprep.mubr.msk.f32.mxu1 %vm3632_vm0, %v3631_v2 }
  0x6b   : > { %3431 = vmatmul.mubr.f32.gmra.mxu0 %v232_v46 }
  0x6c   : > { %3433 = vmatprep.mubr.msk.f32.mxu0 %vm3632_vm0, %v3631_v2 }
  0x6d   : > { %3527 = vmatmul.mubr.f32.gmra.mxu1 %v264_v47 }
  0x6e   : > { %3529 = vmatprep.mubr.msk.f32.mxu1 %vm3632_vm0, %v3631_v2 }
  0x6f   : > { %3434 = vmatmul.mubr.f32.gmra.mxu0 %v233_v48 }
  0x70   : > { %3436 = vmatprep.mubr.msk.f32.mxu0 %vm3632_vm0, %v3631_v2 }
  0x71   : > { %3530 = vmatmul.mubr.f32.gmra.mxu1 %v265_v49 }
  0x72   : > { %3532 = vmatprep.mubr.msk.f32.mxu1 %vm3632_vm0, %v3631_v2 }
  0x73   : > { %3437 = vmatmul.mubr.f32.gmra.mxu0 %v234_v50 }
  0x74   : > { %3439 = vmatprep.mubr.msk.f32.mxu0 %vm3632_vm0, %v3631_v2 }
  0x75   : > { %3533 = vmatmul.mubr.f32.gmra.mxu1 %v266_v51 }
  0x76   : > { %3535 = vmatprep.mubr.msk.f32.mxu1 %vm3632_vm0, %v3631_v2 }
  0x77   : > { %3440 = vmatmul.mubr.f32.gmra.mxu0 %v235_v52 }
  0x78   : > { %3442 = vmatprep.mubr.msk.f32.mxu0 %vm3632_vm0, %v3631_v2 }
  0x79   : > { %3536 = vmatmul.mubr.f32.gmra.mxu1 %v267_v53 }
  0x7a   : > { %3538 = vmatprep.mubr.msk.f32.mxu1 %vm3632_vm0, %v3631_v2 }
  0x7b   : > { %3443 = vmatmul.mubr.f32.gmra.mxu0 %v236_v54 }
  0x7c   : > { %3445 = vmatprep.mubr.msk.f32.mxu0 %vm3632_vm0, %v3631_v2 }
  0x7d   : > { %3539 = vmatmul.mubr.f32.gmra.mxu1 %v268_v55 }
  0x7e   : > { %3541 = vmatprep.mubr.msk.f32.mxu1 %vm3632_vm0, %v3631_v2 }
  0x7f   : > { %3446 = vmatmul.mubr.f32.gmra.mxu0 %v237_v56 }
  0x80   : > { %3448 = vmatprep.mubr.msk.f32.mxu0 %vm3632_vm0, %v3631_v2 }
  0x81   : > { %3542 = vmatmul.mubr.f32.gmra.mxu1 %v269_v57 }
  0x82   : > { %3544 = vmatprep.mubr.msk.f32.mxu1 %vm3632_vm0, %v3631_v2 }
  0x83   : > { %3449 = vmatmul.mubr.f32.gmra.mxu0 %v238_v58 }
  0x84   : > { %3451 = vmatprep.mubr.msk.f32.mxu0 %vm3632_vm0, %v3631_v2 }
  0x85   : > { %3545 = vmatmul.mubr.f32.gmra.mxu1 %v270_v59 }
  0x86   : > { %3547 = vmatprep.mubr.msk.f32.mxu1 %vm3632_vm0, %v3631_v2 }
  0x87   : > { %3452 = vmatmul.mubr.f32.gmra.mxu0 %v239_v60 }
  0x88   : > { %3454 = vmatprep.mubr.msk.f32.mxu0 %vm3632_vm0, %v3631_v2 }
  0x89   : > { %3548 = vmatmul.mubr.f32.gmra.mxu1 %v271_v61 }
  0x8a   : > { %3550 = vmatprep.mubr.msk.f32.mxu1 %vm3632_vm0, %v3631_v2 }
  0x8b   : > { %3455 = vmatmul.mubr.f32.gmra.mxu0 %v240_v62 }
  0x8c   : > { %3457 = vmatprep.mubr.msk.f32.mxu0 %vm3632_vm0, %v3631_v2 }
  0x8d   : > { %3551 = vmatmul.mubr.f32.gmra.mxu1 %v272_v63 }
  0x8e   : > { %3553 = vmatprep.mubr.msk.f32.mxu1 %vm3632_vm0, %v3631_v2 }
  0x8f   : > { %3458 = vmatmul.mubr.f32.gmra.mxu0 %v241_v0 }
  0x90   : > { %3460 = vmatprep.mubr.msk.f32.mxu0 %vm3632_vm0, %v3631_v2 }
  0x91   : > { %3554 = vmatmul.mubr.f32.gmra.mxu1 %v273_v1 }
  0x92   : > { %3556 = vmatprep.mubr.msk.f32.mxu1 %vm3632_vm0, %v3631_v2 }
  0x93   : > { %3461 = vmatmul.mubr.f32.gmra.mxu0 %v242_v3 }
  0x94   : > { %3463 = vmatprep.mubr.msk.f32.mxu0 %vm3632_vm0, %v3631_v2 }
  0x95   : > { %3557 = vmatmul.mubr.f32.gmra.mxu1 %v274_v4 }
  0x96   : > { %3559 = vmatprep.mubr.msk.f32.mxu1 %vm3632_vm0, %v3631_v2 }
  0x97   : > { %3464 = vmatmul.mubr.f32.gmra.mxu0 %v243_v5 }
  0x98   : > { %3466 = vmatprep.mubr.msk.f32.mxu0 %vm3632_vm0, %v3631_v2 }
  0x99   : > { %3560 = vmatmul.mubr.f32.gmra.mxu1 %v275_v6 }
  0x9a   : > { %3562 = vmatprep.mubr.msk.f32.mxu1 %vm3632_vm0, %v3631_v2 }
  0x9b   : > { %3467 = vmatmul.mubr.f32.gmra.mxu0 %v244_v7 }
  0x9c   : > { %3469 = vmatprep.mubr.msk.f32.mxu0 %vm3632_vm0, %v3631_v2 }
  0x9d   : > { %3563 = vmatmul.mubr.f32.gmra.mxu1 %v276_v8 }
  0x9e   : > { %3565 = vmatprep.mubr.msk.f32.mxu1 %vm3632_vm0, %v3631_v2 }
  0x9f   : > { %3470 = vmatmul.mubr.f32.gmra.mxu0 %v245_v9 }
  0xa0   : > { %3472 = vmatprep.mubr.msk.f32.mxu0 %vm3632_vm0, %v3631_v2 }
  0xa1   : > { %3566 = vmatmul.mubr.f32.gmra.mxu1 %v277_v10 }
  0xa2   : > { %3568 = vmatprep.mubr.msk.f32.mxu1 %vm3632_vm0, %v3631_v2 }
  0xa3   : > { %3473 = vmatmul.mubr.f32.gmra.mxu0 %v246_v11 }
  0xa4   : > { %3475 = vmatprep.mubr.msk.f32.mxu0 %vm3632_vm0, %v3631_v2 }
  0xa5   : > { %3569 = vmatmul.mubr.f32.gmra.mxu1 %v278_v12 }
  0xa6   : > { %3571 = vmatprep.mubr.msk.f32.mxu1 %vm3632_vm0, %v3631_v2 }
  0xa7   : > { %3476 = vmatmul.mubr.f32.gmra.mxu0 %v247_v13 }
  0xa8   : > { %3478 = vmatprep.mubr.msk.f32.mxu0 %vm3632_vm0, %v3631_v2 }
  0xa9   : > { %3572 = vmatmul.mubr.f32.gmra.mxu1 %v279_v14 }
  0xaa   : > { %3574 = vmatprep.mubr.msk.f32.mxu1 %vm3632_vm0, %v3631_v2 }
  0xab   : > { %3479 = vmatmul.mubr.f32.gmra.mxu0 %v248_v15 }
  0xac   : > { %3481 = vmatprep.mubr.msk.f32.mxu0 %vm3632_vm0, %v3631_v2 }
  0xad   : > { %3575 = vmatmul.mubr.f32.gmra.mxu1 %v280_v16 }
  0xaf   : > { %3482 = vmatmul.mubr.f32.gmra.mxu0 %v249_v17 }
  0xf3   : > { %v370_v19 = vpop.f32.mrf.mxu0 }
  0xf4   : > { %v3956_v20 = vadd.f32 %v3953_v18, %v370_v19 }
  0xf5   : > { %v3390_v21 = vpop.f32.mrf.mxu0  ;;  %v530_v22 = vpop.f32.mrf.mxu1 }
  0xf6   : > { %686 = vst [vmem:[%s3958_s13] sm:$0xff] %v3956_v20  ;;  %v3963_v2 = vadd.f32 %v3953_v18, %v530_v22 }
  0xf7   : > { %v375_v23 = vpop.f32.mrf.mxu0  ;;  %v3486_v24 = vpop.f32.mrf.mxu1 }
  0xf8   : > { %v3966_v25 = vadd.f32 %v3953_v18, %v375_v23  ;;  %718 = vst [vmem:[%s3958_s13 + $0x100] sm:$0xff] %v3963_v2 }
  0xf9   : > { %v3393_v26 = vpop.f32.mrf.mxu0  ;;  %v535_v27 = vpop.f32.mrf.mxu1 }
  0xfa   : > { %687 = vst [vmem:[%s3958_s13 + $0x8] sm:$0xff] %v3966_v25  ;;  %v3973_v28 = vadd.f32 %v3953_v18, %v535_v27 }
  0xfb   : > { %v380_v29 = vpop.f32.mrf.mxu0  ;;  %v3489_v30 = vpop.f32.mrf.mxu1 }
  0xfc   : > { %v3976_v31 = vadd.f32 %v3953_v18, %v380_v29  ;;  %719 = vst [vmem:[%s3958_s13 + $0x108] sm:$0xff] %v3973_v28 }
  0xfd   : > { %v3396_v32 = vpop.f32.mrf.mxu0  ;;  %v540_v33 = vpop.f32.mrf.mxu1 }
  0xfe   : > { %688 = vst [vmem:[%s3958_s13 + $0x10] sm:$0xff] %v3976_v31  ;;  %v3983_v34 = vadd.f32 %v3953_v18, %v540_v33 }
  0xff   : > { %v385_v35 = vpop.f32.mrf.mxu0  ;;  %v3492_v36 = vpop.f32.mrf.mxu1 }
 0x100   : > { %v3986_v37 = vadd.f32 %v3953_v18, %v385_v35  ;;  %720 = vst [vmem:[%s3958_s13 + $0x110] sm:$0xff] %v3983_v34 }
 0x101   : > { %v3399_v38 = vpop.f32.mrf.mxu0  ;;  %v545_v39 = vpop.f32.mrf.mxu1 }
 0x102   : > { %689 = vst [vmem:[%s3958_s13 + $0x18] sm:$0xff] %v3986_v37  ;;  %v3993_v40 = vadd.f32 %v3953_v18, %v545_v39 }
 0x103   : > { %v390_v41 = vpop.f32.mrf.mxu0  ;;  %v3495_v42 = vpop.f32.mrf.mxu1 }
 0x104   : > { %v3996_v43 = vadd.f32 %v3953_v18, %v390_v41  ;;  %721 = vst [vmem:[%s3958_s13 + $0x118] sm:$0xff] %v3993_v40 }
 0x105   : > { %v3402_v44 = vpop.f32.mrf.mxu0  ;;  %v550_v45 = vpop.f32.mrf.mxu1 }
 0x106   : > { %690 = vst [vmem:[%s3958_s13 + $0x20] sm:$0xff] %v3996_v43  ;;  %v4003_v46 = vadd.f32 %v3953_v18, %v550_v45 }
 0x107   : > { %v395_v47 = vpop.f32.mrf.mxu0  ;;  %v3498_v48 = vpop.f32.mrf.mxu1 }
 0x108   : > { %v4006_v49 = vadd.f32 %v3953_v18, %v395_v47  ;;  %722 = vst [vmem:[%s3958_s13 + $0x120] sm:$0xff] %v4003_v46 }
 0x109   : > { %v3405_v50 = vpop.f32.mrf.mxu0  ;;  %v555_v51 = vpop.f32.mrf.mxu1 }
 0x10a   : > { %691 = vst [vmem:[%s3958_s13 + $0x28] sm:$0xff] %v4006_v49  ;;  %v4013_v52 = vadd.f32 %v3953_v18, %v555_v51 }
 0x10b   : > { %v400_v53 = vpop.f32.mrf.mxu0  ;;  %v3501_v54 = vpop.f32.mrf.mxu1 }
 0x10c   : > { %v4016_v55 = vadd.f32 %v3953_v18, %v400_v53  ;;  %723 = vst [vmem:[%s3958_s13 + $0x128] sm:$0xff] %v4013_v52 }
 0x10d   : > { %v3408_v56 = vpop.f32.mrf.mxu0  ;;  %v560_v57 = vpop.f32.mrf.mxu1 }
 0x10e   : > { %692 = vst [vmem:[%s3958_s13 + $0x30] sm:$0xff] %v4016_v55  ;;  %v4023_v58 = vadd.f32 %v3953_v18, %v560_v57 }
 0x10f   : > { %v405_v59 = vpop.f32.mrf.mxu0  ;;  %v3504_v60 = vpop.f32.mrf.mxu1 }
 0x110   : > { %v4026_v61 = vadd.f32 %v3953_v18, %v405_v59  ;;  %724 = vst [vmem:[%s3958_s13 + $0x130] sm:$0xff] %v4023_v58 }
 0x111   : > { %v3411_v62 = vpop.f32.mrf.mxu0  ;;  %v565_v63 = vpop.f32.mrf.mxu1 }
 0x112   : > { %693 = vst [vmem:[%s3958_s13 + $0x38] sm:$0xff] %v4026_v61  ;;  %v4033_v0 = vadd.f32 %v3953_v18, %v565_v63 }
 0x113   : > { %v410_v1 = vpop.f32.mrf.mxu0  ;;  %v3507_v3 = vpop.f32.mrf.mxu1 }
 0x114   : > { %v4036_v4 = vadd.f32 %v3953_v18, %v410_v1  ;;  %725 = vst [vmem:[%s3958_s13 + $0x138] sm:$0xff] %v4033_v0 }
 0x115   : > { %v3414_v5 = vpop.f32.mrf.mxu0  ;;  %v570_v6 = vpop.f32.mrf.mxu1 }
 0x116   : > { %694 = vst [vmem:[%s3958_s13 + $0x40] sm:$0xff] %v4036_v4  ;;  %v4043_v7 = vadd.f32 %v3953_v18, %v570_v6  ;;  %v822_v6 = vmul.f32 %v3966_v25, %v3966_v25 }
 0x117   : > { %v415_v8 = vpop.f32.mrf.mxu0  ;;  %v3510_v9 = vpop.f32.mrf.mxu1 }
 0x118   : > { %v4046_v10 = vadd.f32 %v3953_v18, %v415_v8  ;;  %726 = vst [vmem:[%s3958_s13 + $0x140] sm:$0xff] %v4043_v7 }
 0x119   : > { %v3417_v11 = vpop.f32.mrf.mxu0  ;;  %v575_v12 = vpop.f32.mrf.mxu1 }
 0x11a   : > { %695 = vst [vmem:[%s3958_s13 + $0x48] sm:$0xff] %v4046_v10  ;;  %v4053_v13 = vadd.f32 %v3953_v18, %v575_v12  ;;  %v821_v12 = vmul.f32 %v3956_v20, %v3956_v20 }
 0x11b   : > { %v420_v14 = vpop.f32.mrf.mxu0  ;;  %v3513_v15 = vpop.f32.mrf.mxu1 }
 0x11c   : > { %v4056_v16 = vadd.f32 %v3953_v18, %v420_v14  ;;  %727 = vst [vmem:[%s3958_s13 + $0x148] sm:$0xff] %v4053_v13  ;;  %v750_v14 = vadd.f32 %v3966_v25, %v3956_v20  ;;  %v823_v15 = vmul.f32 %v3976_v31, %v3976_v31 }
 0x11d   : > { %v3420_v17 = vpop.f32.mrf.mxu0  ;;  %v580_v19 = vpop.f32.mrf.mxu1 }
 0x11e   : > { %696 = vst [vmem:[%s3958_s13 + $0x50] sm:$0xff] %v4056_v16  ;;  %v4063_v21 = vadd.f32 %v3953_v18, %v580_v19 }
 0x11f   : > { %v425_v22 = vpop.f32.mrf.mxu0  ;;  %v3516_v23 = vpop.f32.mrf.mxu1 }
 0x120   : > { %v4066_v24 = vadd.f32 %v3953_v18, %v425_v22  ;;  %728 = vst [vmem:[%s3958_s13 + $0x150] sm:$0xff] %v4063_v21  ;;  %v884_v23 = vadd.f32 %v822_v6, %v821_v12  ;;  %v828_v6 = vmul.f32 %v4026_v61, %v4026_v61 }
 0x121   : > { %v3423_v26 = vpop.f32.mrf.mxu0  ;;  %v585_v27 = vpop.f32.mrf.mxu1 }
 0x122   : > { %697 = vst [vmem:[%s3958_s13 + $0x58] sm:$0xff] %v4066_v24  ;;  %v4073_v29 = vadd.f32 %v3953_v18, %v585_v27  ;;  %v751_v26 = vadd.f32 %v750_v14, %v3976_v31  ;;  %v824_v27 = vmul.f32 %v3986_v37, %v3986_v37 }
 0x123   : > { %v430_v30 = vpop.f32.mrf.mxu0  ;;  %v3519_v32 = vpop.f32.mrf.mxu1 }
 0x124   : > { %v4076_v33 = vadd.f32 %v3953_v18, %v430_v30  ;;  %729 = vst [vmem:[%s3958_s13 + $0x158] sm:$0xff] %v4073_v29  ;;  %v885_v32 = vadd.f32 %v884_v23, %v823_v15  ;;  %v829_v15 = vmul.f32 %v4036_v4, %v4036_v4 }
 0x125   : > { %v3426_v35 = vpop.f32.mrf.mxu0  ;;  %v590_v36 = vpop.f32.mrf.mxu1 }
 0x126   : > { %698 = vst [vmem:[%s3958_s13 + $0x60] sm:$0xff] %v4076_v33  ;;  %v4083_v38 = vadd.f32 %v3953_v18, %v590_v36  ;;  %v752_v35 = vadd.f32 %v751_v26, %v3986_v37  ;;  %v825_v36 = vmul.f32 %v3996_v43, %v3996_v43 }
 0x127   : > { %v435_v39 = vpop.f32.mrf.mxu0  ;;  %v3522_v41 = vpop.f32.mrf.mxu1 }
 0x128   : > { %v4086_v42 = vadd.f32 %v3953_v18, %v435_v39  ;;  %730 = vst [vmem:[%s3958_s13 + $0x160] sm:$0xff] %v4083_v38 }
 0x129   : > { %v3429_v44 = vpop.f32.mrf.mxu0  ;;  %v595_v45 = vpop.f32.mrf.mxu1 }
 0x12a   : > { %699 = vst [vmem:[%s3958_s13 + $0x68] sm:$0xff] %v4086_v42  ;;  %v4093_v47 = vadd.f32 %v3953_v18, %v595_v45  ;;  %v886_v44 = vadd.f32 %v885_v32, %v824_v27  ;;  %v753_v45 = vadd.f32 %v752_v35, %v3996_v43  ;;  %v830_v27 = vmul.f32 %v4046_v10, %v4046_v10 }
 0x12b   : > { %v440_v48 = vpop.f32.mrf.mxu0  ;;  %v3525_v50 = vpop.f32.mrf.mxu1 }
 0x12c   : > { %v4096_v51 = vadd.f32 %v3953_v18, %v440_v48  ;;  %731 = vst [vmem:[%s3958_s13 + $0x168] sm:$0xff] %v4093_v47  ;;  %v826_v48 = vmul.f32 %v4006_v49, %v4006_v49 }
 0x12d   : > { %v3432_v53 = vpop.f32.mrf.mxu0  ;;  %v600_v54 = vpop.f32.mrf.mxu1 }
 0x12e   : > { %700 = vst [vmem:[%s3958_s13 + $0x70] sm:$0xff] %v4096_v51  ;;  %v4103_v56 = vadd.f32 %v3953_v18, %v600_v54  ;;  %v887_v54 = vadd.f32 %v886_v44, %v825_v36  ;;  %v831_v36 = vmul.f32 %v4056_v16, %v4056_v16 }
 0x12f   : > { %v445_v57 = vpop.f32.mrf.mxu0  ;;  %v3528_v59 = vpop.f32.mrf.mxu1 }
 0x130   : > { %v4106_v60 = vadd.f32 %v3953_v18, %v445_v57  ;;  %732 = vst [vmem:[%s3958_s13 + $0x170] sm:$0xff] %v4103_v56  ;;  %v754_v57 = vadd.f32 %v753_v45, %v4006_v49  ;;  %v827_v59 = vmul.f32 %v4016_v55, %v4016_v55 }
 0x131   : > { %v3435_v62 = vpop.f32.mrf.mxu0  ;;  %v605_v63 = vpop.f32.mrf.mxu1 }
 0x132   : > { %701 = vst [vmem:[%s3958_s13 + $0x78] sm:$0xff] %v4106_v60  ;;  %v4113_v1 = vadd.f32 %v3953_v18, %v605_v63 }
 0x133   : > { %v450_v3 = vpop.f32.mrf.mxu0  ;;  %v3531_v5 = vpop.f32.mrf.mxu1 }
 0x134   : > { %v4118_v8 = vadd.f32 %v3953_v18, %v450_v3  ;;  %733 = vst [vmem:[%s3958_s13 + $0x178] sm:$0xff] %v4113_v1  ;;  %v888_v3 = vadd.f32 %v887_v54, %v826_v48  ;;  %v755_v5 = vadd.f32 %v754_v57, %v4016_v55  ;;  %v832_v48 = vmul.f32 %v4066_v24, %v4066_v24 }
 0x135   : > { %v3438_v9 = vpop.f32.mrf.mxu0  ;;  %v610_v11 = vpop.f32.mrf.mxu1 }
 0x136   : > { %702 = vst [vmem:[%s3958_s13 + $0x80] sm:$0xff] %v4118_v8  ;;  %v4131_v17 = vadd.f32 %v3953_v18, %v610_v11  ;;  %v889_v12 = vadd.f32 %v888_v3, %v827_v59  ;;  %v756_v14 = vadd.f32 %v755_v5, %v4026_v61  ;;  %v833_v59 = vmul.f32 %v4076_v33, %v4076_v33 }
 0x137   : > { %v455_v19 = vpop.f32.mrf.mxu0  ;;  %v3534_v22 = vpop.f32.mrf.mxu1 }
 0x138   : > { %v4137_v20 = vadd.f32 %v3953_v18, %v455_v19  ;;  %734 = vst [vmem:[%s3958_s13 + $0x180] sm:$0xff] %v4131_v17  ;;  %v890_v23 = vadd.f32 %v889_v12, %v828_v6  ;;  %v757_v26 = vadd.f32 %v756_v14, %v4036_v4  ;;  %v834_v6 = vmul.f32 %v4086_v42, %v4086_v42 }
 0x139   : > { %v3441_v25 = vpop.f32.mrf.mxu0  ;;  %v615_v30 = vpop.f32.mrf.mxu1 }
 0x13a   : > { %703 = vst [vmem:[%s3958_s13 + $0x88] sm:$0xff] %v4137_v20  ;;  %v4147_v31 = vadd.f32 %v3953_v18, %v615_v30  ;;  %v891_v32 = vadd.f32 %v890_v23, %v829_v15  ;;  %v758_v35 = vadd.f32 %v757_v26, %v4046_v10  ;;  %v835_v15 = vmul.f32 %v4096_v51, %v4096_v51 }
 0x13b   : > { %v460_v39 = vpop.f32.mrf.mxu0  ;;  %v3537_v41 = vpop.f32.mrf.mxu1 }
 0x13c   : > { %v4153_v37 = vadd.f32 %v3953_v18, %v460_v39  ;;  %735 = vst [vmem:[%s3958_s13 + $0x188] sm:$0xff] %v4147_v31  ;;  %v892_v44 = vadd.f32 %v891_v32, %v830_v27  ;;  %v759_v45 = vadd.f32 %v758_v35, %v4056_v16  ;;  %v836_v27 = vmul.f32 %v4106_v60, %v4106_v60 }
 0x13d   : > { %v3444_v50 = vpop.f32.mrf.mxu0  ;;  %v620_v53 = vpop.f32.mrf.mxu1 }
 0x13e   : > { %704 = vst [vmem:[%s3958_s13 + $0x90] sm:$0xff] %v4153_v37  ;;  %v4163_v43 = vadd.f32 %v3953_v18, %v620_v53  ;;  %v893_v54 = vadd.f32 %v892_v44, %v831_v36  ;;  %v760_v57 = vadd.f32 %v759_v45, %v4066_v24  ;;  %v837_v36 = vmul.f32 %v4118_v8, %v4118_v8 }
 0x13f   : > { %v465_v62 = vpop.f32.mrf.mxu0  ;;  %v3540_v63 = vpop.f32.mrf.mxu1 }
 0x140   : > { %v4169_v49 = vadd.f32 %v3953_v18, %v465_v62  ;;  %736 = vst [vmem:[%s3958_s13 + $0x190] sm:$0xff] %v4163_v43  ;;  %v894_v3 = vadd.f32 %v893_v54, %v832_v48  ;;  %v761_v5 = vadd.f32 %v760_v57, %v4076_v33  ;;  %v838_v48 = vmul.f32 %v4137_v20, %v4137_v20 }
 0x141   : > { %v3447_v9 = vpop.f32.mrf.mxu0  ;;  %v625_v11 = vpop.f32.mrf.mxu1 }
 0x142   : > { %705 = vst [vmem:[%s3958_s13 + $0x98] sm:$0xff] %v4169_v49  ;;  %v4179_v55 = vadd.f32 %v3953_v18, %v625_v11  ;;  %v895_v12 = vadd.f32 %v894_v3, %v833_v59  ;;  %v762_v14 = vadd.f32 %v761_v5, %v4086_v42  ;;  %v839_v59 = vmul.f32 %v4153_v37, %v4153_v37 }
 0x143   : > { %v470_v19 = vpop.f32.mrf.mxu0  ;;  %v3543_v22 = vpop.f32.mrf.mxu1 }
 0x144   : > { %v4185_v61 = vadd.f32 %v3953_v18, %v470_v19  ;;  %737 = vst [vmem:[%s3958_s13 + $0x198] sm:$0xff] %v4179_v55  ;;  %v896_v23 = vadd.f32 %v895_v12, %v834_v6  ;;  %v763_v26 = vadd.f32 %v762_v14, %v4096_v51  ;;  %v840_v6 = vmul.f32 %v4169_v49, %v4169_v49 }
 0x145   : > { %v3450_v25 = vpop.f32.mrf.mxu0  ;;  %v630_v30 = vpop.f32.mrf.mxu1 }
 0x146   : > { %706 = vst [vmem:[%s3958_s13 + $0xa0] sm:$0xff] %v4185_v61  ;;  %v4195_v4 = vadd.f32 %v3953_v18, %v630_v30  ;;  %v897_v32 = vadd.f32 %v896_v23, %v835_v15  ;;  %v764_v35 = vadd.f32 %v763_v26, %v4106_v60  ;;  %v841_v15 = vmul.f32 %v4185_v61, %v4185_v61 }
 0x147   : > { %v475_v39 = vpop.f32.mrf.mxu0  ;;  %v3546_v41 = vpop.f32.mrf.mxu1 }
 0x148   : > { %v4201_v10 = vadd.f32 %v3953_v18, %v475_v39  ;;  %738 = vst [vmem:[%s3958_s13 + $0x1a0] sm:$0xff] %v4195_v4  ;;  %v898_v44 = vadd.f32 %v897_v32, %v836_v27  ;;  %v765_v45 = vadd.f32 %v764_v35, %v4118_v8 }
 0x149   : > { %v3453_v50 = vpop.f32.mrf.mxu0  ;;  %v635_v53 = vpop.f32.mrf.mxu1 }
 0x14a   : > { %707 = vst [vmem:[%s3958_s13 + $0xa8] sm:$0xff] %v4201_v10  ;;  %v4211_v16 = vadd.f32 %v3953_v18, %v635_v53  ;;  %v899_v54 = vadd.f32 %v898_v44, %v837_v36  ;;  %v766_v57 = vadd.f32 %v765_v45, %v4137_v20  ;;  %v842_v27 = vmul.f32 %v4201_v10, %v4201_v10 }
 0x14b   : > { %v480_v62 = vpop.f32.mrf.mxu0  ;;  %v3549_v63 = vpop.f32.mrf.mxu1 }
 0x14c   : > { %v4217_v24 = vadd.f32 %v3953_v18, %v480_v62  ;;  %739 = vst [vmem:[%s3958_s13 + $0x1a8] sm:$0xff] %v4211_v16  ;;  %v900_v3 = vadd.f32 %v899_v54, %v838_v48  ;;  %v767_v5 = vadd.f32 %v766_v57, %v4153_v37 }
 0x14d   : > { %v3456_v9 = vpop.f32.mrf.mxu0  ;;  %v640_v11 = vpop.f32.mrf.mxu1 }
 0x14e   : > { %708 = vst [vmem:[%s3958_s13 + $0xb0] sm:$0xff] %v4217_v24  ;;  %v4227_v33 = vadd.f32 %v3953_v18, %v640_v11  ;;  %v901_v12 = vadd.f32 %v900_v3, %v839_v59  ;;  %v768_v14 = vadd.f32 %v767_v5, %v4169_v49  ;;  %v843_v36 = vmul.f32 %v4217_v24, %v4217_v24 }
 0x14f   : > { %v485_v19 = vpop.f32.mrf.mxu0  ;;  %v3552_v22 = vpop.f32.mrf.mxu1 }
 0x150   : > { %v486_v42 = vadd.f32 %v3953_v18, %v485_v19  ;;  %740 = vst [vmem:[%s3958_s13 + $0x1b0] sm:$0xff] %v4227_v33  ;;  %v902_v23 = vadd.f32 %v901_v12, %v840_v6  ;;  %v769_v26 = vadd.f32 %v768_v14, %v4185_v61 }
 0x151   : > { %v3459_v25 = vpop.f32.mrf.mxu0  ;;  %v645_v30 = vpop.f32.mrf.mxu1 }
 0x152   : > { %709 = vst [vmem:[%s3958_s13 + $0xb8] sm:$0xff] %v486_v42  ;;  %v4240_v51 = vadd.f32 %v3953_v18, %v645_v30  ;;  %v903_v32 = vadd.f32 %v902_v23, %v841_v15  ;;  %v770_v35 = vadd.f32 %v769_v26, %v4201_v10  ;;  %v844_v48 = vmul.f32 %v486_v42, %v486_v42 }
 0x153   : > { %v490_v39 = vpop.f32.mrf.mxu0  ;;  %v3555_v41 = vpop.f32.mrf.mxu1 }
 0x154   : > { %v491_v50 = vadd.f32 %v3953_v18, %v490_v39  ;;  %741 = vst [vmem:[%s3958_s13 + $0x1b8] sm:$0xff] %v4240_v51  ;;  %v904_v44 = vadd.f32 %v903_v32, %v842_v27  ;;  %v771_v45 = vadd.f32 %v770_v35, %v4217_v24 }
 0x155   : > { %v3462_v60 = vpop.f32.mrf.mxu0  ;;  %v650_v53 = vpop.f32.mrf.mxu1 }
 0x156   : > { %710 = vst [vmem:[%s3958_s13 + $0xc0] sm:$0xff] %v491_v50  ;;  %v4253_v8 = vadd.f32 %v3953_v18, %v650_v53  ;;  %v905_v54 = vadd.f32 %v904_v44, %v843_v36  ;;  %v772_v57 = vadd.f32 %v771_v45, %v486_v42  ;;  %v845_v59 = vmul.f32 %v491_v50, %v491_v50 }
 0x157   : > { %v495_v62 = vpop.f32.mrf.mxu0  ;;  %v3558_v63 = vpop.f32.mrf.mxu1 }
 0x158   : > { %v496_v9 = vadd.f32 %v3953_v18, %v495_v62  ;;  %742 = vst [vmem:[%s3958_s13 + $0x1c0] sm:$0xff] %v4253_v8  ;;  %v906_v5 = vadd.f32 %v905_v54, %v844_v48  ;;  %v773_v24 = vadd.f32 %v772_v57, %v491_v50 }
 0x159   : > { %v3465_v20 = vpop.f32.mrf.mxu0  ;;  %v655_v11 = vpop.f32.mrf.mxu1 }
 0x15a   : > { %711 = vst [vmem:[%s3958_s13 + $0xc8] sm:$0xff] %v496_v9  ;;  %v4266_v37 = vadd.f32 %v3953_v18, %v655_v11  ;;  %v846_v6 = vmul.f32 %v496_v9, %v496_v9  ;;  %v907_v14 = vadd.f32 %v906_v5, %v845_v59  ;;  %v774_v42 = vadd.f32 %v773_v24, %v496_v9 }
 0x15b   : > { %v500_v19 = vpop.f32.mrf.mxu0  ;;  %v3561_v22 = vpop.f32.mrf.mxu1 }
 0x15c   : > { %v501_v25 = vadd.f32 %v3953_v18, %v500_v19  ;;  %743 = vst [vmem:[%s3958_s13 + $0x1c8] sm:$0xff] %v4266_v37  ;;  %v908_v26 = vadd.f32 %v907_v14, %v846_v6 }
 0x15d   : > { %v3468_v49 = vpop.f32.mrf.mxu0  ;;  %v660_v30 = vpop.f32.mrf.mxu1 }
 0x15e   : > { %712 = vst [vmem:[%s3958_s13 + $0xd0] sm:$0xff] %v501_v25  ;;  %v4279_v61 = vadd.f32 %v3953_v18, %v660_v30  ;;  %v847_v15 = vmul.f32 %v501_v25, %v501_v25  ;;  %v775_v50 = vadd.f32 %v774_v42, %v501_v25 }
 0x15f   : > { %v505_v39 = vpop.f32.mrf.mxu0  ;;  %v3564_v41 = vpop.f32.mrf.mxu1 }
 0x160   : > { %v506_v60 = vadd.f32 %v3953_v18, %v505_v39  ;;  %744 = vst [vmem:[%s3958_s13 + $0x1d0] sm:$0xff] %v4279_v61  ;;  %v909_v35 = vadd.f32 %v908_v26, %v847_v15  ;;  %v853_v15 = vmul.f32 %v3963_v2, %v3963_v2  ;;  %v854_v26 = vmul.f32 %v3973_v28, %v3973_v28 }
 0x161   : > { %v3471_v10 = vpop.f32.mrf.mxu0  ;;  %v665_v53 = vpop.f32.mrf.mxu1 }
 0x162   : > { %713 = vst [vmem:[%s3958_s13 + $0xd8] sm:$0xff] %v506_v60  ;;  %v4287_v62 = vadd.f32 %v3953_v18, %v665_v53  ;;  %v848_v27 = vmul.f32 %v506_v60, %v506_v60  ;;  %v776_v9 = vadd.f32 %v775_v50, %v506_v60 }
 0x163   : > { %v510_v63 = vpop.f32.mrf.mxu0  ;;  %v3567_v3 = vpop.f32.mrf.mxu1 }
 0x164   : > { %v511_v20 = vadd.f32 %v3953_v18, %v510_v63  ;;  %745 = vst [vmem:[%s3958_s13 + $0x1d8] sm:$0xff] %v4287_v62  ;;  %v910_v45 = vadd.f32 %v909_v35, %v848_v27 }
 0x165   : > { %v3474_v11 = vpop.f32.mrf.mxu0  ;;  %v670_v12 = vpop.f32.mrf.mxu1 }
 0x166   : > { %714 = vst [vmem:[%s3958_s13 + $0xe0] sm:$0xff] %v511_v20  ;;  %v4294_v19 = vadd.f32 %v3953_v18, %v670_v12  ;;  %v849_v36 = vmul.f32 %v511_v20, %v511_v20  ;;  %v777_v25 = vadd.f32 %v776_v9, %v511_v20 }
 0x167   : > { %v515_v22 = vpop.f32.mrf.mxu0  ;;  %v3570_v23 = vpop.f32.mrf.mxu1 }
 0x168   : > { %v516_v49 = vadd.f32 %v3953_v18, %v515_v22  ;;  %746 = vst [vmem:[%s3958_s13 + $0x1e0] sm:$0xff] %v4294_v19  ;;  %v911_v57 = vadd.f32 %v910_v45, %v849_v36 }
 0x169   : > { %v3477_v30 = vpop.f32.mrf.mxu0  ;;  %v675_v32 = vpop.f32.mrf.mxu1 }
 0x16a   : > { %715 = vst [vmem:[%s3958_s13 + $0xe8] sm:$0xff] %v516_v49  ;;  %v4301_v39 = vadd.f32 %v3953_v18, %v675_v32  ;;  %v850_v48 = vmul.f32 %v516_v49, %v516_v49  ;;  %v778_v60 = vadd.f32 %v777_v25, %v516_v49  ;;  %v856_v32 = vmul.f32 %v3993_v40, %v3993_v40 }
 0x16b   : > { %v520_v41 = vpop.f32.mrf.mxu0  ;;  %v3573_v44 = vpop.f32.mrf.mxu1 }
 0x16c   : > { %v521_v10 = vadd.f32 %v3953_v18, %v520_v41  ;;  %747 = vst [vmem:[%s3958_s13 + $0x1e8] sm:$0xff] %v4301_v39  ;;  %v912_v24 = vadd.f32 %v911_v57, %v850_v48 }
 0x16d   : > { %v3480_v53 = vpop.f32.mrf.mxu0  ;;  %v680_v54 = vpop.f32.mrf.mxu1 }
 0x16e   : > { %716 = vst [vmem:[%s3958_s13 + $0xf0] sm:$0xff] %v521_v10  ;;  %v851_v59 = vmul.f32 %v521_v10, %v521_v10  ;;  %v4308_v63 = vadd.f32 %v3953_v18, %v680_v54  ;;  %v779_v6 = vadd.f32 %v778_v60, %v521_v10 }
 0x16f   : > { %v525_v3 = vpop.f32.mrf.mxu0  ;;  %v3576_v5 = vpop.f32.mrf.mxu1 }
 0x170   : > { %v526_v20 = vadd.f32 %v3953_v18, %v525_v3  ;;  %748 = vst [vmem:[%s3958_s13 + $0x1f0] sm:$0xff] %v4308_v63  ;;  %v913_v12 = vadd.f32 %v912_v24, %v851_v59  ;;  %v855_v18 = vmul.f32 %v3983_v34, %v3983_v34 }
 0x171   : > { %v3483_v11 = vpop.f32.mrf.mxu0 }
 0x172   : > { %717 = vst [vmem:[%s3958_s13 + $0xf8] sm:$0xff] %v526_v20  ;;  %v780_v14 = vadd.f32 %v779_v6, %v526_v20  ;;  %v852_v42 = vmul.f32 %v526_v20, %v526_v20 }
 0x174   : > { %v781_v22 = vadd.f32 %v780_v14, %v3963_v2  ;;  %v914_v23 = vadd.f32 %v913_v12, %v852_v42  ;;  %v857_v2 = vmul.f32 %v4003_v46, %v4003_v46 }
 0x176   : > { %v782_v50 = vadd.f32 %v781_v22, %v3973_v28  ;;  %v915_v27 = vadd.f32 %v914_v23, %v853_v15  ;;  %v858_v28 = vmul.f32 %v4013_v52, %v4013_v52  ;;  %v868_v22 = vmul.f32 %v4113_v1, %v4113_v1 }
 0x178   : > { %v783_v49 = vadd.f32 %v782_v50, %v3983_v34  ;;  %v916_v30 = vadd.f32 %v915_v27, %v854_v26  ;;  %v859_v34 = vmul.f32 %v4023_v58, %v4023_v58  ;;  %v869_v50 = vmul.f32 %v4131_v17, %v4131_v17 }
 0x17a   : > { %v784_v35 = vadd.f32 %v783_v49, %v3993_v40  ;;  %v917_v9 = vadd.f32 %v916_v30, %v855_v18  ;;  %v860_v40 = vmul.f32 %v4033_v0, %v4033_v0  ;;  %v870_v18 = vmul.f32 %v4147_v31, %v4147_v31 }
 0x17b   : > { %v871_v30 = vmul.f32 %v4163_v43, %v4163_v43 }
 0x17c   : > { %v785_v36 = vadd.f32 %v784_v35, %v4003_v46  ;;  %v918_v41 = vadd.f32 %v917_v9, %v856_v32  ;;  %v861_v46 = vmul.f32 %v4043_v7, %v4043_v7  ;;  %v872_v35 = vmul.f32 %v4179_v55, %v4179_v55 }
 0x17e   : > { %v786_v44 = vadd.f32 %v785_v36, %v4013_v52  ;;  %v919_v45 = vadd.f32 %v918_v41, %v857_v2  ;;  %v862_v52 = vmul.f32 %v4053_v13, %v4053_v13  ;;  %v873_v2 = vmul.f32 %v4195_v4, %v4195_v4 }
 0x17f   : > { %v874_v41 = vmul.f32 %v4211_v16, %v4211_v16 }
 0x180   : > { %v787_v25 = vadd.f32 %v786_v44, %v4023_v58  ;;  %v920_v48 = vadd.f32 %v919_v45, %v858_v28  ;;  %v863_v58 = vmul.f32 %v4063_v21, %v4063_v21  ;;  %v875_v44 = vmul.f32 %v4227_v33, %v4227_v33 }
 0x182   : > { %v921_v10 = vadd.f32 %v920_v48, %v859_v34  ;;  %v788_v53 = vadd.f32 %v787_v25, %v4033_v0  ;;  %v864_v0 = vmul.f32 %v4073_v29, %v4073_v29  ;;  %v876_v34 = vmul.f32 %v4240_v51, %v4240_v51 }
 0x183   : > { %v877_v48 = vmul.f32 %v4253_v8, %v4253_v8 }
 0x184   : > { %v789_v54 = vadd.f32 %v788_v53, %v4043_v7  ;;  %v922_v57 = vadd.f32 %v921_v10, %v860_v40  ;;  %v865_v7 = vmul.f32 %v4083_v38, %v4083_v38  ;;  %v878_v10 = vmul.f32 %v4266_v37, %v4266_v37 }
 0x186   : > { %v790_v60 = vadd.f32 %v789_v54, %v4053_v13  ;;  %v923_v59 = vadd.f32 %v922_v57, %v861_v46  ;;  %v866_v13 = vmul.f32 %v4093_v47, %v4093_v47  ;;  %v879_v46 = vmul.f32 %v4279_v61, %v4279_v61 }
 0x187   : > { %v880_v57 = vmul.f32 %v4287_v62, %v4287_v62 }
 0x188   : > { %v791_v3 = vadd.f32 %v790_v60, %v4063_v21  ;;  %v924_v5 = vadd.f32 %v923_v59, %v862_v52  ;;  %v867_v21 = vmul.f32 %v4103_v56, %v4103_v56  ;;  %v881_v60 = vmul.f32 %v4294_v19, %v4294_v19 }
 0x18a   : > { %v792_v24 = vadd.f32 %v791_v3, %v4073_v29  ;;  %v925_v6 = vadd.f32 %v924_v5, %v863_v58  ;;  %v882_v58 = vmul.f32 %v4301_v39, %v4301_v39 }
 0x18c   : > { %v793_v20 = vadd.f32 %v792_v24, %v4083_v38  ;;  %v926_v11 = vadd.f32 %v925_v6, %v864_v0 }
 0x18e   : > { %v794_v12 = vadd.f32 %v793_v20, %v4093_v47  ;;  %v927_v14 = vadd.f32 %v926_v11, %v865_v7 }
 0x190   : > { %v795_v42 = vadd.f32 %v794_v12, %v4103_v56  ;;  %v928_v15 = vadd.f32 %v927_v14, %v866_v13  ;;  %v749_v14 = vld [vmem:[#allocation3] sm:$0x1] }
 0x192   : > { %v796_v29 = vadd.f32 %v795_v42, %v4113_v1  ;;  %v929_v23 = vadd.f32 %v928_v15, %v867_v21 }
 0x194   : > { %v930_v38 = vadd.f32 %v929_v23, %v868_v22  ;;  %v797_v26 = vadd.f32 %v796_v29, %v4131_v17 }
 0x196   : > { %v931_v47 = vadd.f32 %v930_v38, %v869_v50  ;;  %v798_v27 = vadd.f32 %v797_v26, %v4147_v31 }
 0x198   : > { %v932_v56 = vadd.f32 %v931_v47, %v870_v18  ;;  %v799_v49 = vadd.f32 %v798_v27, %v4163_v43 }
 0x19a   : > { %v933_v1 = vadd.f32 %v932_v56, %v871_v30  ;;  %v800_v32 = vadd.f32 %v799_v49, %v4179_v55 }
 0x19c   : > { %v934_v9 = vadd.f32 %v933_v1, %v872_v35  ;;  %v801_v17 = vadd.f32 %v800_v32, %v4195_v4 }
 0x19e   : > { %v935_v36 = vadd.f32 %v934_v9, %v873_v2  ;;  %v802_v31 = vadd.f32 %v801_v17, %v4211_v16 }
 0x1a0   : > { %v936_v28 = vadd.f32 %v935_v36, %v874_v41  ;;  %v803_v43 = vadd.f32 %v802_v31, %v4227_v33 }
 0x1a2   : > { %v937_v45 = vadd.f32 %v936_v28, %v875_v44  ;;  %v804_v55 = vadd.f32 %v803_v43, %v4240_v51 }
 0x1a4   : > { %v938_v25 = vadd.f32 %v937_v45, %v876_v34  ;;  %v805_v4 = vadd.f32 %v804_v55, %v4253_v8 }
 0x1a6   : > { %v939_v40 = vadd.f32 %v938_v25, %v877_v48  ;;  %v806_v16 = vadd.f32 %v805_v4, %v4266_v37 }
 0x1a8   : > { %v940_v53 = vadd.f32 %v939_v40, %v878_v10  ;;  %v807_v33 = vadd.f32 %v806_v16, %v4279_v61  ;;  %v883_v61 = vmul.f32 %v4308_v63, %v4308_v63 }
 0x1aa   : > { %v941_v54 = vadd.f32 %v940_v53, %v879_v46  ;;  %v808_v51 = vadd.f32 %v807_v33, %v4287_v62 }
 0x1ac   : > { %v942_v52 = vadd.f32 %v941_v54, %v880_v57  ;;  %v809_v8 = vadd.f32 %v808_v51, %v4294_v19 }
 0x1ae   : > { %v943_v59 = vadd.f32 %v942_v52, %v881_v60  ;;  %v810_v37 = vadd.f32 %v809_v8, %v4301_v39  ;;  %v820_v39 = vld [vmem:[#allocation4] sm:$0x1] }
 0x1b0   : > { %v944_v3 = vadd.f32 %v943_v59, %v882_v58  ;;  %v811_v5 = vadd.f32 %v810_v37, %v4308_v63 }
 0x1b2   : > { %v812_v0 = vrot.slane %v811_v5, 4  ;;  %v945_v62 = vadd.f32 %v944_v3, %v883_v61 }
 0x1b4   : > { %v813_v24 = vadd.f32 %v812_v0, %v811_v5  ;;  %v946_v6 = vrot.slane %v945_v62, 4 }
 0x1b6   : > { %v814_v7 = vrot.slane %v813_v24, 2  ;;  %v947_v20 = vadd.f32 %v946_v6, %v945_v62 }
 0x1b8   : > { %v815_v11 = vadd.f32 %v814_v7, %v813_v24  ;;  %v948_v19 = vrot.slane %v947_v20, 2 }
 0x1ba   : > { %v816_v13 = vrot.slane %v815_v11, 1  ;;  %v949_v12 = vadd.f32 %v948_v19, %v947_v20 }
 0x1bc   : > { %v817_v21 = vadd.f32 %v816_v13, %v815_v11  ;;  %v950_v42 = vrot.slane %v949_v12, 1 }
 0x1be   : > { %v818_v15 = vadd.f32 %v817_v21, %v749_v14  ;;  %v951_v29 = vadd.f32 %v950_v42, %v949_v12  ;;  %957 = sbr.rel (%p3274_p5) target bundleno = 934 (0x3a6), region = 48 }
 0x1c0   : > { %819 = vst [vmem:[#allocation3] sm:$0x1] %v818_v15  ;;  %v952_v22 = vadd.f32 %v951_v29, %v820_v39 }
 0x1c2   : > { %953 = vst [vmem:[#allocation4] sm:$0x1] %v952_v22 }
 0x1c3   : > { %v1021_v18 = vlaneseq  ;;  %v964_v49 = vld [vmem:[%s5467_s3] sm:$0x1]  ;;  %v1228_v17 = vld [vmem:[#allocation2 + $0x188] sm:$0xff]  ;;  %v1473_v2 = vld [vmem:[#allocation2 + $0x310] sm:$0xff] }
 0x1c4   : > { %v968_v35 = vld [vmem:[%s5468_s4] sm:$0x1]  ;;  %v1718_v36 = vld [vmem:[#allocation2 + $0x498] sm:$0xff]  ;;  %v2208_v43 = vld [vmem:[#allocation2 + $0x7a8] sm:$0xff] }
 0x1c5   : > { %v1022_v56 = vshrl.u32 %v1021_v18, 7  ;;  %v971_v9 = vld [vmem:[#allocation2] sm:$0xff]  ;;  %v2453_v44 = vld [vmem:[#allocation2 + $0x930] sm:$0xff]  ;;  %v2698_v45 = vld [vmem:[#allocation2 + $0xab8] sm:$0xff] }
 0x1c6   : > { %v1963_v28 = vld [vmem:[#allocation2 + $0x620] sm:$0xff]  ;;  %v972_v34 = vld [vmem:[#allocation2 + $0x8] sm:$0xff]  ;;  %v1229_v16 = vld [vmem:[#allocation2 + $0x190] sm:$0xff] }
 0x1c7   : > { %v958_v63 = vld [vmem:[#allocation3] sm:$0x1]  ;;  %v1023_v30 = vsub.s32 0, %v1022_v56  ;;  %v2943_v55 = vld [vmem:[#allocation2 + $0xc40] sm:$0xff]  ;;  %v1474_v10 = vld [vmem:[#allocation2 + $0x318] sm:$0xff] }
 0x1c8   : > { %v959_v38 = vmul.f32 0.00028344672, %v958_v63  ;;  %v1719_v53 = vld [vmem:[#allocation2 + $0x4a0] sm:$0xff]  ;;  %v1964_v60 = vld [vmem:[#allocation2 + $0x628] sm:$0xff]  ;;  %v2209_v14 = vld [vmem:[#allocation2 + $0x7b0] sm:$0xff] }
 0x1c9   : > { %v960_v23 = vld [vmem:[#allocation4] sm:$0x1]  ;;  %v2699_v18 = vld [vmem:[#allocation2 + $0xac0] sm:$0xff] }
 0x1ca   : > { %v961_v26 = vmul.f32 0.00028344672, %v960_v23  ;;  %v962_v50 = vmul.f32 %v959_v38, %v959_v38 }
 0x1cc   : > { %v963_v47 = vsub.f32 %v961_v26, %v962_v50 }
 0x1ce   : > { %v965_v27 = vadd.f32 1e-05, %v963_v47 }
 0x1d0   : > { %3620 = vrsqrt.f32 %v965_v27  ;;  %v2454_v27 = vld [vmem:[#allocation2 + $0x938] sm:$0xff] }
 0x1dd   : > { %v3621_v1 = vpop.eup %3620 }
 0x1de   : > { %v967_v32 = vmul.f32 %v3621_v1, %v964_v49 }
 0x1e0   : > { %v969_v31 = vmul.f32 %v967_v32, %v959_v38  ;;  %v4414_v41 = vrot.slane %v967_v32, %v1023_v30  ;;  %v2944_v32 = vld [vmem:[#allocation2 + $0xc48] sm:$0xff] }
 0x1e2   : > { %v970_v25 = vsub.f32 %v968_v35, %v969_v31  ;;  %v1026_v4 = vmul.f32 %v4414_v41, %v971_v9  ;;  %v1277_v48 = vmul.f32 %v1228_v17, %v4414_v41  ;;  %v1522_v40 = vmul.f32 %v1473_v2, %v4414_v41  ;;  %v973_v35 = vld [vmem:[#allocation2 + $0x10] sm:$0xff]  ;;  %v1230_v9 = vld [vmem:[#allocation2 + $0x198] sm:$0xff] }
 0x1e3   : > { %v1767_v33 = vmul.f32 %v1718_v36, %v4414_v41  ;;  %v2012_v46 = vmul.f32 %v1963_v28, %v4414_v41  ;;  %v2257_v54 = vmul.f32 %v2208_v43, %v4414_v41  ;;  %v2502_v51 = vmul.f32 %v2453_v44, %v4414_v41 }
 0x1e4   : > { %v4423_v57 = vrot.slane %v970_v25, %v1023_v30  ;;  %v2747_v52 = vmul.f32 %v2698_v45, %v4414_v41  ;;  %v2992_v8 = vmul.f32 %v2943_v55, %v4414_v41  ;;  %v1027_v59 = vmul.f32 %v4414_v41, %v972_v34  ;;  %v1475_v55 = vld [vmem:[#allocation2 + $0x320] sm:$0xff] }
 0x1e5   : > { %v1278_v37 = vmul.f32 %v1229_v16, %v4414_v41  ;;  %v1523_v58 = vmul.f32 %v1474_v10, %v4414_v41  ;;  %v1768_v61 = vmul.f32 %v1719_v53, %v4414_v41  ;;  %v2013_v20 = vmul.f32 %v1964_v60, %v4414_v41 }
 0x1e6   : > { %v1081_v3 = vadd.f32 %v4423_v57, %v1026_v4  ;;  %v1326_v5 = vadd.f32 %v1277_v48, %v4423_v57  ;;  %v1571_v0 = vadd.f32 %v1522_v40, %v4423_v57  ;;  %v1816_v62 = vadd.f32 %v1767_v33, %v4423_v57 }
 0x1e7   : > { %v2061_v24 = vadd.f32 %v2012_v46, %v4423_v57  ;;  %v4437_v6 = vadd.f32 %v2257_v54, %v4423_v57  ;;  %v4440_v7 = vadd.f32 %v2502_v51, %v4423_v57  ;;  %v4444_v12 = vadd.f32 %v2747_v52, %v4423_v57  ;;  %v1720_v52 = vld [vmem:[#allocation2 + $0x4a8] sm:$0xff] }
 0x1e8   : > { %v1130_v11 = vmax.f32 %v1081_v3, 0.0  ;;  %v1375_v19 = vmax.f32 %v1326_v5, 0.0  ;;  %v1620_v13 = vmax.f32 %v1571_v0, 0.0  ;;  %v1865_v21 = vmax.f32 %v1816_v62, 0.0  ;;  %v2455_v3 = vld [vmem:[#allocation2 + $0x940] sm:$0xff] }
 0x1e9   : > { %v2110_v42 = vmax.f32 %v2061_v24, 0.0  ;;  %v2355_v39 = vmax.f32 %v4437_v6, 0.0  ;;  %v2600_v15 = vmax.f32 %v4440_v7, 0.0  ;;  %v4449_v22 = vadd.f32 %v2992_v8, %v4423_v57  ;;  %v1965_v8 = vld [vmem:[#allocation2 + $0x630] sm:$0xff] }
 0x1ea   : > { %v1179_v29 = vmax.f32 %v1130_v11, 0.0  ;;  %v1082_v63 = vadd.f32 %v4423_v57, %v1027_v59  ;;  %v1327_v23 = vadd.f32 %v1278_v37, %v4423_v57  ;;  %v1572_v38 = vadd.f32 %v1523_v58, %v4423_v57 }
 0x1eb   : > { %v1817_v26 = vadd.f32 %v1768_v61, %v4423_v57  ;;  %v2062_v50 = vadd.f32 %v2013_v20, %v4423_v57  ;;  %v2258_v47 = vmul.f32 %v2209_v14, %v4414_v41  ;;  %v2845_v49 = vmax.f32 %v4444_v12, 0.0  ;;  %v2210_v61 = vld [vmem:[#allocation2 + $0x7b8] sm:$0xff] }
 0x1ec   : > { %v1424_v56 = vmax.f32 %v1179_v29, %v1375_v19  ;;  %v1131_v30 = vmax.f32 %v1082_v63, 0.0  ;;  %v1376_v1 = vmax.f32 %v1327_v23, 0.0  ;;  %v3090_v17 = vmax.f32 %v4449_v22, 0.0  ;;  %v2700_v19 = vld [vmem:[#allocation2 + $0xac8] sm:$0xff] }
 0x1ed   : > { %v1621_v2 = vmax.f32 %v1572_v38, 0.0  ;;  %v1866_v36 = vmax.f32 %v1817_v26, 0.0  ;;  %v2307_v31 = vadd.f32 %v2258_v47, %v4423_v57  ;;  %v2503_v44 = vmul.f32 %v2454_v27, %v4414_v41  ;;  %v2945_v47 = vld [vmem:[#allocation2 + $0xc50] sm:$0xff]  ;;  %v974_v27 = vld [vmem:[#allocation2 + $0x18] sm:$0xff] }
 0x1ee   : > { %v1669_v28 = vmax.f32 %v1424_v56, %v1620_v13  ;;  %v1180_v43 = vmax.f32 %v1131_v30, 0.0  ;;  %v2748_v45 = vmul.f32 %v2699_v18, %v4414_v41  ;;  %v2111_v34 = vmax.f32 %v2062_v50, 0.0 }
 0x1ef   : > { %v2993_v25 = vmul.f32 %v2944_v32, %v4414_v41  ;;  %v1028_v4 = vmul.f32 %v4414_v41, %v973_v35  ;;  %v1279_v48 = vmul.f32 %v1230_v9, %v4414_v41  ;;  %v2552_v10 = vadd.f32 %v2503_v44, %v4423_v57  ;;  %v1231_v32 = vld [vmem:[#allocation2 + $0x1a0] sm:$0xff] }
 0x1f0   : > { %v1914_v40 = vmax.f32 %v1669_v28, %v1865_v21  ;;  %v1425_v16 = vmax.f32 %v1180_v43, %v1376_v1  ;;  %v2797_v53 = vadd.f32 %v2748_v45, %v4423_v57  ;;  %v2356_v33 = vmax.f32 %v2307_v31, 0.0  ;;  %v1721_v31 = vld [vmem:[#allocation2 + $0x4b0] sm:$0xff] }
 0x1f1   : > { %v1083_v46 = vadd.f32 %v4423_v57, %v1028_v4  ;;  %v1328_v54 = vadd.f32 %v1279_v48, %v4423_v57  ;;  %v1524_v51 = vmul.f32 %v1475_v55, %v4414_v41  ;;  %v2601_v37 = vmax.f32 %v2552_v10, 0.0 }
 0x1f2   : > { %v2159_v60 = vmax.f32 %v1914_v40, %v2110_v42  ;;  %v1670_v59 = vmax.f32 %v1425_v16, %v1621_v2  ;;  %v3042_v58 = vadd.f32 %v2993_v25, %v4423_v57  ;;  %v2846_v5 = vmax.f32 %v2797_v53, 0.0 }
 0x1f3   : > { %v1132_v0 = vmax.f32 %v1083_v46, 0.0  ;;  %v1377_v62 = vmax.f32 %v1328_v54, 0.0  ;;  %v1573_v24 = vadd.f32 %v1524_v51, %v4423_v57  ;;  %v1769_v20 = vmul.f32 %v1720_v52, %v4414_v41  ;;  %v2211_v46 = vld [vmem:[#allocation2 + $0x7c0] sm:$0xff]  ;;  %v2456_v54 = vld [vmem:[#allocation2 + $0x948] sm:$0xff] }
 0x1f4   : > { %v2404_v6 = vmax.f32 %v2159_v60, %v2355_v39  ;;  %v1915_v7 = vmax.f32 %v1670_v59, %v1866_v36  ;;  %v2014_v11 = vmul.f32 %v1965_v8, %v4414_v41  ;;  %v2259_v14 = vmul.f32 %v2210_v61, %v4414_v41  ;;  %v2701_v59 = vld [vmem:[#allocation2 + $0xad0] sm:$0xff] }
 0x1f5   : > { %v1181_v13 = vmax.f32 %v1132_v0, 0.0  ;;  %v1622_v12 = vmax.f32 %v1573_v24, 0.0  ;;  %v2504_v21 = vmul.f32 %v2455_v3, %v4414_v41  ;;  %v1818_v63 = vadd.f32 %v1769_v20, %v4423_v57  ;;  %v975_v0 = vld [vmem:[#allocation2 + $0x20] sm:$0xff]  ;;  %v1232_v20 = vld [vmem:[#allocation2 + $0x1a8] sm:$0xff] }
 0x1f6   : > { %v2649_v42 = vmax.f32 %v2404_v6, %v2600_v15  ;;  %v2160_v29 = vmax.f32 %v1915_v7, %v2111_v34  ;;  %v2063_v23 = vadd.f32 %v2014_v11, %v4423_v57  ;;  %v2308_v39 = vadd.f32 %v2259_v14, %v4423_v57  ;;  %v1476_v15 = vld [vmem:[#allocation2 + $0x328] sm:$0xff] }
 0x1f7   : > { %v1426_v38 = vmax.f32 %v1181_v13, %v1377_v62  ;;  %v2553_v26 = vadd.f32 %v2504_v21, %v4423_v57  ;;  %v2749_v50 = vmul.f32 %v2700_v19, %v4414_v41  ;;  %v3091_v30 = vmax.f32 %v3042_v58, 0.0 }
 0x1f8   : > { %v2894_v18 = vmax.f32 %v2649_v42, %v2845_v49  ;;  %v2405_v56 = vmax.f32 %v2160_v29, %v2356_v33  ;;  %v1867_v1 = vmax.f32 %v1818_v63, 0.0  ;;  %v2112_v9 = vmax.f32 %v2063_v23, 0.0  ;;  %v1966_v49 = vld [vmem:[#allocation2 + $0x638] sm:$0xff] }
 0x1f9   : > { %v1671_v35 = vmax.f32 %v1426_v38, %v1622_v12  ;;  %v2357_v2 = vmax.f32 %v2308_v39, 0.0  ;;  %v2798_v36 = vadd.f32 %v2749_v50, %v4423_v57  ;;  %v2994_v44 = vmul.f32 %v2945_v47, %v4414_v41  ;;  %v1722_v50 = vld [vmem:[#allocation2 + $0x4b8] sm:$0xff] }
 0x1fa   : > { %v3139_v28 = vmax.f32 %v2894_v18, %v3090_v17  ;;  %v2650_v43 = vmax.f32 %v2405_v56, %v2601_v37  ;;  %v1029_v45 = vmul.f32 %v4414_v41, %v974_v27  ;;  %v2602_v34 = vmax.f32 %v2553_v26, 0.0  ;;  %v2946_v37 = vld [vmem:[#allocation2 + $0xc58] sm:$0xff]  ;;  %v1477_v26 = vld [vmem:[#allocation2 + $0x330] sm:$0xff] }
 0x1fb   : > { %v1916_v55 = vmax.f32 %v1671_v35, %v1867_v1  ;;  %v1280_v25 = vmul.f32 %v1231_v32, %v4414_v41  ;;  %v1525_v4 = vmul.f32 %v1476_v15, %v4414_v41  ;;  %v3043_v22 = vadd.f32 %v2994_v44, %v4423_v57  ;;  %v2212_v1 = vld [vmem:[#allocation2 + $0x7c8] sm:$0xff]  ;;  %v2457_v32 = vld [vmem:[#allocation2 + $0x950] sm:$0xff]  ;;  %v2702_v44 = vld [vmem:[#allocation2 + $0xad8] sm:$0xff] }
 0x1fc   : > { %3188 = vst [vmem:[%s5469_s5] sm:$0xff] %v3139_v28  ;;  %v2895_v48 = vmax.f32 %v2650_v43, %v2846_v5  ;;  %v1084_v17 = vadd.f32 %v4423_v57, %v1029_v45  ;;  %v1770_v40 = vmul.f32 %v1721_v31, %v4414_v41  ;;  %v2015_v33 = vmul.f32 %v1966_v49, %v4414_v41 }
 0x1fd   : > { %v2161_v16 = vmax.f32 %v1916_v55, %v2112_v9  ;;  %v1329_v10 = vadd.f32 %v1280_v25, %v4423_v57  ;;  %v1574_v53 = vadd.f32 %v1525_v4, %v4423_v57  ;;  %v2847_v52 = vmax.f32 %v2798_v36, 0.0 }
 0x1fe   : > { %v3140_v51 = vmax.f32 %v2895_v48, %v3091_v30  ;;  %v1133_v8 = vmax.f32 %v1084_v17, 0.0  ;;  %v1819_v60 = vadd.f32 %v1770_v40, %v4423_v57  ;;  %v3092_v61 = vmax.f32 %v3043_v22, 0.0  ;;  %v1967_v30 = vld [vmem:[#allocation2 + $0x640] sm:$0xff] }
 0x1ff   : > { %v2406_v58 = vmax.f32 %v2161_v16, %v2357_v2  ;;  %v1378_v3 = vmax.f32 %v1329_v10, 0.0  ;;  %v2064_v5 = vadd.f32 %v2015_v33, %v4423_v57  ;;  %v1623_v24 = vmax.f32 %v1574_v53, 0.0  ;;  %v2947_v53 = vld [vmem:[#allocation2 + $0xc60] sm:$0xff]  ;;  %v976_v33 = vld [vmem:[#allocation2 + $0x28] sm:$0xff] }
 0x200   : > { %3189 = vst [vmem:[%s5469_s5 + $0x8] sm:$0xff] %v3140_v51  ;;  %v1182_v62 = vmax.f32 %v1133_v8, 0.0  ;;  %v2260_v6 = vmul.f32 %v2211_v46, %v4414_v41  ;;  %v2505_v7 = vmul.f32 %v2456_v54, %v4414_v41  ;;  %v1868_v19 = vmax.f32 %v1819_v60, 0.0  ;;  %v1233_v8 = vld [vmem:[#allocation2 + $0x1b0] sm:$0xff]  ;;  %v1478_v60 = vld [vmem:[#allocation2 + $0x338] sm:$0xff] }
 0x201   : > { %v2651_v11 = vmax.f32 %v2406_v58, %v2602_v34  ;;  %v2750_v13 = vmul.f32 %v2701_v59, %v4414_v41  ;;  %v2995_v12 = vmul.f32 %v2946_v37, %v4414_v41  ;;  %v1030_v29 = vmul.f32 %v4414_v41, %v975_v0  ;;  %v1723_v59 = vld [vmem:[#allocation2 + $0x4c0] sm:$0xff] }
 0x202   : > { %v1427_v14 = vmax.f32 %v1182_v62, %v1378_v3  ;;  %v2309_v21 = vadd.f32 %v2260_v6, %v4423_v57  ;;  %v2554_v42 = vadd.f32 %v2505_v7, %v4423_v57  ;;  %v2113_v23 = vmax.f32 %v2064_v5, 0.0  ;;  %v1968_v6 = vld [vmem:[#allocation2 + $0x648] sm:$0xff] }
 0x203   : > { %v2896_v63 = vmax.f32 %v2651_v11, %v2847_v52  ;;  %v2799_v38 = vadd.f32 %v2750_v13, %v4423_v57  ;;  %v1281_v39 = vmul.f32 %v1232_v20, %v4414_v41  ;;  %v3044_v18 = vadd.f32 %v2995_v12, %v4423_v57 }
 0x204   : > { %v1672_v47 = vmax.f32 %v1427_v14, %v1623_v24  ;;  %v2358_v27 = vmax.f32 %v2309_v21, 0.0  ;;  %v1085_v56 = vadd.f32 %v4423_v57, %v1030_v29  ;;  %v2603_v35 = vmax.f32 %v2554_v42, 0.0 }
 0x205   : > { %v3141_v15 = vmax.f32 %v2896_v63, %v3092_v61  ;;  %v2848_v9 = vmax.f32 %v2799_v38, 0.0  ;;  %v1330_v2 = vadd.f32 %v1281_v39, %v4423_v57  ;;  %v1526_v28 = vmul.f32 %v1477_v26, %v4414_v41  ;;  %v2213_v38 = vld [vmem:[#allocation2 + $0x7d0] sm:$0xff]  ;;  %v2458_v39 = vld [vmem:[#allocation2 + $0x958] sm:$0xff] }
 0x206   : > { %v1917_v36 = vmax.f32 %v1672_v47, %v1868_v19  ;;  %v1134_v31 = vmax.f32 %v1085_v56, 0.0  ;;  %v1771_v43 = vmul.f32 %v1722_v50, %v4414_v41  ;;  %v2016_v49 = vmul.f32 %v1967_v30, %v4414_v41  ;;  %v2948_v56 = vld [vmem:[#allocation2 + $0xc68] sm:$0xff]  ;;  %v977_v30 = vld [vmem:[#allocation2 + $0x30] sm:$0xff] }
 0x207   : > { %3190 = vst [vmem:[%s5469_s5 + $0x10] sm:$0xff] %v3141_v15  ;;  %v1379_v45 = vmax.f32 %v1330_v2, 0.0  ;;  %v2261_v55 = vmul.f32 %v2212_v1, %v4414_v41  ;;  %v2506_v34 = vmul.f32 %v2457_v32, %v4414_v41  ;;  %v1575_v48 = vadd.f32 %v1526_v28, %v4423_v57  ;;  %v1234_v28 = vld [vmem:[#allocation2 + $0x1b8] sm:$0xff] }
 0x208   : > { %v2162_v25 = vmax.f32 %v1917_v36, %v2113_v23  ;;  %v1183_v4 = vmax.f32 %v1134_v31, 0.0  ;;  %v1820_v22 = vadd.f32 %v1771_v43, %v4423_v57  ;;  %v2065_v17 = vadd.f32 %v2016_v49, %v4423_v57 }
 0x209   : > { %v2310_v40 = vadd.f32 %v2261_v55, %v4423_v57  ;;  %v2555_v16 = vadd.f32 %v2506_v34, %v4423_v57  ;;  %v2751_v10 = vmul.f32 %v2702_v44, %v4414_v41  ;;  %v1624_v51 = vmax.f32 %v1575_v48, 0.0 }
 0x20a   : > { %v2407_v46 = vmax.f32 %v2162_v25, %v2358_v27  ;;  %v1428_v54 = vmax.f32 %v1183_v4, %v1379_v45  ;;  %v1869_v52 = vmax.f32 %v1820_v22, 0.0  ;;  %v3093_v37 = vmax.f32 %v3044_v18, 0.0  ;;  %v2703_v18 = vld [vmem:[#allocation2 + $0xae0] sm:$0xff] }
 0x20b   : > { %v2114_v58 = vmax.f32 %v2065_v17, 0.0  ;;  %v2359_v61 = vmax.f32 %v2310_v40, 0.0  ;;  %v2800_v3 = vadd.f32 %v2751_v10, %v4423_v57  ;;  %v2996_v62 = vmul.f32 %v2947_v53, %v4414_v41  ;;  %v1724_v10 = vld [vmem:[#allocation2 + $0x4c8] sm:$0xff] }
 0x20c   : > { %v2652_v5 = vmax.f32 %v2407_v46, %v2603_v35  ;;  %v1673_v0 = vmax.f32 %v1428_v54, %v1624_v51  ;;  %v1031_v24 = vmul.f32 %v4414_v41, %v976_v33  ;;  %v2604_v7 = vmax.f32 %v2555_v16, 0.0  ;;  %v1479_v16 = vld [vmem:[#allocation2 + $0x340] sm:$0xff]  ;;  %v1969_v51 = vld [vmem:[#allocation2 + $0x650] sm:$0xff] }
 0x20d   : > { %v1282_v20 = vmul.f32 %v1233_v8, %v4414_v41  ;;  %v1527_v11 = vmul.f32 %v1478_v60, %v4414_v41  ;;  %v1772_v19 = vmul.f32 %v1723_v59, %v4414_v41  ;;  %v3045_v14 = vadd.f32 %v2996_v62, %v4423_v57  ;;  %v2704_v62 = vld [vmem:[#allocation2 + $0xae8] sm:$0xff] }
 0x20e   : > { %v2897_v13 = vmax.f32 %v2652_v5, %v2848_v9  ;;  %v1918_v12 = vmax.f32 %v1673_v0, %v1869_v52  ;;  %v1086_v21 = vadd.f32 %v4423_v57, %v1031_v24  ;;  %v2017_v23 = vmul.f32 %v1968_v6, %v4414_v41  ;;  %v2214_v52 = vld [vmem:[#allocation2 + $0x7d8] sm:$0xff] }
 0x20f   : > { %v1331_v42 = vadd.f32 %v1282_v20, %v4423_v57  ;;  %v1576_v29 = vadd.f32 %v1527_v11, %v4423_v57  ;;  %v1821_v63 = vadd.f32 %v1772_v19, %v4423_v57  ;;  %v2849_v47 = vmax.f32 %v2800_v3, 0.0 }
 0x210   : > { %v3142_v26 = vmax.f32 %v2897_v13, %v3093_v37  ;;  %v2163_v50 = vmax.f32 %v1918_v12, %v2114_v58  ;;  %v1135_v27 = vmax.f32 %v1086_v21, 0.0  ;;  %v3094_v1 = vmax.f32 %v3045_v14, 0.0  ;;  %v2459_v58 = vld [vmem:[#allocation2 + $0x960] sm:$0xff]  ;;  %v2949_v14 = vld [vmem:[#allocation2 + $0xc70] sm:$0xff] }
 0x211   : > { %v1380_v32 = vmax.f32 %v1331_v42, 0.0  ;;  %v1625_v15 = vmax.f32 %v1576_v29, 0.0  ;;  %v2066_v35 = vadd.f32 %v2017_v23, %v4423_v57  ;;  %v2262_v36 = vmul.f32 %v2213_v38, %v4414_v41  ;;  %v978_v23 = vld [vmem:[#allocation2 + $0x38] sm:$0xff] }
 0x212   : > { %3191 = vst [vmem:[%s5469_s5 + $0x18] sm:$0xff] %v3142_v26  ;;  %v2408_v9 = vmax.f32 %v2163_v50, %v2359_v61  ;;  %v1184_v2 = vmax.f32 %v1135_v27, 0.0  ;;  %v2507_v31 = vmul.f32 %v2458_v39, %v4414_v41  ;;  %v1870_v43 = vmax.f32 %v1821_v63, 0.0  ;;  %v1480_v27 = vld [vmem:[#allocation2 + $0x348] sm:$0xff] }
 0x213   : > { %v2752_v44 = vmul.f32 %v2703_v18, %v4414_v41  ;;  %v2997_v45 = vmul.f32 %v2948_v56, %v4414_v41  ;;  %v1032_v49 = vmul.f32 %v4414_v41, %v977_v30  ;;  %v2311_v25 = vadd.f32 %v2262_v36, %v4423_v57  ;;  %v1970_v36 = vld [vmem:[#allocation2 + $0x658] sm:$0xff] }
 0x214   : > { %v2653_v55 = vmax.f32 %v2408_v9, %v2604_v7  ;;  %v1429_v34 = vmax.f32 %v1184_v2, %v1380_v32  ;;  %v2556_v4 = vadd.f32 %v2507_v31, %v4423_v57  ;;  %v2115_v48 = vmax.f32 %v2066_v35, 0.0  ;;  %v1725_v32 = vld [vmem:[#allocation2 + $0x4d0] sm:$0xff] }
 0x215   : > { %v2801_v22 = vadd.f32 %v2752_v44, %v4423_v57  ;;  %v1087_v17 = vadd.f32 %v4423_v57, %v1032_v49  ;;  %v1283_v40 = vmul.f32 %v1234_v28, %v4414_v41  ;;  %v2360_v46 = vmax.f32 %v2311_v25, 0.0  ;;  %v2215_v25 = vld [vmem:[#allocation2 + $0x7e0] sm:$0xff] }
 0x216   : > { %v2898_v53 = vmax.f32 %v2653_v55, %v2849_v47  ;;  %v1674_v33 = vmax.f32 %v1429_v34, %v1625_v15  ;;  %v3046_v54 = vadd.f32 %v2997_v45, %v4423_v57  ;;  %v2605_v8 = vmax.f32 %v2556_v4, 0.0  ;;  %v1235_v47 = vld [vmem:[#allocation2 + $0x1c0] sm:$0xff] }
 0x217   : > { %v2850_v60 = vmax.f32 %v2801_v22, 0.0  ;;  %v1136_v59 = vmax.f32 %v1087_v17, 0.0  ;;  %v1332_v37 = vadd.f32 %v1283_v40, %v4423_v57  ;;  %v1528_v5 = vmul.f32 %v1479_v16, %v4414_v41  ;;  %v2460_v40 = vld [vmem:[#allocation2 + $0x968] sm:$0xff] }
 0x218   : > { %v3143_v61 = vmax.f32 %v2898_v53, %v3094_v1  ;;  %v1919_v3 = vmax.f32 %v1674_v33, %v1870_v43  ;;  %v1773_v0 = vmul.f32 %v1724_v10, %v4414_v41  ;;  %v2018_v7 = vmul.f32 %v1969_v51, %v4414_v41 }
 0x219   : > { %v1185_v24 = vmax.f32 %v1136_v59, 0.0  ;;  %v1381_v6 = vmax.f32 %v1332_v37, 0.0  ;;  %v2263_v20 = vmul.f32 %v2214_v52, %v4414_v41  ;;  %v1577_v19 = vadd.f32 %v1528_v5, %v4423_v57  ;;  %v979_v59 = vld [vmem:[#allocation2 + $0x40] sm:$0xff]  ;;  %v1236_v5 = vld [vmem:[#allocation2 + $0x1c8] sm:$0xff] }
 0x21a   : > { %3192 = vst [vmem:[%s5469_s5 + $0x20] sm:$0xff] %v3143_v61  ;;  %v2164_v11 = vmax.f32 %v1919_v3, %v2115_v48  ;;  %v1822_v13 = vadd.f32 %v1773_v0, %v4423_v57  ;;  %v2508_v12 = vmul.f32 %v2459_v58, %v4414_v41  ;;  %v2067_v42 = vadd.f32 %v2018_v7, %v4423_v57 }
 0x21b   : > { %v1430_v21 = vmax.f32 %v1185_v24, %v1381_v6  ;;  %v2312_v29 = vadd.f32 %v2263_v20, %v4423_v57  ;;  %v2753_v63 = vmul.f32 %v2704_v62, %v4414_v41  ;;  %v1626_v39 = vmax.f32 %v1577_v19, 0.0 }
 0x21c   : > { %v2409_v38 = vmax.f32 %v2164_v11, %v2360_v46  ;;  %v1871_v26 = vmax.f32 %v1822_v13, 0.0  ;;  %v2557_v50 = vadd.f32 %v2508_v12, %v4423_v57  ;;  %v3095_v18 = vmax.f32 %v3046_v54, 0.0  ;;  %v2705_v46 = vld [vmem:[#allocation2 + $0xaf0] sm:$0xff]  ;;  %v2950_v54 = vld [vmem:[#allocation2 + $0xc78] sm:$0xff] }
 0x21d   : > { %v2116_v56 = vmax.f32 %v2067_v42, 0.0  ;;  %v2802_v30 = vadd.f32 %v2753_v63, %v4423_v57  ;;  %v2998_v1 = vmul.f32 %v2949_v14, %v4414_v41  ;;  %v1675_v35 = vmax.f32 %v1430_v21, %v1626_v39  ;;  %v1481_v13 = vld [vmem:[#allocation2 + $0x350] sm:$0xff] }
 0x21e   : > { %v2654_v15 = vmax.f32 %v2409_v38, %v2605_v8  ;;  %v2361_v9 = vmax.f32 %v2312_v29, 0.0  ;;  %v1033_v2 = vmul.f32 %v4414_v41, %v978_v23  ;;  %v2606_v31 = vmax.f32 %v2557_v50, 0.0  ;;  %v1726_v29 = vld [vmem:[#allocation2 + $0x4d8] sm:$0xff]  ;;  %v2216_v50 = vld [vmem:[#allocation2 + $0x7e8] sm:$0xff] }
 0x21f   : > { %v3047_v28 = vadd.f32 %v2998_v1, %v4423_v57  ;;  %v1284_v43 = vmul.f32 %v1235_v47, %v4414_v41  ;;  %v1529_v44 = vmul.f32 %v1480_v27, %v4414_v41  ;;  %v1920_v49 = vmax.f32 %v1675_v35, %v1871_v26  ;;  %v1971_v26 = vld [vmem:[#allocation2 + $0x660] sm:$0xff] }
 0x220   : > { %v2899_v45 = vmax.f32 %v2654_v15, %v2850_v60  ;;  %v1088_v55 = vadd.f32 %v4423_v57, %v1033_v2  ;;  %v1774_v34 = vmul.f32 %v1725_v32, %v4414_v41  ;;  %v2851_v4 = vmax.f32 %v2802_v30, 0.0  ;;  %v2461_v30 = vld [vmem:[#allocation2 + $0x970] sm:$0xff] }
 0x221   : > { %v1333_v48 = vadd.f32 %v1284_v43, %v4423_v57  ;;  %v1578_v22 = vadd.f32 %v1529_v44, %v4423_v57  ;;  %v2019_v17 = vmul.f32 %v1970_v36, %v4414_v41  ;;  %v2165_v10 = vmax.f32 %v1920_v49, %v2116_v56 }
 0x222   : > { %v3144_v16 = vmax.f32 %v2899_v45, %v3095_v18  ;;  %v1137_v53 = vmax.f32 %v1088_v55, 0.0  ;;  %v1823_v33 = vadd.f32 %v1774_v34, %v4423_v57  ;;  %v3096_v51 = vmax.f32 %v3047_v28, 0.0  ;;  %v2951_v55 = vld [vmem:[#allocation2 + $0xc80] sm:$0xff] }
 0x223   : > { %v1382_v52 = vmax.f32 %v1333_v48, 0.0  ;;  %v2068_v8 = vadd.f32 %v2019_v17, %v4423_v57  ;;  %v2264_v60 = vmul.f32 %v2215_v25, %v4414_v41  ;;  %v2410_v37 = vmax.f32 %v2165_v10, %v2361_v9  ;;  %v2706_v9 = vld [vmem:[#allocation2 + $0xaf8] sm:$0xff] }
 0x224   : > { %3193 = vst [vmem:[%s5469_s5 + $0x28] sm:$0xff] %v3144_v16  ;;  %v1186_v58 = vmax.f32 %v1137_v53, 0.0  ;;  %v1627_v61 = vmax.f32 %v1578_v22, 0.0  ;;  %v2509_v3 = vmul.f32 %v2460_v40, %v4414_v41  ;;  %v1872_v0 = vmax.f32 %v1823_v33, 0.0  ;;  %v980_v22 = vld [vmem:[#allocation2 + $0x48] sm:$0xff]  ;;  %v1237_v53 = vld [vmem:[#allocation2 + $0x1d0] sm:$0xff] }
 0x225   : > { %v2313_v62 = vadd.f32 %v2264_v60, %v4423_v57  ;;  %v2754_v24 = vmul.f32 %v2705_v46, %v4414_v41  ;;  %v2999_v6 = vmul.f32 %v2950_v54, %v4414_v41  ;;  %v2655_v7 = vmax.f32 %v2410_v37, %v2606_v31  ;;  %v1482_v33 = vld [vmem:[#allocation2 + $0x358] sm:$0xff] }
 0x226   : > { %v1431_v20 = vmax.f32 %v1186_v58, %v1382_v52  ;;  %v2558_v11 = vadd.f32 %v2509_v3, %v4423_v57  ;;  %v1034_v19 = vmul.f32 %v4414_v41, %v979_v59  ;;  %v2117_v12 = vmax.f32 %v2068_v8, 0.0  ;;  %v1727_v8 = vld [vmem:[#allocation2 + $0x4e0] sm:$0xff] }
 0x227   : > { %v2362_v14 = vmax.f32 %v2313_v62, 0.0  ;;  %v2803_v21 = vadd.f32 %v2754_v24, %v4423_v57  ;;  %v1285_v42 = vmul.f32 %v1236_v5, %v4414_v41  ;;  %v2900_v63 = vmax.f32 %v2655_v7, %v2851_v4 }
 0x228   : > { %v1676_v23 = vmax.f32 %v1431_v20, %v1627_v61  ;;  %v3048_v38 = vadd.f32 %v2999_v6, %v4423_v57  ;;  %v1089_v39 = vadd.f32 %v4423_v57, %v1034_v19  ;;  %v2607_v47 = vmax.f32 %v2558_v11, 0.0  ;;  %v1972_v61 = vld [vmem:[#allocation2 + $0x668] sm:$0xff]  ;;  %v2217_v11 = vld [vmem:[#allocation2 + $0x7f0] sm:$0xff] }
 0x229   : > { %v2852_v27 = vmax.f32 %v2803_v21, 0.0  ;;  %v1334_v18 = vadd.f32 %v1285_v42, %v4423_v57  ;;  %v1530_v56 = vmul.f32 %v1481_v13, %v4414_v41  ;;  %v3145_v1 = vmax.f32 %v2900_v63, %v3096_v51  ;;  %v2462_v21 = vld [vmem:[#allocation2 + $0x978] sm:$0xff] }
 0x22a   : > { %v1921_v32 = vmax.f32 %v1676_v23, %v1872_v0  ;;  %v1138_v15 = vmax.f32 %v1089_v39, 0.0  ;;  %v1775_v35 = vmul.f32 %v1726_v29, %v4414_v41  ;;  %v2020_v31 = vmul.f32 %v1971_v26, %v4414_v41  ;;  %v2952_v39 = vld [vmem:[#allocation2 + $0xc88] sm:$0xff] }
 0x22b   : > { %v1383_v2 = vmax.f32 %v1334_v18, 0.0  ;;  %v1579_v36 = vadd.f32 %v1530_v56, %v4423_v57  ;;  %v2265_v28 = vmul.f32 %v2216_v50, %v4414_v41  ;;  %3194 = vst [vmem:[%s5469_s5 + $0x30] sm:$0xff] %v3145_v1  ;;  %v2510_v49 = vmul.f32 %v2461_v30, %v4414_v41  ;;  %v981_v18 = vld [vmem:[#allocation2 + $0x50] sm:$0xff] }
 0x22c   : > { %v2166_v43 = vmax.f32 %v1921_v32, %v2117_v12  ;;  %v1187_v44 = vmax.f32 %v1138_v15, 0.0  ;;  %v1824_v45 = vadd.f32 %v1775_v35, %v4423_v57  ;;  %v2069_v25 = vadd.f32 %v2020_v31, %v4423_v57  ;;  %v1238_v15 = vld [vmem:[#allocation2 + $0x1d8] sm:$0xff] }
 0x22d   : > { %v1628_v34 = vmax.f32 %v1579_v36, 0.0  ;;  %v2314_v4 = vadd.f32 %v2265_v28, %v4423_v57  ;;  %v2755_v48 = vmul.f32 %v2706_v9, %v4414_v41  ;;  %v2559_v10 = vadd.f32 %v2510_v49, %v4423_v57 }
 0x22e   : > { %v2411_v17 = vmax.f32 %v2166_v43, %v2362_v14  ;;  %v1432_v40 = vmax.f32 %v1187_v44, %v1383_v2  ;;  %v1873_v16 = vmax.f32 %v1824_v45, 0.0  ;;  %v3097_v46 = vmax.f32 %v3048_v38, 0.0  ;;  %v2707_v38 = vld [vmem:[#allocation2 + $0xb00] sm:$0xff] }
 0x22f   : > { %v2118_v54 = vmax.f32 %v2069_v25, 0.0  ;;  %v2804_v51 = vadd.f32 %v2755_v48, %v4423_v57  ;;  %v3000_v52 = vmul.f32 %v2951_v55, %v4414_v41  ;;  %v2363_v37 = vmax.f32 %v2314_v4, 0.0  ;;  %v1483_v45 = vld [vmem:[#allocation2 + $0x360] sm:$0xff]  ;;  %v1728_v4 = vld [vmem:[#allocation2 + $0x4e8] sm:$0xff] }
 0x230   : > { %v2656_v60 = vmax.f32 %v2411_v17, %v2607_v47  ;;  %v1677_v59 = vmax.f32 %v1432_v40, %v1628_v34  ;;  %v1035_v58 = vmul.f32 %v4414_v41, %v980_v22  ;;  %v2608_v3 = vmax.f32 %v2559_v10, 0.0  ;;  %v2218_v10 = vld [vmem:[#allocation2 + $0x7f8] sm:$0xff] }
 0x231   : > { %v3049_v5 = vadd.f32 %v3000_v52, %v4423_v57  ;;  %v1286_v0 = vmul.f32 %v1237_v53, %v4414_v41  ;;  %v1531_v62 = vmul.f32 %v1482_v33, %v4414_v41  ;;  %v1776_v20 = vmul.f32 %v1727_v8, %v4414_v41 }
 0x232   : > { %v2901_v24 = vmax.f32 %v2656_v60, %v2852_v27  ;;  %v1922_v6 = vmax.f32 %v1677_v59, %v1873_v16  ;;  %v1090_v7 = vadd.f32 %v4423_v57, %v1035_v58  ;;  %v2853_v19 = vmax.f32 %v2804_v51, 0.0  ;;  %v1973_v16 = vld [vmem:[#allocation2 + $0x670] sm:$0xff]  ;;  %v2463_v51 = vld [vmem:[#allocation2 + $0x980] sm:$0xff] }
 0x233   : > { %v1335_v13 = vadd.f32 %v1286_v0, %v4423_v57  ;;  %v1580_v12 = vadd.f32 %v1531_v62, %v4423_v57  ;;  %v2021_v14 = vmul.f32 %v1972_v61, %v4414_v41  ;;  %v1825_v23 = vadd.f32 %v1776_v20, %v4423_v57 }
 0x234   : > { %v3146_v42 = vmax.f32 %v2901_v24, %v3097_v46  ;;  %v2167_v29 = vmax.f32 %v1922_v6, %v2118_v54  ;;  %v1139_v63 = vmax.f32 %v1090_v7, 0.0  ;;  %v3098_v26 = vmax.f32 %v3049_v5, 0.0  ;;  %v2953_v7 = vld [vmem:[#allocation2 + $0xc90] sm:$0xff] }
 0x235   : > { %v1384_v50 = vmax.f32 %v1335_v13, 0.0  ;;  %v2070_v47 = vadd.f32 %v2021_v14, %v4423_v57  ;;  %v2266_v27 = vmul.f32 %v2217_v11, %v4414_v41  ;;  %v1629_v1 = vmax.f32 %v1580_v12, 0.0  ;;  %v982_v12 = vld [vmem:[#allocation2 + $0x58] sm:$0xff] }
 0x236   : > { %3195 = vst [vmem:[%s5469_s5 + $0x38] sm:$0xff] %v3146_v42  ;;  %v2412_v56 = vmax.f32 %v2167_v29, %v2363_v37  ;;  %v1188_v30 = vmax.f32 %v1139_v63, 0.0  ;;  %v2511_v32 = vmul.f32 %v2462_v21, %v4414_v41  ;;  %v1874_v35 = vmax.f32 %v1825_v23, 0.0  ;;  %v2708_v37 = vld [vmem:[#allocation2 + $0xb08] sm:$0xff]  ;;  %v1239_v63 = vld [vmem:[#allocation2 + $0x1e0] sm:$0xff] }
 0x237   : > { %v2315_v9 = vadd.f32 %v2266_v27, %v4423_v57  ;;  %v2756_v2 = vmul.f32 %v2707_v38, %v4414_v41  ;;  %v3001_v36 = vmul.f32 %v2952_v39, %v4414_v41  ;;  %v1036_v44 = vmul.f32 %v4414_v41, %v981_v18  ;;  %v1484_v23 = vld [vmem:[#allocation2 + $0x368] sm:$0xff] }
 0x238   : > { %v2657_v31 = vmax.f32 %v2412_v56, %v2608_v3  ;;  %v1433_v28 = vmax.f32 %v1188_v30, %v1384_v50  ;;  %v2560_v43 = vadd.f32 %v2511_v32, %v4423_v57  ;;  %v2119_v49 = vmax.f32 %v2070_v47, 0.0  ;;  %v1729_v47 = vld [vmem:[#allocation2 + $0x4f0] sm:$0xff] }
 0x239   : > { %v2364_v55 = vmax.f32 %v2315_v9, 0.0  ;;  %v2805_v34 = vadd.f32 %v2756_v2, %v4423_v57  ;;  %v1287_v25 = vmul.f32 %v1238_v15, %v4414_v41  ;;  %v3050_v17 = vadd.f32 %v3001_v36, %v4423_v57 }
 0x23a   : > { %v2902_v48 = vmax.f32 %v2657_v31, %v2853_v19  ;;  %v1678_v22 = vmax.f32 %v1433_v28, %v1629_v1  ;;  %v1091_v40 = vadd.f32 %v4423_v57, %v1036_v44  ;;  %v2609_v53 = vmax.f32 %v2560_v43, 0.0  ;;  %v1974_v1 = vld [vmem:[#allocation2 + $0x678] sm:$0xff]  ;;  %v2219_v43 = vld [vmem:[#allocation2 + $0x800] sm:$0xff] }
 0x23b   : > { %v2854_v33 = vmax.f32 %v2805_v34, 0.0  ;;  %v1336_v46 = vadd.f32 %v1287_v25, %v4423_v57  ;;  %v1532_v54 = vmul.f32 %v1483_v45, %v4414_v41  ;;  %v1777_v59 = vmul.f32 %v1728_v4, %v4414_v41  ;;  %v2464_v34 = vld [vmem:[#allocation2 + $0x988] sm:$0xff] }
 0x23c   : > { %v3147_v52 = vmax.f32 %v2902_v48, %v3098_v26  ;;  %v1923_v8 = vmax.f32 %v1678_v22, %v1874_v35  ;;  %v1140_v60 = vmax.f32 %v1091_v40, 0.0  ;;  %v2022_v3 = vmul.f32 %v1973_v16, %v4414_v41  ;;  %v2954_v40 = vld [vmem:[#allocation2 + $0xc98] sm:$0xff] }
 0x23d   : > { %v1385_v58 = vmax.f32 %v1336_v46, 0.0  ;;  %v1581_v61 = vadd.f32 %v1532_v54, %v4423_v57  ;;  %v2267_v5 = vmul.f32 %v2218_v10, %v4414_v41  ;;  %v1826_v24 = vadd.f32 %v1777_v59, %v4423_v57  ;;  %v983_v46 = vld [vmem:[#allocation2 + $0x60] sm:$0xff] }
 0x23e   : > { %3196 = vst [vmem:[%s5469_s5 + $0x40] sm:$0xff] %v3147_v52  ;;  %v2168_v0 = vmax.f32 %v1923_v8, %v2119_v49  ;;  %v1189_v62 = vmax.f32 %v1140_v60, 0.0  ;;  %v2512_v6 = vmul.f32 %v2463_v51, %v4414_v41  ;;  %v2071_v11 = vadd.f32 %v2022_v3, %v4423_v57  ;;  %v1240_v60 = vld [vmem:[#allocation2 + $0x1e8] sm:$0xff] }
 0x23f   : > { %v1630_v20 = vmax.f32 %v1581_v61, 0.0  ;;  %v2316_v19 = vadd.f32 %v2267_v5, %v4423_v57  ;;  %v2757_v13 = vmul.f32 %v2708_v37, %v4414_v41  ;;  %v1875_v42 = vmax.f32 %v1826_v24, 0.0  ;;  %v1485_v24 = vld [vmem:[#allocation2 + $0x370] sm:$0xff] }
 0x240   : > { %v2413_v14 = vmax.f32 %v2168_v0, %v2364_v55  ;;  %v1434_v21 = vmax.f32 %v1189_v62, %v1385_v58  ;;  %v2561_v29 = vadd.f32 %v2512_v6, %v4423_v57  ;;  %v3099_v38 = vmax.f32 %v3050_v17, 0.0  ;;  %v2709_v17 = vld [vmem:[#allocation2 + $0xb10] sm:$0xff] }
 0x241   : > { %v2120_v39 = vmax.f32 %v2071_v11, 0.0  ;;  %v2806_v26 = vadd.f32 %v2757_v13, %v4423_v57  ;;  %v3002_v50 = vmul.f32 %v2953_v7, %v4414_v41  ;;  %v2365_v56 = vmax.f32 %v2316_v19, 0.0  ;;  %v1730_v19 = vld [vmem:[#allocation2 + $0x4f8] sm:$0xff] }
 0x242   : > { %v2658_v27 = vmax.f32 %v2413_v14, %v2609_v53  ;;  %v1679_v18 = vmax.f32 %v1434_v21, %v1630_v20  ;;  %v1037_v30 = vmul.f32 %v4414_v41, %v982_v12  ;;  %v2610_v32 = vmax.f32 %v2561_v29, 0.0  ;;  %v2220_v29 = vld [vmem:[#allocation2 + $0x808] sm:$0xff] }
 0x243   : > { %v3051_v15 = vadd.f32 %v3002_v50, %v4423_v57  ;;  %v1288_v35 = vmul.f32 %v1239_v63, %v4414_v41  ;;  %v1533_v9 = vmul.f32 %v1484_v23, %v4414_v41  ;;  %v1778_v28 = vmul.f32 %v1729_v47, %v4414_v41 }
 0x244   : > { %v2903_v2 = vmax.f32 %v2658_v27, %v2854_v33  ;;  %v1924_v36 = vmax.f32 %v1679_v18, %v1875_v42  ;;  %v1092_v31 = vadd.f32 %v4423_v57, %v1037_v30  ;;  %v2855_v44 = vmax.f32 %v2806_v26, 0.0  ;;  %v1975_v42 = vld [vmem:[#allocation2 + $0x680] sm:$0xff]  ;;  %v2465_v26 = vld [vmem:[#allocation2 + $0x990] sm:$0xff] }
 0x245   : > { %v1337_v45 = vadd.f32 %v1288_v35, %v4423_v57  ;;  %v1582_v49 = vadd.f32 %v1533_v9, %v4423_v57  ;;  %v2023_v55 = vmul.f32 %v1974_v1, %v4414_v41  ;;  %v1827_v22 = vadd.f32 %v1778_v28, %v4423_v57 }
 0x246   : > { %v3148_v25 = vmax.f32 %v2903_v2, %v3099_v38  ;;  %v2169_v4 = vmax.f32 %v1924_v36, %v2120_v39  ;;  %v1141_v48 = vmax.f32 %v1092_v31, 0.0  ;;  %v3100_v16 = vmax.f32 %v3051_v15, 0.0  ;;  %v2955_v31 = vld [vmem:[#allocation2 + $0xca0] sm:$0xff] }
 0x247   : > { %v1386_v10 = vmax.f32 %v1337_v45, 0.0  ;;  %v2072_v53 = vadd.f32 %v2023_v55, %v4423_v57  ;;  %v2268_v33 = vmul.f32 %v2219_v43, %v4414_v41  ;;  %v1631_v52 = vmax.f32 %v1582_v49, 0.0  ;;  %v984_v49 = vld [vmem:[#allocation2 + $0x68] sm:$0xff] }
 0x248   : > { %3197 = vst [vmem:[%s5469_s5 + $0x48] sm:$0xff] %v3148_v25  ;;  %v2414_v54 = vmax.f32 %v2169_v4, %v2365_v56  ;;  %v1190_v51 = vmax.f32 %v1141_v48, 0.0  ;;  %v2513_v8 = vmul.f32 %v2464_v34, %v4414_v41  ;;  %v1876_v59 = vmax.f32 %v1827_v22, 0.0  ;;  %v2710_v56 = vld [vmem:[#allocation2 + $0xb18] sm:$0xff]  ;;  %v1241_v48 = vld [vmem:[#allocation2 + $0x1f0] sm:$0xff] }
 0x249   : > { %v2317_v37 = vadd.f32 %v2268_v33, %v4423_v57  ;;  %v2758_v58 = vmul.f32 %v2709_v17, %v4414_v41  ;;  %v3003_v61 = vmul.f32 %v2954_v40, %v4414_v41  ;;  %v1038_v62 = vmul.f32 %v4414_v41, %v983_v46  ;;  %v1486_v22 = vld [vmem:[#allocation2 + $0x378] sm:$0xff] }
 0x24a   : > { %v2659_v3 = vmax.f32 %v2414_v54, %v2610_v32  ;;  %v1435_v5 = vmax.f32 %v1190_v51, %v1386_v10  ;;  %v2562_v0 = vadd.f32 %v2513_v8, %v4423_v57  ;;  %v2121_v6 = vmax.f32 %v2072_v53, 0.0  ;;  %v1731_v53 = vld [vmem:[#allocation2 + $0x500] sm:$0xff] }
 0x24b   : > { %v2366_v7 = vmax.f32 %v2317_v37, 0.0  ;;  %v2807_v20 = vadd.f32 %v2758_v58, %v4423_v57  ;;  %v1289_v11 = vmul.f32 %v1240_v60, %v4414_v41  ;;  %v3052_v14 = vadd.f32 %v3003_v61, %v4423_v57 }
 0x24c   : > { %v2904_v13 = vmax.f32 %v2659_v3, %v2855_v44  ;;  %v1680_v12 = vmax.f32 %v1435_v5, %v1631_v52  ;;  %v1093_v21 = vadd.f32 %v4423_v57, %v1038_v62  ;;  %v2611_v63 = vmax.f32 %v2562_v0, 0.0  ;;  %v1976_v52 = vld [vmem:[#allocation2 + $0x688] sm:$0xff]  ;;  %v2221_v0 = vld [vmem:[#allocation2 + $0x810] sm:$0xff] }
 0x24d   : > { %v2856_v23 = vmax.f32 %v2807_v20, 0.0  ;;  %v1338_v38 = vadd.f32 %v1289_v11, %v4423_v57  ;;  %v1534_v39 = vmul.f32 %v1485_v24, %v4414_v41  ;;  %v1779_v18 = vmul.f32 %v1730_v19, %v4414_v41  ;;  %v2466_v20 = vld [vmem:[#allocation2 + $0x998] sm:$0xff] }
 0x24e   : > { %v3149_v50 = vmax.f32 %v2904_v13, %v3100_v16  ;;  %v1925_v47 = vmax.f32 %v1680_v12, %v1876_v59  ;;  %v1142_v27 = vmax.f32 %v1093_v21, 0.0  ;;  %v2024_v32 = vmul.f32 %v1975_v42, %v4414_v41  ;;  %v2956_v21 = vld [vmem:[#allocation2 + $0xca8] sm:$0xff] }
 0x24f   : > { %v1387_v30 = vmax.f32 %v1338_v38, 0.0  ;;  %v1583_v1 = vadd.f32 %v1534_v39, %v4423_v57  ;;  %v2269_v15 = vmul.f32 %v2220_v29, %v4414_v41  ;;  %v1828_v2 = vadd.f32 %v1779_v18, %v4423_v57  ;;  %v985_v38 = vld [vmem:[#allocation2 + $0x70] sm:$0xff] }
 0x250   : > { %3198 = vst [vmem:[%s5469_s5 + $0x50] sm:$0xff] %v3149_v50  ;;  %v2170_v35 = vmax.f32 %v1925_v47, %v2121_v6  ;;  %v1191_v9 = vmax.f32 %v1142_v27, 0.0  ;;  %v2514_v36 = vmul.f32 %v2465_v26, %v4414_v41  ;;  %v2073_v43 = vadd.f32 %v2024_v32, %v4423_v57  ;;  %v1242_v27 = vld [vmem:[#allocation2 + $0x1f8] sm:$0xff] }
 0x251   : > { %v1632_v28 = vmax.f32 %v1583_v1, 0.0  ;;  %v2318_v44 = vadd.f32 %v2269_v15, %v4423_v57  ;;  %v2759_v45 = vmul.f32 %v2710_v56, %v4414_v41  ;;  %v1877_v25 = vmax.f32 %v1828_v2, 0.0  ;;  %v1487_v2 = vld [vmem:[#allocation2 + $0x380] sm:$0xff] }
 0x252   : > { %v2415_v55 = vmax.f32 %v2170_v35, %v2366_v7  ;;  %v1436_v34 = vmax.f32 %v1191_v9, %v1387_v30  ;;  %v2563_v4 = vadd.f32 %v2514_v36, %v4423_v57  ;;  %v3101_v17 = vmax.f32 %v3052_v14, 0.0  ;;  %v2711_v14 = vld [vmem:[#allocation2 + $0xb20] sm:$0xff] }
 0x253   : > { %v2122_v40 = vmax.f32 %v2073_v43, 0.0  ;;  %v2808_v16 = vadd.f32 %v2759_v45, %v4423_v57  ;;  %v3004_v10 = vmul.f32 %v2955_v31, %v4414_v41  ;;  %v2367_v54 = vmax.f32 %v2318_v44, 0.0  ;;  %v1732_v44 = vld [vmem:[#allocation2 + $0x508] sm:$0xff] }
 0x254   : > { %v2660_v33 = vmax.f32 %v2415_v55, %v2611_v63  ;;  %v1681_v46 = vmax.f32 %v1436_v34, %v1632_v28  ;;  %v1039_v51 = vmul.f32 %v4414_v41, %v984_v49  ;;  %v2612_v8 = vmax.f32 %v2563_v4, 0.0  ;;  %v2222_v4 = vld [vmem:[#allocation2 + $0x818] sm:$0xff] }
 0x255   : > { %v3053_v60 = vadd.f32 %v3004_v10, %v4423_v57  ;;  %v1290_v59 = vmul.f32 %v1241_v48, %v4414_v41  ;;  %v1535_v37 = vmul.f32 %v1486_v22, %v4414_v41  ;;  %v1780_v5 = vmul.f32 %v1731_v53, %v4414_v41 }
 0x256   : > { %v2905_v58 = vmax.f32 %v2660_v33, %v2856_v23  ;;  %v1926_v61 = vmax.f32 %v1681_v46, %v1877_v25  ;;  %v1094_v3 = vadd.f32 %v4423_v57, %v1039_v51  ;;  %v2857_v62 = vmax.f32 %v2808_v16, 0.0  ;;  %v1977_v25 = vld [vmem:[#allocation2 + $0x690] sm:$0xff]  ;;  %v2467_v16 = vld [vmem:[#allocation2 + $0x9a0] sm:$0xff] }
 0x257   : > { %v1339_v24 = vadd.f32 %v1290_v59, %v4423_v57  ;;  %v1584_v6 = vadd.f32 %v1535_v37, %v4423_v57  ;;  %v2025_v7 = vmul.f32 %v1976_v52, %v4414_v41  ;;  %v1829_v12 = vadd.f32 %v1780_v5, %v4423_v57 }
 0x258   : > { %v3150_v11 = vmax.f32 %v2905_v58, %v3101_v17  ;;  %v2171_v19 = vmax.f32 %v1926_v61, %v2122_v40  ;;  %v1143_v13 = vmax.f32 %v1094_v3, 0.0  ;;  %v3102_v42 = vmax.f32 %v3053_v60, 0.0  ;;  %v2957_v3 = vld [vmem:[#allocation2 + $0xcb0] sm:$0xff] }
 0x259   : > { %v1388_v29 = vmax.f32 %v1339_v24, 0.0  ;;  %v2074_v63 = vadd.f32 %v2025_v7, %v4423_v57  ;;  %v2270_v23 = vmul.f32 %v2221_v0, %v4414_v41  ;;  %v1633_v50 = vmax.f32 %v1584_v6, 0.0  ;;  %v986_v6 = vld [vmem:[#allocation2 + $0x78] sm:$0xff] }
 0x25a   : > { %3199 = vst [vmem:[%s5469_s5 + $0x58] sm:$0xff] %v3150_v11  ;;  %v2416_v39 = vmax.f32 %v2171_v19, %v2367_v54  ;;  %v1192_v26 = vmax.f32 %v1143_v13, 0.0  ;;  %v2515_v47 = vmul.f32 %v2466_v20, %v4414_v41  ;;  %v1878_v18 = vmax.f32 %v1829_v12, 0.0  ;;  %v2712_v54 = vld [vmem:[#allocation2 + $0xb28] sm:$0xff]  ;;  %v1243_v13 = vld [vmem:[#allocation2 + $0x200] sm:$0xff] }
 0x25b   : > { %v2319_v56 = vadd.f32 %v2270_v23, %v4423_v57  ;;  %v2760_v30 = vmul.f32 %v2711_v14, %v4414_v41  ;;  %v3005_v1 = vmul.f32 %v2956_v21, %v4414_v41  ;;  %v1040_v9 = vmul.f32 %v4414_v41, %v985_v38  ;;  %v1488_v12 = vld [vmem:[#allocation2 + $0x388] sm:$0xff] }
 0x25c   : > { %v2661_v32 = vmax.f32 %v2416_v39, %v2612_v8  ;;  %v1437_v15 = vmax.f32 %v1192_v26, %v1388_v29  ;;  %v2564_v35 = vadd.f32 %v2515_v47, %v4423_v57  ;;  %v2123_v36 = vmax.f32 %v2074_v63, 0.0  ;;  %v1733_v63 = vld [vmem:[#allocation2 + $0x510] sm:$0xff] }
 0x25d   : > { %v2368_v31 = vmax.f32 %v2319_v56, 0.0  ;;  %v2809_v28 = vadd.f32 %v2760_v30, %v4423_v57  ;;  %v1291_v43 = vmul.f32 %v1242_v27, %v4414_v41  ;;  %v3054_v55 = vadd.f32 %v3005_v1, %v4423_v57 }
 0x25e   : > { %v2906_v45 = vmax.f32 %v2661_v32, %v2857_v62  ;;  %v1682_v49 = vmax.f32 %v1437_v15, %v1633_v50  ;;  %v1095_v34 = vadd.f32 %v4423_v57, %v1040_v9  ;;  %v2613_v48 = vmax.f32 %v2564_v35, 0.0  ;;  %v1978_v50 = vld [vmem:[#allocation2 + $0x698] sm:$0xff]  ;;  %v2223_v35 = vld [vmem:[#allocation2 + $0x820] sm:$0xff] }
 0x25f   : > { %v2858_v22 = vmax.f32 %v2809_v28, 0.0  ;;  %v1340_v17 = vadd.f32 %v1291_v43, %v4423_v57  ;;  %v1536_v40 = vmul.f32 %v1487_v2, %v4414_v41  ;;  %v1781_v46 = vmul.f32 %v1732_v44, %v4414_v41  ;;  %v2468_v28 = vld [vmem:[#allocation2 + $0x9a8] sm:$0xff] }
 0x260   : > { %v3151_v10 = vmax.f32 %v2906_v45, %v3102_v42  ;;  %v1927_v53 = vmax.f32 %v1682_v49, %v1878_v18  ;;  %v1144_v33 = vmax.f32 %v1095_v34, 0.0  ;;  %v2026_v8 = vmul.f32 %v1977_v25, %v4414_v41  ;;  %v2958_v34 = vld [vmem:[#allocation2 + $0xcb8] sm:$0xff] }
 0x261   : > { %v1389_v51 = vmax.f32 %v1340_v17, 0.0  ;;  %v1585_v52 = vadd.f32 %v1536_v40, %v4423_v57  ;;  %v2271_v60 = vmul.f32 %v2222_v4, %v4414_v41  ;;  %v1830_v58 = vadd.f32 %v1781_v46, %v4423_v57  ;;  %v987_v17 = vld [vmem:[#allocation2 + $0x80] sm:$0xff] }
 0x262   : > { %3200 = vst [vmem:[%s5469_s5 + $0x60] sm:$0xff] %v3151_v10  ;;  %v2172_v59 = vmax.f32 %v1927_v53, %v2123_v36  ;;  %v1193_v37 = vmax.f32 %v1144_v33, 0.0  ;;  %v2516_v61 = vmul.f32 %v2467_v16, %v4414_v41  ;;  %v2075_v0 = vadd.f32 %v2026_v8, %v4423_v57  ;;  %v1244_v33 = vld [vmem:[#allocation2 + $0x208] sm:$0xff] }
 0x263   : > { %v1634_v5 = vmax.f32 %v1585_v52, 0.0  ;;  %v2320_v62 = vadd.f32 %v2271_v60, %v4423_v57  ;;  %v2761_v24 = vmul.f32 %v2712_v54, %v4414_v41  ;;  %v1879_v11 = vmax.f32 %v1830_v58, 0.0  ;;  %v1489_v58 = vld [vmem:[#allocation2 + $0x390] sm:$0xff] }
 0x264   : > { %v2417_v7 = vmax.f32 %v2172_v59, %v2368_v31  ;;  %v1438_v20 = vmax.f32 %v1193_v37, %v1389_v51  ;;  %v2565_v19 = vadd.f32 %v2516_v61, %v4423_v57  ;;  %v3103_v14 = vmax.f32 %v3054_v55, 0.0  ;;  %v2713_v55 = vld [vmem:[#allocation2 + $0xb30] sm:$0xff] }
 0x265   : > { %v2124_v21 = vmax.f32 %v2075_v0, 0.0  ;;  %v2810_v42 = vadd.f32 %v2761_v24, %v4423_v57  ;;  %v3006_v29 = vmul.f32 %v2957_v3, %v4414_v41  ;;  %v2369_v39 = vmax.f32 %v2320_v62, 0.0  ;;  %v1734_v62 = vld [vmem:[#allocation2 + $0x518] sm:$0xff] }
 0x266   : > { %v2662_v23 = vmax.f32 %v2417_v7, %v2613_v48  ;;  %v1683_v38 = vmax.f32 %v1438_v20, %v1634_v5  ;;  %v1041_v26 = vmul.f32 %v4414_v41, %v986_v6  ;;  %v2614_v47 = vmax.f32 %v2565_v19, 0.0  ;;  %v2224_v19 = vld [vmem:[#allocation2 + $0x828] sm:$0xff] }
 0x267   : > { %v3055_v27 = vadd.f32 %v3006_v29, %v4423_v57  ;;  %v1292_v18 = vmul.f32 %v1243_v13, %v4414_v41  ;;  %v1537_v56 = vmul.f32 %v1488_v12, %v4414_v41  ;;  %v1782_v15 = vmul.f32 %v1733_v63, %v4414_v41 }
 0x268   : > { %v2907_v30 = vmax.f32 %v2662_v23, %v2858_v22  ;;  %v1928_v1 = vmax.f32 %v1683_v38, %v1879_v11  ;;  %v1096_v32 = vadd.f32 %v4423_v57, %v1041_v26  ;;  %v2859_v9 = vmax.f32 %v2810_v42, 0.0  ;;  %v1979_v11 = vld [vmem:[#allocation2 + $0x6a0] sm:$0xff]  ;;  %v2469_v42 = vld [vmem:[#allocation2 + $0x9b0] sm:$0xff] }
 0x269   : > { %v1341_v2 = vadd.f32 %v1292_v18, %v4423_v57  ;;  %v1586_v36 = vadd.f32 %v1537_v56, %v4423_v57  ;;  %v2027_v31 = vmul.f32 %v1978_v50, %v4414_v41  ;;  %v1831_v49 = vadd.f32 %v1782_v15, %v4423_v57 }
 0x26a   : > { %v3152_v43 = vmax.f32 %v2907_v30, %v3103_v14  ;;  %v2173_v44 = vmax.f32 %v1928_v1, %v2124_v21  ;;  %v1145_v45 = vmax.f32 %v1096_v32, 0.0  ;;  %v3104_v25 = vmax.f32 %v3055_v27, 0.0  ;;  %v2959_v32 = vld [vmem:[#allocation2 + $0xcc0] sm:$0xff] }
 0x26b   : > { %v1390_v4 = vmax.f32 %v1341_v2, 0.0  ;;  %v2076_v48 = vadd.f32 %v2027_v31, %v4423_v57  ;;  %v2272_v22 = vmul.f32 %v2223_v35, %v4414_v41  ;;  %v1635_v10 = vmax.f32 %v1586_v36, 0.0  ;;  %v988_v36 = vld [vmem:[#allocation2 + $0x88] sm:$0xff] }
 0x26c   : > { %3201 = vst [vmem:[%s5469_s5 + $0x68] sm:$0xff] %v3152_v43  ;;  %v2418_v40 = vmax.f32 %v2173_v44, %v2369_v39  ;;  %v1194_v16 = vmax.f32 %v1145_v45, 0.0  ;;  %v2517_v53 = vmul.f32 %v2468_v28, %v4414_v41  ;;  %v1880_v46 = vmax.f32 %v1831_v49, 0.0  ;;  %v2714_v39 = vld [vmem:[#allocation2 + $0xb38] sm:$0xff]  ;;  %v1245_v45 = vld [vmem:[#allocation2 + $0x210] sm:$0xff] }
 0x26d   : > { %v2321_v54 = vadd.f32 %v2272_v22, %v4423_v57  ;;  %v2762_v51 = vmul.f32 %v2713_v55, %v4414_v41  ;;  %v3007_v52 = vmul.f32 %v2958_v34, %v4414_v41  ;;  %v1042_v37 = vmul.f32 %v4414_v41, %v987_v17  ;;  %v1490_v49 = vld [vmem:[#allocation2 + $0x398] sm:$0xff] }
 0x26e   : > { %v2663_v8 = vmax.f32 %v2418_v40, %v2614_v47  ;;  %v1439_v60 = vmax.f32 %v1194_v16, %v1390_v4  ;;  %v2566_v59 = vadd.f32 %v2517_v53, %v4423_v57  ;;  %v2125_v61 = vmax.f32 %v2076_v48, 0.0  ;;  %v1735_v48 = vld [vmem:[#allocation2 + $0x520] sm:$0xff] }
 0x26f   : > { %v2370_v3 = vmax.f32 %v2321_v54, 0.0  ;;  %v2811_v5 = vadd.f32 %v2762_v51, %v4423_v57  ;;  %v1293_v0 = vmul.f32 %v1244_v33, %v4414_v41  ;;  %v3056_v7 = vadd.f32 %v3007_v52, %v4423_v57 }
 0x270   : > { %v2908_v24 = vmax.f32 %v2663_v8, %v2859_v9  ;;  %v1684_v6 = vmax.f32 %v1439_v60, %v1635_v10  ;;  %v1097_v20 = vadd.f32 %v4423_v57, %v1042_v37  ;;  %v2615_v13 = vmax.f32 %v2566_v59, 0.0  ;;  %v1980_v10 = vld [vmem:[#allocation2 + $0x6a8] sm:$0xff]  ;;  %v2225_v59 = vld [vmem:[#allocation2 + $0x830] sm:$0xff] }
 0x271   : > { %v2860_v12 = vmax.f32 %v2811_v5, 0.0  ;;  %v1342_v14 = vadd.f32 %v1293_v0, %v4423_v57  ;;  %v1538_v21 = vmul.f32 %v1489_v58, %v4414_v41  ;;  %v1783_v38 = vmul.f32 %v1734_v62, %v4414_v41  ;;  %v2470_v5 = vld [vmem:[#allocation2 + $0x9b8] sm:$0xff] }
 0x272   : > { %v3153_v29 = vmax.f32 %v2908_v24, %v3104_v25  ;;  %v1929_v63 = vmax.f32 %v1684_v6, %v1880_v46  ;;  %v1146_v23 = vmax.f32 %v1097_v20, 0.0  ;;  %v2028_v47 = vmul.f32 %v1979_v11, %v4414_v41  ;;  %v2960_v20 = vld [vmem:[#allocation2 + $0xcc8] sm:$0xff] }
 0x273   : > { %v1391_v26 = vmax.f32 %v1342_v14, 0.0  ;;  %v1587_v50 = vadd.f32 %v1538_v21, %v4423_v57  ;;  %v2273_v27 = vmul.f32 %v2224_v19, %v4414_v41  ;;  %v1832_v30 = vadd.f32 %v1783_v38, %v4423_v57  ;;  %v989_v14 = vld [vmem:[#allocation2 + $0x90] sm:$0xff] }
 0x274   : > { %3202 = vst [vmem:[%s5469_s5 + $0x70] sm:$0xff] %v3153_v29  ;;  %v2174_v18 = vmax.f32 %v1929_v63, %v2125_v61  ;;  %v1195_v56 = vmax.f32 %v1146_v23, 0.0  ;;  %v2518_v1 = vmul.f32 %v2469_v42, %v4414_v41  ;;  %v2077_v35 = vadd.f32 %v2028_v47, %v4423_v57  ;;  %v1246_v23 = vld [vmem:[#allocation2 + $0x218] sm:$0xff] }
 0x275   : > { %v1636_v15 = vmax.f32 %v1587_v50, 0.0  ;;  %v2322_v9 = vadd.f32 %v2273_v27, %v4423_v57  ;;  %v2763_v2 = vmul.f32 %v2714_v39, %v4414_v41  ;;  %v1881_v43 = vmax.f32 %v1832_v30, 0.0  ;;  %v1491_v30 = vld [vmem:[#allocation2 + $0x3a0] sm:$0xff] }
 0x276   : > { %v2419_v31 = vmax.f32 %v2174_v18, %v2370_v3  ;;  %v1440_v28 = vmax.f32 %v1195_v56, %v1391_v26  ;;  %v2567_v44 = vadd.f32 %v2518_v1, %v4423_v57  ;;  %v3105_v55 = vmax.f32 %v3056_v7, 0.0  ;;  %v2715_v7 = vld [vmem:[#allocation2 + $0xb40] sm:$0xff] }
 0x277   : > { %v2126_v34 = vmax.f32 %v2077_v35, 0.0  ;;  %v2812_v25 = vadd.f32 %v2763_v2, %v4423_v57  ;;  %v3008_v4 = vmul.f32 %v2959_v32, %v4414_v41  ;;  %v2371_v40 = vmax.f32 %v2322_v9, 0.0  ;;  %v1736_v9 = vld [vmem:[#allocation2 + $0x528] sm:$0xff] }
 0x278   : > { %v2664_v22 = vmax.f32 %v2419_v31, %v2615_v13  ;;  %v1685_v17 = vmax.f32 %v1440_v28, %v1636_v15  ;;  %v1043_v16 = vmul.f32 %v4414_v41, %v988_v36  ;;  %v2616_v53 = vmax.f32 %v2567_v44, 0.0  ;;  %v2226_v44 = vld [vmem:[#allocation2 + $0x838] sm:$0xff] }
 0x279   : > { %v3057_v33 = vadd.f32 %v3008_v4, %v4423_v57  ;;  %v1294_v46 = vmul.f32 %v1245_v45, %v4414_v41  ;;  %v1539_v54 = vmul.f32 %v1490_v49, %v4414_v41  ;;  %v1784_v60 = vmul.f32 %v1735_v48, %v4414_v41 }
 0x27a   : > { %v2909_v51 = vmax.f32 %v2664_v22, %v2860_v12  ;;  %v1930_v52 = vmax.f32 %v1685_v17, %v1881_v43  ;;  %v1098_v8 = vadd.f32 %v4423_v57, %v1043_v16  ;;  %v2861_v37 = vmax.f32 %v2812_v25, 0.0  ;;  %v1981_v43 = vld [vmem:[#allocation2 + $0x6b0] sm:$0xff]  ;;  %v2471_v25 = vld [vmem:[#allocation2 + $0x9c0] sm:$0xff] }
 0x27b   : > { %v1343_v58 = vadd.f32 %v1294_v46, %v4423_v57  ;;  %v1588_v61 = vadd.f32 %v1539_v54, %v4423_v57  ;;  %v2029_v3 = vmul.f32 %v1980_v10, %v4414_v41  ;;  %v1833_v6 = vadd.f32 %v1784_v60, %v4423_v57 }
 0x27c   : > { %v3154_v0 = vmax.f32 %v2909_v51, %v3105_v55  ;;  %v2175_v62 = vmax.f32 %v1930_v52, %v2126_v34  ;;  %v1147_v24 = vmax.f32 %v1098_v8, 0.0  ;;  %v3106_v11 = vmax.f32 %v3057_v33, 0.0  ;;  %v2961_v8 = vld [vmem:[#allocation2 + $0xcd0] sm:$0xff] }
 0x27d   : > { %v1392_v19 = vmax.f32 %v1343_v58, 0.0  ;;  %v2078_v13 = vadd.f32 %v2029_v3, %v4423_v57  ;;  %v2274_v12 = vmul.f32 %v2225_v59, %v4414_v41  ;;  %v1637_v29 = vmax.f32 %v1588_v61, 0.0  ;;  %v990_v61 = vld [vmem:[#allocation2 + $0x98] sm:$0xff] }
 0x27e   : > { %3203 = vst [vmem:[%s5469_s5 + $0x78] sm:$0xff] %v3154_v0  ;;  %v2420_v21 = vmax.f32 %v2175_v62, %v2371_v40  ;;  %v1196_v42 = vmax.f32 %v1147_v24, 0.0  ;;  %v2519_v63 = vmul.f32 %v2470_v5, %v4414_v41  ;;  %v1882_v38 = vmax.f32 %v1833_v6, 0.0  ;;  %v2716_v40 = vld [vmem:[#allocation2 + $0xb48] sm:$0xff]  ;;  %v1247_v24 = vld [vmem:[#allocation2 + $0x220] sm:$0xff] }
 0x27f   : > { %v2323_v39 = vadd.f32 %v2274_v12, %v4423_v57  ;;  %v2764_v26 = vmul.f32 %v2715_v7, %v4414_v41  ;;  %v3009_v50 = vmul.f32 %v2960_v20, %v4414_v41  ;;  %v1044_v56 = vmul.f32 %v4414_v41, %v989_v14  ;;  %v1492_v6 = vld [vmem:[#allocation2 + $0x3a8] sm:$0xff] }
 0x280   : > { %v2665_v47 = vmax.f32 %v2420_v21, %v2616_v53  ;;  %v1441_v27 = vmax.f32 %v1196_v42, %v1392_v19  ;;  %v2568_v18 = vadd.f32 %v2519_v63, %v4423_v57  ;;  %v2127_v1 = vmax.f32 %v2078_v13, 0.0  ;;  %v1737_v13 = vld [vmem:[#allocation2 + $0x530] sm:$0xff] }
 0x281   : > { %v2372_v32 = vmax.f32 %v2323_v39, 0.0  ;;  %v2813_v15 = vadd.f32 %v2764_v26, %v4423_v57  ;;  %v1295_v35 = vmul.f32 %v1246_v23, %v4414_v41  ;;  %v3058_v31 = vadd.f32 %v3009_v50, %v4423_v57 }
 0x282   : > { %v2910_v2 = vmax.f32 %v2665_v47, %v2861_v37  ;;  %v1686_v36 = vmax.f32 %v1441_v27, %v1637_v29  ;;  %v1099_v28 = vadd.f32 %v4423_v57, %v1044_v56  ;;  %v2617_v45 = vmax.f32 %v2568_v18, 0.0  ;;  %v1982_v29 = vld [vmem:[#allocation2 + $0x6b8] sm:$0xff]  ;;  %v2227_v18 = vld [vmem:[#allocation2 + $0x840] sm:$0xff] }
 0x283   : > { %v2862_v49 = vmax.f32 %v2813_v15, 0.0  ;;  %v1344_v55 = vadd.f32 %v1295_v35, %v4423_v57  ;;  %v1540_v34 = vmul.f32 %v1491_v30, %v4414_v41  ;;  %v1785_v17 = vmul.f32 %v1736_v9, %v4414_v41  ;;  %v2472_v15 = vld [vmem:[#allocation2 + $0x9c8] sm:$0xff] }
 0x284   : > { %v3155_v4 = vmax.f32 %v2910_v2, %v3106_v11  ;;  %v1931_v48 = vmax.f32 %v1686_v36, %v1882_v38  ;;  %v1148_v22 = vmax.f32 %v1099_v28, 0.0  ;;  %v2030_v53 = vmul.f32 %v1981_v43, %v4414_v41  ;;  %v2962_v28 = vld [vmem:[#allocation2 + $0xcd8] sm:$0xff] }
 0x285   : > { %v1393_v16 = vmax.f32 %v1344_v55, 0.0  ;;  %v1589_v10 = vadd.f32 %v1540_v34, %v4423_v57  ;;  %v2275_v33 = vmul.f32 %v2226_v44, %v4414_v41  ;;  %v1834_v51 = vadd.f32 %v1785_v17, %v4423_v57  ;;  %v991_v55 = vld [vmem:[#allocation2 + $0xa0] sm:$0xff] }
 0x286   : > { %3204 = vst [vmem:[%s5469_s5 + $0x80] sm:$0xff] %v3155_v4  ;;  %v2176_v46 = vmax.f32 %v1931_v48, %v2127_v1  ;;  %v1197_v54 = vmax.f32 %v1148_v22, 0.0  ;;  %v2520_v52 = vmul.f32 %v2471_v25, %v4414_v41  ;;  %v2079_v59 = vadd.f32 %v2030_v53, %v4423_v57  ;;  %v1248_v22 = vld [vmem:[#allocation2 + $0x228] sm:$0xff] }
 0x287   : > { %v1638_v60 = vmax.f32 %v1589_v10, 0.0  ;;  %v2324_v37 = vadd.f32 %v2275_v33, %v4423_v57  ;;  %v2765_v58 = vmul.f32 %v2716_v40, %v4414_v41  ;;  %v1883_v0 = vmax.f32 %v1834_v51, 0.0  ;;  %v1493_v51 = vld [vmem:[#allocation2 + $0x3b0] sm:$0xff] }
 0x288   : > { %v2421_v3 = vmax.f32 %v2176_v46, %v2372_v32  ;;  %v1442_v5 = vmax.f32 %v1197_v54, %v1393_v16  ;;  %v2569_v62 = vadd.f32 %v2520_v52, %v4423_v57  ;;  %v3107_v7 = vmax.f32 %v3058_v31, 0.0  ;;  %v2717_v31 = vld [vmem:[#allocation2 + $0xb50] sm:$0xff] }
 0x289   : > { %v2128_v20 = vmax.f32 %v2079_v59, 0.0  ;;  %v2814_v11 = vadd.f32 %v2765_v58, %v4423_v57  ;;  %v3010_v19 = vmul.f32 %v2961_v8, %v4414_v41  ;;  %v2373_v21 = vmax.f32 %v2324_v37, 0.0  ;;  %v1738_v37 = vld [vmem:[#allocation2 + $0x538] sm:$0xff] }
 0x28a   : > { %v2666_v12 = vmax.f32 %v2421_v3, %v2617_v45  ;;  %v1687_v14 = vmax.f32 %v1442_v5, %v1638_v60  ;;  %v1045_v42 = vmul.f32 %v4414_v41, %v990_v61  ;;  %v2618_v63 = vmax.f32 %v2569_v62, 0.0  ;;  %v2228_v62 = vld [vmem:[#allocation2 + $0x848] sm:$0xff] }
 0x28b   : > { %v3059_v23 = vadd.f32 %v3010_v19, %v4423_v57  ;;  %v1296_v38 = vmul.f32 %v1247_v24, %v4414_v41  ;;  %v1541_v39 = vmul.f32 %v1492_v6, %v4414_v41  ;;  %v1786_v27 = vmul.f32 %v1737_v13, %v4414_v41 }
 0x28c   : > { %v2911_v26 = vmax.f32 %v2666_v12, %v2862_v49  ;;  %v1932_v50 = vmax.f32 %v1687_v14, %v1883_v0  ;;  %v1100_v47 = vadd.f32 %v4423_v57, %v1045_v42  ;;  %v2863_v56 = vmax.f32 %v2814_v11, 0.0  ;;  %v1983_v0 = vld [vmem:[#allocation2 + $0x6c0] sm:$0xff]  ;;  %v2473_v11 = vld [vmem:[#allocation2 + $0x9d0] sm:$0xff] }
 0x28d   : > { %v1345_v30 = vadd.f32 %v1296_v38, %v4423_v57  ;;  %v1590_v1 = vadd.f32 %v1541_v39, %v4423_v57  ;;  %v2031_v32 = vmul.f32 %v1982_v29, %v4414_v41  ;;  %v1835_v36 = vadd.f32 %v1786_v27, %v4423_v57 }
 0x28e   : > { %v3156_v35 = vmax.f32 %v2911_v26, %v3107_v7  ;;  %v2177_v9 = vmax.f32 %v1932_v50, %v2128_v20  ;;  %v1149_v2 = vmax.f32 %v1100_v47, 0.0  ;;  %v3108_v43 = vmax.f32 %v3059_v23, 0.0  ;;  %v2963_v47 = vld [vmem:[#allocation2 + $0xce0] sm:$0xff] }
 0x28f   : > { %v1394_v44 = vmax.f32 %v1345_v30, 0.0  ;;  %v2080_v45 = vadd.f32 %v2031_v32, %v4423_v57  ;;  %v2276_v49 = vmul.f32 %v2227_v18, %v4414_v41  ;;  %v1639_v4 = vmax.f32 %v1590_v1, 0.0  ;;  %v992_v1 = vld [vmem:[#allocation2 + $0xa8] sm:$0xff] }
 0x290   : > { %3205 = vst [vmem:[%s5469_s5 + $0x88] sm:$0xff] %v3156_v35  ;;  %v2422_v34 = vmax.f32 %v2177_v9, %v2373_v21  ;;  %v1198_v25 = vmax.f32 %v1149_v2, 0.0  ;;  %v2521_v48 = vmul.f32 %v2472_v15, %v4414_v41  ;;  %v1884_v17 = vmax.f32 %v1835_v36, 0.0  ;;  %v2718_v21 = vld [vmem:[#allocation2 + $0xb58] sm:$0xff]  ;;  %v1249_v2 = vld [vmem:[#allocation2 + $0x230] sm:$0xff] }
 0x291   : > { %v2325_v40 = vadd.f32 %v2276_v49, %v4423_v57  ;;  %v2766_v16 = vmul.f32 %v2717_v31, %v4414_v41  ;;  %v3011_v10 = vmul.f32 %v2962_v28, %v4414_v41  ;;  %v1046_v54 = vmul.f32 %v4414_v41, %v991_v55  ;;  %v1494_v36 = vld [vmem:[#allocation2 + $0x3b8] sm:$0xff] }
 0x292   : > { %v2667_v53 = vmax.f32 %v2422_v34, %v2618_v63  ;;  %v1443_v33 = vmax.f32 %v1198_v25, %v1394_v44  ;;  %v2570_v46 = vadd.f32 %v2521_v48, %v4423_v57  ;;  %v2129_v52 = vmax.f32 %v2080_v45, 0.0  ;;  %v1739_v45 = vld [vmem:[#allocation2 + $0x540] sm:$0xff] }
 0x293   : > { %v2374_v8 = vmax.f32 %v2325_v40, 0.0  ;;  %v2815_v60 = vadd.f32 %v2766_v16, %v4423_v57  ;;  %v1297_v59 = vmul.f32 %v1248_v22, %v4414_v41  ;;  %v3060_v3 = vadd.f32 %v3011_v10, %v4423_v57 }
 0x294   : > { %v2912_v58 = vmax.f32 %v2667_v53, %v2863_v56  ;;  %v1688_v61 = vmax.f32 %v1443_v33, %v1639_v4  ;;  %v1101_v5 = vadd.f32 %v4423_v57, %v1046_v54  ;;  %v2619_v24 = vmax.f32 %v2570_v46, 0.0  ;;  %v1984_v4 = vld [vmem:[#allocation2 + $0x6c8] sm:$0xff]  ;;  %v2229_v46 = vld [vmem:[#allocation2 + $0x850] sm:$0xff] }
 0x295   : > { %v2864_v6 = vmax.f32 %v2815_v60, 0.0  ;;  %v1346_v7 = vadd.f32 %v1297_v59, %v4423_v57  ;;  %v1542_v20 = vmul.f32 %v1493_v51, %v4414_v41  ;;  %v1787_v14 = vmul.f32 %v1738_v37, %v4414_v41  ;;  %v2474_v60 = vld [vmem:[#allocation2 + $0x9d8] sm:$0xff] }
 0x296   : > { %v3157_v19 = vmax.f32 %v2912_v58, %v3108_v43  ;;  %v1933_v13 = vmax.f32 %v1688_v61, %v1884_v17  ;;  %v1150_v12 = vmax.f32 %v1101_v5, 0.0  ;;  %v2032_v63 = vmul.f32 %v1983_v0, %v4414_v41  ;;  %v2964_v5 = vld [vmem:[#allocation2 + $0xce8] sm:$0xff] }
 0x297   : > { %v1395_v42 = vmax.f32 %v1346_v7, 0.0  ;;  %v1591_v29 = vadd.f32 %v1542_v20, %v4423_v57  ;;  %v2277_v23 = vmul.f32 %v2228_v62, %v4414_v41  ;;  %v1836_v26 = vadd.f32 %v1787_v14, %v4423_v57  ;;  %v993_v7 = vld [vmem:[#allocation2 + $0xb0] sm:$0xff] }
 0x298   : > { %3206 = vst [vmem:[%s5469_s5 + $0x90] sm:$0xff] %v3157_v19  ;;  %v2178_v38 = vmax.f32 %v1933_v13, %v2129_v52  ;;  %v1199_v39 = vmax.f32 %v1150_v12, 0.0  ;;  %v2522_v50 = vmul.f32 %v2473_v11, %v4414_v41  ;;  %v2081_v18 = vadd.f32 %v2032_v63, %v4423_v57  ;;  %v1250_v12 = vld [vmem:[#allocation2 + $0x238] sm:$0xff] }
 0x299   : > { %v1640_v27 = vmax.f32 %v1591_v29, 0.0  ;;  %v2326_v56 = vadd.f32 %v2277_v23, %v4423_v57  ;;  %v2767_v30 = vmul.f32 %v2718_v21, %v4414_v41  ;;  %v1885_v35 = vmax.f32 %v1836_v26, 0.0  ;;  %v1495_v26 = vld [vmem:[#allocation2 + $0x3c0] sm:$0xff] }
 0x29a   : > { %v2423_v32 = vmax.f32 %v2178_v38, %v2374_v8  ;;  %v1444_v15 = vmax.f32 %v1199_v39, %v1395_v42  ;;  %v2571_v9 = vadd.f32 %v2522_v50, %v4423_v57  ;;  %v3109_v31 = vmax.f32 %v3060_v3, 0.0  ;;  %v2719_v3 = vld [vmem:[#allocation2 + $0xb60] sm:$0xff] }
 0x29b   : > { %v2130_v28 = vmax.f32 %v2081_v18, 0.0  ;;  %v2816_v43 = vadd.f32 %v2767_v30, %v4423_v57  ;;  %v3012_v44 = vmul.f32 %v2963_v47, %v4414_v41  ;;  %v2375_v34 = vmax.f32 %v2326_v56, 0.0  ;;  %v1740_v56 = vld [vmem:[#allocation2 + $0x548] sm:$0xff] }
 0x29c   : > { %v2668_v49 = vmax.f32 %v2423_v32, %v2619_v24  ;;  %v1689_v55 = vmax.f32 %v1444_v15, %v1640_v27  ;;  %v1047_v25 = vmul.f32 %v4414_v41, %v992_v1  ;;  %v2620_v48 = vmax.f32 %v2571_v9, 0.0  ;;  %v2230_v9 = vld [vmem:[#allocation2 + $0x858] sm:$0xff] }
 0x29d   : > { %v3061_v22 = vadd.f32 %v3012_v44, %v4423_v57  ;;  %v1298_v17 = vmul.f32 %v1249_v2, %v4414_v41  ;;  %v1543_v40 = vmul.f32 %v1494_v36, %v4414_v41  ;;  %v1788_v33 = vmul.f32 %v1739_v45, %v4414_v41 }
 0x29e   : > { %v2913_v16 = vmax.f32 %v2668_v49, %v2864_v6  ;;  %v1934_v10 = vmax.f32 %v1689_v55, %v1885_v35  ;;  %v1102_v53 = vadd.f32 %v4423_v57, %v1047_v25  ;;  %v2865_v54 = vmax.f32 %v2816_v43, 0.0  ;;  %v1985_v35 = vld [vmem:[#allocation2 + $0x6d0] sm:$0xff]  ;;  %v2475_v43 = vld [vmem:[#allocation2 + $0x9e0] sm:$0xff] }
 0x29f   : > { %v1347_v51 = vadd.f32 %v1298_v17, %v4423_v57  ;;  %v1592_v52 = vadd.f32 %v1543_v40, %v4423_v57  ;;  %v2033_v8 = vmul.f32 %v1984_v4, %v4414_v41  ;;  %v1837_v61 = vadd.f32 %v1788_v33, %v4423_v57 }
 0x2a0   : > { %v3158_v59 = vmax.f32 %v2913_v16, %v3109_v31  ;;  %v2179_v37 = vmax.f32 %v1934_v10, %v2130_v28  ;;  %v1151_v58 = vmax.f32 %v1102_v53, 0.0  ;;  %v3110_v0 = vmax.f32 %v3061_v22, 0.0  ;;  %v2965_v53 = vld [vmem:[#allocation2 + $0xcf0] sm:$0xff] }
 0x2a1   : > { %v1396_v62 = vmax.f32 %v1347_v51, 0.0  ;;  %v2082_v24 = vadd.f32 %v2033_v8, %v4423_v57  ;;  %v2278_v6 = vmul.f32 %v2229_v46, %v4414_v41  ;;  %v1641_v19 = vmax.f32 %v1592_v52, 0.0  ;;  %v994_v52 = vld [vmem:[#allocation2 + $0xb8] sm:$0xff] }
 0x2a2   : > { %3207 = vst [vmem:[%s5469_s5 + $0x98] sm:$0xff] %v3158_v59  ;;  %v2424_v20 = vmax.f32 %v2179_v37, %v2375_v34  ;;  %v1200_v11 = vmax.f32 %v1151_v58, 0.0  ;;  %v2523_v13 = vmul.f32 %v2474_v60, %v4414_v41  ;;  %v1886_v14 = vmax.f32 %v1837_v61, 0.0  ;;  %v2720_v34 = vld [vmem:[#allocation2 + $0xb68] sm:$0xff]  ;;  %v1251_v58 = vld [vmem:[#allocation2 + $0x240] sm:$0xff] }
 0x2a3   : > { %v2327_v21 = vadd.f32 %v2278_v6, %v4423_v57  ;;  %v2768_v42 = vmul.f32 %v2719_v3, %v4414_v41  ;;  %v3013_v29 = vmul.f32 %v2964_v5, %v4414_v41  ;;  %v1048_v39 = vmul.f32 %v4414_v41, %v993_v7  ;;  %v1496_v61 = vld [vmem:[#allocation2 + $0x3c8] sm:$0xff] }
 0x2a4   : > { %v2669_v63 = vmax.f32 %v2424_v20, %v2620_v48  ;;  %v1445_v23 = vmax.f32 %v1200_v11, %v1396_v62  ;;  %v2572_v38 = vadd.f32 %v2523_v13, %v4423_v57  ;;  %v2131_v50 = vmax.f32 %v2082_v24, 0.0  ;;  %v1741_v24 = vld [vmem:[#allocation2 + $0x550] sm:$0xff] }
 0x2a5   : > { %v2376_v47 = vmax.f32 %v2327_v21, 0.0  ;;  %v2817_v27 = vadd.f32 %v2768_v42, %v4423_v57  ;;  %v1299_v18 = vmul.f32 %v1250_v12, %v4414_v41  ;;  %v3062_v32 = vadd.f32 %v3013_v29, %v4423_v57 }
 0x2a6   : > { %v2914_v30 = vmax.f32 %v2669_v63, %v2865_v54  ;;  %v1690_v1 = vmax.f32 %v1445_v23, %v1641_v19  ;;  %v1103_v15 = vadd.f32 %v4423_v57, %v1048_v39  ;;  %v2621_v2 = vmax.f32 %v2572_v38, 0.0  ;;  %v1986_v19 = vld [vmem:[#allocation2 + $0x6d8] sm:$0xff]  ;;  %v2231_v38 = vld [vmem:[#allocation2 + $0x860] sm:$0xff] }
 0x2a7   : > { %v2866_v36 = vmax.f32 %v2817_v27, 0.0  ;;  %v1348_v31 = vadd.f32 %v1299_v18, %v4423_v57  ;;  %v1544_v28 = vmul.f32 %v1495_v26, %v4414_v41  ;;  %v1789_v55 = vmul.f32 %v1740_v56, %v4414_v41  ;;  %v2476_v27 = vld [vmem:[#allocation2 + $0x9e8] sm:$0xff] }
 0x2a8   : > { %v3159_v44 = vmax.f32 %v2914_v30, %v3110_v0  ;;  %v1935_v45 = vmax.f32 %v1690_v1, %v1886_v14  ;;  %v1152_v49 = vmax.f32 %v1103_v15, 0.0  ;;  %v2034_v48 = vmul.f32 %v1985_v35, %v4414_v41  ;;  %v2966_v15 = vld [vmem:[#allocation2 + $0xcf8] sm:$0xff] }
 0x2a9   : > { %v1397_v25 = vmax.f32 %v1348_v31, 0.0  ;;  %v1593_v4 = vadd.f32 %v1544_v28, %v4423_v57  ;;  %v2279_v22 = vmul.f32 %v2230_v9, %v4414_v41  ;;  %v1838_v16 = vadd.f32 %v1789_v55, %v4423_v57  ;;  %v995_v31 = vld [vmem:[#allocation2 + $0xc0] sm:$0xff] }
 0x2aa   : > { %3208 = vst [vmem:[%s5469_s5 + $0xa0] sm:$0xff] %v3159_v44  ;;  %v2180_v17 = vmax.f32 %v1935_v45, %v2131_v50  ;;  %v1201_v40 = vmax.f32 %v1152_v49, 0.0  ;;  %v2524_v10 = vmul.f32 %v2475_v43, %v4414_v41  ;;  %v2083_v46 = vadd.f32 %v2034_v48, %v4423_v57  ;;  %v1252_v49 = vld [vmem:[#allocation2 + $0x248] sm:$0xff] }
 0x2ab   : > { %v1642_v33 = vmax.f32 %v1593_v4, 0.0  ;;  %v2328_v54 = vadd.f32 %v2279_v22, %v4423_v57  ;;  %v2769_v51 = vmul.f32 %v2720_v34, %v4414_v41  ;;  %v1887_v59 = vmax.f32 %v1838_v16, 0.0  ;;  %v1497_v16 = vld [vmem:[#allocation2 + $0x3d0] sm:$0xff] }
 0x2ac   : > { %v2425_v8 = vmax.f32 %v2180_v17, %v2376_v47  ;;  %v1446_v60 = vmax.f32 %v1201_v40, %v1397_v25  ;;  %v2573_v37 = vadd.f32 %v2524_v10, %v4423_v57  ;;  %v3111_v3 = vmax.f32 %v3062_v32, 0.0  ;;  %v2721_v32 = vld [vmem:[#allocation2 + $0xb70] sm:$0xff] }
 0x2ad   : > { %v2132_v5 = vmax.f32 %v2083_v46, 0.0  ;;  %v2818_v0 = vadd.f32 %v2769_v51, %v4423_v57  ;;  %v3014_v62 = vmul.f32 %v2965_v53, %v4414_v41  ;;  %v2377_v20 = vmax.f32 %v2328_v54, 0.0  ;;  %v1742_v54 = vld [vmem:[#allocation2 + $0x558] sm:$0xff] }
 0x2ae   : > { %v2670_v6 = vmax.f32 %v2425_v8, %v2621_v2  ;;  %v1691_v7 = vmax.f32 %v1446_v60, %v1642_v33  ;;  %v1049_v11 = vmul.f32 %v4414_v41, %v994_v52  ;;  %v2622_v13 = vmax.f32 %v2573_v37, 0.0  ;;  %v2232_v37 = vld [vmem:[#allocation2 + $0x868] sm:$0xff] }
 0x2af   : > { %v3063_v12 = vadd.f32 %v3014_v62, %v4423_v57  ;;  %v1300_v14 = vmul.f32 %v1251_v58, %v4414_v41  ;;  %v1545_v21 = vmul.f32 %v1496_v61, %v4414_v41  ;;  %v1790_v23 = vmul.f32 %v1741_v24, %v4414_v41 }
 0x2b0   : > { %v2915_v42 = vmax.f32 %v2670_v6, %v2866_v36  ;;  %v1936_v29 = vmax.f32 %v1691_v7, %v1887_v59  ;;  %v1104_v63 = vadd.f32 %v4423_v57, %v1049_v11  ;;  %v2867_v39 = vmax.f32 %v2818_v0, 0.0  ;;  %v1987_v59 = vld [vmem:[#allocation2 + $0x6e0] sm:$0xff]  ;;  %v2477_v0 = vld [vmem:[#allocation2 + $0x9f0] sm:$0xff] }
 0x2b1   : > { %v1349_v26 = vadd.f32 %v1300_v14, %v4423_v57  ;;  %v1594_v50 = vadd.f32 %v1545_v21, %v4423_v57  ;;  %v2035_v47 = vmul.f32 %v1986_v19, %v4414_v41  ;;  %v1839_v1 = vadd.f32 %v1790_v23, %v4423_v57 }
 0x2b2   : > { %v3160_v18 = vmax.f32 %v2915_v42, %v3111_v3  ;;  %v2181_v56 = vmax.f32 %v1936_v29, %v2132_v5  ;;  %v1153_v30 = vmax.f32 %v1104_v63, 0.0  ;;  %v3112_v35 = vmax.f32 %v3063_v12, 0.0  ;;  %v2967_v63 = vld [vmem:[#allocation2 + $0xd00] sm:$0xff] }
 0x2b3   : > { %v1398_v9 = vmax.f32 %v1349_v26, 0.0  ;;  %v2084_v2 = vadd.f32 %v2035_v47, %v4423_v57  ;;  %v2280_v36 = vmul.f32 %v2231_v38, %v4414_v41  ;;  %v1643_v44 = vmax.f32 %v1594_v50, 0.0  ;;  %v996_v50 = vld [vmem:[#allocation2 + $0xc8] sm:$0xff] }
 0x2b4   : > { %3209 = vst [vmem:[%s5469_s5 + $0xa8] sm:$0xff] %v3160_v18  ;;  %v2426_v28 = vmax.f32 %v2181_v56, %v2377_v20  ;;  %v1202_v43 = vmax.f32 %v1153_v30, 0.0  ;;  %v2525_v45 = vmul.f32 %v2476_v27, %v4414_v41  ;;  %v1888_v55 = vmax.f32 %v1839_v1, 0.0  ;;  %v2722_v20 = vld [vmem:[#allocation2 + $0xb78] sm:$0xff]  ;;  %v1253_v30 = vld [vmem:[#allocation2 + $0x250] sm:$0xff] }
 0x2b5   : > { %v2329_v34 = vadd.f32 %v2280_v36, %v4423_v57  ;;  %v2770_v25 = vmul.f32 %v2721_v32, %v4414_v41  ;;  %v3015_v4 = vmul.f32 %v2966_v15, %v4414_v41  ;;  %v1050_v40 = vmul.f32 %v4414_v41, %v995_v31  ;;  %v1498_v1 = vld [vmem:[#allocation2 + $0x3d8] sm:$0xff] }
 0x2b6   : > { %v2671_v48 = vmax.f32 %v2426_v28, %v2622_v13  ;;  %v1447_v22 = vmax.f32 %v1202_v43, %v1398_v9  ;;  %v2574_v17 = vadd.f32 %v2525_v45, %v4423_v57  ;;  %v2133_v10 = vmax.f32 %v2084_v2, 0.0  ;;  %v1743_v2 = vld [vmem:[#allocation2 + $0x560] sm:$0xff] }
 0x2b7   : > { %v2378_v53 = vmax.f32 %v2329_v34, 0.0  ;;  %v2819_v33 = vadd.f32 %v2770_v25, %v4423_v57  ;;  %v1301_v46 = vmul.f32 %v1252_v49, %v4414_v41  ;;  %v3064_v8 = vadd.f32 %v3015_v4, %v4423_v57 }
 0x2b8   : > { %v2916_v51 = vmax.f32 %v2671_v48, %v2867_v39  ;;  %v1692_v52 = vmax.f32 %v1447_v22, %v1643_v44  ;;  %v1105_v60 = vadd.f32 %v4423_v57, %v1050_v40  ;;  %v2623_v58 = vmax.f32 %v2574_v17, 0.0  ;;  %v1988_v44 = vld [vmem:[#allocation2 + $0x6e8] sm:$0xff]  ;;  %v2233_v17 = vld [vmem:[#allocation2 + $0x870] sm:$0xff] }
 0x2b9   : > { %v2868_v61 = vmax.f32 %v2819_v33, 0.0  ;;  %v1350_v3 = vadd.f32 %v1301_v46, %v4423_v57  ;;  %v1546_v5 = vmul.f32 %v1497_v16, %v4414_v41  ;;  %v1791_v7 = vmul.f32 %v1742_v54, %v4414_v41  ;;  %v2478_v33 = vld [vmem:[#allocation2 + $0x9f8] sm:$0xff] }
 0x2ba   : > { %v3161_v62 = vmax.f32 %v2916_v51, %v3112_v35  ;;  %v1937_v24 = vmax.f32 %v1692_v52, %v1888_v55  ;;  %v1154_v6 = vmax.f32 %v1105_v60, 0.0  ;;  %v2036_v13 = vmul.f32 %v1987_v59, %v4414_v41  ;;  %v2968_v60 = vld [vmem:[#allocation2 + $0xd08] sm:$0xff] }
 0x2bb   : > { %v1399_v11 = vmax.f32 %v1350_v3, 0.0  ;;  %v1595_v19 = vadd.f32 %v1546_v5, %v4423_v57  ;;  %v2281_v12 = vmul.f32 %v2232_v37, %v4414_v41  ;;  %v1840_v42 = vadd.f32 %v1791_v7, %v4423_v57  ;;  %v997_v3 = vld [vmem:[#allocation2 + $0xd0] sm:$0xff] }
 0x2bc   : > { %3210 = vst [vmem:[%s5469_s5 + $0xb0] sm:$0xff] %v3161_v62  ;;  %v2182_v14 = vmax.f32 %v1937_v24, %v2133_v10  ;;  %v1203_v21 = vmax.f32 %v1154_v6, 0.0  ;;  %v2526_v29 = vmul.f32 %v2477_v0, %v4414_v41  ;;  %v2085_v38 = vadd.f32 %v2036_v13, %v4423_v57  ;;  %v1254_v6 = vld [vmem:[#allocation2 + $0x258] sm:$0xff] }
 0x2bd   : > { %v1644_v23 = vmax.f32 %v1595_v19, 0.0  ;;  %v2330_v39 = vadd.f32 %v2281_v12, %v4423_v57  ;;  %v2771_v26 = vmul.f32 %v2722_v20, %v4414_v41  ;;  %v1889_v18 = vmax.f32 %v1840_v42, 0.0  ;;  %v1499_v42 = vld [vmem:[#allocation2 + $0x3e0] sm:$0xff] }
 0x2be   : > { %v2427_v47 = vmax.f32 %v2182_v14, %v2378_v53  ;;  %v1448_v27 = vmax.f32 %v1203_v21, %v1399_v11  ;;  %v2575_v56 = vadd.f32 %v2526_v29, %v4423_v57  ;;  %v3113_v32 = vmax.f32 %v3064_v8, 0.0  ;;  %v2723_v8 = vld [vmem:[#allocation2 + $0xb80] sm:$0xff] }
 0x2bf   : > { %v2134_v15 = vmax.f32 %v2085_v38, 0.0  ;;  %v2820_v35 = vadd.f32 %v2771_v26, %v4423_v57  ;;  %v3016_v9 = vmul.f32 %v2967_v63, %v4414_v41  ;;  %v2379_v28 = vmax.f32 %v2330_v39, 0.0  ;;  %v1744_v39 = vld [vmem:[#allocation2 + $0x568] sm:$0xff] }
 0x2c0   : > { %v2672_v36 = vmax.f32 %v2427_v47, %v2623_v58  ;;  %v1693_v31 = vmax.f32 %v1448_v27, %v1644_v23  ;;  %v1051_v43 = vmul.f32 %v4414_v41, %v996_v50  ;;  %v2624_v45 = vmax.f32 %v2575_v56, 0.0  ;;  %v2234_v56 = vld [vmem:[#allocation2 + $0x878] sm:$0xff] }
 0x2c1   : > { %v3065_v49 = vadd.f32 %v3016_v9, %v4423_v57  ;;  %v1302_v55 = vmul.f32 %v1253_v30, %v4414_v41  ;;  %v1547_v34 = vmul.f32 %v1498_v1, %v4414_v41  ;;  %v1792_v22 = vmul.f32 %v1743_v2, %v4414_v41 }
 0x2c2   : > { %v2917_v25 = vmax.f32 %v2672_v36, %v2868_v61  ;;  %v1938_v4 = vmax.f32 %v1693_v31, %v1889_v18  ;;  %v1106_v48 = vadd.f32 %v4423_v57, %v1051_v43  ;;  %v2869_v40 = vmax.f32 %v2820_v35, 0.0  ;;  %v1989_v18 = vld [vmem:[#allocation2 + $0x6f0] sm:$0xff]  ;;  %v2479_v35 = vld [vmem:[#allocation2 + $0xa00] sm:$0xff] }
 0x2c3   : > { %v1351_v16 = vadd.f32 %v1302_v55, %v4423_v57  ;;  %v1596_v10 = vadd.f32 %v1547_v34, %v4423_v57  ;;  %v2037_v53 = vmul.f32 %v1988_v44, %v4414_v41  ;;  %v1841_v52 = vadd.f32 %v1792_v22, %v4423_v57 }
 0x2c4   : > { %v3162_v46 = vmax.f32 %v2917_v25, %v3113_v32  ;;  %v2183_v54 = vmax.f32 %v1938_v4, %v2134_v15  ;;  %v1155_v51 = vmax.f32 %v1106_v48, 0.0  ;;  %v3114_v59 = vmax.f32 %v3065_v49, 0.0  ;;  %v2969_v48 = vld [vmem:[#allocation2 + $0xd10] sm:$0xff] }
 0x2c5   : > { %v1400_v37 = vmax.f32 %v1351_v16, 0.0  ;;  %v2086_v58 = vadd.f32 %v2037_v53, %v4423_v57  ;;  %v2282_v61 = vmul.f32 %v2233_v17, %v4414_v41  ;;  %v1645_v62 = vmax.f32 %v1596_v10, 0.0  ;;  %v998_v10 = vld [vmem:[#allocation2 + $0xd8] sm:$0xff] }
 0x2c6   : > { %3211 = vst [vmem:[%s5469_s5 + $0xb8] sm:$0xff] %v3162_v46  ;;  %v2428_v5 = vmax.f32 %v2183_v54, %v2379_v28  ;;  %v1204_v0 = vmax.f32 %v1155_v51, 0.0  ;;  %v2527_v24 = vmul.f32 %v2478_v33, %v4414_v41  ;;  %v1890_v7 = vmax.f32 %v1841_v52, 0.0  ;;  %v2724_v28 = vld [vmem:[#allocation2 + $0xb88] sm:$0xff]  ;;  %v1255_v51 = vld [vmem:[#allocation2 + $0x260] sm:$0xff] }
 0x2c7   : > { %v2331_v20 = vadd.f32 %v2282_v61, %v4423_v57  ;;  %v2772_v11 = vmul.f32 %v2723_v8, %v4414_v41  ;;  %v3017_v19 = vmul.f32 %v2968_v60, %v4414_v41  ;;  %v1052_v21 = vmul.f32 %v4414_v41, %v997_v3  ;;  %v1500_v52 = vld [vmem:[#allocation2 + $0x3e8] sm:$0xff] }
 0x2c8   : > { %v2673_v13 = vmax.f32 %v2428_v5, %v2624_v45  ;;  %v1449_v12 = vmax.f32 %v1204_v0, %v1400_v37  ;;  %v2576_v14 = vadd.f32 %v2527_v24, %v4423_v57  ;;  %v2135_v29 = vmax.f32 %v2086_v58, 0.0  ;;  %v1745_v58 = vld [vmem:[#allocation2 + $0x570] sm:$0xff] }
 0x2c9   : > { %v2380_v63 = vmax.f32 %v2331_v20, 0.0  ;;  %v2821_v23 = vadd.f32 %v2772_v11, %v4423_v57  ;;  %v1303_v38 = vmul.f32 %v1254_v6, %v4414_v41  ;;  %v3066_v47 = vadd.f32 %v3017_v19, %v4423_v57 }
 0x2ca   : > { %v2918_v26 = vmax.f32 %v2673_v13, %v2869_v40  ;;  %v1694_v50 = vmax.f32 %v1449_v12, %v1645_v62  ;;  %v1107_v27 = vadd.f32 %v4423_v57, %v1052_v21  ;;  %v2625_v30 = vmax.f32 %v2576_v14, 0.0  ;;  %v1990_v62 = vld [vmem:[#allocation2 + $0x6f8] sm:$0xff]  ;;  %v2235_v14 = vld [vmem:[#allocation2 + $0x880] sm:$0xff] }
 0x2cb   : > { %v2870_v1 = vmax.f32 %v2821_v23, 0.0  ;;  %v1352_v32 = vadd.f32 %v1303_v38, %v4423_v57  ;;  %v1548_v15 = vmul.f32 %v1499_v42, %v4414_v41  ;;  %v1793_v31 = vmul.f32 %v1744_v39, %v4414_v41  ;;  %v2480_v23 = vld [vmem:[#allocation2 + $0xa08] sm:$0xff] }
 0x2cc   : > { %v3163_v9 = vmax.f32 %v2918_v26, %v3114_v59  ;;  %v1939_v2 = vmax.f32 %v1694_v50, %v1890_v7  ;;  %v1156_v36 = vmax.f32 %v1107_v27, 0.0  ;;  %v2038_v45 = vmul.f32 %v1989_v18, %v4414_v41  ;;  %v2970_v27 = vld [vmem:[#allocation2 + $0xd18] sm:$0xff] }
 0x2cd   : > { %v1401_v43 = vmax.f32 %v1352_v32, 0.0  ;;  %v1597_v44 = vadd.f32 %v1548_v15, %v4423_v57  ;;  %v2283_v49 = vmul.f32 %v2234_v56, %v4414_v41  ;;  %v1842_v25 = vadd.f32 %v1793_v31, %v4423_v57  ;;  %v999_v32 = vld [vmem:[#allocation2 + $0xe0] sm:$0xff] }
 0x2ce   : > { %3212 = vst [vmem:[%s5469_s5 + $0xc0] sm:$0xff] %v3163_v9  ;;  %v2184_v55 = vmax.f32 %v1939_v2, %v2135_v29  ;;  %v1205_v34 = vmax.f32 %v1156_v36, 0.0  ;;  %v2528_v4 = vmul.f32 %v2479_v35, %v4414_v41  ;;  %v2087_v17 = vadd.f32 %v2038_v45, %v4423_v57  ;;  %v1256_v36 = vld [vmem:[#allocation2 + $0x268] sm:$0xff] }
 0x2cf   : > { %v1646_v22 = vmax.f32 %v1597_v44, 0.0  ;;  %v2332_v40 = vadd.f32 %v2283_v49, %v4423_v57  ;;  %v2773_v16 = vmul.f32 %v2724_v28, %v4414_v41  ;;  %v1891_v46 = vmax.f32 %v1842_v25, 0.0  ;;  %v1501_v25 = vld [vmem:[#allocation2 + $0x3f0] sm:$0xff] }
 0x2d0   : > { %v2429_v53 = vmax.f32 %v2184_v55, %v2380_v63  ;;  %v1450_v33 = vmax.f32 %v1205_v34, %v1401_v43  ;;  %v2577_v54 = vadd.f32 %v2528_v4, %v4423_v57  ;;  %v3115_v8 = vmax.f32 %v3066_v47, 0.0  ;;  %v2725_v47 = vld [vmem:[#allocation2 + $0xb90] sm:$0xff] }
 0x2d1   : > { %v2136_v60 = vmax.f32 %v2087_v17, 0.0  ;;  %v2822_v59 = vadd.f32 %v2773_v16, %v4423_v57  ;;  %v3018_v37 = vmul.f32 %v2969_v48, %v4414_v41  ;;  %v2381_v5 = vmax.f32 %v2332_v40, 0.0  ;;  %v1746_v40 = vld [vmem:[#allocation2 + $0x578] sm:$0xff] }
 0x2d2   : > { %v2674_v61 = vmax.f32 %v2429_v53, %v2625_v30  ;;  %v1695_v3 = vmax.f32 %v1450_v33, %v1646_v22  ;;  %v1053_v0 = vmul.f32 %v4414_v41, %v998_v10  ;;  %v2626_v24 = vmax.f32 %v2577_v54, 0.0  ;;  %v2236_v54 = vld [vmem:[#allocation2 + $0x888] sm:$0xff] }
 0x2d3   : > { %v3067_v6 = vadd.f32 %v3018_v37, %v4423_v57  ;;  %v1304_v7 = vmul.f32 %v1255_v51, %v4414_v41  ;;  %v1549_v20 = vmul.f32 %v1500_v52, %v4414_v41  ;;  %v1794_v12 = vmul.f32 %v1745_v58, %v4414_v41 }
 0x2d4   : > { %v2919_v11 = vmax.f32 %v2674_v61, %v2870_v1  ;;  %v1940_v19 = vmax.f32 %v1695_v3, %v1891_v46  ;;  %v1108_v13 = vadd.f32 %v4423_v57, %v1053_v0  ;;  %v2871_v21 = vmax.f32 %v2822_v59, 0.0  ;;  %v1991_v46 = vld [vmem:[#allocation2 + $0x700] sm:$0xff]  ;;  %v2481_v59 = vld [vmem:[#allocation2 + $0xa10] sm:$0xff] }
 0x2d5   : > { %v1353_v42 = vadd.f32 %v1304_v7, %v4423_v57  ;;  %v1598_v29 = vadd.f32 %v1549_v20, %v4423_v57  ;;  %v2039_v63 = vmul.f32 %v1990_v62, %v4414_v41  ;;  %v1843_v50 = vadd.f32 %v1794_v12, %v4423_v57 }
 0x2d6   : > { %v3164_v38 = vmax.f32 %v2919_v11, %v3115_v8  ;;  %v2185_v39 = vmax.f32 %v1940_v19, %v2136_v60  ;;  %v1157_v26 = vmax.f32 %v1108_v13, 0.0  ;;  %v3116_v18 = vmax.f32 %v3067_v6, 0.0  ;;  %v2971_v13 = vld [vmem:[#allocation2 + $0xd20] sm:$0xff] }
 0x2d7   : > { %v1402_v56 = vmax.f32 %v1353_v42, 0.0  ;;  %v2088_v30 = vadd.f32 %v2039_v63, %v4423_v57  ;;  %v2284_v1 = vmul.f32 %v2235_v14, %v4414_v41  ;;  %v1647_v9 = vmax.f32 %v1598_v29, 0.0  ;;  %v1000_v29 = vld [vmem:[#allocation2 + $0xe8] sm:$0xff] }
 0x2d8   : > { %3213 = vst [vmem:[%s5469_s5 + $0xc8] sm:$0xff] %v3164_v38  ;;  %v2430_v15 = vmax.f32 %v2185_v39, %v2381_v5  ;;  %v1206_v35 = vmax.f32 %v1157_v26, 0.0  ;;  %v2529_v2 = vmul.f32 %v2480_v23, %v4414_v41  ;;  %v1892_v31 = vmax.f32 %v1843_v50, 0.0  ;;  %v2726_v5 = vld [vmem:[#allocation2 + $0xb98] sm:$0xff]  ;;  %v1257_v26 = vld [vmem:[#allocation2 + $0x270] sm:$0xff] }
 0x2d9   : > { %v2333_v28 = vadd.f32 %v2284_v1, %v4423_v57  ;;  %v2774_v43 = vmul.f32 %v2725_v47, %v4414_v41  ;;  %v3019_v44 = vmul.f32 %v2970_v27, %v4414_v41  ;;  %v1054_v34 = vmul.f32 %v4414_v41, %v999_v32  ;;  %v1502_v50 = vld [vmem:[#allocation2 + $0x3f8] sm:$0xff] }
 0x2da   : > { %v2675_v45 = vmax.f32 %v2430_v15, %v2626_v24  ;;  %v1451_v49 = vmax.f32 %v1206_v35, %v1402_v56  ;;  %v2578_v55 = vadd.f32 %v2529_v2, %v4423_v57  ;;  %v2137_v4 = vmax.f32 %v2088_v30, 0.0  ;;  %v1747_v30 = vld [vmem:[#allocation2 + $0x580] sm:$0xff] }
 0x2db   : > { %v2382_v48 = vmax.f32 %v2333_v28, 0.0  ;;  %v2823_v22 = vadd.f32 %v2774_v43, %v4423_v57  ;;  %v1305_v17 = vmul.f32 %v1256_v36, %v4414_v41  ;;  %v3068_v53 = vadd.f32 %v3019_v44, %v4423_v57 }
 0x2dc   : > { %v2920_v16 = vmax.f32 %v2675_v45, %v2871_v21  ;;  %v1696_v10 = vmax.f32 %v1451_v49, %v1647_v9  ;;  %v1109_v33 = vadd.f32 %v4423_v57, %v1054_v34  ;;  %v2627_v51 = vmax.f32 %v2578_v55, 0.0  ;;  %v1992_v9 = vld [vmem:[#allocation2 + $0x708] sm:$0xff]  ;;  %v2237_v55 = vld [vmem:[#allocation2 + $0x890] sm:$0xff] }
 0x2dd   : > { %v2872_v52 = vmax.f32 %v2823_v22, 0.0  ;;  %v1354_v8 = vadd.f32 %v1305_v17, %v4423_v57  ;;  %v1550_v60 = vmul.f32 %v1501_v25, %v4414_v41  ;;  %v1795_v3 = vmul.f32 %v1746_v40, %v4414_v41  ;;  %v2482_v22 = vld [vmem:[#allocation2 + $0xa18] sm:$0xff] }
 0x2de   : > { %v3165_v37 = vmax.f32 %v2920_v16, %v3116_v18  ;;  %v1941_v58 = vmax.f32 %v1696_v10, %v1892_v31  ;;  %v1158_v61 = vmax.f32 %v1109_v33, 0.0  ;;  %v2040_v24 = vmul.f32 %v1991_v46, %v4414_v41  ;;  %v2972_v33 = vld [vmem:[#allocation2 + $0xd28] sm:$0xff] }
 0x2df   : > { %v1403_v0 = vmax.f32 %v1354_v8, 0.0  ;;  %v1599_v62 = vadd.f32 %v1550_v60, %v4423_v57  ;;  %v2285_v6 = vmul.f32 %v2236_v54, %v4414_v41  ;;  %v1844_v11 = vadd.f32 %v1795_v3, %v4423_v57  ;;  %v1001_v8 = vld [vmem:[#allocation2 + $0xf0] sm:$0xff] }
 0x2e0   : > { %3214 = vst [vmem:[%s5469_s5 + $0xd0] sm:$0xff] %v3165_v37  ;;  %v2186_v7 = vmax.f32 %v1941_v58, %v2137_v4  ;;  %v1207_v20 = vmax.f32 %v1158_v61, 0.0  ;;  %v2530_v19 = vmul.f32 %v2481_v59, %v4414_v41  ;;  %v2089_v14 = vadd.f32 %v2040_v24, %v4423_v57  ;;  %v1258_v61 = vld [vmem:[#allocation2 + $0x278] sm:$0xff] }
 0x2e1   : > { %v1648_v12 = vmax.f32 %v1599_v62, 0.0  ;;  %v2334_v21 = vadd.f32 %v2285_v6, %v4423_v57  ;;  %v2775_v42 = vmul.f32 %v2726_v5, %v4414_v41  ;;  %v1893_v38 = vmax.f32 %v1844_v11, 0.0  ;;  %v1503_v11 = vld [vmem:[#allocation2 + $0x400] sm:$0xff] }
 0x2e2   : > { %v2431_v63 = vmax.f32 %v2186_v7, %v2382_v48  ;;  %v1452_v23 = vmax.f32 %v1207_v20, %v1403_v0  ;;  %v2579_v39 = vadd.f32 %v2530_v19, %v4423_v57  ;;  %v3117_v47 = vmax.f32 %v3068_v53, 0.0  ;;  %v2727_v53 = vld [vmem:[#allocation2 + $0xba0] sm:$0xff] }
 0x2e3   : > { %v2138_v27 = vmax.f32 %v2089_v14, 0.0  ;;  %v2824_v18 = vadd.f32 %v2775_v42, %v4423_v57  ;;  %v3020_v56 = vmul.f32 %v2971_v13, %v4414_v41  ;;  %v2383_v15 = vmax.f32 %v2334_v21, 0.0  ;;  %v1748_v21 = vld [vmem:[#allocation2 + $0x588] sm:$0xff] }
 0x2e4   : > { %v2676_v1 = vmax.f32 %v2431_v63, %v2627_v51  ;;  %v1697_v32 = vmax.f32 %v1452_v23, %v1648_v12  ;;  %v1055_v35 = vmul.f32 %v4414_v41, %v1000_v29  ;;  %v2628_v2 = vmax.f32 %v2579_v39, 0.0  ;;  %v2238_v39 = vld [vmem:[#allocation2 + $0x898] sm:$0xff] }
 0x2e5   : > { %v3069_v36 = vadd.f32 %v3020_v56, %v4423_v57  ;;  %v1306_v31 = vmul.f32 %v1257_v26, %v4414_v41  ;;  %v1551_v28 = vmul.f32 %v1502_v50, %v4414_v41  ;;  %v1796_v49 = vmul.f32 %v1747_v30, %v4414_v41 }
 0x2e6   : > { %v2921_v43 = vmax.f32 %v2676_v1, %v2872_v52  ;;  %v1942_v44 = vmax.f32 %v1697_v32, %v1893_v38  ;;  %v1110_v45 = vadd.f32 %v4423_v57, %v1055_v35  ;;  %v2873_v34 = vmax.f32 %v2824_v18, 0.0  ;;  %v1993_v38 = vld [vmem:[#allocation2 + $0x710] sm:$0xff]  ;;  %v2483_v18 = vld [vmem:[#allocation2 + $0xa20] sm:$0xff] }
 0x2e7   : > { %v1355_v25 = vadd.f32 %v1306_v31, %v4423_v57  ;;  %v1600_v4 = vadd.f32 %v1551_v28, %v4423_v57  ;;  %v2041_v48 = vmul.f32 %v1992_v9, %v4414_v41  ;;  %v1845_v10 = vadd.f32 %v1796_v49, %v4423_v57 }
 0x2e8   : > { %v3166_v17 = vmax.f32 %v2921_v43, %v3117_v47  ;;  %v2187_v40 = vmax.f32 %v1942_v44, %v2138_v27  ;;  %v1159_v16 = vmax.f32 %v1110_v45, 0.0  ;;  %v3118_v46 = vmax.f32 %v3069_v36, 0.0  ;;  %v2973_v45 = vld [vmem:[#allocation2 + $0xd30] sm:$0xff] }
 0x2e9   : > { %v1404_v54 = vmax.f32 %v1355_v25, 0.0  ;;  %v2090_v51 = vadd.f32 %v2041_v48, %v4423_v57  ;;  %v2286_v52 = vmul.f32 %v2237_v55, %v4414_v41  ;;  %v1649_v37 = vmax.f32 %v1600_v4, 0.0  ;;  %v1002_v4 = vld [vmem:[#allocation2 + $0xf8] sm:$0xff] }
 0x2ea   : > { %3215 = vst [vmem:[%s5469_s5 + $0xd8] sm:$0xff] %v3166_v17  ;;  %v2432_v60 = vmax.f32 %v2187_v40, %v2383_v15  ;;  %v1208_v59 = vmax.f32 %v1159_v16, 0.0  ;;  %v2531_v58 = vmul.f32 %v2482_v22, %v4414_v41  ;;  %v1894_v3 = vmax.f32 %v1845_v10, 0.0  ;;  %v2728_v15 = vld [vmem:[#allocation2 + $0xba8] sm:$0xff]  ;;  %v1259_v16 = vld [vmem:[#allocation2 + $0x280] sm:$0xff] }
 0x2eb   : > { %v2335_v5 = vadd.f32 %v2286_v52, %v4423_v57  ;;  %v2776_v0 = vmul.f32 %v2727_v53, %v4414_v41  ;;  %v3021_v62 = vmul.f32 %v2972_v33, %v4414_v41  ;;  %v1056_v20 = vmul.f32 %v4414_v41, %v1001_v8  ;;  %v1504_v10 = vld [vmem:[#allocation2 + $0x408] sm:$0xff] }
 0x2ec   : > { %v2677_v24 = vmax.f32 %v2432_v60, %v2628_v2  ;;  %v1453_v6 = vmax.f32 %v1208_v59, %v1404_v54  ;;  %v2580_v7 = vadd.f32 %v2531_v58, %v4423_v57  ;;  %v2139_v19 = vmax.f32 %v2090_v51, 0.0  ;;  %v1749_v51 = vld [vmem:[#allocation2 + $0x590] sm:$0xff] }
 0x2ed   : > { %v2384_v13 = vmax.f32 %v2335_v5, 0.0  ;;  %v2825_v12 = vadd.f32 %v2776_v0, %v4423_v57  ;;  %v1307_v14 = vmul.f32 %v1258_v61, %v4414_v41  ;;  %v3070_v63 = vadd.f32 %v3021_v62, %v4423_v57 }
 0x2ee   : > { %v2922_v42 = vmax.f32 %v2677_v24, %v2873_v34  ;;  %v1698_v29 = vmax.f32 %v1453_v6, %v1649_v37  ;;  %v1111_v23 = vadd.f32 %v4423_v57, %v1056_v20  ;;  %v2629_v26 = vmax.f32 %v2580_v7, 0.0  ;;  %v1994_v37 = vld [vmem:[#allocation2 + $0x718] sm:$0xff]  ;;  %v2239_v7 = vld [vmem:[#allocation2 + $0x8a0] sm:$0xff] }
 0x2ef   : > { %v2874_v50 = vmax.f32 %v2825_v12, 0.0  ;;  %v1356_v47 = vadd.f32 %v1307_v14, %v4423_v57  ;;  %v1552_v27 = vmul.f32 %v1503_v11, %v4414_v41  ;;  %v1797_v32 = vmul.f32 %v1748_v21, %v4414_v41  ;;  %v2484_v12 = vld [vmem:[#allocation2 + $0xa28] sm:$0xff] }
 0x2f0   : > { %v3167_v56 = vmax.f32 %v2922_v42, %v3118_v46  ;;  %v1943_v30 = vmax.f32 %v1698_v29, %v1894_v3  ;;  %v1160_v1 = vmax.f32 %v1111_v23, 0.0  ;;  %v2042_v2 = vmul.f32 %v1993_v38, %v4414_v41  ;;  %v2974_v23 = vld [vmem:[#allocation2 + $0xd38] sm:$0xff] }
 0x2f1   : > { %v1405_v35 = vmax.f32 %v1356_v47, 0.0  ;;  %v1601_v9 = vadd.f32 %v1552_v27, %v4423_v57  ;;  %v2287_v36 = vmul.f32 %v2238_v39, %v4414_v41  ;;  %v1846_v43 = vadd.f32 %v1797_v32, %v4423_v57  ;;  %v1003_v47 = vld [vmem:[#allocation2 + $0x100] sm:$0xff] }
 0x2f2   : > { %3216 = vst [vmem:[%s5469_s5 + $0xe0] sm:$0xff] %v3167_v56  ;;  %v2188_v31 = vmax.f32 %v1943_v30, %v2139_v19  ;;  %v1209_v28 = vmax.f32 %v1160_v1, 0.0  ;;  %v2532_v44 = vmul.f32 %v2483_v18, %v4414_v41  ;;  %v2091_v55 = vadd.f32 %v2042_v2, %v4423_v57  ;;  %v1260_v1 = vld [vmem:[#allocation2 + $0x288] sm:$0xff] }
 0x2f3   : > { %v1650_v49 = vmax.f32 %v1601_v9, 0.0  ;;  %v2336_v34 = vadd.f32 %v2287_v36, %v4423_v57  ;;  %v2777_v25 = vmul.f32 %v2728_v15, %v4414_v41  ;;  %v1895_v17 = vmax.f32 %v1846_v43, 0.0  ;;  %v1505_v43 = vld [vmem:[#allocation2 + $0x410] sm:$0xff] }
 0x2f4   : > { %v2433_v48 = vmax.f32 %v2188_v31, %v2384_v13  ;;  %v1454_v22 = vmax.f32 %v1209_v28, %v1405_v35  ;;  %v2581_v40 = vadd.f32 %v2532_v44, %v4423_v57  ;;  %v3119_v53 = vmax.f32 %v3070_v63, 0.0  ;;  %v2729_v63 = vld [vmem:[#allocation2 + $0xbb0] sm:$0xff] }
 0x2f5   : > { %v2140_v33 = vmax.f32 %v2091_v55, 0.0  ;;  %v2826_v46 = vadd.f32 %v2777_v25, %v4423_v57  ;;  %v3022_v54 = vmul.f32 %v2973_v45, %v4414_v41  ;;  %v2385_v60 = vmax.f32 %v2336_v34, 0.0  ;;  %v1750_v34 = vld [vmem:[#allocation2 + $0x598] sm:$0xff] }
 0x2f6   : > { %v2678_v52 = vmax.f32 %v2433_v48, %v2629_v26  ;;  %v1699_v8 = vmax.f32 %v1454_v22, %v1650_v49  ;;  %v1057_v59 = vmul.f32 %v4414_v41, %v1002_v4  ;;  %v2630_v58 = vmax.f32 %v2581_v40, 0.0  ;;  %v2240_v40 = vld [vmem:[#allocation2 + $0x8a8] sm:$0xff] }
 0x2f7   : > { %v3071_v61 = vadd.f32 %v3022_v54, %v4423_v57  ;;  %v1308_v3 = vmul.f32 %v1259_v16, %v4414_v41  ;;  %v1553_v5 = vmul.f32 %v1504_v10, %v4414_v41  ;;  %v1798_v6 = vmul.f32 %v1749_v51, %v4414_v41 }
 0x2f8   : > { %v2923_v0 = vmax.f32 %v2678_v52, %v2874_v50  ;;  %v1944_v62 = vmax.f32 %v1699_v8, %v1895_v17  ;;  %v1112_v24 = vadd.f32 %v4423_v57, %v1057_v59  ;;  %v2875_v20 = vmax.f32 %v2826_v46, 0.0  ;;  %v1995_v17 = vld [vmem:[#allocation2 + $0x720] sm:$0xff]  ;;  %v2485_v46 = vld [vmem:[#allocation2 + $0xa30] sm:$0xff] }
 0x2f9   : > { %v1357_v11 = vadd.f32 %v1308_v3, %v4423_v57  ;;  %v1602_v19 = vadd.f32 %v1553_v5, %v4423_v57  ;;  %v2043_v13 = vmul.f32 %v1994_v37, %v4414_v41  ;;  %v1847_v29 = vadd.f32 %v1798_v6, %v4423_v57 }
 0x2fa   : > { %v3168_v14 = vmax.f32 %v2923_v0, %v3119_v53  ;;  %v2189_v21 = vmax.f32 %v1944_v62, %v2140_v33  ;;  %v1161_v42 = vmax.f32 %v1112_v24, 0.0  ;;  %v3120_v38 = vmax.f32 %v3071_v61, 0.0  ;;  %v2975_v24 = vld [vmem:[#allocation2 + $0xd40] sm:$0xff] }
 0x2fb   : > { %v1406_v39 = vmax.f32 %v1357_v11, 0.0  ;;  %v2092_v26 = vadd.f32 %v2043_v13, %v4423_v57  ;;  %v2288_v50 = vmul.f32 %v2239_v7, %v4414_v41  ;;  %v1651_v56 = vmax.f32 %v1602_v19, 0.0  ;;  %v1004_v19 = vld [vmem:[#allocation2 + $0x108] sm:$0xff] }
 0x2fc   : > { %3217 = vst [vmem:[%s5469_s5 + $0xe8] sm:$0xff] %v3168_v14  ;;  %v2434_v27 = vmax.f32 %v2189_v21, %v2385_v60  ;;  %v1210_v18 = vmax.f32 %v1161_v42, 0.0  ;;  %v2533_v30 = vmul.f32 %v2484_v12, %v4414_v41  ;;  %v1896_v32 = vmax.f32 %v1847_v29, 0.0  ;;  %v2730_v60 = vld [vmem:[#allocation2 + $0xbb8] sm:$0xff]  ;;  %v1261_v42 = vld [vmem:[#allocation2 + $0x290] sm:$0xff] }
 0x2fd   : > { %v2337_v15 = vadd.f32 %v2288_v50, %v4423_v57  ;;  %v2778_v35 = vmul.f32 %v2729_v63, %v4414_v41  ;;  %v3023_v9 = vmul.f32 %v2974_v23, %v4414_v41  ;;  %v1058_v28 = vmul.f32 %v4414_v41, %v1003_v47  ;;  %v1506_v29 = vld [vmem:[#allocation2 + $0x418] sm:$0xff] }
 0x2fe   : > { %v2679_v2 = vmax.f32 %v2434_v27, %v2630_v58  ;;  %v1455_v36 = vmax.f32 %v1210_v18, %v1406_v39  ;;  %v2582_v31 = vadd.f32 %v2533_v30, %v4423_v57  ;;  %v2141_v44 = vmax.f32 %v2092_v26, 0.0  ;;  %v1751_v26 = vld [vmem:[#allocation2 + $0x5a0] sm:$0xff] }
 0x2ff   : > { %v2386_v45 = vmax.f32 %v2337_v15, 0.0  ;;  %v2827_v49 = vadd.f32 %v2778_v35, %v4423_v57  ;;  %v1309_v55 = vmul.f32 %v1260_v1, %v4414_v41  ;;  %v3072_v48 = vadd.f32 %v3023_v9, %v4423_v57 }
 0x300   : > { %v2924_v25 = vmax.f32 %v2679_v2, %v2875_v20  ;;  %v1700_v4 = vmax.f32 %v1455_v36, %v1651_v56  ;;  %v1113_v22 = vadd.f32 %v4423_v57, %v1058_v28  ;;  %v2631_v16 = vmax.f32 %v2582_v31, 0.0  ;;  %v1996_v56 = vld [vmem:[#allocation2 + $0x728] sm:$0xff]  ;;  %v2241_v31 = vld [vmem:[#allocation2 + $0x8b0] sm:$0xff] }
 0x301   : > { %v2876_v10 = vmax.f32 %v2827_v49, 0.0  ;;  %v1358_v53 = vadd.f32 %v1309_v55, %v4423_v57  ;;  %v1554_v33 = vmul.f32 %v1505_v43, %v4414_v41  ;;  %v1799_v8 = vmul.f32 %v1750_v34, %v4414_v41  ;;  %v2486_v49 = vld [vmem:[#allocation2 + $0xa38] sm:$0xff] }
 0x302   : > { %v3169_v54 = vmax.f32 %v2924_v25, %v3120_v38  ;;  %v1945_v51 = vmax.f32 %v1700_v4, %v1896_v32  ;;  %v1162_v52 = vmax.f32 %v1113_v22, 0.0  ;;  %v2044_v58 = vmul.f32 %v1995_v17, %v4414_v41  ;;  %v2976_v22 = vld [vmem:[#allocation2 + $0xd48] sm:$0xff] }
 0x303   : > { %v1407_v59 = vmax.f32 %v1358_v53, 0.0  ;;  %v1603_v37 = vadd.f32 %v1554_v33, %v4423_v57  ;;  %v2289_v61 = vmul.f32 %v2240_v40, %v4414_v41  ;;  %v1848_v0 = vadd.f32 %v1799_v8, %v4423_v57  ;;  %v1005_v53 = vld [vmem:[#allocation2 + $0x110] sm:$0xff] }
 0x304   : > { %3218 = vst [vmem:[%s5469_s5 + $0xf0] sm:$0xff] %v3169_v54  ;;  %v2190_v3 = vmax.f32 %v1945_v51, %v2141_v44  ;;  %v1211_v5 = vmax.f32 %v1162_v52, 0.0  ;;  %v2534_v62 = vmul.f32 %v2485_v46, %v4414_v41  ;;  %v2093_v7 = vadd.f32 %v2044_v58, %v4423_v57  ;;  %v1262_v52 = vld [vmem:[#allocation2 + $0x298] sm:$0xff] }
 0x305   : > { %v1652_v6 = vmax.f32 %v1603_v37, 0.0  ;;  %v2338_v20 = vadd.f32 %v2289_v61, %v4423_v57  ;;  %v2779_v11 = vmul.f32 %v2730_v60, %v4414_v41  ;;  %v1897_v14 = vmax.f32 %v1848_v0, 0.0  ;;  %v1507_v0 = vld [vmem:[#allocation2 + $0x420] sm:$0xff] }
 0x306   : > { %v2435_v13 = vmax.f32 %v2190_v3, %v2386_v45  ;;  %v1456_v12 = vmax.f32 %v1211_v5, %v1407_v59  ;;  %v2583_v21 = vadd.f32 %v2534_v62, %v4423_v57  ;;  %v3121_v63 = vmax.f32 %v3072_v48, 0.0  ;;  %v2731_v48 = vld [vmem:[#allocation2 + $0xbc0] sm:$0xff] }
 0x307   : > { %v2142_v23 = vmax.f32 %v2093_v7, 0.0  ;;  %v2828_v38 = vadd.f32 %v2779_v11, %v4423_v57  ;;  %v3024_v39 = vmul.f32 %v2975_v24, %v4414_v41  ;;  %v2387_v27 = vmax.f32 %v2338_v20, 0.0  ;;  %v1752_v20 = vld [vmem:[#allocation2 + $0x5a8] sm:$0xff] }
 0x308   : > { %v2680_v50 = vmax.f32 %v2435_v13, %v2631_v16  ;;  %v1701_v47 = vmax.f32 %v1456_v12, %v1652_v6  ;;  %v1059_v18 = vmul.f32 %v4414_v41, %v1004_v19  ;;  %v2632_v30 = vmax.f32 %v2583_v21, 0.0  ;;  %v2242_v21 = vld [vmem:[#allocation2 + $0x8b8] sm:$0xff] }
 0x309   : > { %v3073_v1 = vadd.f32 %v3024_v39, %v4423_v57  ;;  %v1310_v32 = vmul.f32 %v1261_v42, %v4414_v41  ;;  %v1555_v15 = vmul.f32 %v1506_v29, %v4414_v41  ;;  %v1800_v36 = vmul.f32 %v1751_v26, %v4414_v41 }
 0x30a   : > { %v2925_v35 = vmax.f32 %v2680_v50, %v2876_v10  ;;  %v1946_v9 = vmax.f32 %v1701_v47, %v1897_v14  ;;  %v1114_v2 = vadd.f32 %v4423_v57, %v1059_v18  ;;  %v2877_v28 = vmax.f32 %v2828_v38, 0.0  ;;  %v1997_v14 = vld [vmem:[#allocation2 + $0x730] sm:$0xff]  ;;  %v2487_v38 = vld [vmem:[#allocation2 + $0xa40] sm:$0xff] }
 0x30b   : > { %v1359_v43 = vadd.f32 %v1310_v32, %v4423_v57  ;;  %v1604_v44 = vadd.f32 %v1555_v15, %v4423_v57  ;;  %v2045_v45 = vmul.f32 %v1996_v56, %v4414_v41  ;;  %v1849_v4 = vadd.f32 %v1800_v36, %v4423_v57 }
 0x30c   : > { %v3170_v55 = vmax.f32 %v2925_v35, %v3121_v63  ;;  %v2191_v34 = vmax.f32 %v1946_v9, %v2142_v23  ;;  %v1163_v25 = vmax.f32 %v1114_v2, 0.0  ;;  %v3122_v17 = vmax.f32 %v3073_v1, 0.0  ;;  %v2977_v2 = vld [vmem:[#allocation2 + $0xd50] sm:$0xff] }
 0x30d   : > { %v1408_v40 = vmax.f32 %v1359_v43, 0.0  ;;  %v2094_v16 = vadd.f32 %v2045_v45, %v4423_v57  ;;  %v2290_v10 = vmul.f32 %v2241_v31, %v4414_v41  ;;  %v1653_v54 = vmax.f32 %v1604_v44, 0.0  ;;  %v1006_v44 = vld [vmem:[#allocation2 + $0x118] sm:$0xff] }
 0x30e   : > { %3219 = vst [vmem:[%s5469_s5 + $0xf8] sm:$0xff] %v3170_v55  ;;  %v2436_v33 = vmax.f32 %v2191_v34, %v2387_v27  ;;  %v1212_v46 = vmax.f32 %v1163_v25, 0.0  ;;  %v2535_v51 = vmul.f32 %v2486_v49, %v4414_v41  ;;  %v1898_v8 = vmax.f32 %v1849_v4, 0.0  ;;  %v2732_v27 = vld [vmem:[#allocation2 + $0xbc8] sm:$0xff]  ;;  %v1263_v25 = vld [vmem:[#allocation2 + $0x2a0] sm:$0xff] }
 0x30f   : > { %v2339_v60 = vadd.f32 %v2290_v10, %v4423_v57  ;;  %v2780_v59 = vmul.f32 %v2731_v48, %v4414_v41  ;;  %v3025_v37 = vmul.f32 %v2976_v22, %v4414_v41  ;;  %v1060_v5 = vmul.f32 %v4414_v41, %v1005_v53  ;;  %v1508_v4 = vld [vmem:[#allocation2 + $0x428] sm:$0xff] }
 0x310   : > { %v2681_v58 = vmax.f32 %v2436_v33, %v2632_v30  ;;  %v1457_v61 = vmax.f32 %v1212_v46, %v1408_v40  ;;  %v2584_v3 = vadd.f32 %v2535_v51, %v4423_v57  ;;  %v2143_v62 = vmax.f32 %v2094_v16, 0.0  ;;  %v1753_v16 = vld [vmem:[#allocation2 + $0x5b0] sm:$0xff] }
 0x311   : > { %v2388_v24 = vmax.f32 %v2339_v60, 0.0  ;;  %v2829_v6 = vadd.f32 %v2780_v59, %v4423_v57  ;;  %v1311_v7 = vmul.f32 %v1262_v52, %v4414_v41  ;;  %v3074_v13 = vadd.f32 %v3025_v37, %v4423_v57 }
 0x312   : > { %v2926_v11 = vmax.f32 %v2681_v58, %v2877_v28  ;;  %v1702_v19 = vmax.f32 %v1457_v61, %v1653_v54  ;;  %v1115_v12 = vadd.f32 %v4423_v57, %v1060_v5  ;;  %v2633_v42 = vmax.f32 %v2584_v3, 0.0  ;;  %v1998_v54 = vld [vmem:[#allocation2 + $0x738] sm:$0xff]  ;;  %v2243_v3 = vld [vmem:[#allocation2 + $0x8c0] sm:$0xff] }
 0x313   : > { %v2878_v29 = vmax.f32 %v2829_v6, 0.0  ;;  %v1360_v63 = vadd.f32 %v1311_v7, %v4423_v57  ;;  %v1556_v23 = vmul.f32 %v1507_v0, %v4414_v41  ;;  %v1801_v47 = vmul.f32 %v1752_v20, %v4414_v41  ;;  %v2488_v6 = vld [vmem:[#allocation2 + $0xa48] sm:$0xff] }
 0x314   : > { %v3171_v39 = vmax.f32 %v2926_v11, %v3122_v17  ;;  %v1947_v26 = vmax.f32 %v1702_v19, %v1898_v8  ;;  %v1164_v50 = vmax.f32 %v1115_v12, 0.0  ;;  %v2046_v30 = vmul.f32 %v1997_v14, %v4414_v41  ;;  %v2978_v12 = vld [vmem:[#allocation2 + $0xd58] sm:$0xff] }
 0x315   : > { %v1409_v18 = vmax.f32 %v1360_v63, 0.0  ;;  %v1605_v56 = vadd.f32 %v1556_v23, %v4423_v57  ;;  %v2291_v1 = vmul.f32 %v2242_v21, %v4414_v41  ;;  %v1850_v35 = vadd.f32 %v1801_v47, %v4423_v57  ;;  %v1007_v63 = vld [vmem:[#allocation2 + $0x120] sm:$0xff] }
 0x316   : > { %3220 = vst [vmem:[%s5469_s5 + $0x100] sm:$0xff] %v3171_v39  ;;  %v2192_v32 = vmax.f32 %v1947_v26, %v2143_v62  ;;  %v1213_v15 = vmax.f32 %v1164_v50, 0.0  ;;  %v2536_v9 = vmul.f32 %v2487_v38, %v4414_v41  ;;  %v2095_v31 = vadd.f32 %v2046_v30, %v4423_v57  ;;  %v1264_v50 = vld [vmem:[#allocation2 + $0x2a8] sm:$0xff] }
 0x317   : > { %v1654_v36 = vmax.f32 %v1605_v56, 0.0  ;;  %v2340_v28 = vadd.f32 %v2291_v1, %v4423_v57  ;;  %v2781_v43 = vmul.f32 %v2732_v27, %v4414_v41  ;;  %v1899_v55 = vmax.f32 %v1850_v35, 0.0  ;;  %v1509_v35 = vld [vmem:[#allocation2 + $0x430] sm:$0xff] }
 0x318   : > { %v2437_v45 = vmax.f32 %v2192_v32, %v2388_v24  ;;  %v1458_v49 = vmax.f32 %v1213_v15, %v1409_v18  ;;  %v2585_v34 = vadd.f32 %v2536_v9, %v4423_v57  ;;  %v3123_v48 = vmax.f32 %v3074_v13, 0.0  ;;  %v2733_v13 = vld [vmem:[#allocation2 + $0xbd0] sm:$0xff] }
 0x319   : > { %v2144_v22 = vmax.f32 %v2095_v31, 0.0  ;;  %v2830_v17 = vadd.f32 %v2781_v43, %v4423_v57  ;;  %v3026_v40 = vmul.f32 %v2977_v2, %v4414_v41  ;;  %v2389_v33 = vmax.f32 %v2340_v28, 0.0  ;;  %v1754_v28 = vld [vmem:[#allocation2 + $0x5b8] sm:$0xff] }
 0x31a   : > { %v2682_v10 = vmax.f32 %v2437_v45, %v2633_v42  ;;  %v1703_v53 = vmax.f32 %v1458_v49, %v1654_v36  ;;  %v1061_v46 = vmul.f32 %v4414_v41, %v1006_v44  ;;  %v2634_v51 = vmax.f32 %v2585_v34, 0.0  ;;  %v2244_v34 = vld [vmem:[#allocation2 + $0x8c8] sm:$0xff] }
 0x31b   : > { %v3075_v52 = vadd.f32 %v3026_v40, %v4423_v57  ;;  %v1312_v8 = vmul.f32 %v1263_v25, %v4414_v41  ;;  %v1557_v60 = vmul.f32 %v1508_v4, %v4414_v41  ;;  %v1802_v61 = vmul.f32 %v1753_v16, %v4414_v41 }
 0x31c   : > { %v2927_v59 = vmax.f32 %v2682_v10, %v2878_v29  ;;  %v1948_v37 = vmax.f32 %v1703_v53, %v1899_v55  ;;  %v1116_v58 = vadd.f32 %v4423_v57, %v1061_v46  ;;  %v2879_v5 = vmax.f32 %v2830_v17, 0.0  ;;  %v1999_v55 = vld [vmem:[#allocation2 + $0x740] sm:$0xff]  ;;  %v2489_v17 = vld [vmem:[#allocation2 + $0xa50] sm:$0xff] }
 0x31d   : > { %v1361_v0 = vadd.f32 %v1312_v8, %v4423_v57  ;;  %v1606_v62 = vadd.f32 %v1557_v60, %v4423_v57  ;;  %v2047_v24 = vmul.f32 %v1998_v54, %v4414_v41  ;;  %v1851_v19 = vadd.f32 %v1802_v61, %v4423_v57 }
 0x31e   : > { %v3172_v7 = vmax.f32 %v2927_v59, %v3123_v48  ;;  %v2193_v20 = vmax.f32 %v1948_v37, %v2144_v22  ;;  %v1165_v11 = vmax.f32 %v1116_v58, 0.0  ;;  %v3124_v14 = vmax.f32 %v3075_v52, 0.0  ;;  %v2979_v58 = vld [vmem:[#allocation2 + $0xd60] sm:$0xff] }
 0x31f   : > { %v1410_v21 = vmax.f32 %v1361_v0, 0.0  ;;  %v2096_v42 = vadd.f32 %v2047_v24, %v4423_v57  ;;  %v2292_v29 = vmul.f32 %v2243_v3, %v4414_v41  ;;  %v1655_v39 = vmax.f32 %v1606_v62, 0.0  ;;  %v1008_v62 = vld [vmem:[#allocation2 + $0x128] sm:$0xff] }
 0x320   : > { %3221 = vst [vmem:[%s5469_s5 + $0x108] sm:$0xff] %v3172_v7  ;;  %v2438_v23 = vmax.f32 %v2193_v20, %v2389_v33  ;;  %v1214_v38 = vmax.f32 %v1165_v11, 0.0  ;;  %v2537_v26 = vmul.f32 %v2488_v6, %v4414_v41  ;;  %v1900_v47 = vmax.f32 %v1851_v19, 0.0  ;;  %v2734_v33 = vld [vmem:[#allocation2 + $0xbd8] sm:$0xff]  ;;  %v1265_v11 = vld [vmem:[#allocation2 + $0x2b0] sm:$0xff] }
 0x321   : > { %v2341_v27 = vadd.f32 %v2292_v29, %v4423_v57  ;;  %v2782_v18 = vmul.f32 %v2733_v13, %v4414_v41  ;;  %v3027_v56 = vmul.f32 %v2978_v12, %v4414_v41  ;;  %v1062_v15 = vmul.f32 %v4414_v41, %v1007_v63  ;;  %v1510_v19 = vld [vmem:[#allocation2 + $0x438] sm:$0xff] }
 0x322   : > { %v2683_v30 = vmax.f32 %v2438_v23, %v2634_v51  ;;  %v1459_v1 = vmax.f32 %v1214_v38, %v1410_v21  ;;  %v2586_v32 = vadd.f32 %v2537_v26, %v4423_v57  ;;  %v2145_v9 = vmax.f32 %v2096_v42, 0.0  ;;  %v1755_v42 = vld [vmem:[#allocation2 + $0x5c0] sm:$0xff] }
 0x323   : > { %v2390_v2 = vmax.f32 %v2341_v27, 0.0  ;;  %v2831_v36 = vadd.f32 %v2782_v18, %v4423_v57  ;;  %v1313_v31 = vmul.f32 %v1264_v50, %v4414_v41  ;;  %v3076_v45 = vadd.f32 %v3027_v56, %v4423_v57 }
 0x324   : > { %v2928_v43 = vmax.f32 %v2683_v30, %v2879_v5  ;;  %v1704_v44 = vmax.f32 %v1459_v1, %v1655_v39  ;;  %v1117_v49 = vadd.f32 %v4423_v57, %v1062_v15  ;;  %v2635_v25 = vmax.f32 %v2586_v32, 0.0  ;;  %v2000_v39 = vld [vmem:[#allocation2 + $0x748] sm:$0xff]  ;;  %v2245_v32 = vld [vmem:[#allocation2 + $0x8d0] sm:$0xff] }
 0x325   : > { %v2880_v4 = vmax.f32 %v2831_v36, 0.0  ;;  %v1362_v48 = vadd.f32 %v1313_v31, %v4423_v57  ;;  %v1558_v22 = vmul.f32 %v1509_v35, %v4414_v41  ;;  %v1803_v53 = vmul.f32 %v1754_v28, %v4414_v41  ;;  %v2490_v36 = vld [vmem:[#allocation2 + $0xa58] sm:$0xff] }
 0x326   : > { %v3173_v40 = vmax.f32 %v2928_v43, %v3124_v14  ;;  %v1949_v16 = vmax.f32 %v1704_v44, %v1900_v47  ;;  %v1166_v10 = vmax.f32 %v1117_v49, 0.0  ;;  %v2048_v51 = vmul.f32 %v1999_v55, %v4414_v41  ;;  %v2980_v49 = vld [vmem:[#allocation2 + $0xd68] sm:$0xff] }
 0x327   : > { %v1411_v46 = vmax.f32 %v1362_v48, 0.0  ;;  %v1607_v54 = vadd.f32 %v1558_v22, %v4423_v57  ;;  %v2293_v52 = vmul.f32 %v2244_v34, %v4414_v41  ;;  %v1852_v59 = vadd.f32 %v1803_v53, %v4423_v57  ;;  %v1009_v48 = vld [vmem:[#allocation2 + $0x130] sm:$0xff] }
 0x328   : > { %3222 = vst [vmem:[%s5469_s5 + $0x110] sm:$0xff] %v3173_v40  ;;  %v2194_v8 = vmax.f32 %v1949_v16, %v2145_v9  ;;  %v1215_v60 = vmax.f32 %v1166_v10, 0.0  ;;  %v2538_v37 = vmul.f32 %v2489_v17, %v4414_v41  ;;  %v2097_v3 = vadd.f32 %v2048_v51, %v4423_v57  ;;  %v1266_v10 = vld [vmem:[#allocation2 + $0x2b8] sm:$0xff] }
 0x329   : > { %v1656_v61 = vmax.f32 %v1607_v54, 0.0  ;;  %v2342_v5 = vadd.f32 %v2293_v52, %v4423_v57  ;;  %v2783_v0 = vmul.f32 %v2734_v33, %v4414_v41  ;;  %v1901_v7 = vmax.f32 %v1852_v59, 0.0  ;;  %v1511_v59 = vld [vmem:[#allocation2 + $0x440] sm:$0xff] }
 0x32a   : > { %v2439_v24 = vmax.f32 %v2194_v8, %v2390_v2  ;;  %v1460_v6 = vmax.f32 %v1215_v60, %v1411_v46  ;;  %v2587_v20 = vadd.f32 %v2538_v37, %v4423_v57  ;;  %v3125_v13 = vmax.f32 %v3076_v45, 0.0  ;;  %v2735_v45 = vld [vmem:[#allocation2 + $0xbe0] sm:$0xff] }
 0x32b   : > { %v2146_v12 = vmax.f32 %v2097_v3, 0.0  ;;  %v2832_v14 = vadd.f32 %v2783_v0, %v4423_v57  ;;  %v3028_v21 = vmul.f32 %v2979_v58, %v4414_v41  ;;  %v2391_v23 = vmax.f32 %v2342_v5, 0.0  ;;  %v1756_v5 = vld [vmem:[#allocation2 + $0x5c8] sm:$0xff] }
 0x32c   : > { %v2684_v29 = vmax.f32 %v2439_v24, %v2635_v25  ;;  %v1705_v63 = vmax.f32 %v1460_v6, %v1656_v61  ;;  %v1063_v38 = vmul.f32 %v4414_v41, %v1008_v62  ;;  %v2636_v26 = vmax.f32 %v2587_v20, 0.0  ;;  %v2246_v20 = vld [vmem:[#allocation2 + $0x8d8] sm:$0xff] }
 0x32d   : > { %v3077_v50 = vadd.f32 %v3028_v21, %v4423_v57  ;;  %v1314_v47 = vmul.f32 %v1265_v11, %v4414_v41  ;;  %v1559_v27 = vmul.f32 %v1510_v19, %v4414_v41  ;;  %v1804_v1 = vmul.f32 %v1755_v42, %v4414_v41 }
 0x32e   : > { %v2929_v18 = vmax.f32 %v2684_v29, %v2880_v4  ;;  %v1950_v56 = vmax.f32 %v1705_v63, %v1901_v7  ;;  %v1118_v30 = vadd.f32 %v4423_v57, %v1063_v38  ;;  %v2881_v15 = vmax.f32 %v2832_v14, 0.0  ;;  %v2001_v7 = vld [vmem:[#allocation2 + $0x750] sm:$0xff]  ;;  %v2491_v14 = vld [vmem:[#allocation2 + $0xa60] sm:$0xff] }
 0x32f   : > { %v1363_v35 = vadd.f32 %v1314_v47, %v4423_v57  ;;  %v1608_v9 = vadd.f32 %v1559_v27, %v4423_v57  ;;  %v2049_v2 = vmul.f32 %v2000_v39, %v4414_v41  ;;  %v1853_v44 = vadd.f32 %v1804_v1, %v4423_v57 }
 0x330   : > { %v3174_v31 = vmax.f32 %v2929_v18, %v3125_v13  ;;  %v2195_v28 = vmax.f32 %v1950_v56, %v2146_v12  ;;  %v1167_v43 = vmax.f32 %v1118_v30, 0.0  ;;  %v3126_v55 = vmax.f32 %v3077_v50, 0.0  ;;  %v2981_v30 = vld [vmem:[#allocation2 + $0xd70] sm:$0xff] }
 0x331   : > { %v1412_v34 = vmax.f32 %v1363_v35, 0.0  ;;  %v2098_v25 = vadd.f32 %v2049_v2, %v4423_v57  ;;  %v2294_v4 = vmul.f32 %v2245_v32, %v4414_v41  ;;  %v1657_v40 = vmax.f32 %v1608_v9, 0.0  ;;  %v1010_v9 = vld [vmem:[#allocation2 + $0x138] sm:$0xff] }
 0x332   : > { %3223 = vst [vmem:[%s5469_s5 + $0x118] sm:$0xff] %v3174_v31  ;;  %v2440_v22 = vmax.f32 %v2195_v28, %v2391_v23  ;;  %v1216_v17 = vmax.f32 %v1167_v43, 0.0  ;;  %v2539_v16 = vmul.f32 %v2490_v36, %v4414_v41  ;;  %v1902_v53 = vmax.f32 %v1853_v44, 0.0  ;;  %v2736_v23 = vld [vmem:[#allocation2 + $0xbe8] sm:$0xff]  ;;  %v1267_v43 = vld [vmem:[#allocation2 + $0x2c0] sm:$0xff] }
 0x333   : > { %v2343_v33 = vadd.f32 %v2294_v4, %v4423_v57  ;;  %v2784_v46 = vmul.f32 %v2735_v45, %v4414_v41  ;;  %v3029_v54 = vmul.f32 %v2980_v49, %v4414_v41  ;;  %v1064_v60 = vmul.f32 %v4414_v41, %v1009_v48  ;;  %v1512_v44 = vld [vmem:[#allocation2 + $0x448] sm:$0xff] }
 0x334   : > { %v2685_v51 = vmax.f32 %v2440_v22, %v2636_v26  ;;  %v1461_v52 = vmax.f32 %v1216_v17, %v1412_v34  ;;  %v2588_v8 = vadd.f32 %v2539_v16, %v4423_v57  ;;  %v2147_v37 = vmax.f32 %v2098_v25, 0.0  ;;  %v1757_v25 = vld [vmem:[#allocation2 + $0x5d0] sm:$0xff] }
 0x335   : > { %v2392_v58 = vmax.f32 %v2343_v33, 0.0  ;;  %v2833_v61 = vadd.f32 %v2784_v46, %v4423_v57  ;;  %v1315_v3 = vmul.f32 %v1266_v10, %v4414_v41  ;;  %v3078_v24 = vadd.f32 %v3029_v54, %v4423_v57 }
 0x336   : > { %v2930_v0 = vmax.f32 %v2685_v51, %v2881_v15  ;;  %v1706_v62 = vmax.f32 %v1461_v52, %v1657_v40  ;;  %v1119_v6 = vadd.f32 %v4423_v57, %v1064_v60  ;;  %v2637_v11 = vmax.f32 %v2588_v8, 0.0  ;;  %v2002_v40 = vld [vmem:[#allocation2 + $0x758] sm:$0xff]  ;;  %v2247_v8 = vld [vmem:[#allocation2 + $0x8e0] sm:$0xff] }
 0x337   : > { %v2882_v19 = vmax.f32 %v2833_v61, 0.0  ;;  %v1364_v13 = vadd.f32 %v1315_v3, %v4423_v57  ;;  %v1560_v12 = vmul.f32 %v1511_v59, %v4414_v41  ;;  %v1805_v63 = vmul.f32 %v1756_v5, %v4414_v41  ;;  %v2492_v61 = vld [vmem:[#allocation2 + $0xa68] sm:$0xff] }
 0x338   : > { %v3175_v21 = vmax.f32 %v2930_v0, %v3126_v55  ;;  %v1951_v42 = vmax.f32 %v1706_v62, %v1902_v53  ;;  %v1168_v29 = vmax.f32 %v1119_v6, 0.0  ;;  %v2050_v26 = vmul.f32 %v2001_v7, %v4414_v41  ;;  %v2982_v6 = vld [vmem:[#allocation2 + $0xd78] sm:$0xff] }
 0x339   : > { %v1413_v38 = vmax.f32 %v1364_v13, 0.0  ;;  %v1609_v39 = vadd.f32 %v1560_v12, %v4423_v57  ;;  %v2295_v50 = vmul.f32 %v2246_v20, %v4414_v41  ;;  %v1854_v18 = vadd.f32 %v1805_v63, %v4423_v57  ;;  %v1011_v13 = vld [vmem:[#allocation2 + $0x140] sm:$0xff] }
 0x33a   : > { %3224 = vst [vmem:[%s5469_s5 + $0x120] sm:$0xff] %v3175_v21  ;;  %v2196_v47 = vmax.f32 %v1951_v42, %v2147_v37  ;;  %v1217_v27 = vmax.f32 %v1168_v29, 0.0  ;;  %v2540_v56 = vmul.f32 %v2491_v14, %v4414_v41  ;;  %v2099_v32 = vadd.f32 %v2050_v26, %v4423_v57  ;;  %v1268_v29 = vld [vmem:[#allocation2 + $0x2c8] sm:$0xff] }
 0x33b   : > { %v1658_v1 = vmax.f32 %v1609_v39, 0.0  ;;  %v2344_v15 = vadd.f32 %v2295_v50, %v4423_v57  ;;  %v2785_v35 = vmul.f32 %v2736_v23, %v4414_v41  ;;  %v1903_v31 = vmax.f32 %v1854_v18, 0.0  ;;  %v1513_v18 = vld [vmem:[#allocation2 + $0x450] sm:$0xff] }
 0x33c   : > { %v2441_v2 = vmax.f32 %v2196_v47, %v2392_v58  ;;  %v1462_v36 = vmax.f32 %v1217_v27, %v1413_v38  ;;  %v2589_v28 = vadd.f32 %v2540_v56, %v4423_v57  ;;  %v3127_v45 = vmax.f32 %v3078_v24, 0.0  ;;  %v2737_v24 = vld [vmem:[#allocation2 + $0xbf0] sm:$0xff] }
 0x33d   : > { %v2148_v49 = vmax.f32 %v2099_v32, 0.0  ;;  %v2834_v55 = vadd.f32 %v2785_v35, %v4423_v57  ;;  %v3030_v34 = vmul.f32 %v2981_v30, %v4414_v41  ;;  %v2393_v22 = vmax.f32 %v2344_v15, 0.0  ;;  %v1758_v15 = vld [vmem:[#allocation2 + $0x5d8] sm:$0xff] }
 0x33e   : > { %v2686_v4 = vmax.f32 %v2441_v2, %v2637_v11  ;;  %v1707_v48 = vmax.f32 %v1462_v36, %v1658_v1  ;;  %v1065_v17 = vmul.f32 %v4414_v41, %v1010_v9  ;;  %v2638_v16 = vmax.f32 %v2589_v28, 0.0  ;;  %v2248_v28 = vld [vmem:[#allocation2 + $0x8e8] sm:$0xff] }
 0x33f   : > { %v3079_v10 = vadd.f32 %v3030_v34, %v4423_v57  ;;  %v1316_v53 = vmul.f32 %v1267_v43, %v4414_v41  ;;  %v1561_v33 = vmul.f32 %v1512_v44, %v4414_v41  ;;  %v1806_v52 = vmul.f32 %v1757_v25, %v4414_v41 }
 0x340   : > { %v2931_v46 = vmax.f32 %v2686_v4, %v2882_v19  ;;  %v1952_v54 = vmax.f32 %v1707_v48, %v1903_v31  ;;  %v1120_v51 = vadd.f32 %v4423_v57, %v1065_v17  ;;  %v2883_v60 = vmax.f32 %v2834_v55, 0.0  ;;  %v2003_v31 = vld [vmem:[#allocation2 + $0x760] sm:$0xff]  ;;  %v2493_v55 = vld [vmem:[#allocation2 + $0xa70] sm:$0xff] }
 0x341   : > { %v1365_v59 = vadd.f32 %v1316_v53, %v4423_v57  ;;  %v1610_v37 = vadd.f32 %v1561_v33, %v4423_v57  ;;  %v2051_v58 = vmul.f32 %v2002_v40, %v4414_v41  ;;  %v1855_v62 = vadd.f32 %v1806_v52, %v4423_v57 }
 0x342   : > { %v3176_v3 = vmax.f32 %v2931_v46, %v3127_v45  ;;  %v2197_v5 = vmax.f32 %v1952_v54, %v2148_v49  ;;  %v1169_v0 = vmax.f32 %v1120_v51, 0.0  ;;  %v3128_v7 = vmax.f32 %v3079_v10, 0.0  ;;  %v2983_v51 = vld [vmem:[#allocation2 + $0xd80] sm:$0xff] }
 0x343   : > { %v1414_v20 = vmax.f32 %v1365_v59, 0.0  ;;  %v2100_v11 = vadd.f32 %v2051_v58, %v4423_v57  ;;  %v2296_v19 = vmul.f32 %v2247_v8, %v4414_v41  ;;  %v1659_v21 = vmax.f32 %v1610_v37, 0.0  ;;  %v1012_v37 = vld [vmem:[#allocation2 + $0x148] sm:$0xff] }
 0x344   : > { %3225 = vst [vmem:[%s5469_s5 + $0x128] sm:$0xff] %v3176_v3  ;;  %v2442_v12 = vmax.f32 %v2197_v5, %v2393_v22  ;;  %v1218_v14 = vmax.f32 %v1169_v0, 0.0  ;;  %v2541_v42 = vmul.f32 %v2492_v61, %v4414_v41  ;;  %v1904_v63 = vmax.f32 %v1855_v62, 0.0  ;;  %v2738_v22 = vld [vmem:[#allocation2 + $0xbf8] sm:$0xff]  ;;  %v1269_v0 = vld [vmem:[#allocation2 + $0x2d0] sm:$0xff] }
 0x345   : > { %v2345_v23 = vadd.f32 %v2296_v19, %v4423_v57  ;;  %v2786_v38 = vmul.f32 %v2737_v24, %v4414_v41  ;;  %v3031_v39 = vmul.f32 %v2982_v6, %v4414_v41  ;;  %v1066_v27 = vmul.f32 %v4414_v41, %v1011_v13  ;;  %v1514_v62 = vld [vmem:[#allocation2 + $0x458] sm:$0xff] }
 0x346   : > { %v2687_v26 = vmax.f32 %v2442_v12, %v2638_v16  ;;  %v1463_v50 = vmax.f32 %v1218_v14, %v1414_v20  ;;  %v2590_v47 = vadd.f32 %v2541_v42, %v4423_v57  ;;  %v2149_v56 = vmax.f32 %v2100_v11, 0.0  ;;  %v1759_v11 = vld [vmem:[#allocation2 + $0x5e0] sm:$0xff] }
 0x347   : > { %v2394_v30 = vmax.f32 %v2345_v23, 0.0  ;;  %v2835_v1 = vadd.f32 %v2786_v38, %v4423_v57  ;;  %v1317_v32 = vmul.f32 %v1268_v29, %v4414_v41  ;;  %v3080_v2 = vadd.f32 %v3031_v39, %v4423_v57 }
 0x348   : > { %v2932_v35 = vmax.f32 %v2687_v26, %v2883_v60  ;;  %v1708_v9 = vmax.f32 %v1463_v50, %v1659_v21  ;;  %v1121_v36 = vadd.f32 %v4423_v57, %v1066_v27  ;;  %v2639_v43 = vmax.f32 %v2590_v47, 0.0  ;;  %v2004_v21 = vld [vmem:[#allocation2 + $0x768] sm:$0xff]  ;;  %v2249_v47 = vld [vmem:[#allocation2 + $0x8f0] sm:$0xff] }
 0x349   : > { %v2884_v44 = vmax.f32 %v2835_v1, 0.0  ;;  %v1366_v45 = vadd.f32 %v1317_v32, %v4423_v57  ;;  %v1562_v49 = vmul.f32 %v1513_v18, %v4414_v41  ;;  %v1807_v48 = vmul.f32 %v1758_v15, %v4414_v41  ;;  %v2494_v1 = vld [vmem:[#allocation2 + $0xa78] sm:$0xff] }
 0x34a   : > { %v3177_v34 = vmax.f32 %v2932_v35, %v3128_v7  ;;  %v1953_v25 = vmax.f32 %v1708_v9, %v1904_v63  ;;  %v1170_v4 = vmax.f32 %v1121_v36, 0.0  ;;  %v2052_v16 = vmul.f32 %v2003_v31, %v4414_v41  ;;  %v2984_v36 = vld [vmem:[#allocation2 + $0xd88] sm:$0xff] }
 0x34b   : > { %v1415_v17 = vmax.f32 %v1366_v45, 0.0  ;;  %v1611_v40 = vadd.f32 %v1562_v49, %v4423_v57  ;;  %v2297_v10 = vmul.f32 %v2248_v28, %v4414_v41  ;;  %v1856_v46 = vadd.f32 %v1807_v48, %v4423_v57  ;;  %v1013_v45 = vld [vmem:[#allocation2 + $0x150] sm:$0xff] }
 0x34c   : > { %3226 = vst [vmem:[%s5469_s5 + $0x130] sm:$0xff] %v3177_v34  ;;  %v2198_v53 = vmax.f32 %v1953_v25, %v2149_v56  ;;  %v1219_v33 = vmax.f32 %v1170_v4, 0.0  ;;  %v2542_v54 = vmul.f32 %v2493_v55, %v4414_v41  ;;  %v2101_v8 = vadd.f32 %v2052_v16, %v4423_v57  ;;  %v1270_v4 = vld [vmem:[#allocation2 + $0x2d8] sm:$0xff] }
 0x34d   : > { %v1660_v52 = vmax.f32 %v1611_v40, 0.0  ;;  %v2346_v60 = vadd.f32 %v2297_v10, %v4423_v57  ;;  %v2787_v59 = vmul.f32 %v2738_v22, %v4414_v41  ;;  %v1905_v3 = vmax.f32 %v1856_v46, 0.0  ;;  %v1515_v46 = vld [vmem:[#allocation2 + $0x460] sm:$0xff] }
 0x34e   : > { %v2443_v58 = vmax.f32 %v2198_v53, %v2394_v30  ;;  %v1464_v61 = vmax.f32 %v1219_v33, %v1415_v17  ;;  %v2591_v5 = vadd.f32 %v2542_v54, %v4423_v57  ;;  %v3129_v24 = vmax.f32 %v3080_v2, 0.0  ;;  %v2739_v2 = vld [vmem:[#allocation2 + $0xc00] sm:$0xff] }
 0x34f   : > { %v2150_v6 = vmax.f32 %v2101_v8, 0.0  ;;  %v2836_v7 = vadd.f32 %v2787_v59, %v4423_v57  ;;  %v3032_v20 = vmul.f32 %v2983_v51, %v4414_v41  ;;  %v2395_v12 = vmax.f32 %v2346_v60, 0.0  ;;  %v1760_v60 = vld [vmem:[#allocation2 + $0x5e8] sm:$0xff] }
 0x350   : > { %v2688_v19 = vmax.f32 %v2443_v58, %v2639_v43  ;;  %v1709_v13 = vmax.f32 %v1464_v61, %v1660_v52  ;;  %v1067_v14 = vmul.f32 %v4414_v41, %v1012_v37  ;;  %v2640_v42 = vmax.f32 %v2591_v5, 0.0  ;;  %v2250_v5 = vld [vmem:[#allocation2 + $0x8f8] sm:$0xff] }
 0x351   : > { %v3081_v29 = vadd.f32 %v3032_v20, %v4423_v57  ;;  %v1318_v63 = vmul.f32 %v1269_v0, %v4414_v41  ;;  %v1563_v23 = vmul.f32 %v1514_v62, %v4414_v41  ;;  %v1808_v50 = vmul.f32 %v1759_v11, %v4414_v41 }
 0x352   : > { %v2933_v38 = vmax.f32 %v2688_v19, %v2884_v44  ;;  %v1954_v39 = vmax.f32 %v1709_v13, %v1905_v3  ;;  %v1122_v26 = vadd.f32 %v4423_v57, %v1067_v14  ;;  %v2885_v27 = vmax.f32 %v2836_v7, 0.0  ;;  %v2005_v3 = vld [vmem:[#allocation2 + $0x770] sm:$0xff]  ;;  %v2495_v7 = vld [vmem:[#allocation2 + $0xa80] sm:$0xff] }
 0x353   : > { %v1367_v18 = vadd.f32 %v1318_v63, %v4423_v57  ;;  %v1612_v56 = vadd.f32 %v1563_v23, %v4423_v57  ;;  %v2053_v30 = vmul.f32 %v2004_v21, %v4414_v41  ;;  %v1857_v9 = vadd.f32 %v1808_v50, %v4423_v57 }
 0x354   : > { %v3178_v32 = vmax.f32 %v2933_v38, %v3129_v24  ;;  %v2199_v15 = vmax.f32 %v1954_v39, %v2150_v6  ;;  %v1171_v35 = vmax.f32 %v1122_v26, 0.0  ;;  %v3130_v31 = vmax.f32 %v3081_v29, 0.0  ;;  %v2985_v26 = vld [vmem:[#allocation2 + $0xd90] sm:$0xff] }
 0x355   : > { %v1416_v28 = vmax.f32 %v1367_v18, 0.0  ;;  %v2102_v43 = vadd.f32 %v2053_v30, %v4423_v57  ;;  %v2298_v44 = vmul.f32 %v2249_v47, %v4414_v41  ;;  %v1661_v34 = vmax.f32 %v1612_v56, 0.0  ;;  %v1014_v56 = vld [vmem:[#allocation2 + $0x158] sm:$0xff] }
 0x356   : > { %3227 = vst [vmem:[%s5469_s5 + $0x138] sm:$0xff] %v3178_v32  ;;  %v2444_v49 = vmax.f32 %v2199_v15, %v2395_v12  ;;  %v1220_v55 = vmax.f32 %v1171_v35, 0.0  ;;  %v2543_v25 = vmul.f32 %v2494_v1, %v4414_v41  ;;  %v1906_v48 = vmax.f32 %v1857_v9, 0.0  ;;  %v2740_v12 = vld [vmem:[#allocation2 + $0xc08] sm:$0xff]  ;;  %v1271_v35 = vld [vmem:[#allocation2 + $0x2e0] sm:$0xff] }
 0x357   : > { %v2347_v22 = vadd.f32 %v2298_v44, %v4423_v57  ;;  %v2788_v17 = vmul.f32 %v2739_v2, %v4414_v41  ;;  %v3033_v40 = vmul.f32 %v2984_v36, %v4414_v41  ;;  %v1068_v33 = vmul.f32 %v4414_v41, %v1013_v45  ;;  %v1516_v9 = vld [vmem:[#allocation2 + $0x468] sm:$0xff] }
 0x358   : > { %v2689_v16 = vmax.f32 %v2444_v49, %v2640_v42  ;;  %v1465_v10 = vmax.f32 %v1220_v55, %v1416_v28  ;;  %v2592_v53 = vadd.f32 %v2543_v25, %v4423_v57  ;;  %v2151_v54 = vmax.f32 %v2102_v43, 0.0  ;;  %v1761_v43 = vld [vmem:[#allocation2 + $0x5f0] sm:$0xff] }
 0x359   : > { %v2396_v51 = vmax.f32 %v2347_v22, 0.0  ;;  %v2837_v52 = vadd.f32 %v2788_v17, %v4423_v57  ;;  %v1319_v8 = vmul.f32 %v1270_v4, %v4414_v41  ;;  %v3082_v58 = vadd.f32 %v3033_v40, %v4423_v57 }
 0x35a   : > { %v2934_v59 = vmax.f32 %v2689_v16, %v2885_v27  ;;  %v1710_v37 = vmax.f32 %v1465_v10, %v1661_v34  ;;  %v1123_v61 = vadd.f32 %v4423_v57, %v1068_v33  ;;  %v2641_v0 = vmax.f32 %v2592_v53, 0.0  ;;  %v2006_v34 = vld [vmem:[#allocation2 + $0x778] sm:$0xff]  ;;  %v2251_v53 = vld [vmem:[#allocation2 + $0x900] sm:$0xff] }
 0x35b   : > { %v2886_v62 = vmax.f32 %v2837_v52, 0.0  ;;  %v1368_v24 = vadd.f32 %v1319_v8, %v4423_v57  ;;  %v1564_v6 = vmul.f32 %v1515_v46, %v4414_v41  ;;  %v1809_v13 = vmul.f32 %v1760_v60, %v4414_v41  ;;  %v2496_v52 = vld [vmem:[#allocation2 + $0xa88] sm:$0xff] }
 0x35c   : > { %v3179_v20 = vmax.f32 %v2934_v59, %v3130_v31  ;;  %v1955_v11 = vmax.f32 %v1710_v37, %v1906_v48  ;;  %v1172_v19 = vmax.f32 %v1123_v61, 0.0  ;;  %v2054_v42 = vmul.f32 %v2005_v3, %v4414_v41  ;;  %v2986_v61 = vld [vmem:[#allocation2 + $0xd98] sm:$0xff] }
 0x35d   : > { %v1417_v14 = vmax.f32 %v1368_v24, 0.0  ;;  %v1613_v21 = vadd.f32 %v1564_v6, %v4423_v57  ;;  %v2299_v29 = vmul.f32 %v2250_v5, %v4414_v41  ;;  %v1858_v38 = vadd.f32 %v1809_v13, %v4423_v57  ;;  %v1015_v24 = vld [vmem:[#allocation2 + $0x160] sm:$0xff] }
 0x35e   : > { %3228 = vst [vmem:[%s5469_s5 + $0x140] sm:$0xff] %v3179_v20  ;;  %v2200_v63 = vmax.f32 %v1955_v11, %v2151_v54  ;;  %v1221_v23 = vmax.f32 %v1172_v19, 0.0  ;;  %v2544_v39 = vmul.f32 %v2495_v7, %v4414_v41  ;;  %v2103_v47 = vadd.f32 %v2054_v42, %v4423_v57  ;;  %v1272_v19 = vld [vmem:[#allocation2 + $0x2e8] sm:$0xff] }
 0x35f   : > { %v1662_v50 = vmax.f32 %v1613_v21, 0.0  ;;  %v2348_v27 = vadd.f32 %v2299_v29, %v4423_v57  ;;  %v2789_v18 = vmul.f32 %v2740_v12, %v4414_v41  ;;  %v1907_v32 = vmax.f32 %v1858_v38, 0.0  ;;  %v1517_v38 = vld [vmem:[#allocation2 + $0x470] sm:$0xff] }
 0x360   : > { %v2445_v30 = vmax.f32 %v2200_v63, %v2396_v51  ;;  %v1466_v1 = vmax.f32 %v1221_v23, %v1417_v14  ;;  %v2593_v15 = vadd.f32 %v2544_v39, %v4423_v57  ;;  %v3131_v2 = vmax.f32 %v3082_v58, 0.0  ;;  %v2741_v58 = vld [vmem:[#allocation2 + $0xc10] sm:$0xff] }
 0x361   : > { %v2152_v36 = vmax.f32 %v2103_v47, 0.0  ;;  %v2838_v31 = vadd.f32 %v2789_v18, %v4423_v57  ;;  %v3034_v28 = vmul.f32 %v2985_v26, %v4414_v41  ;;  %v2397_v49 = vmax.f32 %v2348_v27, 0.0  ;;  %v1762_v27 = vld [vmem:[#allocation2 + $0x5f8] sm:$0xff] }
 0x362   : > { %v2690_v44 = vmax.f32 %v2445_v30, %v2641_v0  ;;  %v1711_v45 = vmax.f32 %v1466_v1, %v1662_v50  ;;  %v1069_v55 = vmul.f32 %v4414_v41, %v1014_v56  ;;  %v2642_v25 = vmax.f32 %v2593_v15, 0.0  ;;  %v2252_v15 = vld [vmem:[#allocation2 + $0x908] sm:$0xff] }
 0x363   : > { %v3083_v4 = vadd.f32 %v3034_v28, %v4423_v57  ;;  %v1320_v48 = vmul.f32 %v1271_v35, %v4414_v41  ;;  %v1565_v22 = vmul.f32 %v1516_v9, %v4414_v41  ;;  %v1810_v10 = vmul.f32 %v1761_v43, %v4414_v41 }
 0x364   : > { %v2935_v17 = vmax.f32 %v2690_v44, %v2886_v62  ;;  %v1956_v40 = vmax.f32 %v1711_v45, %v1907_v32  ;;  %v1124_v16 = vadd.f32 %v4423_v57, %v1069_v55  ;;  %v2887_v33 = vmax.f32 %v2838_v31, 0.0  ;;  %v2007_v32 = vld [vmem:[#allocation2 + $0x780] sm:$0xff]  ;;  %v2497_v31 = vld [vmem:[#allocation2 + $0xa90] sm:$0xff] }
 0x365   : > { %v1369_v46 = vadd.f32 %v1320_v48, %v4423_v57  ;;  %v1614_v54 = vadd.f32 %v1565_v22, %v4423_v57  ;;  %v2055_v51 = vmul.f32 %v2006_v34, %v4414_v41  ;;  %v1859_v37 = vadd.f32 %v1810_v10, %v4423_v57 }
 0x366   : > { %v3180_v8 = vmax.f32 %v2935_v17, %v3131_v2  ;;  %v2201_v60 = vmax.f32 %v1956_v40, %v2152_v36  ;;  %v1173_v59 = vmax.f32 %v1124_v16, 0.0  ;;  %v3132_v3 = vmax.f32 %v3083_v4, 0.0  ;;  %v2987_v16 = vld [vmem:[#allocation2 + $0xda0] sm:$0xff] }
 0x367   : > { %v1418_v5 = vmax.f32 %v1369_v46, 0.0  ;;  %v2104_v0 = vadd.f32 %v2055_v51, %v4423_v57  ;;  %v2300_v62 = vmul.f32 %v2251_v53, %v4414_v41  ;;  %v1663_v20 = vmax.f32 %v1614_v54, 0.0  ;;  %v1016_v54 = vld [vmem:[#allocation2 + $0x168] sm:$0xff] }
 0x368   : > { %3229 = vst [vmem:[%s5469_s5 + $0x148] sm:$0xff] %v3180_v8  ;;  %v2446_v6 = vmax.f32 %v2201_v60, %v2397_v49  ;;  %v1222_v7 = vmax.f32 %v1173_v59, 0.0  ;;  %v2545_v11 = vmul.f32 %v2496_v52, %v4414_v41  ;;  %v1908_v13 = vmax.f32 %v1859_v37, 0.0  ;;  %v2742_v49 = vld [vmem:[#allocation2 + $0xc18] sm:$0xff]  ;;  %v1273_v59 = vld [vmem:[#allocation2 + $0x2f0] sm:$0xff] }
 0x369   : > { %v2349_v12 = vadd.f32 %v2300_v62, %v4423_v57  ;;  %v2790_v14 = vmul.f32 %v2741_v58, %v4414_v41  ;;  %v3035_v21 = vmul.f32 %v2986_v61, %v4414_v41  ;;  %v1070_v23 = vmul.f32 %v4414_v41, %v1015_v24  ;;  %v1518_v37 = vld [vmem:[#allocation2 + $0x478] sm:$0xff] }
 0x36a   : > { %v2691_v42 = vmax.f32 %v2446_v6, %v2642_v25  ;;  %v1467_v29 = vmax.f32 %v1222_v7, %v1418_v5  ;;  %v2594_v63 = vadd.f32 %v2545_v11, %v4423_v57  ;;  %v2153_v39 = vmax.f32 %v2104_v0, 0.0  ;;  %v1763_v0 = vld [vmem:[#allocation2 + $0x600] sm:$0xff] }
 0x36b   : > { %v2398_v26 = vmax.f32 %v2349_v12, 0.0  ;;  %v2839_v50 = vadd.f32 %v2790_v14, %v4423_v57  ;;  %v1321_v47 = vmul.f32 %v1272_v19, %v4414_v41  ;;  %v3084_v30 = vadd.f32 %v3035_v21, %v4423_v57 }
 0x36c   : > { %v2936_v18 = vmax.f32 %v2691_v42, %v2887_v33  ;;  %v1712_v56 = vmax.f32 %v1467_v29, %v1663_v20  ;;  %v1125_v1 = vadd.f32 %v4423_v57, %v1070_v23  ;;  %v2643_v35 = vmax.f32 %v2594_v63, 0.0  ;;  %v2008_v20 = vld [vmem:[#allocation2 + $0x788] sm:$0xff]  ;;  %v2253_v63 = vld [vmem:[#allocation2 + $0x910] sm:$0xff] }
 0x36d   : > { %v2888_v9 = vmax.f32 %v2839_v50, 0.0  ;;  %v1370_v2 = vadd.f32 %v1321_v47, %v4423_v57  ;;  %v1566_v36 = vmul.f32 %v1517_v38, %v4414_v41  ;;  %v1811_v45 = vmul.f32 %v1762_v27, %v4414_v41  ;;  %v2498_v50 = vld [vmem:[#allocation2 + $0xa98] sm:$0xff] }
 0x36e   : > { %v3181_v28 = vmax.f32 %v2936_v18, %v3132_v3  ;;  %v1957_v43 = vmax.f32 %v1712_v56, %v1908_v13  ;;  %v1174_v44 = vmax.f32 %v1125_v1, 0.0  ;;  %v2056_v25 = vmul.f32 %v2007_v32, %v4414_v41  ;;  %v2988_v1 = vld [vmem:[#allocation2 + $0xda8] sm:$0xff] }
 0x36f   : > { %v1419_v55 = vmax.f32 %v1370_v2, 0.0  ;;  %v1615_v34 = vadd.f32 %v1566_v36, %v4423_v57  ;;  %v2301_v4 = vmul.f32 %v2252_v15, %v4414_v41  ;;  %v1860_v17 = vadd.f32 %v1811_v45, %v4423_v57  ;;  %v1017_v2 = vld [vmem:[#allocation2 + $0x170] sm:$0xff] }
 0x370   : > { %3230 = vst [vmem:[%s5469_s5 + $0x150] sm:$0xff] %v3181_v28  ;;  %v2202_v48 = vmax.f32 %v1957_v43, %v2153_v39  ;;  %v1223_v22 = vmax.f32 %v1174_v44, 0.0  ;;  %v2546_v40 = vmul.f32 %v2497_v31, %v4414_v41  ;;  %v2105_v53 = vadd.f32 %v2056_v25, %v4423_v57  ;;  %v1274_v44 = vld [vmem:[#allocation2 + $0x2f8] sm:$0xff] }
 0x371   : > { %v1664_v10 = vmax.f32 %v1615_v34, 0.0  ;;  %v2350_v33 = vadd.f32 %v2301_v4, %v4423_v57  ;;  %v2791_v46 = vmul.f32 %v2742_v49, %v4414_v41  ;;  %v1909_v8 = vmax.f32 %v1860_v17, 0.0  ;;  %v1519_v17 = vld [vmem:[#allocation2 + $0x480] sm:$0xff] }
 0x372   : > { %v2447_v51 = vmax.f32 %v2202_v48, %v2398_v26  ;;  %v1468_v52 = vmax.f32 %v1223_v22, %v1419_v55  ;;  %v2595_v60 = vadd.f32 %v2546_v40, %v4423_v57  ;;  %v3133_v58 = vmax.f32 %v3084_v30, 0.0  ;;  %v2743_v30 = vld [vmem:[#allocation2 + $0xc20] sm:$0xff] }
 0x373   : > { %v2154_v61 = vmax.f32 %v2105_v53, 0.0  ;;  %v2840_v3 = vadd.f32 %v2791_v46, %v4423_v57  ;;  %v3036_v5 = vmul.f32 %v2987_v16, %v4414_v41  ;;  %v2399_v6 = vmax.f32 %v2350_v33, 0.0  ;;  %v1764_v33 = vld [vmem:[#allocation2 + $0x608] sm:$0xff] }
 0x374   : > { %v2692_v62 = vmax.f32 %v2447_v51, %v2643_v35  ;;  %v1713_v24 = vmax.f32 %v1468_v52, %v1664_v10  ;;  %v1071_v7 = vmul.f32 %v4414_v41, %v1016_v54  ;;  %v2644_v11 = vmax.f32 %v2595_v60, 0.0  ;;  %v2254_v60 = vld [vmem:[#allocation2 + $0x918] sm:$0xff] }
 0x375   : > { %v3085_v19 = vadd.f32 %v3036_v5, %v4423_v57  ;;  %v1322_v13 = vmul.f32 %v1273_v59, %v4414_v41  ;;  %v1567_v12 = vmul.f32 %v1518_v37, %v4414_v41  ;;  %v1812_v29 = vmul.f32 %v1763_v0, %v4414_v41 }
 0x376   : > { %v2937_v14 = vmax.f32 %v2692_v62, %v2888_v9  ;;  %v1958_v21 = vmax.f32 %v1713_v24, %v1909_v8  ;;  %v1126_v42 = vadd.f32 %v4423_v57, %v1071_v7  ;;  %v2889_v23 = vmax.f32 %v2840_v3, 0.0  ;;  %v2009_v8 = vld [vmem:[#allocation2 + $0x790] sm:$0xff]  ;;  %v2499_v3 = vld [vmem:[#allocation2 + $0xaa0] sm:$0xff] }
 0x377   : > { %v1371_v38 = vadd.f32 %v1322_v13, %v4423_v57  ;;  %v1616_v39 = vadd.f32 %v1567_v12, %v4423_v57  ;;  %v2057_v26 = vmul.f32 %v2008_v20, %v4414_v41  ;;  %v1861_v56 = vadd.f32 %v1812_v29, %v4423_v57 }
 0x378   : > { %v3182_v47 = vmax.f32 %v2937_v14, %v3133_v58  ;;  %v2203_v27 = vmax.f32 %v1958_v21, %v2154_v61  ;;  %v1175_v18 = vmax.f32 %v1126_v42, 0.0  ;;  %v3134_v32 = vmax.f32 %v3085_v19, 0.0  ;;  %v2989_v42 = vld [vmem:[#allocation2 + $0xdb0] sm:$0xff] }
 0x379   : > { %v1420_v15 = vmax.f32 %v1371_v38, 0.0  ;;  %v2106_v35 = vadd.f32 %v2057_v26, %v4423_v57  ;;  %v2302_v9 = vmul.f32 %v2253_v63, %v4414_v41  ;;  %v1665_v28 = vmax.f32 %v1616_v39, 0.0  ;;  %v1018_v39 = vld [vmem:[#allocation2 + $0x178] sm:$0xff] }
 0x37a   : > { %3231 = vst [vmem:[%s5469_s5 + $0x158] sm:$0xff] %v3182_v47  ;;  %v2448_v36 = vmax.f32 %v2203_v27, %v2399_v6  ;;  %v1224_v31 = vmax.f32 %v1175_v18, 0.0  ;;  %v2547_v43 = vmul.f32 %v2498_v50, %v4414_v41  ;;  %v1910_v45 = vmax.f32 %v1861_v56, 0.0  ;;  %v2744_v6 = vld [vmem:[#allocation2 + $0xc28] sm:$0xff]  ;;  %v1275_v18 = vld [vmem:[#allocation2 + $0x300] sm:$0xff] }
 0x37b   : > { %v2351_v49 = vadd.f32 %v2302_v9, %v4423_v57  ;;  %v2792_v55 = vmul.f32 %v2743_v30, %v4414_v41  ;;  %v3037_v34 = vmul.f32 %v2988_v1, %v4414_v41  ;;  %v1072_v22 = vmul.f32 %v4414_v41, %v1017_v2  ;;  %v1520_v56 = vld [vmem:[#allocation2 + $0x488] sm:$0xff] }
 0x37c   : > { %v2693_v25 = vmax.f32 %v2448_v36, %v2644_v11  ;;  %v1469_v4 = vmax.f32 %v1224_v31, %v1420_v15  ;;  %v2596_v48 = vadd.f32 %v2547_v43, %v4423_v57  ;;  %v2155_v40 = vmax.f32 %v2106_v35, 0.0  ;;  %v1765_v35 = vld [vmem:[#allocation2 + $0x610] sm:$0xff] }
 0x37d   : > { %v2400_v16 = vmax.f32 %v2351_v49, 0.0  ;;  %v2841_v10 = vadd.f32 %v2792_v55, %v4423_v57  ;;  %v1323_v53 = vmul.f32 %v1274_v44, %v4414_v41  ;;  %v3086_v51 = vadd.f32 %v3037_v34, %v4423_v57 }
 0x37e   : > { %v2938_v46 = vmax.f32 %v2693_v25, %v2889_v23  ;;  %v1714_v54 = vmax.f32 %v1469_v4, %v1665_v28  ;;  %v1127_v52 = vadd.f32 %v4423_v57, %v1072_v22  ;;  %v2645_v59 = vmax.f32 %v2596_v48, 0.0  ;;  %v2010_v28 = vld [vmem:[#allocation2 + $0x798] sm:$0xff]  ;;  %v2255_v48 = vld [vmem:[#allocation2 + $0x920] sm:$0xff] }
 0x37f   : > { %v2890_v37 = vmax.f32 %v2841_v10, 0.0  ;;  %v1372_v58 = vadd.f32 %v1323_v53, %v4423_v57  ;;  %v1568_v61 = vmul.f32 %v1519_v17, %v4414_v41  ;;  %v1813_v24 = vmul.f32 %v1764_v33, %v4414_v41  ;;  %v2500_v10 = vld [vmem:[#allocation2 + $0xaa8] sm:$0xff] }
 0x380   : > { %v3183_v5 = vmax.f32 %v2938_v46, %v3134_v32  ;;  %v1959_v0 = vmax.f32 %v1714_v54, %v1910_v45  ;;  %v1176_v62 = vmax.f32 %v1127_v52, 0.0  ;;  %v2058_v11 = vmul.f32 %v2009_v8, %v4414_v41  ;;  %v2990_v52 = vld [vmem:[#allocation2 + $0xdb8] sm:$0xff] }
 0x381   : > { %v1421_v7 = vmax.f32 %v1372_v58, 0.0  ;;  %v1617_v20 = vadd.f32 %v1568_v61, %v4423_v57  ;;  %v2303_v19 = vmul.f32 %v2254_v60, %v4414_v41  ;;  %v1862_v14 = vadd.f32 %v1813_v24, %v4423_v57  ;;  %v1019_v58 = vld [vmem:[#allocation2 + $0x180] sm:$0xff] }
 0x382   : > { %3232 = vst [vmem:[%s5469_s5 + $0x160] sm:$0xff] %v3183_v5  ;;  %v2204_v13 = vmax.f32 %v1959_v0, %v2155_v40  ;;  %v1225_v12 = vmax.f32 %v1176_v62, 0.0  ;;  %v2548_v21 = vmul.f32 %v2499_v3, %v4414_v41  ;;  %v2107_v63 = vadd.f32 %v2058_v11, %v4423_v57  ;;  %v1276_v62 = vld [vmem:[#allocation2 + $0x308] sm:$0xff] }
 0x383   : > { %v1666_v29 = vmax.f32 %v1617_v20, 0.0  ;;  %v2352_v23 = vadd.f32 %v2303_v19, %v4423_v57  ;;  %v2793_v38 = vmul.f32 %v2744_v6, %v4414_v41  ;;  %v1911_v47 = vmax.f32 %v1862_v14, 0.0  ;;  %v1521_v14 = vld [vmem:[#allocation2 + $0x490] sm:$0xff] }
 0x384   : > { %v2449_v26 = vmax.f32 %v2204_v13, %v2400_v16  ;;  %v1470_v50 = vmax.f32 %v1225_v12, %v1421_v7  ;;  %v2597_v27 = vadd.f32 %v2548_v21, %v4423_v57  ;;  %v3135_v30 = vmax.f32 %v3086_v51, 0.0  ;;  %v2745_v51 = vld [vmem:[#allocation2 + $0xc30] sm:$0xff] }
 0x385   : > { %v2156_v1 = vmax.f32 %v2107_v63, 0.0  ;;  %v2842_v32 = vadd.f32 %v2793_v38, %v4423_v57  ;;  %v3038_v15 = vmul.f32 %v2989_v42, %v4414_v41  ;;  %v2401_v36 = vmax.f32 %v2352_v23, 0.0  ;;  %v1766_v63 = vld [vmem:[#allocation2 + $0x618] sm:$0xff] }
 0x386   : > { %v2694_v9 = vmax.f32 %v2449_v26, %v2645_v59  ;;  %v1715_v2 = vmax.f32 %v1470_v50, %v1666_v29  ;;  %v1073_v31 = vmul.f32 %v4414_v41, %v1018_v39  ;;  %v2646_v43 = vmax.f32 %v2597_v27, 0.0  ;;  %v2011_v50 = vld [vmem:[#allocation2 + $0x7a0] sm:$0xff] }
 0x387   : > { %v3087_v44 = vadd.f32 %v3038_v15, %v4423_v57  ;;  %v1324_v45 = vmul.f32 %v1275_v18, %v4414_v41  ;;  %v1569_v49 = vmul.f32 %v1520_v56, %v4414_v41  ;;  %v1814_v4 = vmul.f32 %v1765_v35, %v4414_v41 }
 0x388   : > { %v2939_v55 = vmax.f32 %v2694_v9, %v2890_v37  ;;  %v1960_v34 = vmax.f32 %v1715_v2, %v1911_v47  ;;  %v1128_v25 = vadd.f32 %v4423_v57, %v1073_v31  ;;  %v2891_v22 = vmax.f32 %v2842_v32, 0.0  ;;  %v2256_v47 = vld [vmem:[#allocation2 + $0x928] sm:$0xff] }
 0x389   : > { %v1373_v17 = vadd.f32 %v1324_v45, %v4423_v57  ;;  %v1618_v40 = vadd.f32 %v1569_v49, %v4423_v57  ;;  %v2059_v16 = vmul.f32 %v2010_v28, %v4414_v41  ;;  %v1863_v54 = vadd.f32 %v1814_v4, %v4423_v57 }
 0x38a   : > { %v3184_v53 = vmax.f32 %v2939_v55, %v3135_v30  ;;  %v2205_v33 = vmax.f32 %v1960_v34, %v2156_v1  ;;  %v1177_v46 = vmax.f32 %v1128_v25, 0.0  ;;  %v3136_v8 = vmax.f32 %v3087_v44, 0.0  ;;  %v2501_v1 = vld [vmem:[#allocation2 + $0xab0] sm:$0xff] }
 0x38b   : > { %v1422_v60 = vmax.f32 %v1373_v17, 0.0  ;;  %v2108_v59 = vadd.f32 %v2059_v16, %v4423_v57  ;;  %v2304_v37 = vmul.f32 %v2255_v48, %v4414_v41  ;;  %v1667_v5 = vmax.f32 %v1618_v40, 0.0 }
 0x38c   : > { %3233 = vst [vmem:[%s5469_s5 + $0x168] sm:$0xff] %v3184_v53  ;;  %v2450_v61 = vmax.f32 %v2205_v33, %v2401_v36  ;;  %v1226_v3 = vmax.f32 %v1177_v46, 0.0  ;;  %v2549_v0 = vmul.f32 %v2500_v10, %v4414_v41  ;;  %v1912_v24 = vmax.f32 %v1863_v54, 0.0 }
 0x38d   : > { %v2353_v6 = vadd.f32 %v2304_v37, %v4423_v57  ;;  %v2794_v7 = vmul.f32 %v2745_v51, %v4414_v41  ;;  %v3039_v20 = vmul.f32 %v2990_v52, %v4414_v41  ;;  %v1074_v12 = vmul.f32 %v4414_v41, %v1019_v58 }
 0x38e   : > { %v2695_v11 = vmax.f32 %v2450_v61, %v2646_v43  ;;  %v1471_v19 = vmax.f32 %v1226_v3, %v1422_v60  ;;  %v2598_v13 = vadd.f32 %v2549_v0, %v4423_v57  ;;  %v2157_v21 = vmax.f32 %v2108_v59, 0.0  ;;  %v2746_v43 = vld [vmem:[#allocation2 + $0xc38] sm:$0xff] }
 0x38f   : > { %v2402_v42 = vmax.f32 %v2353_v6, 0.0  ;;  %v1325_v29 = vmul.f32 %v1276_v62, %v4414_v41  ;;  %v2843_v39 = vadd.f32 %v2794_v7, %v4423_v57  ;;  %v1129_v26 = vadd.f32 %v4423_v57, %v1074_v12 }
 0x390   : > { %v2940_v23 = vmax.f32 %v2695_v11, %v2891_v22  ;;  %v1716_v38 = vmax.f32 %v1471_v19, %v1667_v5  ;;  %v2647_v27 = vmax.f32 %v2598_v13, 0.0  ;;  %v3088_v18 = vadd.f32 %v3039_v20, %v4423_v57  ;;  %v2991_v22 = vld [vmem:[#allocation2 + $0xdc0] sm:$0xff] }
 0x391   : > { %v1374_v56 = vadd.f32 %v1325_v29, %v4423_v57  ;;  %v1570_v30 = vmul.f32 %v1521_v14, %v4414_v41  ;;  %v1178_v35 = vmax.f32 %v1129_v26, 0.0  ;;  %v1815_v9 = vmul.f32 %v1766_v63, %v4414_v41 }
 0x392   : > { %v3185_v32 = vmax.f32 %v2940_v23, %v3136_v8  ;;  %v1961_v15 = vmax.f32 %v1716_v38, %v1912_v24  ;;  %v2060_v31 = vmul.f32 %v2011_v50, %v4414_v41  ;;  %v2305_v28 = vmul.f32 %v2256_v47, %v4414_v41 }
 0x393   : > { %v1423_v2 = vmax.f32 %v1374_v56, 0.0  ;;  %v1619_v36 = vadd.f32 %v1570_v30, %v4423_v57  ;;  %v1227_v45 = vmax.f32 %v1178_v35, 0.0  ;;  %v1864_v49 = vadd.f32 %v1815_v9, %v4423_v57 }
 0x394   : > { %3234 = vst [vmem:[%s5469_s5 + $0x170] sm:$0xff] %v3185_v32  ;;  %v2206_v44 = vmax.f32 %v1961_v15, %v2157_v21  ;;  %v2550_v55 = vmul.f32 %v2501_v1, %v4414_v41  ;;  %v2892_v34 = vmax.f32 %v2843_v39, 0.0  ;;  %v2109_v4 = vadd.f32 %v2060_v31, %v4423_v57 }
 0x395   : > { %v1668_v25 = vmax.f32 %v1619_v36, 0.0  ;;  %v2354_v48 = vadd.f32 %v2305_v28, %v4423_v57  ;;  %v1472_v40 = vmax.f32 %v1227_v45, %v1423_v2  ;;  %v1913_v16 = vmax.f32 %v1864_v49, 0.0 }
 0x396   : > { %v2451_v17 = vmax.f32 %v2206_v44, %v2402_v42  ;;  %v2795_v10 = vmul.f32 %v2746_v43, %v4414_v41  ;;  %v3137_v53 = vmax.f32 %v3088_v18, 0.0  ;;  %v2599_v33 = vadd.f32 %v2550_v55, %v4423_v57 }
 0x397   : > { %v1717_v54 = vmax.f32 %v1472_v40, %v1668_v25  ;;  %v2158_v51 = vmax.f32 %v2109_v4, 0.0  ;;  %v3040_v52 = vmul.f32 %v2991_v22, %v4414_v41  ;;  %v2403_v59 = vmax.f32 %v2354_v48, 0.0 }
 0x398   : > { %v2696_v46 = vmax.f32 %v2451_v17, %v2647_v27  ;;  %v2844_v37 = vadd.f32 %v2795_v10, %v4423_v57  ;;  %v2648_v3 = vmax.f32 %v2599_v33, 0.0 }
 0x399   : > { %v1962_v60 = vmax.f32 %v1717_v54, %v1913_v16  ;;  %v3089_v5 = vadd.f32 %v3040_v52, %v4423_v57 }
 0x39a   : > { %v2941_v8 = vmax.f32 %v2696_v46, %v2892_v34  ;;  %v2893_v62 = vmax.f32 %v2844_v37, 0.0 }
 0x39b   : > { %v2207_v61 = vmax.f32 %v1962_v60, %v2158_v51  ;;  %v3138_v6 = vmax.f32 %v3089_v5, 0.0 }
 0x39c   : > { %v3186_v58 = vmax.f32 %v2941_v8, %v3137_v53 }
 0x39d   : > { %v2452_v0 = vmax.f32 %v2207_v61, %v2403_v59 }
 0x39e   : > { %3235 = vst [vmem:[%s5469_s5 + $0x178] sm:$0xff] %v3186_v58 }
 0x39f   : > { %v2697_v24 = vmax.f32 %v2452_v0, %v2648_v3 }
 0x3a1   : > { %v2942_v7 = vmax.f32 %v2697_v24, %v2893_v62 }
 0x3a3   : > { %v3187_v41 = vmax.f32 %v2942_v7, %v3138_v6 }
 0x3a5   : > { %3236 = vst [vmem:[%s5469_s5 + $0x180] sm:$0xff] %v3187_v41 }
 0x3a6 PF: > { %s15_s18 = sadd.s32 1, %s3628_s18  }
 0x3a7   : > { %p12_p6 = scmp.ge.s32.totalorder %s15_s18, 9  }
 0x3a9   :  { %14 = sbr.rel (!%p12_p6) target bundleno = 1 (0x1), region = 75 }

// kernel: discriminator3_forward.5
= control target key start
LH: loop header
LB: loop body
LE: loop exit
PB: predicated region body
PF: predicated region fallthrough
CT: control target
= control target key end

     0   :  { %vm1478_vm1 = vcmask 1041408   ;;  %vm1500_vm2 = vcmask 1024   ;;  %s3245_s1 = inlined_call_operand.vmem [shape: f32[1024,512], index: 1, kind: input, shape index: {}]   ;;  %s3246_s0 = inlined_call_operand.vmem [shape: f32[8,1024], index: 0, kind: input, shape index: {}]   ;;  %s3247_s2 = inlined_call_operand.vmem [shape: f32[1,512], index: 2, kind: input, shape index: {}]   ;;  %s3248_s6 = inlined_call_operand.<no memory space> [shape: f32[1,1], index: 6, kind: input, shape index: {}]   ;;  %s3249_s3 = inlined_call_operand.vmem [shape: f32[1,512], index: 3, kind: input, shape index: {}]   ;;  %s3250_s4 = inlined_call_operand.vmem [shape: f32[1,512], index: 4, kind: input, shape index: {}]   ;;  %s3251_s5 = inlined_call_operand.vmem [shape: f32[1,512], index: 5, kind: input, shape index: {}]   ;;  %s3252_s7 = inlined_call_operand.vmem [shape: f32[2,1], index: 7, kind: output, shape index: {}]  }
   0x1   :  { %v107_v0 = vld [vmem:[%s3245_s1 + $0x1e8] sm:$0xff]  ;;  %v106_v2 = vld [vmem:[%s3245_s1 + $0x1e0] sm:$0xff] }
   0x2   :  { %v235_v1 = vld [vmem:[%s3245_s1 + $0x5e8] sm:$0xff]  ;;  %580 = vmatprep.subr.mxu0 %v107_v0  ;;  %v234_v3 = vld [vmem:[%s3245_s1 + $0x5e0] sm:$0xff] }
   0x3   :  { %651 = vmatprep.subr.mxu1 %v235_v1  ;;  %v103_v4 = vld [vmem:[%s3245_s1 + $0x1c8] sm:$0xff]  ;;  %581 = vmatpush1.msra.mxu0 %v106_v2  ;;  %v102_v6 = vld [vmem:[%s3245_s1 + $0x1c0] sm:$0xff] }
   0x4   :  { %v231_v5 = vld [vmem:[%s3245_s1 + $0x5c8] sm:$0xff]  ;;  %652 = vmatpush1.msra.mxu1 %v234_v3  ;;  %v230_v7 = vld [vmem:[%s3245_s1 + $0x5c0] sm:$0xff]  ;;  %582 = vmatprep.subr.mxu0 %v103_v4 }
   0x5   :  { %v99_v8 = vld [vmem:[%s3245_s1 + $0x1a8] sm:$0xff]  ;;  %653 = vmatprep.subr.mxu1 %v231_v5  ;;  %v98_v10 = vld [vmem:[%s3245_s1 + $0x1a0] sm:$0xff]  ;;  %583 = vmatpush1.msra.mxu0 %v102_v6 }
   0x6   :  { %v227_v9 = vld [vmem:[%s3245_s1 + $0x5a8] sm:$0xff]  ;;  %v226_v11 = vld [vmem:[%s3245_s1 + $0x5a0] sm:$0xff]  ;;  %654 = vmatpush1.msra.mxu1 %v230_v7  ;;  %584 = vmatprep.subr.mxu0 %v99_v8 }
   0x7   :  { %v95_v12 = vld [vmem:[%s3245_s1 + $0x188] sm:$0xff]  ;;  %655 = vmatprep.subr.mxu1 %v227_v9  ;;  %v94_v14 = vld [vmem:[%s3245_s1 + $0x180] sm:$0xff]  ;;  %585 = vmatpush1.msra.mxu0 %v98_v10 }
   0x8   :  { %v223_v13 = vld [vmem:[%s3245_s1 + $0x588] sm:$0xff]  ;;  %v222_v15 = vld [vmem:[%s3245_s1 + $0x580] sm:$0xff]  ;;  %656 = vmatpush1.msra.mxu1 %v226_v11  ;;  %586 = vmatprep.subr.mxu0 %v95_v12 }
   0x9   :  { %v91_v16 = vld [vmem:[%s3245_s1 + $0x168] sm:$0xff]  ;;  %657 = vmatprep.subr.mxu1 %v223_v13  ;;  %v90_v18 = vld [vmem:[%s3245_s1 + $0x160] sm:$0xff]  ;;  %587 = vmatpush1.msra.mxu0 %v94_v14 }
   0xa   :  { %v219_v17 = vld [vmem:[%s3245_s1 + $0x568] sm:$0xff]  ;;  %v218_v19 = vld [vmem:[%s3245_s1 + $0x560] sm:$0xff]  ;;  %658 = vmatpush1.msra.mxu1 %v222_v15  ;;  %588 = vmatprep.subr.mxu0 %v91_v16 }
   0xb   :  { %v87_v20 = vld [vmem:[%s3245_s1 + $0x148] sm:$0xff]  ;;  %659 = vmatprep.subr.mxu1 %v219_v17  ;;  %v86_v22 = vld [vmem:[%s3245_s1 + $0x140] sm:$0xff]  ;;  %589 = vmatpush1.msra.mxu0 %v90_v18 }
   0xc   :  { %v215_v21 = vld [vmem:[%s3245_s1 + $0x548] sm:$0xff]  ;;  %v214_v23 = vld [vmem:[%s3245_s1 + $0x540] sm:$0xff]  ;;  %660 = vmatpush1.msra.mxu1 %v218_v19  ;;  %590 = vmatprep.subr.mxu0 %v87_v20 }
   0xd   :  { %v83_v24 = vld [vmem:[%s3245_s1 + $0x128] sm:$0xff]  ;;  %661 = vmatprep.subr.mxu1 %v215_v21  ;;  %v82_v26 = vld [vmem:[%s3245_s1 + $0x120] sm:$0xff]  ;;  %591 = vmatpush1.msra.mxu0 %v86_v22 }
   0xe   :  { %v211_v25 = vld [vmem:[%s3245_s1 + $0x528] sm:$0xff]  ;;  %v210_v27 = vld [vmem:[%s3245_s1 + $0x520] sm:$0xff]  ;;  %662 = vmatpush1.msra.mxu1 %v214_v23  ;;  %592 = vmatprep.subr.mxu0 %v83_v24 }
   0xf   :  { %v79_v28 = vld [vmem:[%s3245_s1 + $0x108] sm:$0xff]  ;;  %663 = vmatprep.subr.mxu1 %v211_v25  ;;  %v78_v30 = vld [vmem:[%s3245_s1 + $0x100] sm:$0xff]  ;;  %593 = vmatpush1.msra.mxu0 %v82_v26 }
  0x10   :  { %v207_v29 = vld [vmem:[%s3245_s1 + $0x508] sm:$0xff]  ;;  %v206_v31 = vld [vmem:[%s3245_s1 + $0x500] sm:$0xff]  ;;  %664 = vmatpush1.msra.mxu1 %v210_v27  ;;  %594 = vmatprep.subr.mxu0 %v79_v28 }
  0x11   :  { %v75_v32 = vld [vmem:[%s3245_s1 + $0xe8] sm:$0xff]  ;;  %665 = vmatprep.subr.mxu1 %v207_v29  ;;  %v74_v34 = vld [vmem:[%s3245_s1 + $0xe0] sm:$0xff]  ;;  %595 = vmatpush1.msra.mxu0 %v78_v30 }
  0x12   :  { %v203_v33 = vld [vmem:[%s3245_s1 + $0x4e8] sm:$0xff]  ;;  %v202_v35 = vld [vmem:[%s3245_s1 + $0x4e0] sm:$0xff]  ;;  %666 = vmatpush1.msra.mxu1 %v206_v31  ;;  %596 = vmatprep.subr.mxu0 %v75_v32 }
  0x13   :  { %v71_v36 = vld [vmem:[%s3245_s1 + $0xc8] sm:$0xff]  ;;  %667 = vmatprep.subr.mxu1 %v203_v33  ;;  %v70_v38 = vld [vmem:[%s3245_s1 + $0xc0] sm:$0xff]  ;;  %597 = vmatpush1.msra.mxu0 %v74_v34 }
  0x14   :  { %v199_v37 = vld [vmem:[%s3245_s1 + $0x4c8] sm:$0xff]  ;;  %v198_v39 = vld [vmem:[%s3245_s1 + $0x4c0] sm:$0xff]  ;;  %668 = vmatpush1.msra.mxu1 %v202_v35  ;;  %598 = vmatprep.subr.mxu0 %v71_v36 }
  0x15   :  { %v67_v40 = vld [vmem:[%s3245_s1 + $0xa8] sm:$0xff]  ;;  %669 = vmatprep.subr.mxu1 %v199_v37  ;;  %v66_v42 = vld [vmem:[%s3245_s1 + $0xa0] sm:$0xff]  ;;  %599 = vmatpush1.msra.mxu0 %v70_v38 }
  0x16   :  { %v195_v41 = vld [vmem:[%s3245_s1 + $0x4a8] sm:$0xff]  ;;  %v194_v43 = vld [vmem:[%s3245_s1 + $0x4a0] sm:$0xff]  ;;  %670 = vmatpush1.msra.mxu1 %v198_v39  ;;  %600 = vmatprep.subr.mxu0 %v67_v40 }
  0x17   :  { %v63_v44 = vld [vmem:[%s3245_s1 + $0x88] sm:$0xff]  ;;  %671 = vmatprep.subr.mxu1 %v195_v41  ;;  %v62_v46 = vld [vmem:[%s3245_s1 + $0x80] sm:$0xff]  ;;  %601 = vmatpush1.msra.mxu0 %v66_v42 }
  0x18   :  { %v191_v45 = vld [vmem:[%s3245_s1 + $0x488] sm:$0xff]  ;;  %v190_v47 = vld [vmem:[%s3245_s1 + $0x480] sm:$0xff]  ;;  %672 = vmatpush1.msra.mxu1 %v194_v43  ;;  %602 = vmatprep.subr.mxu0 %v63_v44 }
  0x19   :  { %v59_v48 = vld [vmem:[%s3245_s1 + $0x68] sm:$0xff]  ;;  %673 = vmatprep.subr.mxu1 %v191_v45  ;;  %v58_v50 = vld [vmem:[%s3245_s1 + $0x60] sm:$0xff]  ;;  %603 = vmatpush1.msra.mxu0 %v62_v46 }
  0x1a   :  { %v187_v49 = vld [vmem:[%s3245_s1 + $0x468] sm:$0xff]  ;;  %v186_v51 = vld [vmem:[%s3245_s1 + $0x460] sm:$0xff]  ;;  %674 = vmatpush1.msra.mxu1 %v190_v47  ;;  %604 = vmatprep.subr.mxu0 %v59_v48 }
  0x1b   :  { %v55_v52 = vld [vmem:[%s3245_s1 + $0x48] sm:$0xff]  ;;  %675 = vmatprep.subr.mxu1 %v187_v49  ;;  %v54_v54 = vld [vmem:[%s3245_s1 + $0x40] sm:$0xff]  ;;  %605 = vmatpush1.msra.mxu0 %v58_v50 }
  0x1c   :  { %v183_v53 = vld [vmem:[%s3245_s1 + $0x448] sm:$0xff]  ;;  %v182_v55 = vld [vmem:[%s3245_s1 + $0x440] sm:$0xff]  ;;  %676 = vmatpush1.msra.mxu1 %v186_v51  ;;  %606 = vmatprep.subr.mxu0 %v55_v52 }
  0x1d   :  { %v51_v56 = vld [vmem:[%s3245_s1 + $0x28] sm:$0xff]  ;;  %677 = vmatprep.subr.mxu1 %v183_v53  ;;  %v50_v58 = vld [vmem:[%s3245_s1 + $0x20] sm:$0xff]  ;;  %607 = vmatpush1.msra.mxu0 %v54_v54 }
  0x1e   :  { %v179_v57 = vld [vmem:[%s3245_s1 + $0x428] sm:$0xff]  ;;  %v178_v59 = vld [vmem:[%s3245_s1 + $0x420] sm:$0xff]  ;;  %678 = vmatpush1.msra.mxu1 %v182_v55  ;;  %608 = vmatprep.subr.mxu0 %v51_v56 }
  0x1f   :  { %v47_v60 = vld [vmem:[%s3245_s1 + $0x8] sm:$0xff]  ;;  %679 = vmatprep.subr.mxu1 %v179_v57  ;;  %v46_v62 = vld [vmem:[%s3245_s1] sm:$0xff]  ;;  %609 = vmatpush1.msra.mxu0 %v50_v58 }
  0x20   :  { %v175_v61 = vld [vmem:[%s3245_s1 + $0x408] sm:$0xff]  ;;  %v174_v63 = vld [vmem:[%s3245_s1 + $0x400] sm:$0xff]  ;;  %680 = vmatpush1.msra.mxu1 %v178_v59  ;;  %610 = vmatprep.subr.mxu0 %v47_v60 }
  0x21   :  { %v171_v0 = vld [vmem:[%s3245_s1 + $0x3e8] sm:$0xff]  ;;  %681 = vmatprep.subr.mxu1 %v175_v61  ;;  %v170_v2 = vld [vmem:[%s3245_s1 + $0x3e0] sm:$0xff]  ;;  %611 = vmatpush1.msra.mxu0 %v46_v62 }
  0x22   :  { %v299_v1 = vld [vmem:[%s3245_s1 + $0x7e8] sm:$0xff]  ;;  %v298_v3 = vld [vmem:[%s3245_s1 + $0x7e0] sm:$0xff]  ;;  %682 = vmatpush1.msra.mxu1 %v174_v63  ;;  %612 = vmatprep.subr.mxu0 %v171_v0 }
  0x23   :  { %v167_v4 = vld [vmem:[%s3245_s1 + $0x3c8] sm:$0xff]  ;;  %683 = vmatprep.subr.mxu1 %v299_v1  ;;  %v166_v6 = vld [vmem:[%s3245_s1 + $0x3c0] sm:$0xff]  ;;  %613 = vmatpush2.msra.mxu0 %v170_v2  ;;  %v41_v2 = vld [vmem:[%s3246_s0 + $0x18] sm:$0xff] }
  0x24   :  { %v295_v5 = vld [vmem:[%s3245_s1 + $0x7c8] sm:$0xff]  ;;  %v294_v7 = vld [vmem:[%s3245_s1 + $0x7c0] sm:$0xff]  ;;  %684 = vmatpush2.msra.mxu1 %v298_v3  ;;  %614 = vmatprep.subr.mxu0 %v167_v4 }
  0x25   :  { %v163_v8 = vld [vmem:[%s3245_s1 + $0x3a8] sm:$0xff]  ;;  %685 = vmatprep.subr.mxu1 %v295_v5  ;;  %v162_v10 = vld [vmem:[%s3245_s1 + $0x3a0] sm:$0xff]  ;;  %615 = vmatpush2.msra.mxu0 %v166_v6  ;;  %v40_v5 = vld [vmem:[%s3246_s0 + $0x10] sm:$0xff] }
  0x26   :  { %v291_v9 = vld [vmem:[%s3245_s1 + $0x7a8] sm:$0xff]  ;;  %v290_v11 = vld [vmem:[%s3245_s1 + $0x7a0] sm:$0xff]  ;;  %686 = vmatpush2.msra.mxu1 %v294_v7  ;;  %616 = vmatprep.subr.mxu0 %v163_v8 }
  0x27   :  { %v159_v12 = vld [vmem:[%s3245_s1 + $0x388] sm:$0xff]  ;;  %687 = vmatprep.subr.mxu1 %v291_v9  ;;  %v158_v14 = vld [vmem:[%s3245_s1 + $0x380] sm:$0xff]  ;;  %617 = vmatpush2.msra.mxu0 %v162_v10 }
  0x28   :  { %v287_v13 = vld [vmem:[%s3245_s1 + $0x788] sm:$0xff]  ;;  %v286_v15 = vld [vmem:[%s3245_s1 + $0x780] sm:$0xff]  ;;  %688 = vmatpush2.msra.mxu1 %v290_v11  ;;  %618 = vmatprep.subr.mxu0 %v159_v12 }
  0x29   :  { %v155_v16 = vld [vmem:[%s3245_s1 + $0x368] sm:$0xff]  ;;  %689 = vmatprep.subr.mxu1 %v287_v13  ;;  %v154_v18 = vld [vmem:[%s3245_s1 + $0x360] sm:$0xff]  ;;  %619 = vmatpush2.msra.mxu0 %v158_v14 }
  0x2a   :  { %v283_v17 = vld [vmem:[%s3245_s1 + $0x768] sm:$0xff]  ;;  %v282_v19 = vld [vmem:[%s3245_s1 + $0x760] sm:$0xff]  ;;  %690 = vmatpush2.msra.mxu1 %v286_v15  ;;  %620 = vmatprep.subr.mxu0 %v155_v16 }
  0x2b   :  { %v151_v20 = vld [vmem:[%s3245_s1 + $0x348] sm:$0xff]  ;;  %691 = vmatprep.subr.mxu1 %v283_v17  ;;  %v150_v22 = vld [vmem:[%s3245_s1 + $0x340] sm:$0xff]  ;;  %621 = vmatpush2.msra.mxu0 %v154_v18 }
  0x2c   :  { %v279_v21 = vld [vmem:[%s3245_s1 + $0x748] sm:$0xff]  ;;  %v278_v23 = vld [vmem:[%s3245_s1 + $0x740] sm:$0xff]  ;;  %692 = vmatpush2.msra.mxu1 %v282_v19  ;;  %622 = vmatprep.subr.mxu0 %v151_v20 }
  0x2d   :  { %v147_v24 = vld [vmem:[%s3245_s1 + $0x328] sm:$0xff]  ;;  %693 = vmatprep.subr.mxu1 %v279_v21  ;;  %v146_v26 = vld [vmem:[%s3245_s1 + $0x320] sm:$0xff]  ;;  %623 = vmatpush2.msra.mxu0 %v150_v22 }
  0x2e   :  { %v275_v25 = vld [vmem:[%s3245_s1 + $0x728] sm:$0xff]  ;;  %v274_v27 = vld [vmem:[%s3245_s1 + $0x720] sm:$0xff]  ;;  %694 = vmatpush2.msra.mxu1 %v278_v23  ;;  %624 = vmatprep.subr.mxu0 %v147_v24 }
  0x2f   :  { %v143_v28 = vld [vmem:[%s3245_s1 + $0x308] sm:$0xff]  ;;  %695 = vmatprep.subr.mxu1 %v275_v25  ;;  %v142_v30 = vld [vmem:[%s3245_s1 + $0x300] sm:$0xff]  ;;  %625 = vmatpush2.msra.mxu0 %v146_v26 }
  0x30   :  { %v271_v29 = vld [vmem:[%s3245_s1 + $0x708] sm:$0xff]  ;;  %v270_v31 = vld [vmem:[%s3245_s1 + $0x700] sm:$0xff]  ;;  %696 = vmatpush2.msra.mxu1 %v274_v27  ;;  %626 = vmatprep.subr.mxu0 %v143_v28 }
  0x31   :  { %v139_v32 = vld [vmem:[%s3245_s1 + $0x2e8] sm:$0xff]  ;;  %697 = vmatprep.subr.mxu1 %v271_v29  ;;  %v138_v34 = vld [vmem:[%s3245_s1 + $0x2e0] sm:$0xff]  ;;  %627 = vmatpush2.msra.mxu0 %v142_v30 }
  0x32   :  { %v267_v33 = vld [vmem:[%s3245_s1 + $0x6e8] sm:$0xff]  ;;  %v266_v35 = vld [vmem:[%s3245_s1 + $0x6e0] sm:$0xff]  ;;  %698 = vmatpush2.msra.mxu1 %v270_v31  ;;  %628 = vmatprep.subr.mxu0 %v139_v32 }
  0x33   :  { %v135_v36 = vld [vmem:[%s3245_s1 + $0x2c8] sm:$0xff]  ;;  %699 = vmatprep.subr.mxu1 %v267_v33  ;;  %v134_v38 = vld [vmem:[%s3245_s1 + $0x2c0] sm:$0xff]  ;;  %629 = vmatpush2.msra.mxu0 %v138_v34 }
  0x34   :  { %v263_v37 = vld [vmem:[%s3245_s1 + $0x6c8] sm:$0xff]  ;;  %v262_v39 = vld [vmem:[%s3245_s1 + $0x6c0] sm:$0xff]  ;;  %700 = vmatpush2.msra.mxu1 %v266_v35  ;;  %630 = vmatprep.subr.mxu0 %v135_v36 }
  0x35   :  { %v131_v40 = vld [vmem:[%s3245_s1 + $0x2a8] sm:$0xff]  ;;  %701 = vmatprep.subr.mxu1 %v263_v37  ;;  %v130_v42 = vld [vmem:[%s3245_s1 + $0x2a0] sm:$0xff]  ;;  %631 = vmatpush2.msra.mxu0 %v134_v38 }
  0x36   :  { %v259_v41 = vld [vmem:[%s3245_s1 + $0x6a8] sm:$0xff]  ;;  %v258_v43 = vld [vmem:[%s3245_s1 + $0x6a0] sm:$0xff]  ;;  %702 = vmatpush2.msra.mxu1 %v262_v39  ;;  %632 = vmatprep.subr.mxu0 %v131_v40 }
  0x37   :  { %v127_v44 = vld [vmem:[%s3245_s1 + $0x288] sm:$0xff]  ;;  %703 = vmatprep.subr.mxu1 %v259_v41  ;;  %v126_v46 = vld [vmem:[%s3245_s1 + $0x280] sm:$0xff]  ;;  %633 = vmatpush2.msra.mxu0 %v130_v42 }
  0x38   :  { %v255_v45 = vld [vmem:[%s3245_s1 + $0x688] sm:$0xff]  ;;  %v254_v47 = vld [vmem:[%s3245_s1 + $0x680] sm:$0xff]  ;;  %704 = vmatpush2.msra.mxu1 %v258_v43  ;;  %634 = vmatprep.subr.mxu0 %v127_v44 }
  0x39   :  { %v123_v48 = vld [vmem:[%s3245_s1 + $0x268] sm:$0xff]  ;;  %705 = vmatprep.subr.mxu1 %v255_v45  ;;  %v122_v50 = vld [vmem:[%s3245_s1 + $0x260] sm:$0xff]  ;;  %635 = vmatpush2.msra.mxu0 %v126_v46 }
  0x3a   :  { %v251_v49 = vld [vmem:[%s3245_s1 + $0x668] sm:$0xff]  ;;  %v250_v51 = vld [vmem:[%s3245_s1 + $0x660] sm:$0xff]  ;;  %706 = vmatpush2.msra.mxu1 %v254_v47  ;;  %636 = vmatprep.subr.mxu0 %v123_v48 }
  0x3b   :  { %v119_v52 = vld [vmem:[%s3245_s1 + $0x248] sm:$0xff]  ;;  %707 = vmatprep.subr.mxu1 %v251_v49  ;;  %v118_v54 = vld [vmem:[%s3245_s1 + $0x240] sm:$0xff]  ;;  %637 = vmatpush2.msra.mxu0 %v122_v50 }
  0x3c   :  { %v247_v53 = vld [vmem:[%s3245_s1 + $0x648] sm:$0xff]  ;;  %v246_v55 = vld [vmem:[%s3245_s1 + $0x640] sm:$0xff]  ;;  %708 = vmatpush2.msra.mxu1 %v250_v51  ;;  %638 = vmatprep.subr.mxu0 %v119_v52 }
  0x3d   :  { %v115_v56 = vld [vmem:[%s3245_s1 + $0x228] sm:$0xff]  ;;  %709 = vmatprep.subr.mxu1 %v247_v53  ;;  %v114_v58 = vld [vmem:[%s3245_s1 + $0x220] sm:$0xff]  ;;  %639 = vmatpush2.msra.mxu0 %v118_v54 }
  0x3e   :  { %v243_v57 = vld [vmem:[%s3245_s1 + $0x628] sm:$0xff]  ;;  %v242_v59 = vld [vmem:[%s3245_s1 + $0x620] sm:$0xff]  ;;  %710 = vmatpush2.msra.mxu1 %v246_v55  ;;  %640 = vmatprep.subr.mxu0 %v115_v56 }
  0x3f   :  { %v111_v60 = vld [vmem:[%s3245_s1 + $0x208] sm:$0xff]  ;;  %711 = vmatprep.subr.mxu1 %v243_v57  ;;  %v110_v62 = vld [vmem:[%s3245_s1 + $0x200] sm:$0xff]  ;;  %641 = vmatpush2.msra.mxu0 %v114_v58 }
  0x40   :  { %v239_v61 = vld [vmem:[%s3245_s1 + $0x608] sm:$0xff]  ;;  %712 = vmatpush2.msra.mxu1 %v242_v59  ;;  %v238_v0 = vld [vmem:[%s3245_s1 + $0x600] sm:$0xff]  ;;  %642 = vmatprep.subr.mxu0 %v111_v60 }
  0x41   :  { %v39_v63 = vld [vmem:[%s3246_s0 + $0x8] sm:$0xff]  ;;  %v38_v1 = vld [vmem:[%s3246_s0] sm:$0xff]  ;;  %713 = vmatprep.subr.mxu1 %v239_v61  ;;  %643 = vmatpush2.msra.mxu0 %v110_v62 }
  0x42   :  { %v363_v3 = vld [vmem:[%s3245_s1 + $0x9e8] sm:$0xff]  ;;  %644 = vmatprep.mubr.f32.mxu0 %v39_v63  ;;  %714 = vmatpush2.msra.mxu1 %v238_v0  ;;  %v362_v6 = vld [vmem:[%s3245_s1 + $0x9e0] sm:$0xff] }
  0x43   :  { %v491_v4 = vld [vmem:[%s3245_s1 + $0xde8] sm:$0xff]  ;;  %645 = vmatmul.mubr.f32.vlgmr.msra.gmra.mxu0 %v38_v1  ;;  %v490_v7 = vld [vmem:[%s3245_s1 + $0xde0] sm:$0xff]  ;;  %715 = vmatprep.mubr.f32.mxu1 %v41_v2 }
  0x44   :  { %722 = vmatprep.subr.mxu0 %v363_v3  ;;  %v359_v8 = vld [vmem:[%s3245_s1 + $0x9c8] sm:$0xff]  ;;  %793 = vmatprep.subr.mxu1 %v491_v4  ;;  %v358_v10 = vld [vmem:[%s3245_s1 + $0x9c0] sm:$0xff] }
  0x45   :  { %v487_v9 = vld [vmem:[%s3245_s1 + $0xdc8] sm:$0xff]  ;;  %716 = vmatmul.mubr.f32.vlgmr.msra.gmra.mxu1 %v40_v5  ;;  %v486_v11 = vld [vmem:[%s3245_s1 + $0xdc0] sm:$0xff]  ;;  %723 = vmatpush1.msra.mxu0 %v362_v6 }
  0x46   :  { %794 = vmatpush1.msra.mxu1 %v490_v7  ;;  %v355_v12 = vld [vmem:[%s3245_s1 + $0x9a8] sm:$0xff]  ;;  %724 = vmatprep.subr.mxu0 %v359_v8  ;;  %v354_v14 = vld [vmem:[%s3245_s1 + $0x9a0] sm:$0xff] }
  0x47   :  { %v483_v13 = vld [vmem:[%s3245_s1 + $0xda8] sm:$0xff]  ;;  %795 = vmatprep.subr.mxu1 %v487_v9  ;;  %v482_v15 = vld [vmem:[%s3245_s1 + $0xda0] sm:$0xff]  ;;  %725 = vmatpush1.msra.mxu0 %v358_v10 }
  0x48   :  { %796 = vmatpush1.msra.mxu1 %v486_v11  ;;  %v351_v16 = vld [vmem:[%s3245_s1 + $0x988] sm:$0xff]  ;;  %726 = vmatprep.subr.mxu0 %v355_v12  ;;  %v350_v18 = vld [vmem:[%s3245_s1 + $0x980] sm:$0xff] }
  0x49   :  { %v479_v17 = vld [vmem:[%s3245_s1 + $0xd88] sm:$0xff]  ;;  %797 = vmatprep.subr.mxu1 %v483_v13  ;;  %v478_v19 = vld [vmem:[%s3245_s1 + $0xd80] sm:$0xff]  ;;  %727 = vmatpush1.msra.mxu0 %v354_v14 }
  0x4a   :  { %798 = vmatpush1.msra.mxu1 %v482_v15  ;;  %v347_v20 = vld [vmem:[%s3245_s1 + $0x968] sm:$0xff]  ;;  %728 = vmatprep.subr.mxu0 %v351_v16  ;;  %v346_v22 = vld [vmem:[%s3245_s1 + $0x960] sm:$0xff] }
  0x4b   :  { %v475_v21 = vld [vmem:[%s3245_s1 + $0xd68] sm:$0xff]  ;;  %799 = vmatprep.subr.mxu1 %v479_v17  ;;  %v474_v23 = vld [vmem:[%s3245_s1 + $0xd60] sm:$0xff]  ;;  %729 = vmatpush1.msra.mxu0 %v350_v18 }
  0x4c   :  { %800 = vmatpush1.msra.mxu1 %v478_v19  ;;  %v343_v24 = vld [vmem:[%s3245_s1 + $0x948] sm:$0xff]  ;;  %730 = vmatprep.subr.mxu0 %v347_v20  ;;  %v342_v26 = vld [vmem:[%s3245_s1 + $0x940] sm:$0xff] }
  0x4d   :  { %v471_v25 = vld [vmem:[%s3245_s1 + $0xd48] sm:$0xff]  ;;  %801 = vmatprep.subr.mxu1 %v475_v21  ;;  %v470_v27 = vld [vmem:[%s3245_s1 + $0xd40] sm:$0xff]  ;;  %731 = vmatpush1.msra.mxu0 %v346_v22 }
  0x4e   :  { %802 = vmatpush1.msra.mxu1 %v474_v23  ;;  %v339_v28 = vld [vmem:[%s3245_s1 + $0x928] sm:$0xff]  ;;  %732 = vmatprep.subr.mxu0 %v343_v24  ;;  %v338_v30 = vld [vmem:[%s3245_s1 + $0x920] sm:$0xff] }
  0x4f   :  { %v467_v29 = vld [vmem:[%s3245_s1 + $0xd28] sm:$0xff]  ;;  %803 = vmatprep.subr.mxu1 %v471_v25  ;;  %v466_v31 = vld [vmem:[%s3245_s1 + $0xd20] sm:$0xff]  ;;  %733 = vmatpush1.msra.mxu0 %v342_v26 }
  0x50   :  { %804 = vmatpush1.msra.mxu1 %v470_v27  ;;  %v335_v32 = vld [vmem:[%s3245_s1 + $0x908] sm:$0xff]  ;;  %734 = vmatprep.subr.mxu0 %v339_v28  ;;  %v334_v34 = vld [vmem:[%s3245_s1 + $0x900] sm:$0xff] }
  0x51   :  { %v463_v33 = vld [vmem:[%s3245_s1 + $0xd08] sm:$0xff]  ;;  %805 = vmatprep.subr.mxu1 %v467_v29  ;;  %v462_v35 = vld [vmem:[%s3245_s1 + $0xd00] sm:$0xff]  ;;  %735 = vmatpush1.msra.mxu0 %v338_v30 }
  0x52   :  { %806 = vmatpush1.msra.mxu1 %v466_v31  ;;  %v331_v36 = vld [vmem:[%s3245_s1 + $0x8e8] sm:$0xff]  ;;  %736 = vmatprep.subr.mxu0 %v335_v32  ;;  %v330_v38 = vld [vmem:[%s3245_s1 + $0x8e0] sm:$0xff] }
  0x53   :  { %v459_v37 = vld [vmem:[%s3245_s1 + $0xce8] sm:$0xff]  ;;  %807 = vmatprep.subr.mxu1 %v463_v33  ;;  %v458_v39 = vld [vmem:[%s3245_s1 + $0xce0] sm:$0xff]  ;;  %737 = vmatpush1.msra.mxu0 %v334_v34 }
  0x54   :  { %808 = vmatpush1.msra.mxu1 %v462_v35  ;;  %v327_v40 = vld [vmem:[%s3245_s1 + $0x8c8] sm:$0xff]  ;;  %738 = vmatprep.subr.mxu0 %v331_v36  ;;  %v326_v42 = vld [vmem:[%s3245_s1 + $0x8c0] sm:$0xff] }
  0x55   :  { %v455_v41 = vld [vmem:[%s3245_s1 + $0xcc8] sm:$0xff]  ;;  %809 = vmatprep.subr.mxu1 %v459_v37  ;;  %v454_v43 = vld [vmem:[%s3245_s1 + $0xcc0] sm:$0xff]  ;;  %739 = vmatpush1.msra.mxu0 %v330_v38 }
  0x56   :  { %810 = vmatpush1.msra.mxu1 %v458_v39  ;;  %v323_v44 = vld [vmem:[%s3245_s1 + $0x8a8] sm:$0xff]  ;;  %740 = vmatprep.subr.mxu0 %v327_v40  ;;  %v322_v46 = vld [vmem:[%s3245_s1 + $0x8a0] sm:$0xff] }
  0x57   :  { %v451_v45 = vld [vmem:[%s3245_s1 + $0xca8] sm:$0xff]  ;;  %811 = vmatprep.subr.mxu1 %v455_v41  ;;  %v450_v47 = vld [vmem:[%s3245_s1 + $0xca0] sm:$0xff]  ;;  %741 = vmatpush1.msra.mxu0 %v326_v42 }
  0x58   :  { %812 = vmatpush1.msra.mxu1 %v454_v43  ;;  %v319_v48 = vld [vmem:[%s3245_s1 + $0x888] sm:$0xff]  ;;  %742 = vmatprep.subr.mxu0 %v323_v44  ;;  %v318_v50 = vld [vmem:[%s3245_s1 + $0x880] sm:$0xff] }
  0x59   :  { %v447_v49 = vld [vmem:[%s3245_s1 + $0xc88] sm:$0xff]  ;;  %813 = vmatprep.subr.mxu1 %v451_v45  ;;  %v446_v51 = vld [vmem:[%s3245_s1 + $0xc80] sm:$0xff]  ;;  %743 = vmatpush1.msra.mxu0 %v322_v46 }
  0x5a   :  { %814 = vmatpush1.msra.mxu1 %v450_v47  ;;  %v315_v52 = vld [vmem:[%s3245_s1 + $0x868] sm:$0xff]  ;;  %744 = vmatprep.subr.mxu0 %v319_v48  ;;  %v314_v54 = vld [vmem:[%s3245_s1 + $0x860] sm:$0xff] }
  0x5b   :  { %v443_v53 = vld [vmem:[%s3245_s1 + $0xc68] sm:$0xff]  ;;  %815 = vmatprep.subr.mxu1 %v447_v49  ;;  %v442_v55 = vld [vmem:[%s3245_s1 + $0xc60] sm:$0xff]  ;;  %745 = vmatpush1.msra.mxu0 %v318_v50 }
  0x5c   :  { %816 = vmatpush1.msra.mxu1 %v446_v51  ;;  %v311_v56 = vld [vmem:[%s3245_s1 + $0x848] sm:$0xff]  ;;  %746 = vmatprep.subr.mxu0 %v315_v52  ;;  %v310_v58 = vld [vmem:[%s3245_s1 + $0x840] sm:$0xff] }
  0x5d   :  { %v439_v57 = vld [vmem:[%s3245_s1 + $0xc48] sm:$0xff]  ;;  %817 = vmatprep.subr.mxu1 %v443_v53  ;;  %v438_v59 = vld [vmem:[%s3245_s1 + $0xc40] sm:$0xff]  ;;  %747 = vmatpush1.msra.mxu0 %v314_v54 }
  0x5e   :  { %818 = vmatpush1.msra.mxu1 %v442_v55  ;;  %v307_v60 = vld [vmem:[%s3245_s1 + $0x828] sm:$0xff]  ;;  %748 = vmatprep.subr.mxu0 %v311_v56  ;;  %v306_v62 = vld [vmem:[%s3245_s1 + $0x820] sm:$0xff] }
  0x5f   :  { %v435_v61 = vld [vmem:[%s3245_s1 + $0xc28] sm:$0xff]  ;;  %819 = vmatprep.subr.mxu1 %v439_v57  ;;  %v434_v63 = vld [vmem:[%s3245_s1 + $0xc20] sm:$0xff]  ;;  %749 = vmatpush1.msra.mxu0 %v310_v58 }
  0x60   :  { %820 = vmatpush1.msra.mxu1 %v438_v59  ;;  %v303_v0 = vld [vmem:[%s3245_s1 + $0x808] sm:$0xff]  ;;  %750 = vmatprep.subr.mxu0 %v307_v60  ;;  %v302_v2 = vld [vmem:[%s3245_s1 + $0x800] sm:$0xff] }
  0x61   :  { %v431_v1 = vld [vmem:[%s3245_s1 + $0xc08] sm:$0xff]  ;;  %821 = vmatprep.subr.mxu1 %v435_v61  ;;  %v430_v3 = vld [vmem:[%s3245_s1 + $0xc00] sm:$0xff]  ;;  %751 = vmatpush1.msra.mxu0 %v306_v62 }
  0x62   :  { %822 = vmatpush1.msra.mxu1 %v434_v63  ;;  %v427_v4 = vld [vmem:[%s3245_s1 + $0xbe8] sm:$0xff]  ;;  %752 = vmatprep.subr.mxu0 %v303_v0  ;;  %v426_v6 = vld [vmem:[%s3245_s1 + $0xbe0] sm:$0xff] }
  0x63   :  { %v555_v5 = vld [vmem:[%s3245_s1 + $0xfe8] sm:$0xff]  ;;  %823 = vmatprep.subr.mxu1 %v431_v1  ;;  %v554_v7 = vld [vmem:[%s3245_s1 + $0xfe0] sm:$0xff]  ;;  %753 = vmatpush1.msra.mxu0 %v302_v2 }
  0x64   :  { %824 = vmatpush1.msra.mxu1 %v430_v3  ;;  %v423_v8 = vld [vmem:[%s3245_s1 + $0xbc8] sm:$0xff]  ;;  %754 = vmatprep.subr.mxu0 %v427_v4  ;;  %v422_v10 = vld [vmem:[%s3245_s1 + $0xbc0] sm:$0xff] }
  0x65   :  { %v551_v9 = vld [vmem:[%s3245_s1 + $0xfc8] sm:$0xff]  ;;  %825 = vmatprep.subr.mxu1 %v555_v5  ;;  %v550_v11 = vld [vmem:[%s3245_s1 + $0xfc0] sm:$0xff]  ;;  %755 = vmatpush2.msra.mxu0 %v426_v6  ;;  %v45_v6 = vld [vmem:[%s3246_s0 + $0x38] sm:$0xff] }
  0x66   :  { %826 = vmatpush2.msra.mxu1 %v554_v7  ;;  %v419_v12 = vld [vmem:[%s3245_s1 + $0xba8] sm:$0xff]  ;;  %756 = vmatprep.subr.mxu0 %v423_v8  ;;  %v418_v14 = vld [vmem:[%s3245_s1 + $0xba0] sm:$0xff]  ;;  %v109_v7 = vld [vmem:[%s3245_s1 + $0x1f8] sm:$0xff] }
  0x67   :  { %v547_v13 = vld [vmem:[%s3245_s1 + $0xfa8] sm:$0xff]  ;;  %827 = vmatprep.subr.mxu1 %v551_v9  ;;  %v546_v15 = vld [vmem:[%s3245_s1 + $0xfa0] sm:$0xff]  ;;  %757 = vmatpush2.msra.mxu0 %v422_v10  ;;  %v237_v8 = vld [vmem:[%s3245_s1 + $0x5f8] sm:$0xff] }
  0x68   :  { %828 = vmatpush2.msra.mxu1 %v550_v11  ;;  %v415_v16 = vld [vmem:[%s3245_s1 + $0xb88] sm:$0xff]  ;;  %758 = vmatprep.subr.mxu0 %v419_v12  ;;  %v414_v18 = vld [vmem:[%s3245_s1 + $0xb80] sm:$0xff]  ;;  %v44_v9 = vld [vmem:[%s3246_s0 + $0x30] sm:$0xff] }
  0x69   :  { %v543_v17 = vld [vmem:[%s3245_s1 + $0xf88] sm:$0xff]  ;;  %829 = vmatprep.subr.mxu1 %v547_v13  ;;  %v542_v19 = vld [vmem:[%s3245_s1 + $0xf80] sm:$0xff]  ;;  %759 = vmatpush2.msra.mxu0 %v418_v14  ;;  %v108_v10 = vld [vmem:[%s3245_s1 + $0x1f0] sm:$0xff] }
  0x6a   :  { %830 = vmatpush2.msra.mxu1 %v546_v15  ;;  %v411_v20 = vld [vmem:[%s3245_s1 + $0xb68] sm:$0xff]  ;;  %760 = vmatprep.subr.mxu0 %v415_v16  ;;  %v410_v22 = vld [vmem:[%s3245_s1 + $0xb60] sm:$0xff]  ;;  %v236_v11 = vld [vmem:[%s3245_s1 + $0x5f0] sm:$0xff]  ;;  %v32_v16 = vlaneseq }
  0x6b   :  { %v539_v21 = vld [vmem:[%s3245_s1 + $0xf68] sm:$0xff]  ;;  %831 = vmatprep.subr.mxu1 %v543_v17  ;;  %v538_v23 = vld [vmem:[%s3245_s1 + $0xf60] sm:$0xff]  ;;  %761 = vmatpush2.msra.mxu0 %v414_v18  ;;  %v105_v12 = vld [vmem:[%s3245_s1 + $0x1d8] sm:$0xff] }
  0x6c   :  { %832 = vmatpush2.msra.mxu1 %v542_v19  ;;  %v407_v24 = vld [vmem:[%s3245_s1 + $0xb48] sm:$0xff]  ;;  %762 = vmatprep.subr.mxu0 %v411_v20  ;;  %v406_v26 = vld [vmem:[%s3245_s1 + $0xb40] sm:$0xff]  ;;  %v233_v13 = vld [vmem:[%s3245_s1 + $0x5d8] sm:$0xff]  ;;  %vm2394_vm0 = vcmp.lt.s32.totalorder %v32_v16, 512 }
  0x6d   :  { %v535_v25 = vld [vmem:[%s3245_s1 + $0xf48] sm:$0xff]  ;;  %833 = vmatprep.subr.mxu1 %v539_v21  ;;  %v534_v27 = vld [vmem:[%s3245_s1 + $0xf40] sm:$0xff]  ;;  %763 = vmatpush2.msra.mxu0 %v410_v22  ;;  %v104_v14 = vld [vmem:[%s3245_s1 + $0x1d0] sm:$0xff] }
  0x6e   :  { %834 = vmatpush2.msra.mxu1 %v538_v23  ;;  %v403_v28 = vld [vmem:[%s3245_s1 + $0xb28] sm:$0xff]  ;;  %764 = vmatprep.subr.mxu0 %v407_v24  ;;  %v402_v30 = vld [vmem:[%s3245_s1 + $0xb20] sm:$0xff]  ;;  %v232_v15 = vld [vmem:[%s3245_s1 + $0x5d0] sm:$0xff]  ;;  %v1523_v24 = vmov 0.0  }
  0x6f   :  { %v531_v29 = vld [vmem:[%s3245_s1 + $0xf28] sm:$0xff]  ;;  %835 = vmatprep.subr.mxu1 %v535_v25  ;;  %v530_v31 = vld [vmem:[%s3245_s1 + $0xf20] sm:$0xff]  ;;  %765 = vmatpush2.msra.mxu0 %v406_v26  ;;  %v101_v17 = vld [vmem:[%s3245_s1 + $0x1b8] sm:$0xff]  ;;  %36 = vst.msk [vmem:[#allocation3] sm:$0xf] %vm2394_vm0, %v1523_v24 }
  0x70   :  { %836 = vmatpush2.msra.mxu1 %v534_v27  ;;  %v399_v32 = vld [vmem:[%s3245_s1 + $0xb08] sm:$0xff]  ;;  %766 = vmatprep.subr.mxu0 %v403_v28  ;;  %v398_v34 = vld [vmem:[%s3245_s1 + $0xb00] sm:$0xff]  ;;  %v229_v18 = vld [vmem:[%s3245_s1 + $0x5b8] sm:$0xff]  ;;  %37 = vst.msk [vmem:[#allocation4] sm:$0xf] %vm2394_vm0, %v1523_v24 }
  0x71   :  { %v527_v33 = vld [vmem:[%s3245_s1 + $0xf08] sm:$0xff]  ;;  %837 = vmatprep.subr.mxu1 %v531_v29  ;;  %v526_v35 = vld [vmem:[%s3245_s1 + $0xf00] sm:$0xff]  ;;  %767 = vmatpush2.msra.mxu0 %v402_v30  ;;  %v100_v19 = vld [vmem:[%s3245_s1 + $0x1b0] sm:$0xff] }
  0x72   :  { %838 = vmatpush2.msra.mxu1 %v530_v31  ;;  %v395_v36 = vld [vmem:[%s3245_s1 + $0xae8] sm:$0xff]  ;;  %768 = vmatprep.subr.mxu0 %v399_v32  ;;  %v394_v38 = vld [vmem:[%s3245_s1 + $0xae0] sm:$0xff]  ;;  %v228_v20 = vld [vmem:[%s3245_s1 + $0x5b0] sm:$0xff] }
  0x73   :  { %v523_v37 = vld [vmem:[%s3245_s1 + $0xee8] sm:$0xff]  ;;  %839 = vmatprep.subr.mxu1 %v527_v33  ;;  %v522_v39 = vld [vmem:[%s3245_s1 + $0xee0] sm:$0xff]  ;;  %769 = vmatpush2.msra.mxu0 %v398_v34  ;;  %v97_v22 = vld [vmem:[%s3245_s1 + $0x198] sm:$0xff] }
  0x74   :  { %840 = vmatpush2.msra.mxu1 %v526_v35  ;;  %v391_v40 = vld [vmem:[%s3245_s1 + $0xac8] sm:$0xff]  ;;  %770 = vmatprep.subr.mxu0 %v395_v36  ;;  %v390_v42 = vld [vmem:[%s3245_s1 + $0xac0] sm:$0xff]  ;;  %v225_v23 = vld [vmem:[%s3245_s1 + $0x598] sm:$0xff] }
  0x75   :  { %v519_v41 = vld [vmem:[%s3245_s1 + $0xec8] sm:$0xff]  ;;  %841 = vmatprep.subr.mxu1 %v523_v37  ;;  %v518_v43 = vld [vmem:[%s3245_s1 + $0xec0] sm:$0xff]  ;;  %771 = vmatpush2.msra.mxu0 %v394_v38  ;;  %v96_v25 = vld [vmem:[%s3245_s1 + $0x190] sm:$0xff] }
  0x76   :  { %842 = vmatpush2.msra.mxu1 %v522_v39  ;;  %v387_v44 = vld [vmem:[%s3245_s1 + $0xaa8] sm:$0xff]  ;;  %772 = vmatprep.subr.mxu0 %v391_v40  ;;  %v386_v46 = vld [vmem:[%s3245_s1 + $0xaa0] sm:$0xff]  ;;  %v224_v26 = vld [vmem:[%s3245_s1 + $0x590] sm:$0xff] }
  0x77   :  { %v515_v45 = vld [vmem:[%s3245_s1 + $0xea8] sm:$0xff]  ;;  %843 = vmatprep.subr.mxu1 %v519_v41  ;;  %v514_v47 = vld [vmem:[%s3245_s1 + $0xea0] sm:$0xff]  ;;  %773 = vmatpush2.msra.mxu0 %v390_v42  ;;  %v93_v27 = vld [vmem:[%s3245_s1 + $0x178] sm:$0xff] }
  0x78   :  { %844 = vmatpush2.msra.mxu1 %v518_v43  ;;  %v383_v48 = vld [vmem:[%s3245_s1 + $0xa88] sm:$0xff]  ;;  %774 = vmatprep.subr.mxu0 %v387_v44  ;;  %v382_v50 = vld [vmem:[%s3245_s1 + $0xa80] sm:$0xff]  ;;  %v221_v28 = vld [vmem:[%s3245_s1 + $0x578] sm:$0xff] }
  0x79   :  { %v511_v49 = vld [vmem:[%s3245_s1 + $0xe88] sm:$0xff]  ;;  %845 = vmatprep.subr.mxu1 %v515_v45  ;;  %v510_v51 = vld [vmem:[%s3245_s1 + $0xe80] sm:$0xff]  ;;  %775 = vmatpush2.msra.mxu0 %v386_v46  ;;  %v92_v29 = vld [vmem:[%s3245_s1 + $0x170] sm:$0xff] }
  0x7a   :  { %846 = vmatpush2.msra.mxu1 %v514_v47  ;;  %v379_v52 = vld [vmem:[%s3245_s1 + $0xa68] sm:$0xff]  ;;  %776 = vmatprep.subr.mxu0 %v383_v48  ;;  %v378_v54 = vld [vmem:[%s3245_s1 + $0xa60] sm:$0xff]  ;;  %v220_v30 = vld [vmem:[%s3245_s1 + $0x570] sm:$0xff] }
  0x7b   :  { %v507_v53 = vld [vmem:[%s3245_s1 + $0xe68] sm:$0xff]  ;;  %847 = vmatprep.subr.mxu1 %v511_v49  ;;  %v506_v55 = vld [vmem:[%s3245_s1 + $0xe60] sm:$0xff]  ;;  %777 = vmatpush2.msra.mxu0 %v382_v50  ;;  %v89_v31 = vld [vmem:[%s3245_s1 + $0x158] sm:$0xff] }
  0x7c   :  { %848 = vmatpush2.msra.mxu1 %v510_v51  ;;  %v375_v56 = vld [vmem:[%s3245_s1 + $0xa48] sm:$0xff]  ;;  %778 = vmatprep.subr.mxu0 %v379_v52  ;;  %v374_v58 = vld [vmem:[%s3245_s1 + $0xa40] sm:$0xff]  ;;  %v217_v32 = vld [vmem:[%s3245_s1 + $0x558] sm:$0xff] }
  0x7d   :  { %v503_v57 = vld [vmem:[%s3245_s1 + $0xe48] sm:$0xff]  ;;  %849 = vmatprep.subr.mxu1 %v507_v53  ;;  %v502_v59 = vld [vmem:[%s3245_s1 + $0xe40] sm:$0xff]  ;;  %779 = vmatpush2.msra.mxu0 %v378_v54  ;;  %v88_v33 = vld [vmem:[%s3245_s1 + $0x150] sm:$0xff] }
  0x7e   :  { %850 = vmatpush2.msra.mxu1 %v506_v55  ;;  %v371_v60 = vld [vmem:[%s3245_s1 + $0xa28] sm:$0xff]  ;;  %780 = vmatprep.subr.mxu0 %v375_v56  ;;  %v370_v62 = vld [vmem:[%s3245_s1 + $0xa20] sm:$0xff]  ;;  %v216_v34 = vld [vmem:[%s3245_s1 + $0x550] sm:$0xff] }
  0x7f   :  { %v499_v61 = vld [vmem:[%s3245_s1 + $0xe28] sm:$0xff]  ;;  %851 = vmatprep.subr.mxu1 %v503_v57  ;;  %v498_v63 = vld [vmem:[%s3245_s1 + $0xe20] sm:$0xff]  ;;  %781 = vmatpush2.msra.mxu0 %v374_v58  ;;  %v85_v35 = vld [vmem:[%s3245_s1 + $0x138] sm:$0xff] }
  0x80   :  { %852 = vmatpush2.msra.mxu1 %v502_v59  ;;  %v367_v0 = vld [vmem:[%s3245_s1 + $0xa08] sm:$0xff]  ;;  %782 = vmatprep.subr.mxu0 %v371_v60  ;;  %v366_v2 = vld [vmem:[%s3245_s1 + $0xa00] sm:$0xff]  ;;  %v213_v36 = vld [vmem:[%s3245_s1 + $0x538] sm:$0xff] }
  0x81   :  { %v495_v1 = vld [vmem:[%s3245_s1 + $0xe08] sm:$0xff]  ;;  %853 = vmatprep.subr.mxu1 %v499_v61  ;;  %783 = vmatpush2.msra.mxu0 %v370_v62  ;;  %v494_v4 = vld [vmem:[%s3245_s1 + $0xe00] sm:$0xff]  ;;  %v84_v37 = vld [vmem:[%s3245_s1 + $0x130] sm:$0xff] }
  0x82   :  { %v43_v3 = vld [vmem:[%s3246_s0 + $0x28] sm:$0xff]  ;;  %854 = vmatpush2.msra.mxu1 %v498_v63  ;;  %v42_v5 = vld [vmem:[%s3246_s0 + $0x20] sm:$0xff]  ;;  %784 = vmatprep.subr.mxu0 %v367_v0  ;;  %v212_v38 = vld [vmem:[%s3245_s1 + $0x530] sm:$0xff] }
  0x83   :  { %855 = vmatprep.subr.mxu1 %v495_v1  ;;  %785 = vmatpush2.msra.mxu0 %v366_v2  ;;  %v81_v39 = vld [vmem:[%s3245_s1 + $0x118] sm:$0xff]  ;;  %v80_v41 = vld [vmem:[%s3245_s1 + $0x110] sm:$0xff] }
  0x84   :  { %786 = vmatprep.mubr.f32.mxu0 %v43_v3  ;;  %856 = vmatpush2.msra.mxu1 %v494_v4  ;;  %v209_v40 = vld [vmem:[%s3245_s1 + $0x518] sm:$0xff]  ;;  %v208_v42 = vld [vmem:[%s3245_s1 + $0x510] sm:$0xff] }
  0x85   :  { %787 = vmatmul.mubr.f32.vlgmr.msra.gmra.mxu0 %v42_v5  ;;  %857 = vmatprep.mubr.f32.mxu1 %v45_v6  ;;  %v77_v43 = vld [vmem:[%s3245_s1 + $0xf8] sm:$0xff]  ;;  %v76_v45 = vld [vmem:[%s3245_s1 + $0xf0] sm:$0xff] }
  0x86   :  { %864 = vmatprep.subr.mxu0 %v109_v7  ;;  %935 = vmatprep.subr.mxu1 %v237_v8  ;;  %v205_v44 = vld [vmem:[%s3245_s1 + $0x4f8] sm:$0xff]  ;;  %v204_v46 = vld [vmem:[%s3245_s1 + $0x4f0] sm:$0xff] }
  0x87   :  { %858 = vmatmul.mubr.f32.vlgmr.msra.gmra.mxu1 %v44_v9  ;;  %865 = vmatpush1.msra.mxu0 %v108_v10  ;;  %v73_v47 = vld [vmem:[%s3245_s1 + $0xd8] sm:$0xff]  ;;  %v72_v49 = vld [vmem:[%s3245_s1 + $0xd0] sm:$0xff] }
  0x88   :  { %936 = vmatpush1.msra.mxu1 %v236_v11  ;;  %866 = vmatprep.subr.mxu0 %v105_v12  ;;  %v201_v48 = vld [vmem:[%s3245_s1 + $0x4d8] sm:$0xff]  ;;  %v200_v50 = vld [vmem:[%s3245_s1 + $0x4d0] sm:$0xff] }
  0x89   :  { %937 = vmatprep.subr.mxu1 %v233_v13  ;;  %867 = vmatpush1.msra.mxu0 %v104_v14  ;;  %v69_v51 = vld [vmem:[%s3245_s1 + $0xb8] sm:$0xff]  ;;  %v68_v53 = vld [vmem:[%s3245_s1 + $0xb0] sm:$0xff] }
  0x8a   :  { %938 = vmatpush1.msra.mxu1 %v232_v15  ;;  %868 = vmatprep.subr.mxu0 %v101_v17  ;;  %v197_v52 = vld [vmem:[%s3245_s1 + $0x4b8] sm:$0xff]  ;;  %v196_v54 = vld [vmem:[%s3245_s1 + $0x4b0] sm:$0xff] }
  0x8b   :  { %939 = vmatprep.subr.mxu1 %v229_v18  ;;  %869 = vmatpush1.msra.mxu0 %v100_v19  ;;  %v65_v55 = vld [vmem:[%s3245_s1 + $0x98] sm:$0xff]  ;;  %v64_v57 = vld [vmem:[%s3245_s1 + $0x90] sm:$0xff] }
  0x8c   :  { %940 = vmatpush1.msra.mxu1 %v228_v20  ;;  %870 = vmatprep.subr.mxu0 %v97_v22  ;;  %v193_v56 = vld [vmem:[%s3245_s1 + $0x498] sm:$0xff]  ;;  %v192_v58 = vld [vmem:[%s3245_s1 + $0x490] sm:$0xff] }
  0x8d   :  { %941 = vmatprep.subr.mxu1 %v225_v23  ;;  %871 = vmatpush1.msra.mxu0 %v96_v25  ;;  %v61_v59 = vld [vmem:[%s3245_s1 + $0x78] sm:$0xff]  ;;  %v60_v61 = vld [vmem:[%s3245_s1 + $0x70] sm:$0xff] }
  0x8e   :  { %942 = vmatpush1.msra.mxu1 %v224_v26  ;;  %872 = vmatprep.subr.mxu0 %v93_v27  ;;  %v189_v60 = vld [vmem:[%s3245_s1 + $0x478] sm:$0xff]  ;;  %v188_v62 = vld [vmem:[%s3245_s1 + $0x470] sm:$0xff] }
  0x8f   :  { %943 = vmatprep.subr.mxu1 %v221_v28  ;;  %873 = vmatpush1.msra.mxu0 %v92_v29  ;;  %v57_v63 = vld [vmem:[%s3245_s1 + $0x58] sm:$0xff]  ;;  %v56_v1 = vld [vmem:[%s3245_s1 + $0x50] sm:$0xff] }
  0x90   :  { %944 = vmatpush1.msra.mxu1 %v220_v30  ;;  %874 = vmatprep.subr.mxu0 %v89_v31  ;;  %v185_v0 = vld [vmem:[%s3245_s1 + $0x458] sm:$0xff]  ;;  %v184_v2 = vld [vmem:[%s3245_s1 + $0x450] sm:$0xff] }
  0x91   :  { %945 = vmatprep.subr.mxu1 %v217_v32  ;;  %875 = vmatpush1.msra.mxu0 %v88_v33  ;;  %v53_v3 = vld [vmem:[%s3245_s1 + $0x38] sm:$0xff]  ;;  %v52_v5 = vld [vmem:[%s3245_s1 + $0x30] sm:$0xff] }
  0x92   :  { %946 = vmatpush1.msra.mxu1 %v216_v34  ;;  %876 = vmatprep.subr.mxu0 %v85_v35  ;;  %v181_v4 = vld [vmem:[%s3245_s1 + $0x438] sm:$0xff]  ;;  %v180_v6 = vld [vmem:[%s3245_s1 + $0x430] sm:$0xff] }
  0x93   :  { %947 = vmatprep.subr.mxu1 %v213_v36  ;;  %877 = vmatpush1.msra.mxu0 %v84_v37  ;;  %v49_v7 = vld [vmem:[%s3245_s1 + $0x18] sm:$0xff]  ;;  %v48_v9 = vld [vmem:[%s3245_s1 + $0x10] sm:$0xff] }
  0x94   :  { %948 = vmatpush1.msra.mxu1 %v212_v38  ;;  %878 = vmatprep.subr.mxu0 %v81_v39  ;;  %v177_v8 = vld [vmem:[%s3245_s1 + $0x418] sm:$0xff]  ;;  %v176_v10 = vld [vmem:[%s3245_s1 + $0x410] sm:$0xff] }
  0x95   :  { %949 = vmatprep.subr.mxu1 %v209_v40  ;;  %879 = vmatpush1.msra.mxu0 %v80_v41  ;;  %v173_v11 = vld [vmem:[%s3245_s1 + $0x3f8] sm:$0xff]  ;;  %v172_v13 = vld [vmem:[%s3245_s1 + $0x3f0] sm:$0xff] }
  0x96   :  { %950 = vmatpush1.msra.mxu1 %v208_v42  ;;  %880 = vmatprep.subr.mxu0 %v77_v43  ;;  %v301_v12 = vld [vmem:[%s3245_s1 + $0x7f8] sm:$0xff]  ;;  %v300_v14 = vld [vmem:[%s3245_s1 + $0x7f0] sm:$0xff] }
  0x97   :  { %951 = vmatprep.subr.mxu1 %v205_v44  ;;  %881 = vmatpush1.msra.mxu0 %v76_v45  ;;  %v169_v15 = vld [vmem:[%s3245_s1 + $0x3d8] sm:$0xff]  ;;  %v168_v18 = vld [vmem:[%s3245_s1 + $0x3d0] sm:$0xff] }
  0x98   :  { %952 = vmatpush1.msra.mxu1 %v204_v46  ;;  %882 = vmatprep.subr.mxu0 %v73_v47  ;;  %v297_v17 = vld [vmem:[%s3245_s1 + $0x7d8] sm:$0xff]  ;;  %v296_v19 = vld [vmem:[%s3245_s1 + $0x7d0] sm:$0xff] }
  0x99   :  { %953 = vmatprep.subr.mxu1 %v201_v48  ;;  %883 = vmatpush1.msra.mxu0 %v72_v49  ;;  %v165_v20 = vld [vmem:[%s3245_s1 + $0x3b8] sm:$0xff]  ;;  %v164_v23 = vld [vmem:[%s3245_s1 + $0x3b0] sm:$0xff] }
  0x9a   :  { %954 = vmatpush1.msra.mxu1 %v200_v50  ;;  %884 = vmatprep.subr.mxu0 %v69_v51  ;;  %v293_v22 = vld [vmem:[%s3245_s1 + $0x7b8] sm:$0xff]  ;;  %v292_v24 = vld [vmem:[%s3245_s1 + $0x7b0] sm:$0xff] }
  0x9b   :  { %955 = vmatprep.subr.mxu1 %v197_v52  ;;  %885 = vmatpush1.msra.mxu0 %v68_v53  ;;  %v161_v25 = vld [vmem:[%s3245_s1 + $0x398] sm:$0xff]  ;;  %v160_v27 = vld [vmem:[%s3245_s1 + $0x390] sm:$0xff] }
  0x9c   :  { %956 = vmatpush1.msra.mxu1 %v196_v54  ;;  %886 = vmatprep.subr.mxu0 %v65_v55  ;;  %v289_v26 = vld [vmem:[%s3245_s1 + $0x798] sm:$0xff]  ;;  %v288_v28 = vld [vmem:[%s3245_s1 + $0x790] sm:$0xff] }
  0x9d   :  { %957 = vmatprep.subr.mxu1 %v193_v56  ;;  %887 = vmatpush1.msra.mxu0 %v64_v57  ;;  %v157_v29 = vld [vmem:[%s3245_s1 + $0x378] sm:$0xff]  ;;  %v156_v31 = vld [vmem:[%s3245_s1 + $0x370] sm:$0xff] }
  0x9e   :  { %958 = vmatpush1.msra.mxu1 %v192_v58  ;;  %888 = vmatprep.subr.mxu0 %v61_v59  ;;  %v285_v30 = vld [vmem:[%s3245_s1 + $0x778] sm:$0xff]  ;;  %v284_v32 = vld [vmem:[%s3245_s1 + $0x770] sm:$0xff] }
  0x9f   :  { %959 = vmatprep.subr.mxu1 %v189_v60  ;;  %889 = vmatpush1.msra.mxu0 %v60_v61  ;;  %v153_v33 = vld [vmem:[%s3245_s1 + $0x358] sm:$0xff]  ;;  %v152_v35 = vld [vmem:[%s3245_s1 + $0x350] sm:$0xff] }
  0xa0   :  { %960 = vmatpush1.msra.mxu1 %v188_v62  ;;  %890 = vmatprep.subr.mxu0 %v57_v63  ;;  %v281_v34 = vld [vmem:[%s3245_s1 + $0x758] sm:$0xff]  ;;  %v280_v36 = vld [vmem:[%s3245_s1 + $0x750] sm:$0xff] }
  0xa1   :  { %961 = vmatprep.subr.mxu1 %v185_v0  ;;  %891 = vmatpush1.msra.mxu0 %v56_v1  ;;  %v149_v37 = vld [vmem:[%s3245_s1 + $0x338] sm:$0xff]  ;;  %v148_v39 = vld [vmem:[%s3245_s1 + $0x330] sm:$0xff] }
  0xa2   :  { %962 = vmatpush1.msra.mxu1 %v184_v2  ;;  %892 = vmatprep.subr.mxu0 %v53_v3  ;;  %v277_v38 = vld [vmem:[%s3245_s1 + $0x738] sm:$0xff]  ;;  %v276_v40 = vld [vmem:[%s3245_s1 + $0x730] sm:$0xff] }
  0xa3   :  { %963 = vmatprep.subr.mxu1 %v181_v4  ;;  %893 = vmatpush1.msra.mxu0 %v52_v5  ;;  %v145_v41 = vld [vmem:[%s3245_s1 + $0x318] sm:$0xff]  ;;  %v144_v43 = vld [vmem:[%s3245_s1 + $0x310] sm:$0xff] }
  0xa4   :  { %964 = vmatpush1.msra.mxu1 %v180_v6  ;;  %894 = vmatprep.subr.mxu0 %v49_v7  ;;  %v273_v42 = vld [vmem:[%s3245_s1 + $0x718] sm:$0xff]  ;;  %v272_v44 = vld [vmem:[%s3245_s1 + $0x710] sm:$0xff] }
  0xa5   :  { %965 = vmatprep.subr.mxu1 %v177_v8  ;;  %895 = vmatpush1.msra.mxu0 %v48_v9  ;;  %v141_v45 = vld [vmem:[%s3245_s1 + $0x2f8] sm:$0xff]  ;;  %v140_v47 = vld [vmem:[%s3245_s1 + $0x2f0] sm:$0xff] }
  0xa6   :  { %966 = vmatpush1.msra.mxu1 %v176_v10  ;;  %896 = vmatprep.subr.mxu0 %v173_v11  ;;  %v269_v46 = vld [vmem:[%s3245_s1 + $0x6f8] sm:$0xff]  ;;  %v268_v48 = vld [vmem:[%s3245_s1 + $0x6f0] sm:$0xff] }
  0xa7   :  { %967 = vmatprep.subr.mxu1 %v301_v12  ;;  %897 = vmatpush2.msra.mxu0 %v172_v13  ;;  %v137_v49 = vld [vmem:[%s3245_s1 + $0x2d8] sm:$0xff]  ;;  %v136_v51 = vld [vmem:[%s3245_s1 + $0x2d0] sm:$0xff] }
  0xa8   :  { %968 = vmatpush2.msra.mxu1 %v300_v14  ;;  %898 = vmatprep.subr.mxu0 %v169_v15  ;;  %v265_v50 = vld [vmem:[%s3245_s1 + $0x6d8] sm:$0xff]  ;;  %v264_v52 = vld [vmem:[%s3245_s1 + $0x6d0] sm:$0xff]  ;;  %v1515_v14 = vld [vmem:[%s3246_s0 + $0x8] sm:$0xff] }
  0xa9   :  { %969 = vmatprep.subr.mxu1 %v297_v17  ;;  %899 = vmatpush2.msra.mxu0 %v168_v18  ;;  %v133_v53 = vld [vmem:[%s3245_s1 + $0x2b8] sm:$0xff]  ;;  %v132_v55 = vld [vmem:[%s3245_s1 + $0x2b0] sm:$0xff]  ;;  %v1516_v17 = vld [vmem:[%s3246_s0] sm:$0xff] }
  0xaa   :  { %970 = vmatpush2.msra.mxu1 %v296_v19  ;;  %900 = vmatprep.subr.mxu0 %v165_v20  ;;  %v261_v54 = vld [vmem:[%s3245_s1 + $0x6b8] sm:$0xff]  ;;  %v260_v56 = vld [vmem:[%s3245_s1 + $0x6b0] sm:$0xff] }
  0xab   :  { %971 = vmatprep.subr.mxu1 %v293_v22  ;;  %901 = vmatpush2.msra.mxu0 %v164_v23  ;;  %v129_v57 = vld [vmem:[%s3245_s1 + $0x298] sm:$0xff]  ;;  %v128_v59 = vld [vmem:[%s3245_s1 + $0x290] sm:$0xff] }
  0xac   :  { %972 = vmatpush2.msra.mxu1 %v292_v24  ;;  %902 = vmatprep.subr.mxu0 %v161_v25  ;;  %v257_v58 = vld [vmem:[%s3245_s1 + $0x698] sm:$0xff]  ;;  %v256_v60 = vld [vmem:[%s3245_s1 + $0x690] sm:$0xff] }
  0xad   :  { %973 = vmatprep.subr.mxu1 %v289_v26  ;;  %903 = vmatpush2.msra.mxu0 %v160_v27  ;;  %v125_v61 = vld [vmem:[%s3245_s1 + $0x278] sm:$0xff]  ;;  %v124_v63 = vld [vmem:[%s3245_s1 + $0x270] sm:$0xff] }
  0xae   :  { %974 = vmatpush2.msra.mxu1 %v288_v28  ;;  %904 = vmatprep.subr.mxu0 %v157_v29  ;;  %v253_v62 = vld [vmem:[%s3245_s1 + $0x678] sm:$0xff]  ;;  %v252_v0 = vld [vmem:[%s3245_s1 + $0x670] sm:$0xff] }
  0xaf   :  { %975 = vmatprep.subr.mxu1 %v285_v30  ;;  %905 = vmatpush2.msra.mxu0 %v156_v31  ;;  %v121_v1 = vld [vmem:[%s3245_s1 + $0x258] sm:$0xff]  ;;  %v120_v3 = vld [vmem:[%s3245_s1 + $0x250] sm:$0xff] }
  0xb0   :  { %976 = vmatpush2.msra.mxu1 %v284_v32  ;;  %906 = vmatprep.subr.mxu0 %v153_v33  ;;  %v249_v2 = vld [vmem:[%s3245_s1 + $0x658] sm:$0xff]  ;;  %v248_v4 = vld [vmem:[%s3245_s1 + $0x650] sm:$0xff] }
  0xb1   :  { %977 = vmatprep.subr.mxu1 %v281_v34  ;;  %907 = vmatpush2.msra.mxu0 %v152_v35  ;;  %v117_v5 = vld [vmem:[%s3245_s1 + $0x238] sm:$0xff]  ;;  %v116_v7 = vld [vmem:[%s3245_s1 + $0x230] sm:$0xff] }
  0xb2   :  { %978 = vmatpush2.msra.mxu1 %v280_v36  ;;  %908 = vmatprep.subr.mxu0 %v149_v37  ;;  %v245_v6 = vld [vmem:[%s3245_s1 + $0x638] sm:$0xff]  ;;  %v244_v8 = vld [vmem:[%s3245_s1 + $0x630] sm:$0xff] }
  0xb3   :  { %979 = vmatprep.subr.mxu1 %v277_v38  ;;  %909 = vmatpush2.msra.mxu0 %v148_v39  ;;  %v113_v9 = vld [vmem:[%s3245_s1 + $0x218] sm:$0xff]  ;;  %v112_v11 = vld [vmem:[%s3245_s1 + $0x210] sm:$0xff] }
  0xb4   :  { %980 = vmatpush2.msra.mxu1 %v276_v40  ;;  %910 = vmatprep.subr.mxu0 %v145_v41  ;;  %v241_v10 = vld [vmem:[%s3245_s1 + $0x618] sm:$0xff]  ;;  %v240_v12 = vld [vmem:[%s3245_s1 + $0x610] sm:$0xff] }
  0xb5   :  { %981 = vmatprep.subr.mxu1 %v273_v42  ;;  %911 = vmatpush2.msra.mxu0 %v144_v43  ;;  %v365_v13 = vld [vmem:[%s3245_s1 + $0x9f8] sm:$0xff]  ;;  %v364_v18 = vld [vmem:[%s3245_s1 + $0x9f0] sm:$0xff] }
  0xb6   :  { %982 = vmatpush2.msra.mxu1 %v272_v44  ;;  %912 = vmatprep.subr.mxu0 %v141_v45  ;;  %v493_v15 = vld [vmem:[%s3245_s1 + $0xdf8] sm:$0xff]  ;;  %v492_v19 = vld [vmem:[%s3245_s1 + $0xdf0] sm:$0xff] }
  0xb7   :  { %983 = vmatprep.subr.mxu1 %v269_v46  ;;  %913 = vmatpush2.msra.mxu0 %v140_v47  ;;  %v1517_v20 = vld [vmem:[%s3246_s0 + $0x18] sm:$0xff]  ;;  %v1518_v24 = vld [vmem:[%s3246_s0 + $0x10] sm:$0xff] }
  0xb8   :  { %984 = vmatpush2.msra.mxu1 %v268_v48  ;;  %914 = vmatprep.subr.mxu0 %v137_v49  ;;  %v361_v22 = vld [vmem:[%s3245_s1 + $0x9d8] sm:$0xff]  ;;  %v360_v25 = vld [vmem:[%s3245_s1 + $0x9d0] sm:$0xff] }
  0xb9   :  { %985 = vmatprep.subr.mxu1 %v265_v50  ;;  %915 = vmatpush2.msra.mxu0 %v136_v51  ;;  %v489_v23 = vld [vmem:[%s3245_s1 + $0xdd8] sm:$0xff]  ;;  %v488_v26 = vld [vmem:[%s3245_s1 + $0xdd0] sm:$0xff] }
  0xba   :  { %986 = vmatpush2.msra.mxu1 %v264_v52  ;;  %916 = vmatprep.subr.mxu0 %v133_v53  ;;  %v357_v27 = vld [vmem:[%s3245_s1 + $0x9b8] sm:$0xff]  ;;  %v356_v29 = vld [vmem:[%s3245_s1 + $0x9b0] sm:$0xff] }
  0xbb   :  { %987 = vmatprep.subr.mxu1 %v261_v54  ;;  %917 = vmatpush2.msra.mxu0 %v132_v55  ;;  %v485_v28 = vld [vmem:[%s3245_s1 + $0xdb8] sm:$0xff]  ;;  %v484_v30 = vld [vmem:[%s3245_s1 + $0xdb0] sm:$0xff] }
  0xbc   :  { %988 = vmatpush2.msra.mxu1 %v260_v56  ;;  %918 = vmatprep.subr.mxu0 %v129_v57  ;;  %v353_v31 = vld [vmem:[%s3245_s1 + $0x998] sm:$0xff]  ;;  %v352_v33 = vld [vmem:[%s3245_s1 + $0x990] sm:$0xff] }
  0xbd   :  { %989 = vmatprep.subr.mxu1 %v257_v58  ;;  %919 = vmatpush2.msra.mxu0 %v128_v59  ;;  %v481_v32 = vld [vmem:[%s3245_s1 + $0xd98] sm:$0xff]  ;;  %v480_v34 = vld [vmem:[%s3245_s1 + $0xd90] sm:$0xff] }
  0xbe   :  { %990 = vmatpush2.msra.mxu1 %v256_v60  ;;  %920 = vmatprep.subr.mxu0 %v125_v61  ;;  %v349_v35 = vld [vmem:[%s3245_s1 + $0x978] sm:$0xff]  ;;  %v348_v37 = vld [vmem:[%s3245_s1 + $0x970] sm:$0xff] }
  0xbf   :  { %991 = vmatprep.subr.mxu1 %v253_v62  ;;  %921 = vmatpush2.msra.mxu0 %v124_v63  ;;  %v477_v36 = vld [vmem:[%s3245_s1 + $0xd78] sm:$0xff]  ;;  %v476_v38 = vld [vmem:[%s3245_s1 + $0xd70] sm:$0xff] }
  0xc0   :  { %992 = vmatpush2.msra.mxu1 %v252_v0  ;;  %922 = vmatprep.subr.mxu0 %v121_v1  ;;  %v345_v39 = vld [vmem:[%s3245_s1 + $0x958] sm:$0xff]  ;;  %v344_v41 = vld [vmem:[%s3245_s1 + $0x950] sm:$0xff] }
  0xc1   :  { %993 = vmatprep.subr.mxu1 %v249_v2  ;;  %923 = vmatpush2.msra.mxu0 %v120_v3  ;;  %v473_v40 = vld [vmem:[%s3245_s1 + $0xd58] sm:$0xff]  ;;  %v472_v42 = vld [vmem:[%s3245_s1 + $0xd50] sm:$0xff] }
  0xc2   :  { %994 = vmatpush2.msra.mxu1 %v248_v4  ;;  %924 = vmatprep.subr.mxu0 %v117_v5  ;;  %v341_v43 = vld [vmem:[%s3245_s1 + $0x938] sm:$0xff]  ;;  %v340_v45 = vld [vmem:[%s3245_s1 + $0x930] sm:$0xff] }
  0xc3   :  { %995 = vmatprep.subr.mxu1 %v245_v6  ;;  %925 = vmatpush2.msra.mxu0 %v116_v7  ;;  %v469_v44 = vld [vmem:[%s3245_s1 + $0xd38] sm:$0xff]  ;;  %v468_v46 = vld [vmem:[%s3245_s1 + $0xd30] sm:$0xff] }
  0xc4   :  { %996 = vmatpush2.msra.mxu1 %v244_v8  ;;  %926 = vmatprep.subr.mxu0 %v113_v9  ;;  %v337_v47 = vld [vmem:[%s3245_s1 + $0x918] sm:$0xff]  ;;  %v336_v49 = vld [vmem:[%s3245_s1 + $0x910] sm:$0xff] }
  0xc5   :  { %997 = vmatprep.subr.mxu1 %v241_v10  ;;  %927 = vmatpush2.msra.mxu0 %v112_v11  ;;  %v465_v48 = vld [vmem:[%s3245_s1 + $0xd18] sm:$0xff]  ;;  %v464_v50 = vld [vmem:[%s3245_s1 + $0xd10] sm:$0xff] }
  0xc6   :  { %928 = vmatprep.mubr.f32.mxu0 %v1515_v14  ;;  %998 = vmatpush2.msra.mxu1 %v240_v12  ;;  %v333_v51 = vld [vmem:[%s3245_s1 + $0x8f8] sm:$0xff]  ;;  %v332_v53 = vld [vmem:[%s3245_s1 + $0x8f0] sm:$0xff] }
  0xc7   :  { %929 = vmatmul.mubr.f32.vlgmr.msra.gmra.mxu0 %v1516_v17  ;;  %999 = vmatprep.mubr.f32.mxu1 %v1517_v20  ;;  %v461_v52 = vld [vmem:[%s3245_s1 + $0xcf8] sm:$0xff]  ;;  %v460_v54 = vld [vmem:[%s3245_s1 + $0xcf0] sm:$0xff] }
  0xc8   :  { %1006 = vmatprep.subr.mxu0 %v365_v13  ;;  %1077 = vmatprep.subr.mxu1 %v493_v15  ;;  %v329_v55 = vld [vmem:[%s3245_s1 + $0x8d8] sm:$0xff]  ;;  %v328_v57 = vld [vmem:[%s3245_s1 + $0x8d0] sm:$0xff] }
  0xc9   :  { %1000 = vmatmul.mubr.f32.vlgmr.msra.gmra.mxu1 %v1518_v24  ;;  %1007 = vmatpush1.msra.mxu0 %v364_v18  ;;  %v457_v56 = vld [vmem:[%s3245_s1 + $0xcd8] sm:$0xff]  ;;  %v456_v58 = vld [vmem:[%s3245_s1 + $0xcd0] sm:$0xff] }
  0xca   :  { %1078 = vmatpush1.msra.mxu1 %v492_v19  ;;  %1008 = vmatprep.subr.mxu0 %v361_v22  ;;  %v325_v59 = vld [vmem:[%s3245_s1 + $0x8b8] sm:$0xff]  ;;  %v324_v61 = vld [vmem:[%s3245_s1 + $0x8b0] sm:$0xff] }
  0xcb   :  { %1079 = vmatprep.subr.mxu1 %v489_v23  ;;  %1009 = vmatpush1.msra.mxu0 %v360_v25  ;;  %v453_v60 = vld [vmem:[%s3245_s1 + $0xcb8] sm:$0xff]  ;;  %v452_v62 = vld [vmem:[%s3245_s1 + $0xcb0] sm:$0xff] }
  0xcc   :  { %1080 = vmatpush1.msra.mxu1 %v488_v26  ;;  %1010 = vmatprep.subr.mxu0 %v357_v27  ;;  %v321_v63 = vld [vmem:[%s3245_s1 + $0x898] sm:$0xff]  ;;  %v320_v1 = vld [vmem:[%s3245_s1 + $0x890] sm:$0xff] }
  0xcd   :  { %1081 = vmatprep.subr.mxu1 %v485_v28  ;;  %1011 = vmatpush1.msra.mxu0 %v356_v29  ;;  %v449_v0 = vld [vmem:[%s3245_s1 + $0xc98] sm:$0xff]  ;;  %v448_v2 = vld [vmem:[%s3245_s1 + $0xc90] sm:$0xff] }
  0xce   :  { %1082 = vmatpush1.msra.mxu1 %v484_v30  ;;  %1012 = vmatprep.subr.mxu0 %v353_v31  ;;  %v317_v3 = vld [vmem:[%s3245_s1 + $0x878] sm:$0xff]  ;;  %v316_v5 = vld [vmem:[%s3245_s1 + $0x870] sm:$0xff] }
  0xcf   :  { %1083 = vmatprep.subr.mxu1 %v481_v32  ;;  %1013 = vmatpush1.msra.mxu0 %v352_v33  ;;  %v445_v4 = vld [vmem:[%s3245_s1 + $0xc78] sm:$0xff]  ;;  %v444_v6 = vld [vmem:[%s3245_s1 + $0xc70] sm:$0xff] }
  0xd0   :  { %1084 = vmatpush1.msra.mxu1 %v480_v34  ;;  %1014 = vmatprep.subr.mxu0 %v349_v35  ;;  %v313_v7 = vld [vmem:[%s3245_s1 + $0x858] sm:$0xff]  ;;  %v312_v9 = vld [vmem:[%s3245_s1 + $0x850] sm:$0xff] }
  0xd1   :  { %1085 = vmatprep.subr.mxu1 %v477_v36  ;;  %1015 = vmatpush1.msra.mxu0 %v348_v37  ;;  %v441_v8 = vld [vmem:[%s3245_s1 + $0xc58] sm:$0xff]  ;;  %v440_v10 = vld [vmem:[%s3245_s1 + $0xc50] sm:$0xff] }
  0xd2   :  { %1086 = vmatpush1.msra.mxu1 %v476_v38  ;;  %1016 = vmatprep.subr.mxu0 %v345_v39  ;;  %v309_v11 = vld [vmem:[%s3245_s1 + $0x838] sm:$0xff]  ;;  %v308_v13 = vld [vmem:[%s3245_s1 + $0x830] sm:$0xff] }
  0xd3   :  { %1087 = vmatprep.subr.mxu1 %v473_v40  ;;  %1017 = vmatpush1.msra.mxu0 %v344_v41  ;;  %v437_v12 = vld [vmem:[%s3245_s1 + $0xc38] sm:$0xff]  ;;  %v436_v14 = vld [vmem:[%s3245_s1 + $0xc30] sm:$0xff] }
  0xd4   :  { %1088 = vmatpush1.msra.mxu1 %v472_v42  ;;  %1018 = vmatprep.subr.mxu0 %v341_v43  ;;  %v305_v15 = vld [vmem:[%s3245_s1 + $0x818] sm:$0xff]  ;;  %v304_v18 = vld [vmem:[%s3245_s1 + $0x810] sm:$0xff] }
  0xd5   :  { %1089 = vmatprep.subr.mxu1 %v469_v44  ;;  %1019 = vmatpush1.msra.mxu0 %v340_v45  ;;  %v433_v17 = vld [vmem:[%s3245_s1 + $0xc18] sm:$0xff]  ;;  %v432_v19 = vld [vmem:[%s3245_s1 + $0xc10] sm:$0xff] }
  0xd6   :  { %1090 = vmatpush1.msra.mxu1 %v468_v46  ;;  %1020 = vmatprep.subr.mxu0 %v337_v47  ;;  %v429_v20 = vld [vmem:[%s3245_s1 + $0xbf8] sm:$0xff]  ;;  %v428_v23 = vld [vmem:[%s3245_s1 + $0xbf0] sm:$0xff] }
  0xd7   :  { %1091 = vmatprep.subr.mxu1 %v465_v48  ;;  %1021 = vmatpush1.msra.mxu0 %v336_v49  ;;  %v557_v22 = vld [vmem:[%s3245_s1 + $0xff8] sm:$0xff]  ;;  %v556_v24 = vld [vmem:[%s3245_s1 + $0xff0] sm:$0xff] }
  0xd8   :  { %1092 = vmatpush1.msra.mxu1 %v464_v50  ;;  %1022 = vmatprep.subr.mxu0 %v333_v51  ;;  %v425_v25 = vld [vmem:[%s3245_s1 + $0xbd8] sm:$0xff]  ;;  %v424_v27 = vld [vmem:[%s3245_s1 + $0xbd0] sm:$0xff] }
  0xd9   :  { %1093 = vmatprep.subr.mxu1 %v461_v52  ;;  %1023 = vmatpush1.msra.mxu0 %v332_v53  ;;  %v553_v26 = vld [vmem:[%s3245_s1 + $0xfd8] sm:$0xff]  ;;  %v552_v28 = vld [vmem:[%s3245_s1 + $0xfd0] sm:$0xff] }
  0xda   :  { %1094 = vmatpush1.msra.mxu1 %v460_v54  ;;  %1024 = vmatprep.subr.mxu0 %v329_v55  ;;  %v421_v29 = vld [vmem:[%s3245_s1 + $0xbb8] sm:$0xff]  ;;  %v420_v31 = vld [vmem:[%s3245_s1 + $0xbb0] sm:$0xff] }
  0xdb   :  { %1095 = vmatprep.subr.mxu1 %v457_v56  ;;  %1025 = vmatpush1.msra.mxu0 %v328_v57  ;;  %v549_v30 = vld [vmem:[%s3245_s1 + $0xfb8] sm:$0xff]  ;;  %v548_v32 = vld [vmem:[%s3245_s1 + $0xfb0] sm:$0xff] }
  0xdc   :  { %1096 = vmatpush1.msra.mxu1 %v456_v58  ;;  %1026 = vmatprep.subr.mxu0 %v325_v59  ;;  %v417_v33 = vld [vmem:[%s3245_s1 + $0xb98] sm:$0xff]  ;;  %v416_v35 = vld [vmem:[%s3245_s1 + $0xb90] sm:$0xff] }
  0xdd   :  { %1097 = vmatprep.subr.mxu1 %v453_v60  ;;  %1027 = vmatpush1.msra.mxu0 %v324_v61  ;;  %v545_v34 = vld [vmem:[%s3245_s1 + $0xf98] sm:$0xff]  ;;  %v544_v36 = vld [vmem:[%s3245_s1 + $0xf90] sm:$0xff] }
  0xde   :  { %1098 = vmatpush1.msra.mxu1 %v452_v62  ;;  %1028 = vmatprep.subr.mxu0 %v321_v63  ;;  %v413_v37 = vld [vmem:[%s3245_s1 + $0xb78] sm:$0xff]  ;;  %v412_v39 = vld [vmem:[%s3245_s1 + $0xb70] sm:$0xff] }
  0xdf   :  { %1099 = vmatprep.subr.mxu1 %v449_v0  ;;  %1029 = vmatpush1.msra.mxu0 %v320_v1  ;;  %v541_v38 = vld [vmem:[%s3245_s1 + $0xf78] sm:$0xff]  ;;  %v540_v40 = vld [vmem:[%s3245_s1 + $0xf70] sm:$0xff] }
  0xe0   :  { %1100 = vmatpush1.msra.mxu1 %v448_v2  ;;  %1030 = vmatprep.subr.mxu0 %v317_v3  ;;  %v409_v41 = vld [vmem:[%s3245_s1 + $0xb58] sm:$0xff]  ;;  %v408_v43 = vld [vmem:[%s3245_s1 + $0xb50] sm:$0xff] }
  0xe1   :  { %1101 = vmatprep.subr.mxu1 %v445_v4  ;;  %1031 = vmatpush1.msra.mxu0 %v316_v5  ;;  %v537_v42 = vld [vmem:[%s3245_s1 + $0xf58] sm:$0xff]  ;;  %v536_v44 = vld [vmem:[%s3245_s1 + $0xf50] sm:$0xff] }
  0xe2   :  { %1102 = vmatpush1.msra.mxu1 %v444_v6  ;;  %1032 = vmatprep.subr.mxu0 %v313_v7  ;;  %v405_v45 = vld [vmem:[%s3245_s1 + $0xb38] sm:$0xff]  ;;  %v404_v47 = vld [vmem:[%s3245_s1 + $0xb30] sm:$0xff] }
  0xe3   :  { %1103 = vmatprep.subr.mxu1 %v441_v8  ;;  %1033 = vmatpush1.msra.mxu0 %v312_v9  ;;  %v533_v46 = vld [vmem:[%s3245_s1 + $0xf38] sm:$0xff]  ;;  %v532_v48 = vld [vmem:[%s3245_s1 + $0xf30] sm:$0xff] }
  0xe4   :  { %1104 = vmatpush1.msra.mxu1 %v440_v10  ;;  %1034 = vmatprep.subr.mxu0 %v309_v11  ;;  %v401_v49 = vld [vmem:[%s3245_s1 + $0xb18] sm:$0xff]  ;;  %v400_v51 = vld [vmem:[%s3245_s1 + $0xb10] sm:$0xff] }
  0xe5   :  { %1105 = vmatprep.subr.mxu1 %v437_v12  ;;  %1035 = vmatpush1.msra.mxu0 %v308_v13  ;;  %v529_v50 = vld [vmem:[%s3245_s1 + $0xf18] sm:$0xff]  ;;  %v528_v52 = vld [vmem:[%s3245_s1 + $0xf10] sm:$0xff] }
  0xe6   :  { %1106 = vmatpush1.msra.mxu1 %v436_v14  ;;  %1036 = vmatprep.subr.mxu0 %v305_v15  ;;  %v397_v53 = vld [vmem:[%s3245_s1 + $0xaf8] sm:$0xff]  ;;  %v396_v55 = vld [vmem:[%s3245_s1 + $0xaf0] sm:$0xff] }
  0xe7   :  { %1107 = vmatprep.subr.mxu1 %v433_v17  ;;  %1037 = vmatpush1.msra.mxu0 %v304_v18  ;;  %v525_v54 = vld [vmem:[%s3245_s1 + $0xef8] sm:$0xff]  ;;  %v524_v56 = vld [vmem:[%s3245_s1 + $0xef0] sm:$0xff] }
  0xe8   :  { %1108 = vmatpush1.msra.mxu1 %v432_v19  ;;  %1038 = vmatprep.subr.mxu0 %v429_v20  ;;  %v393_v57 = vld [vmem:[%s3245_s1 + $0xad8] sm:$0xff]  ;;  %v392_v59 = vld [vmem:[%s3245_s1 + $0xad0] sm:$0xff] }
  0xe9   :  { %1109 = vmatprep.subr.mxu1 %v557_v22  ;;  %1039 = vmatpush2.msra.mxu0 %v428_v23  ;;  %v521_v58 = vld [vmem:[%s3245_s1 + $0xed8] sm:$0xff]  ;;  %v520_v60 = vld [vmem:[%s3245_s1 + $0xed0] sm:$0xff]  ;;  %v1519_v23 = vld [vmem:[%s3246_s0 + $0x28] sm:$0xff] }
  0xea   :  { %1110 = vmatpush2.msra.mxu1 %v556_v24  ;;  %1040 = vmatprep.subr.mxu0 %v425_v25  ;;  %v389_v61 = vld [vmem:[%s3245_s1 + $0xab8] sm:$0xff]  ;;  %v388_v63 = vld [vmem:[%s3245_s1 + $0xab0] sm:$0xff]  ;;  %v1521_v25 = vld [vmem:[%s3246_s0 + $0x20] sm:$0xff] }
  0xeb   :  { %1111 = vmatprep.subr.mxu1 %v553_v26  ;;  %1041 = vmatpush2.msra.mxu0 %v424_v27  ;;  %v517_v62 = vld [vmem:[%s3245_s1 + $0xeb8] sm:$0xff]  ;;  %v516_v0 = vld [vmem:[%s3245_s1 + $0xeb0] sm:$0xff]  ;;  %v3159_v27 = vshrl.u32 %v32_v16, 7 }
  0xec   :  { %1112 = vmatpush2.msra.mxu1 %v552_v28  ;;  %1042 = vmatprep.subr.mxu0 %v421_v29  ;;  %v385_v1 = vld [vmem:[%s3245_s1 + $0xa98] sm:$0xff]  ;;  %v384_v3 = vld [vmem:[%s3245_s1 + $0xa90] sm:$0xff]  ;;  %v558_v29 = vld [vmem:[%s3247_s2] sm:$0xf] }
  0xed   :  { %1113 = vmatprep.subr.mxu1 %v549_v30  ;;  %1043 = vmatpush2.msra.mxu0 %v420_v31  ;;  %v513_v2 = vld [vmem:[%s3245_s1 + $0xe98] sm:$0xff]  ;;  %v512_v4 = vld [vmem:[%s3245_s1 + $0xe90] sm:$0xff]  ;;  %v3162_v28 = vsub.s32 0, %v3159_v27  ;;  %v3168_v30 = vsub.s32 1, %v3159_v27 }
  0xee   :  { %1114 = vmatpush2.msra.mxu1 %v548_v32  ;;  %1044 = vmatprep.subr.mxu0 %v417_v33  ;;  %v381_v5 = vld [vmem:[%s3245_s1 + $0xa78] sm:$0xff]  ;;  %v380_v7 = vld [vmem:[%s3245_s1 + $0xa70] sm:$0xff] }
  0xef   :  { %1115 = vmatprep.subr.mxu1 %v545_v34  ;;  %1045 = vmatpush2.msra.mxu0 %v416_v35  ;;  %v509_v6 = vld [vmem:[%s3245_s1 + $0xe78] sm:$0xff]  ;;  %v508_v8 = vld [vmem:[%s3245_s1 + $0xe70] sm:$0xff]  ;;  %v563_v32 = vrot.slane %v558_v29, %v3162_v28  ;;  %v567_v33 = vrot.slane %v558_v29, %v3168_v30 }
  0xf0   :  { %1116 = vmatpush2.msra.mxu1 %v544_v36  ;;  %1046 = vmatprep.subr.mxu0 %v413_v37  ;;  %v377_v9 = vld [vmem:[%s3245_s1 + $0xa58] sm:$0xff]  ;;  %v376_v11 = vld [vmem:[%s3245_s1 + $0xa50] sm:$0xff] }
  0xf1   :  { %1117 = vmatprep.subr.mxu1 %v541_v38  ;;  %1047 = vmatpush2.msra.mxu0 %v412_v39  ;;  %v505_v10 = vld [vmem:[%s3245_s1 + $0xe58] sm:$0xff]  ;;  %v504_v12 = vld [vmem:[%s3245_s1 + $0xe50] sm:$0xff] }
  0xf2   :  { %1118 = vmatpush2.msra.mxu1 %v540_v40  ;;  %1048 = vmatprep.subr.mxu0 %v409_v41  ;;  %v373_v13 = vld [vmem:[%s3245_s1 + $0xa38] sm:$0xff]  ;;  %v372_v15 = vld [vmem:[%s3245_s1 + $0xa30] sm:$0xff] }
  0xf3   :  { %1119 = vmatprep.subr.mxu1 %v537_v42  ;;  %1049 = vmatpush2.msra.mxu0 %v408_v43  ;;  %v501_v14 = vld [vmem:[%s3245_s1 + $0xe38] sm:$0xff]  ;;  %v500_v17 = vld [vmem:[%s3245_s1 + $0xe30] sm:$0xff] }
  0xf4   :  { %1120 = vmatpush2.msra.mxu1 %v536_v44  ;;  %1050 = vmatprep.subr.mxu0 %v405_v45  ;;  %v369_v18 = vld [vmem:[%s3245_s1 + $0xa18] sm:$0xff]  ;;  %v368_v20 = vld [vmem:[%s3245_s1 + $0xa10] sm:$0xff] }
  0xf5   :  { %1121 = vmatprep.subr.mxu1 %v533_v46  ;;  %1051 = vmatpush2.msra.mxu0 %v404_v47  ;;  %v497_v19 = vld [vmem:[%s3245_s1 + $0xe18] sm:$0xff]  ;;  %v496_v22 = vld [vmem:[%s3245_s1 + $0xe10] sm:$0xff] }
  0xf6   :  { %1122 = vmatpush2.msra.mxu1 %v532_v48  ;;  %1052 = vmatprep.subr.mxu0 %v401_v49  ;;  %v1520_v24 = vld [vmem:[%s3246_s0 + $0x38] sm:$0xff]  ;;  %v1522_v26 = vld [vmem:[%s3246_s0 + $0x30] sm:$0xff] }
  0xf7   :  { %1123 = vmatprep.subr.mxu1 %v529_v50  ;;  %1053 = vmatpush2.msra.mxu0 %v400_v51 }
  0xf8   :  { %1124 = vmatpush2.msra.mxu1 %v528_v52  ;;  %1054 = vmatprep.subr.mxu0 %v397_v53 }
  0xf9   :  { %1125 = vmatprep.subr.mxu1 %v525_v54  ;;  %1055 = vmatpush2.msra.mxu0 %v396_v55 }
  0xfa   :  { %1126 = vmatpush2.msra.mxu1 %v524_v56  ;;  %1056 = vmatprep.subr.mxu0 %v393_v57 }
  0xfb   :  { %1127 = vmatprep.subr.mxu1 %v521_v58  ;;  %1057 = vmatpush2.msra.mxu0 %v392_v59 }
  0xfc   :  { %1128 = vmatpush2.msra.mxu1 %v520_v60  ;;  %1058 = vmatprep.subr.mxu0 %v389_v61 }
  0xfd   :  { %1129 = vmatprep.subr.mxu1 %v517_v62  ;;  %1059 = vmatpush2.msra.mxu0 %v388_v63 }
  0xfe   :  { %1130 = vmatpush2.msra.mxu1 %v516_v0  ;;  %1060 = vmatprep.subr.mxu0 %v385_v1 }
  0xff   :  { %1131 = vmatprep.subr.mxu1 %v513_v2  ;;  %1061 = vmatpush2.msra.mxu0 %v384_v3 }
 0x100   :  { %1132 = vmatpush2.msra.mxu1 %v512_v4  ;;  %1062 = vmatprep.subr.mxu0 %v381_v5 }
 0x101   :  { %1133 = vmatprep.subr.mxu1 %v509_v6  ;;  %1063 = vmatpush2.msra.mxu0 %v380_v7 }
 0x102   :  { %1134 = vmatpush2.msra.mxu1 %v508_v8  ;;  %1064 = vmatprep.subr.mxu0 %v377_v9 }
 0x103   :  { %1135 = vmatprep.subr.mxu1 %v505_v10  ;;  %1065 = vmatpush2.msra.mxu0 %v376_v11  ;;  %v646_v31 = vpop.f32.mrf.mxu0 }
 0x104   :  { %1136 = vmatpush2.msra.mxu1 %v504_v12  ;;  %1066 = vmatprep.subr.mxu0 %v373_v13  ;;  %v647_v36 = vadd.f32 %v646_v31, %v563_v32  ;;  %v12_v12 = vstv %s3248_s6  ;;  %v3185_v13 = vsub.s32 2, %v3159_v27 }
 0x105   :  { %1137 = vmatprep.subr.mxu1 %v501_v14  ;;  %1067 = vmatpush2.msra.mxu0 %v372_v15  ;;  %v717_v34 = vpop.f32.mrf.mxu1  ;;  %v648_v35 = vpop.f32.mrf.mxu0  ;;  %13 = vst [vmem:[#allocation5] sm:$0x1] %v12_v12  ;;  %v3188_v14 = vsub.s32 3, %v3159_v27  ;;  %v1158_v12 = vld [vmem:[#allocation3] sm:$0xf] }
 0x106   :  { %1138 = vmatpush2.msra.mxu1 %v500_v17  ;;  %1068 = vmatprep.subr.mxu0 %v369_v18  ;;  %v649_v16 = vadd.f32 %v648_v35, %v567_v33  ;;  %v718_v38 = vadd.f32 %v717_v34, %v647_v36  ;;  %v571_v17 = vrot.slane %v558_v29, %v3185_v13 }
 0x107   :  { %1139 = vmatprep.subr.mxu1 %v497_v19  ;;  %1069 = vmatpush2.msra.mxu0 %v368_v20  ;;  %v719_v37 = vpop.f32.mrf.mxu1  ;;  %v575_v18 = vrot.slane %v558_v29, %v3188_v14 }
 0x108   :  { %1070 = vmatprep.mubr.f32.mxu0 %v1519_v23  ;;  %1140 = vmatpush2.msra.mxu1 %v496_v22  ;;  %v720_v40 = vadd.f32 %v719_v37, %v649_v16 }
 0x109   :  { %1141 = vmatprep.mubr.f32.mxu1 %v1520_v24  ;;  %1071 = vmatmul.mubr.f32.vlgmr.msra.gmra.mxu0 %v1521_v25 }
 0x10a   :  { %1142 = vmatmul.mubr.f32.vlgmr.msra.gmra.mxu1 %v1522_v26 }
 0x145   :  { %v788_v39 = vpop.f32.mrf.mxu0 }
 0x146   :  { %v789_v41 = vadd.f32 %v788_v39, %v718_v38 }
 0x147   :  { %v859_v42 = vpop.f32.mrf.mxu1  ;;  %v790_v43 = vpop.f32.mrf.mxu0 }
 0x148   :  { %v860_v44 = vadd.f32 %v859_v42, %v789_v41  ;;  %v791_v45 = vadd.f32 %v790_v43, %v720_v40  ;;  %v1524_v43 = vmov 1966171168  }
 0x149   :  { %v861_v46 = vpop.f32.mrf.mxu1 }
 0x14a   :  { %1154 = vst [vmem:[#allocation2 + $0x10] sm:$0xff] %v860_v44  ;;  %v1159_v47 = vrot.slane %v860_v44, 4  ;;  %v1219_v48 = vmul.f32 %v860_v44, %v860_v44  ;;  %v862_v49 = vadd.f32 %v861_v46, %v791_v45 }
 0x14c   :  { %v1160_v50 = vadd.f32 %v1159_v47, %v860_v44  ;;  %v1223_v51 = vrot.slane %v1219_v48, 4  ;;  %1155 = vst [vmem:[#allocation2] sm:$0xff] %v862_v49  ;;  %v1165_v52 = vrot.slane %v862_v49, 4  ;;  %v1220_v53 = vmul.f32 %v862_v49, %v862_v49 }
 0x14d   :  { %v1190_v44 = vunpack.c.l.s4 %v1524_v43 }
 0x14e   :  { %v1161_v54 = vrot.slane %v1160_v50, 2  ;;  %v1224_v55 = vadd.f32 %v1223_v51, %v1219_v48  ;;  %v1166_v56 = vadd.f32 %v1165_v52, %v862_v49  ;;  %v1229_v57 = vrot.slane %v1220_v53, 4 }
 0x150   :  { %v1162_v58 = vadd.f32 %v1161_v54, %v1160_v50  ;;  %v1225_v59 = vrot.slane %v1224_v55, 2  ;;  %v1167_v60 = vrot.slane %v1166_v56, 2  ;;  %v1230_v61 = vadd.f32 %v1229_v57, %v1220_v53 }
 0x151   :  { %v1191_v53 = vunpack.c.0.s8 %v1190_v44 }
 0x152   :  { %v1163_v62 = vrot.slane %v1162_v58, 1  ;;  %v1226_v63 = vadd.f32 %v1225_v59, %v1224_v55  ;;  %v1168_v0 = vadd.f32 %v1167_v60, %v1166_v56  ;;  %v1231_v1 = vrot.slane %v1230_v61, 2 }
 0x154   :  { %v1227_v2 = vrot.slane %v1226_v63, 1  ;;  %v1169_v3 = vrot.slane %v1168_v0, 1  ;;  %v1232_v4 = vadd.f32 %v1231_v1, %v1230_v61  ;;  %v3172_v5 = vadd.f32 %v1163_v62, %v1162_v58 }
 0x155   :  { %v1194_v61 = vsub.s32 %v1191_v53, %v3159_v27 }
 0x156   :  { %v3174_v6 = vadd.f32 %v1169_v3, %v1168_v0  ;;  %v1233_v7 = vrot.slane %v1232_v4, 1  ;;  %v3176_v8 = vadd.f32 %v1227_v2, %v1226_v63 }
 0x158   :  { %v1187_v9 = vcombine.low %v3172_v5, %v3174_v6  ;;  %v1234_v10 = vadd.f32 %v1233_v7, %v1232_v4 }
 0x15a   :  { %v1251_v11 = vcombine.low %v3176_v8, %v1234_v10  ;;  %v1195_v4 = vrot.slane %v1187_v9, %v1194_v61 }
 0x15c   :  { %v1259_v7 = vrot.slane %v1251_v11, %v1194_v61 }
 0x187   :  { %v930_v15 = vpop.f32.mrf.mxu0 }
 0x188   :  { %v931_v22 = vadd.f32 %v930_v15, %v571_v17 }
 0x189   :  { %v1001_v19 = vpop.f32.mrf.mxu1  ;;  %v932_v20 = vpop.f32.mrf.mxu0 }
 0x18a   :  { %v933_v23 = vadd.f32 %v932_v20, %v575_v18  ;;  %v1002_v25 = vadd.f32 %v1001_v19, %v931_v22  ;;  %v1218_v18 = vld [vmem:[#allocation4] sm:$0xf] }
 0x18b   :  { %v1003_v24 = vpop.f32.mrf.mxu1 }
 0x18c   :  { %v1004_v32 = vadd.f32 %v1003_v24, %v933_v23 }
 0x1c9   :  { %v1072_v26 = vpop.f32.mrf.mxu0 }
 0x1ca   :  { %v1143_v31 = vpop.f32.mrf.mxu1  ;;  %v1073_v33 = vadd.f32 %v1072_v26, %v1002_v25 }
 0x1cb   :  { %v1074_v34 = vpop.f32.mrf.mxu0 }
 0x1cc   :  { %v1144_v35 = vadd.f32 %v1143_v31, %v1073_v33  ;;  %v1075_v36 = vadd.f32 %v1074_v34, %v1004_v32  ;;  %v1145_v16 = vpop.f32.mrf.mxu1  ;;  %v1287_v31 = vld [vmem:[%s3249_s3] sm:$0xf] }
 0x1cd   :  { %v1291_v34 = vld [vmem:[%s3250_s4] sm:$0xf] }
 0x1ce   :  { %1156 = vst [vmem:[#allocation2 + $0x18] sm:$0xff] %v1144_v35  ;;  %v1171_v37 = vrot.slane %v1144_v35, 4  ;;  %v1221_v38 = vmul.f32 %v1144_v35, %v1144_v35  ;;  %v1146_v39 = vadd.f32 %v1145_v16, %v1075_v36 }
 0x1d0   :  { %v1172_v40 = vadd.f32 %v1171_v37, %v1144_v35  ;;  %v1235_v29 = vrot.slane %v1221_v38, 4  ;;  %1157 = vst [vmem:[#allocation2 + $0x8] sm:$0xff] %v1146_v39  ;;  %v1177_v41 = vrot.slane %v1146_v39, 4  ;;  %v1222_v42 = vmul.f32 %v1146_v39, %v1146_v39  ;;  %v1294_v35 = vld [vmem:[#allocation2 + $0x10] sm:$0x3] }
 0x1d2   :  { %v1173_v45 = vrot.slane %v1172_v40, 2  ;;  %v1236_v46 = vadd.f32 %v1235_v29, %v1221_v38  ;;  %v1178_v47 = vadd.f32 %v1177_v41, %v1146_v39  ;;  %v1241_v48 = vrot.slane %v1222_v42, 4  ;;  %v1295_v38 = vld [vmem:[#allocation2] sm:$0x3]  ;;  %v1356_v29 = vld [vmem:[#allocation2 + $0x10] sm:$0xc] }
 0x1d4   :  { %v1174_v49 = vadd.f32 %v1173_v45, %v1172_v40  ;;  %v1237_v50 = vrot.slane %v1236_v46, 2  ;;  %v1179_v51 = vrot.slane %v1178_v47, 2  ;;  %v1242_v52 = vadd.f32 %v1241_v48, %v1222_v42 }
 0x1d5   :  { %v1296_v39 = vld [vmem:[#allocation2 + $0x18] sm:$0x3] }
 0x1d6   :  { %v1175_v54 = vrot.slane %v1174_v49, 1  ;;  %v1238_v55 = vadd.f32 %v1237_v50, %v1236_v46  ;;  %v1180_v56 = vadd.f32 %v1179_v51, %v1178_v47  ;;  %v1243_v57 = vrot.slane %v1242_v52, 2  ;;  %v1357_v46 = vld [vmem:[#allocation2] sm:$0xc]  ;;  %v1358_v47 = vld [vmem:[#allocation2 + $0x18] sm:$0xc] }
 0x1d7   :  { %v1297_v42 = vld [vmem:[#allocation2 + $0x8] sm:$0x3] }
 0x1d8   :  { %v1239_v58 = vrot.slane %v1238_v55, 1  ;;  %v1181_v59 = vrot.slane %v1180_v56, 1  ;;  %v1244_v60 = vadd.f32 %v1243_v57, %v1242_v52  ;;  %v1176_v62 = vadd.f32 %v1175_v54, %v1174_v49  ;;  %v1388_v52 = vld [vmem:[#allocation2 + $0x10] sm:$0x30]  ;;  %v1359_v57 = vld [vmem:[#allocation2 + $0x8] sm:$0xc] }
 0x1da   :  { %v1182_v63 = vadd.f32 %v1181_v59, %v1180_v56  ;;  %v1245_v0 = vrot.slane %v1244_v60, 1  ;;  %v1240_v1 = vadd.f32 %v1239_v58, %v1238_v55  ;;  %v1389_v58 = vld [vmem:[#allocation2] sm:$0x30]  ;;  %v1390_v59 = vld [vmem:[#allocation2 + $0x18] sm:$0x30] }
 0x1dc   :  { %v1188_v2 = vcombine.low %v1176_v62, %v1182_v63  ;;  %v1246_v3 = vadd.f32 %v1245_v0, %v1244_v60 }
 0x1de   :  { %v1202_v5 = vrot.slane %v1188_v2, %v1194_v61  ;;  %v1252_v6 = vcombine.low %v1240_v1, %v1246_v3 }
 0x1e0   :  { %v1203_v8 = vcombine.low %v1195_v4, %v1202_v5  ;;  %v1266_v10 = vrot.slane %v1252_v6, %v1194_v61 }
 0x1e2   :  { %v1210_v15 = vrot.slane %v1203_v8, %v1194_v61  ;;  %v1267_v17 = vcombine.low %v1259_v7, %v1266_v10 }
 0x1e4   :  { %v1212_v19 = vadd.f32 %v1210_v15, %v1158_v12  ;;  %v1274_v20 = vrot.slane %v1267_v17, %v1194_v61 }
 0x1e6   :  { %1217 = vst.msk [vmem:[#allocation3] sm:$0xf] %vm2394_vm0, %v1212_v19  ;;  %v1276_v27 = vadd.f32 %v1274_v20, %v1218_v18 }
 0x1e8   :  { %1277 = vst.msk [vmem:[#allocation4] sm:$0xf] %vm2394_vm0, %v1276_v27 }
 0x1ed   :  { %v1281_v22 = vld [vmem:[#allocation3] sm:$0xf] }
 0x1ee   :  { %v1282_v9 = vmul.f32 0.125, %v1281_v22 }
 0x1ef   :  { %v1283_v23 = vld [vmem:[#allocation4] sm:$0xf] }
 0x1f0   :  { %v1284_v24 = vmul.f32 0.125, %v1283_v23  ;;  %v1285_v11 = vmul.f32 %v1282_v9, %v1282_v9 }
 0x1f2   :  { %v1286_v25 = vsub.f32 %v1284_v24, %v1285_v11 }
 0x1f4   :  { %v1288_v26 = vadd.f32 1e-05, %v1286_v25 }
 0x1f6   :  { %1511 = vrsqrt.f32 %v1288_v26 }
 0x203   :  { %v1512_v32 = vpop.eup %1511 }
 0x204   :  { %v1290_v33 = vmul.f32 %v1512_v32, %v1287_v31  ;;  %v1391_v31 = vld [vmem:[#allocation2 + $0x8] sm:$0x30] }
 0x206   :  { %v1292_v21 = vmul.f32 %v1290_v33, %v1282_v9  ;;  %v3204_v36 = vrot.slane %v1290_v33, %v3162_v28  ;;  %v3207_v16 = vrot.slane %v1290_v33, %v3168_v30  ;;  %v3210_v37 = vrot.slane %v1290_v33, %v3185_v13 }
 0x207   :  { %v3213_v40 = vrot.slane %v1290_v33, %v3188_v14 }
 0x208   :  { %v1293_v41 = vsub.f32 %v1291_v34, %v1292_v21  ;;  %v1319_v43 = vmul.f32 %v3204_v36, %v1294_v35  ;;  %v1320_v44 = vmul.f32 %v3207_v16, %v1295_v38  ;;  %v1321_v45 = vmul.f32 %v3210_v37, %v1296_v39 }
 0x209   :  { %v1322_v48 = vmul.f32 %v3213_v40, %v1297_v42  ;;  %v1360_v49 = vmul.f32 %v1356_v29, %v3204_v36  ;;  %v1361_v50 = vmul.f32 %v1357_v46, %v3207_v16  ;;  %v1362_v51 = vmul.f32 %v1358_v47, %v3210_v37  ;;  %v1421_v42 = vld [vmem:[#allocation2] sm:$0xc0] }
 0x20a   :  { %v1327_v53 = vrot.slane %v1293_v41, %v3162_v28  ;;  %v1331_v54 = vrot.slane %v1293_v41, %v3168_v30  ;;  %v1335_v55 = vrot.slane %v1293_v41, %v3185_v13  ;;  %v1339_v56 = vrot.slane %v1293_v41, %v3188_v14  ;;  %v1420_v41 = vld [vmem:[#allocation2 + $0x10] sm:$0xc0] }
 0x20b   :  { %v1363_v60 = vmul.f32 %v1359_v57, %v3213_v40  ;;  %v1392_v61 = vmul.f32 %v1388_v52, %v3204_v36  ;;  %v1393_v62 = vmul.f32 %v1389_v58, %v3207_v16  ;;  %v1394_v63 = vmul.f32 %v1390_v59, %v3210_v37 }
 0x20c   :  { %v1344_v0 = vadd.f32 %v1327_v53, %v1319_v43  ;;  %v1345_v1 = vadd.f32 %v1331_v54, %v1320_v44  ;;  %v1346_v2 = vadd.f32 %v1335_v55, %v1321_v45  ;;  %v1347_v3 = vadd.f32 %v1339_v56, %v1322_v48  ;;  %v1422_v43 = vld [vmem:[#allocation2 + $0x18] sm:$0xc0]  ;;  %v1423_v48 = vld [vmem:[#allocation2 + $0x8] sm:$0xc0] }
 0x20d   :  { %v1364_v4 = vadd.f32 %v1360_v49, %v1327_v53  ;;  %v1365_v5 = vadd.f32 %v1361_v50, %v1331_v54  ;;  %v1366_v6 = vadd.f32 %v1362_v51, %v1335_v55  ;;  %v1367_v7 = vadd.f32 %v1363_v60, %v1339_v56 }
 0x20e   :  { %v1348_v8 = vmax.f32 %v1344_v0, 0.0  ;;  %v1349_v10 = vmax.f32 %v1345_v1, 0.0  ;;  %v1350_v12 = vmax.f32 %v1346_v2, 0.0  ;;  %v1351_v15 = vmax.f32 %v1347_v3, 0.0  ;;  %v1452_v1 = vld [vmem:[%s3251_s5] sm:$0xf] }
 0x20f   :  { %v1368_v17 = vmax.f32 %v1364_v4, 0.0  ;;  %v1369_v18 = vmax.f32 %v1365_v5, 0.0  ;;  %v1370_v19 = vmax.f32 %v1366_v6, 0.0  ;;  %v1371_v20 = vmax.f32 %v1367_v7, 0.0 }
 0x210   :  { %v1352_v27 = vmax.f32 %v1348_v8, 0.0  ;;  %v1353_v22 = vmax.f32 %v1349_v10, 0.0  ;;  %v1354_v9 = vmax.f32 %v1350_v12, 0.0  ;;  %v1355_v23 = vmax.f32 %v1351_v15, 0.0 }
 0x211   :  { %v1376_v24 = vrot.slane %v1368_v17, 2  ;;  %v1377_v11 = vrot.slane %v1369_v18, 2  ;;  %v1378_v25 = vrot.slane %v1370_v19, 2  ;;  %v1379_v26 = vrot.slane %v1371_v20, 2 }
 0x212   :  { %v1395_v32 = vmul.f32 %v1391_v31, %v3213_v40  ;;  %v1396_v33 = vadd.f32 %v1392_v61, %v1327_v53  ;;  %v1397_v34 = vadd.f32 %v1393_v62, %v1331_v54  ;;  %v1398_v21 = vadd.f32 %v1394_v63, %v1335_v55 }
 0x213   :  { %v1384_v35 = vmax.f32 %v1352_v27, %v1376_v24  ;;  %v1385_v38 = vmax.f32 %v1353_v22, %v1377_v11  ;;  %v1386_v39 = vmax.f32 %v1354_v9, %v1378_v25  ;;  %v1387_v29 = vmax.f32 %v1355_v23, %v1379_v26  ;;  %v1508_v26 = vld [vmem:[#allocation5] ss:$0 sm:$0xff] }
 0x214   :  { %v1399_v44 = vadd.f32 %v1395_v32, %v1339_v56  ;;  %v1400_v45 = vmax.f32 %v1396_v33, 0.0  ;;  %v1401_v46 = vmax.f32 %v1397_v34, 0.0  ;;  %v1402_v47 = vmax.f32 %v1398_v21, 0.0 }
 0x215   :  { %v1424_v49 = vmul.f32 %v1420_v41, %v3204_v36  ;;  %v1425_v50 = vmul.f32 %v1421_v42, %v3207_v16  ;;  %v1426_v51 = vmul.f32 %v1422_v43, %v3210_v37  ;;  %v1427_v52 = vmul.f32 %v1423_v48, %v3213_v40 }
 0x216   :  { %v1403_v57 = vmax.f32 %v1399_v44, 0.0  ;;  %v1408_v58 = vrot.slane %v1400_v45, 4  ;;  %v1409_v59 = vrot.slane %v1401_v46, 4  ;;  %v1410_v60 = vrot.slane %v1402_v47, 4 }
 0x217   :  { %v1428_v61 = vadd.f32 %v1424_v49, %v1327_v53  ;;  %v1429_v62 = vadd.f32 %v1425_v50, %v1331_v54  ;;  %v1430_v63 = vadd.f32 %v1426_v51, %v1335_v55  ;;  %v1431_v0 = vadd.f32 %v1427_v52, %v1339_v56 }
 0x218   :  { %v1411_v2 = vrot.slane %v1403_v57, 4  ;;  %v1416_v36 = vmax.f32 %v1384_v35, %v1408_v58  ;;  %v1417_v3 = vmax.f32 %v1385_v38, %v1409_v59  ;;  %v1418_v16 = vmax.f32 %v1386_v39, %v1410_v60 }
 0x219   :  { %v1432_v4 = vmax.f32 %v1428_v61, 0.0  ;;  %v1433_v37 = vmax.f32 %v1429_v62, 0.0  ;;  %v1434_v5 = vmax.f32 %v1430_v63, 0.0  ;;  %v1435_v40 = vmax.f32 %v1431_v0, 0.0 }
 0x21a   :  { %v1419_v6 = vmax.f32 %v1387_v29, %v1411_v2  ;;  %v1457_v7 = vrot.slane %v1452_v1, %v3162_v28  ;;  %v1461_v53 = vrot.slane %v1452_v1, %v3168_v30  ;;  %v1465_v54 = vrot.slane %v1452_v1, %v3185_v13 }
 0x21b   :  { %v1440_v55 = vrot.slane %v1432_v4, 6  ;;  %v1441_v56 = vrot.slane %v1433_v37, 6  ;;  %v1442_v8 = vrot.slane %v1434_v5, 6  ;;  %v1443_v10 = vrot.slane %v1435_v40, 6 }
 0x21c   :  { %v1469_v12 = vrot.slane %v1452_v1, %v3188_v14 }
 0x21d   :  { %v1448_v15 = vmax.f32 %v1416_v36, %v1440_v55  ;;  %v1449_v17 = vmax.f32 %v1417_v3, %v1441_v56  ;;  %v1450_v18 = vmax.f32 %v1418_v16, %v1442_v8  ;;  %v1451_v19 = vmax.f32 %v1419_v6, %v1443_v10 }
 0x21f   :  { %v1474_v20 = vmul.f32 %v1457_v7, %v1448_v15  ;;  %v1475_v27 = vmul.f32 %v1461_v53, %v1449_v17  ;;  %v1476_v22 = vmul.f32 %v1465_v54, %v1450_v18  ;;  %v1477_v9 = vmul.f32 %v1469_v12, %v1451_v19 }
 0x221   :  { %v1479_v28 = vsel %vm1478_vm1, %v1474_v20, 0.0  ;;  %v1480_v23 = vsel %vm1478_vm1, %v1475_v27, 0.0  ;;  %v1482_v24 = vsel %vm1478_vm1, %v1476_v22, 0.0  ;;  %v1484_v11 = vsel %vm1478_vm1, %v1477_v9, 0.0 }
 0x222   :  { %v1481_v30 = vadd.f32 %v1480_v23, %v1479_v28 }
 0x224   :  { %v1483_v13 = vadd.f32 %v1482_v24, %v1481_v30 }
 0x226   :  { %v1485_v25 = vadd.f32 %v1484_v11, %v1483_v13 }
 0x228   :  { %1486 = vadd.xlane.f32.xlu0 %v1485_v25 }
 0x2b1   :  { %v1487_v31 = vpop.xlane.xlu0 %1486 }
 0x2b2   :  { %v1495_v14 = vadd.f32 %v1508_v26, %v1487_v31 }
 0x2b4   :  { %v1496_v32 = vmul.f32 0.5, %v1495_v14 }
 0x2b6   :  { %1513 = vtanh.f32 %v1496_v32 }
 0x2c3   :  { %v1514_v33 = vpop.eup %1513 }
 0x2c4   :  { %v1498_v34 = vadd.f32 1.0, %v1514_v33 }
 0x2c6   :  { %v1499_v21 = vmul.f32 0.5, %v1498_v34 }
 0x2c8   :  { %1501 = vst.msk [vmem:[%s3252_s7] sm:$0x3] %vm1500_vm2, %v1499_v21 }

// kernel: discriminator3_forward.4
= control target key start
LH: loop header
LB: loop body
LE: loop exit
PB: predicated region body
PF: predicated region fallthrough
CT: control target
= control target key end

     0   :  { %s6199_s1 = inlined_call_operand.vmem [shape: f32[1152,256], index: 1, kind: input, shape index: {}]   ;;  %s6200_s0 = inlined_call_operand.vmem [shape: f32[288,1152], index: 0, kind: input, shape index: {}]   ;;  %s6201_s2 = inlined_call_operand.vmem [shape: f32[1,256], index: 2, kind: input, shape index: {}]   ;;  %s6202_s3 = inlined_call_operand.vmem [shape: f32[1,256], index: 3, kind: input, shape index: {}]   ;;  %s6203_s4 = inlined_call_operand.vmem [shape: f32[1,256], index: 4, kind: input, shape index: {}]   ;;  %s6204_s5 = inlined_call_operand.vmem [shape: f32[32,256], index: 5, kind: output, shape index: {}]  }
   0x1   :  { %v385_v0 = vld [vmem:[%s6199_s1 + $0xf8] sm:$0xff]  ;;  %v384_v1 = vld [vmem:[%s6199_s1 + $0xf0] sm:$0xff]  ;;  %v383_v2 = vld [vmem:[%s6199_s1 + $0xe8] sm:$0xff] }
   0x2   :  { %2831 = vmatprep.subr.mxu1 %v385_v0  ;;  %654 = vmatprep.subr.mxu0 %v385_v0  ;;  %v382_v3 = vld [vmem:[%s6199_s1 + $0xe0] sm:$0xff]  ;;  %v381_v4 = vld [vmem:[%s6199_s1 + $0xd8] sm:$0xff]  ;;  %v380_v5 = vld [vmem:[%s6199_s1 + $0xd0] sm:$0xff] }
   0x3   :  { %2863 = vmatpush1.msra.mxu1 %v384_v1  ;;  %655 = vmatpush1.msra.mxu0 %v384_v1  ;;  %v379_v6 = vld [vmem:[%s6199_s1 + $0xc8] sm:$0xff]  ;;  %v378_v7 = vld [vmem:[%s6199_s1 + $0xc0] sm:$0xff]  ;;  %v377_v8 = vld [vmem:[%s6199_s1 + $0xb8] sm:$0xff] }
   0x4   :  { %2832 = vmatprep.subr.mxu1 %v383_v2  ;;  %656 = vmatprep.subr.mxu0 %v383_v2  ;;  %v376_v9 = vld [vmem:[%s6199_s1 + $0xb0] sm:$0xff]  ;;  %v375_v10 = vld [vmem:[%s6199_s1 + $0xa8] sm:$0xff]  ;;  %v374_v11 = vld [vmem:[%s6199_s1 + $0xa0] sm:$0xff] }
   0x5   :  { %2864 = vmatpush1.msra.mxu1 %v382_v3  ;;  %657 = vmatpush1.msra.mxu0 %v382_v3  ;;  %v373_v12 = vld [vmem:[%s6199_s1 + $0x98] sm:$0xff]  ;;  %v372_v13 = vld [vmem:[%s6199_s1 + $0x90] sm:$0xff]  ;;  %v371_v14 = vld [vmem:[%s6199_s1 + $0x88] sm:$0xff] }
   0x6   :  { %2833 = vmatprep.subr.mxu1 %v381_v4  ;;  %658 = vmatprep.subr.mxu0 %v381_v4  ;;  %v370_v15 = vld [vmem:[%s6199_s1 + $0x80] sm:$0xff]  ;;  %v369_v16 = vld [vmem:[%s6199_s1 + $0x78] sm:$0xff]  ;;  %v368_v17 = vld [vmem:[%s6199_s1 + $0x70] sm:$0xff] }
   0x7   :  { %2865 = vmatpush1.msra.mxu1 %v380_v5  ;;  %659 = vmatpush1.msra.mxu0 %v380_v5  ;;  %v367_v18 = vld [vmem:[%s6199_s1 + $0x68] sm:$0xff]  ;;  %v366_v19 = vld [vmem:[%s6199_s1 + $0x60] sm:$0xff]  ;;  %v365_v20 = vld [vmem:[%s6199_s1 + $0x58] sm:$0xff] }
   0x8   :  { %2834 = vmatprep.subr.mxu1 %v379_v6  ;;  %660 = vmatprep.subr.mxu0 %v379_v6  ;;  %v364_v21 = vld [vmem:[%s6199_s1 + $0x50] sm:$0xff]  ;;  %v363_v22 = vld [vmem:[%s6199_s1 + $0x48] sm:$0xff]  ;;  %v362_v23 = vld [vmem:[%s6199_s1 + $0x40] sm:$0xff] }
   0x9   :  { %2866 = vmatpush1.msra.mxu1 %v378_v7  ;;  %661 = vmatpush1.msra.mxu0 %v378_v7  ;;  %v361_v24 = vld [vmem:[%s6199_s1 + $0x38] sm:$0xff]  ;;  %v360_v25 = vld [vmem:[%s6199_s1 + $0x30] sm:$0xff]  ;;  %v359_v26 = vld [vmem:[%s6199_s1 + $0x28] sm:$0xff] }
   0xa   :  { %2835 = vmatprep.subr.mxu1 %v377_v8  ;;  %662 = vmatprep.subr.mxu0 %v377_v8  ;;  %v358_v27 = vld [vmem:[%s6199_s1 + $0x20] sm:$0xff]  ;;  %v357_v28 = vld [vmem:[%s6199_s1 + $0x18] sm:$0xff]  ;;  %v356_v29 = vld [vmem:[%s6199_s1 + $0x10] sm:$0xff] }
   0xb   :  { %2867 = vmatpush1.msra.mxu1 %v376_v9  ;;  %663 = vmatpush1.msra.mxu0 %v376_v9  ;;  %v355_v30 = vld [vmem:[%s6199_s1 + $0x8] sm:$0xff]  ;;  %v354_v31 = vld [vmem:[%s6199_s1] sm:$0xff]  ;;  %v417_v32 = vld [vmem:[%s6199_s1 + $0x1f8] sm:$0xff] }
   0xc   :  { %2836 = vmatprep.subr.mxu1 %v375_v10  ;;  %664 = vmatprep.subr.mxu0 %v375_v10  ;;  %v416_v33 = vld [vmem:[%s6199_s1 + $0x1f0] sm:$0xff]  ;;  %v415_v34 = vld [vmem:[%s6199_s1 + $0x1e8] sm:$0xff]  ;;  %v414_v35 = vld [vmem:[%s6199_s1 + $0x1e0] sm:$0xff] }
   0xd   :  { %2868 = vmatpush1.msra.mxu1 %v374_v11  ;;  %665 = vmatpush1.msra.mxu0 %v374_v11  ;;  %v413_v36 = vld [vmem:[%s6199_s1 + $0x1d8] sm:$0xff]  ;;  %v412_v37 = vld [vmem:[%s6199_s1 + $0x1d0] sm:$0xff]  ;;  %v411_v38 = vld [vmem:[%s6199_s1 + $0x1c8] sm:$0xff] }
   0xe   :  { %2837 = vmatprep.subr.mxu1 %v373_v12  ;;  %666 = vmatprep.subr.mxu0 %v373_v12  ;;  %v410_v39 = vld [vmem:[%s6199_s1 + $0x1c0] sm:$0xff]  ;;  %v409_v40 = vld [vmem:[%s6199_s1 + $0x1b8] sm:$0xff]  ;;  %v408_v41 = vld [vmem:[%s6199_s1 + $0x1b0] sm:$0xff] }
   0xf   :  { %2869 = vmatpush1.msra.mxu1 %v372_v13  ;;  %667 = vmatpush1.msra.mxu0 %v372_v13  ;;  %v407_v42 = vld [vmem:[%s6199_s1 + $0x1a8] sm:$0xff]  ;;  %v406_v43 = vld [vmem:[%s6199_s1 + $0x1a0] sm:$0xff]  ;;  %v405_v44 = vld [vmem:[%s6199_s1 + $0x198] sm:$0xff] }
  0x10   :  { %2838 = vmatprep.subr.mxu1 %v371_v14  ;;  %668 = vmatprep.subr.mxu0 %v371_v14  ;;  %v404_v45 = vld [vmem:[%s6199_s1 + $0x190] sm:$0xff]  ;;  %v403_v46 = vld [vmem:[%s6199_s1 + $0x188] sm:$0xff]  ;;  %v402_v47 = vld [vmem:[%s6199_s1 + $0x180] sm:$0xff] }
  0x11   :  { %2870 = vmatpush1.msra.mxu1 %v370_v15  ;;  %669 = vmatpush1.msra.mxu0 %v370_v15  ;;  %v401_v48 = vld [vmem:[%s6199_s1 + $0x178] sm:$0xff]  ;;  %v400_v49 = vld [vmem:[%s6199_s1 + $0x170] sm:$0xff]  ;;  %v399_v50 = vld [vmem:[%s6199_s1 + $0x168] sm:$0xff] }
  0x12   :  { %2839 = vmatprep.subr.mxu1 %v369_v16  ;;  %670 = vmatprep.subr.mxu0 %v369_v16  ;;  %v398_v51 = vld [vmem:[%s6199_s1 + $0x160] sm:$0xff]  ;;  %v397_v52 = vld [vmem:[%s6199_s1 + $0x158] sm:$0xff]  ;;  %v396_v53 = vld [vmem:[%s6199_s1 + $0x150] sm:$0xff] }
  0x13   :  { %2871 = vmatpush1.msra.mxu1 %v368_v17  ;;  %671 = vmatpush1.msra.mxu0 %v368_v17  ;;  %v395_v54 = vld [vmem:[%s6199_s1 + $0x148] sm:$0xff]  ;;  %v394_v55 = vld [vmem:[%s6199_s1 + $0x140] sm:$0xff]  ;;  %v393_v56 = vld [vmem:[%s6199_s1 + $0x138] sm:$0xff] }
  0x14   :  { %2840 = vmatprep.subr.mxu1 %v367_v18  ;;  %672 = vmatprep.subr.mxu0 %v367_v18  ;;  %v392_v57 = vld [vmem:[%s6199_s1 + $0x130] sm:$0xff]  ;;  %v391_v58 = vld [vmem:[%s6199_s1 + $0x128] sm:$0xff]  ;;  %v390_v59 = vld [vmem:[%s6199_s1 + $0x120] sm:$0xff] }
  0x15   :  { %2872 = vmatpush1.msra.mxu1 %v366_v19  ;;  %673 = vmatpush1.msra.mxu0 %v366_v19  ;;  %v389_v60 = vld [vmem:[%s6199_s1 + $0x118] sm:$0xff]  ;;  %v388_v61 = vld [vmem:[%s6199_s1 + $0x110] sm:$0xff]  ;;  %v387_v62 = vld [vmem:[%s6199_s1 + $0x108] sm:$0xff] }
  0x16   :  { %2841 = vmatprep.subr.mxu1 %v365_v20  ;;  %674 = vmatprep.subr.mxu0 %v365_v20  ;;  %v386_v63 = vld [vmem:[%s6199_s1 + $0x100] sm:$0xff]  ;;  %v193_v0 = vld [vmem:[%s6200_s0 + $0x518] sm:$0xff]  ;;  %v31_v1 = vld [vmem:[%s6200_s0 + $0x8] sm:$0xff] }
  0x17   :  { %2873 = vmatpush1.msra.mxu1 %v364_v21  ;;  %675 = vmatpush1.msra.mxu0 %v364_v21  ;;  %v192_v2 = vld [vmem:[%s6200_s0 + $0x510] sm:$0xff]  ;;  %v449_v3 = vld [vmem:[%s6199_s1 + $0x2f8] sm:$0xff]  ;;  %v30_v4 = vld [vmem:[%s6200_s0] sm:$0xff] }
  0x18   :  { %2842 = vmatprep.subr.mxu1 %v363_v22  ;;  %676 = vmatprep.subr.mxu0 %v363_v22  ;;  %v448_v5 = vld [vmem:[%s6199_s1 + $0x2f0] sm:$0xff]  ;;  %v513_v6 = vld [vmem:[%s6199_s1 + $0x4f8] sm:$0xff]  ;;  %v202_v7 = vld [vmem:[%s6200_s0 + $0x560] sm:$0xff] }
  0x19   :  { %2874 = vmatpush1.msra.mxu1 %v362_v23  ;;  %677 = vmatpush1.msra.mxu0 %v362_v23  ;;  %v447_v8 = vld [vmem:[%s6199_s1 + $0x2e8] sm:$0xff]  ;;  %v512_v9 = vld [vmem:[%s6199_s1 + $0x4f0] sm:$0xff]  ;;  %v201_v11 = vld [vmem:[%s6200_s0 + $0x558] sm:$0xff] }
  0x1a   :  { %2843 = vmatprep.subr.mxu1 %v361_v24  ;;  %678 = vmatprep.subr.mxu0 %v361_v24  ;;  %v40_v10 = vld [vmem:[%s6200_s0 + $0x50] sm:$0xff]  ;;  %v446_v12 = vld [vmem:[%s6199_s1 + $0x2e0] sm:$0xff]  ;;  %v39_v13 = vld [vmem:[%s6200_s0 + $0x48] sm:$0xff] }
  0x1b   :  { %2875 = vmatpush1.msra.mxu1 %v360_v25  ;;  %679 = vmatpush1.msra.mxu0 %v360_v25  ;;  %v445_v14 = vld [vmem:[%s6199_s1 + $0x2d8] sm:$0xff]  ;;  %v511_v15 = vld [vmem:[%s6199_s1 + $0x4e8] sm:$0xff]  ;;  %v444_v16 = vld [vmem:[%s6199_s1 + $0x2d0] sm:$0xff] }
  0x1c   :  { %2844 = vmatprep.subr.mxu1 %v359_v26  ;;  %680 = vmatprep.subr.mxu0 %v359_v26  ;;  %v510_v17 = vld [vmem:[%s6199_s1 + $0x4e0] sm:$0xff]  ;;  %v211_v18 = vld [vmem:[%s6200_s0 + $0x5a8] sm:$0xff]  ;;  %v509_v20 = vld [vmem:[%s6199_s1 + $0x4d8] sm:$0xff] }
  0x1d   :  { %2876 = vmatpush1.msra.mxu1 %v358_v27  ;;  %681 = vmatpush1.msra.mxu0 %v358_v27  ;;  %v443_v19 = vld [vmem:[%s6199_s1 + $0x2c8] sm:$0xff]  ;;  %v49_v21 = vld [vmem:[%s6200_s0 + $0x98] sm:$0xff]  ;;  %v210_v22 = vld [vmem:[%s6200_s0 + $0x5a0] sm:$0xff] }
  0x1e   :  { %2845 = vmatprep.subr.mxu1 %v357_v28  ;;  %682 = vmatprep.subr.mxu0 %v357_v28  ;;  %v508_v23 = vld [vmem:[%s6199_s1 + $0x4d0] sm:$0xff]  ;;  %v442_v24 = vld [vmem:[%s6199_s1 + $0x2c0] sm:$0xff]  ;;  %v441_v26 = vld [vmem:[%s6199_s1 + $0x2b8] sm:$0xff] }
  0x1f   :  { %2877 = vmatpush1.msra.mxu1 %v356_v29  ;;  %683 = vmatpush1.msra.mxu0 %v356_v29  ;;  %v48_v25 = vld [vmem:[%s6200_s0 + $0x90] sm:$0xff]  ;;  %v507_v27 = vld [vmem:[%s6199_s1 + $0x4c8] sm:$0xff]  ;;  %v506_v29 = vld [vmem:[%s6199_s1 + $0x4c0] sm:$0xff] }
  0x20   :  { %2846 = vmatprep.subr.mxu1 %v355_v30  ;;  %684 = vmatprep.subr.mxu0 %v355_v30  ;;  %v440_v28 = vld [vmem:[%s6199_s1 + $0x2b0] sm:$0xff] }
  0x21   :  { %2878 = vmatpush1.msra.mxu1 %v354_v31  ;;  %685 = vmatpush1.msra.mxu0 %v354_v31  ;;  %v220_v30 = vld [vmem:[%s6200_s0 + $0x5f0] sm:$0xff]  ;;  %v505_v31 = vld [vmem:[%s6199_s1 + $0x4b8] sm:$0xff] }
  0x22   :  { %2847 = vmatprep.subr.mxu1 %v417_v32  ;;  %686 = vmatprep.subr.mxu0 %v417_v32  ;;  %v58_v32 = vld [vmem:[%s6200_s0 + $0xe0] sm:$0xff] }
  0x23   :  { %2879 = vmatpush2.msra.mxu1 %v416_v33  ;;  %687 = vmatpush2.msra.mxu0 %v416_v33  ;;  %v219_v33 = vld [vmem:[%s6200_s0 + $0x5e8] sm:$0xff] }
  0x24   :  { %2848 = vmatprep.subr.mxu1 %v415_v34  ;;  %688 = vmatprep.subr.mxu0 %v415_v34  ;;  %v439_v34 = vld [vmem:[%s6199_s1 + $0x2a8] sm:$0xff] }
  0x25   :  { %2880 = vmatpush2.msra.mxu1 %v414_v35  ;;  %689 = vmatpush2.msra.mxu0 %v414_v35  ;;  %v504_v35 = vld [vmem:[%s6199_s1 + $0x4b0] sm:$0xff] }
  0x26   :  { %2849 = vmatprep.subr.mxu1 %v413_v36  ;;  %690 = vmatprep.subr.mxu0 %v413_v36  ;;  %v57_v36 = vld [vmem:[%s6200_s0 + $0xd8] sm:$0xff] }
  0x27   :  { %2881 = vmatpush2.msra.mxu1 %v412_v37  ;;  %691 = vmatpush2.msra.mxu0 %v412_v37  ;;  %v438_v37 = vld [vmem:[%s6199_s1 + $0x2a0] sm:$0xff] }
  0x28   :  { %2850 = vmatprep.subr.mxu1 %v411_v38  ;;  %692 = vmatprep.subr.mxu0 %v411_v38  ;;  %v437_v38 = vld [vmem:[%s6199_s1 + $0x298] sm:$0xff] }
  0x29   :  { %2882 = vmatpush2.msra.mxu1 %v410_v39  ;;  %693 = vmatpush2.msra.mxu0 %v410_v39  ;;  %v503_v39 = vld [vmem:[%s6199_s1 + $0x4a8] sm:$0xff] }
  0x2a   :  { %2851 = vmatprep.subr.mxu1 %v409_v40  ;;  %694 = vmatprep.subr.mxu0 %v409_v40  ;;  %v229_v40 = vld [vmem:[%s6200_s0 + $0x638] sm:$0xff] }
  0x2b   :  { %2883 = vmatpush2.msra.mxu1 %v408_v41  ;;  %695 = vmatpush2.msra.mxu0 %v408_v41  ;;  %v436_v41 = vld [vmem:[%s6199_s1 + $0x290] sm:$0xff] }
  0x2c   :  { %2852 = vmatprep.subr.mxu1 %v407_v42  ;;  %696 = vmatprep.subr.mxu0 %v407_v42  ;;  %v502_v42 = vld [vmem:[%s6199_s1 + $0x4a0] sm:$0xff] }
  0x2d   :  { %2884 = vmatpush2.msra.mxu1 %v406_v43  ;;  %697 = vmatpush2.msra.mxu0 %v406_v43  ;;  %v67_v43 = vld [vmem:[%s6200_s0 + $0x128] sm:$0xff] }
  0x2e   :  { %2853 = vmatprep.subr.mxu1 %v405_v44  ;;  %698 = vmatprep.subr.mxu0 %v405_v44  ;;  %v228_v44 = vld [vmem:[%s6200_s0 + $0x630] sm:$0xff] }
  0x2f   :  { %2885 = vmatpush2.msra.mxu1 %v404_v45  ;;  %699 = vmatpush2.msra.mxu0 %v404_v45  ;;  %v435_v45 = vld [vmem:[%s6199_s1 + $0x288] sm:$0xff] }
  0x30   :  { %2854 = vmatprep.subr.mxu1 %v403_v46  ;;  %700 = vmatprep.subr.mxu0 %v403_v46  ;;  %v501_v46 = vld [vmem:[%s6199_s1 + $0x498] sm:$0xff] }
  0x31   :  { %2886 = vmatpush2.msra.mxu1 %v402_v47  ;;  %701 = vmatpush2.msra.mxu0 %v402_v47  ;;  %v66_v47 = vld [vmem:[%s6200_s0 + $0x120] sm:$0xff] }
  0x32   :  { %2855 = vmatprep.subr.mxu1 %v401_v48  ;;  %702 = vmatprep.subr.mxu0 %v401_v48  ;;  %v434_v48 = vld [vmem:[%s6199_s1 + $0x280] sm:$0xff] }
  0x33   :  { %2887 = vmatpush2.msra.mxu1 %v400_v49  ;;  %703 = vmatpush2.msra.mxu0 %v400_v49  ;;  %v500_v49 = vld [vmem:[%s6199_s1 + $0x490] sm:$0xff] }
  0x34   :  { %2856 = vmatprep.subr.mxu1 %v399_v50  ;;  %704 = vmatprep.subr.mxu0 %v399_v50  ;;  %v433_v50 = vld [vmem:[%s6199_s1 + $0x278] sm:$0xff] }
  0x35   :  { %2888 = vmatpush2.msra.mxu1 %v398_v51  ;;  %705 = vmatpush2.msra.mxu0 %v398_v51  ;;  %v499_v51 = vld [vmem:[%s6199_s1 + $0x488] sm:$0xff] }
  0x36   :  { %2857 = vmatprep.subr.mxu1 %v397_v52  ;;  %706 = vmatprep.subr.mxu0 %v397_v52  ;;  %v238_v52 = vld [vmem:[%s6200_s0 + $0x680] sm:$0xff] }
  0x37   :  { %2889 = vmatpush2.msra.mxu1 %v396_v53  ;;  %707 = vmatpush2.msra.mxu0 %v396_v53  ;;  %v432_v53 = vld [vmem:[%s6199_s1 + $0x270] sm:$0xff] }
  0x38   :  { %2858 = vmatprep.subr.mxu1 %v395_v54  ;;  %708 = vmatprep.subr.mxu0 %v395_v54  ;;  %v498_v54 = vld [vmem:[%s6199_s1 + $0x480] sm:$0xff] }
  0x39   :  { %2890 = vmatpush2.msra.mxu1 %v394_v55  ;;  %709 = vmatpush2.msra.mxu0 %v394_v55  ;;  %v76_v55 = vld [vmem:[%s6200_s0 + $0x170] sm:$0xff] }
  0x3a   :  { %2859 = vmatprep.subr.mxu1 %v393_v56  ;;  %710 = vmatprep.subr.mxu0 %v393_v56  ;;  %v237_v56 = vld [vmem:[%s6200_s0 + $0x678] sm:$0xff] }
  0x3b   :  { %2891 = vmatpush2.msra.mxu1 %v392_v57  ;;  %711 = vmatpush2.msra.mxu0 %v392_v57  ;;  %v497_v57 = vld [vmem:[%s6199_s1 + $0x478] sm:$0xff] }
  0x3c   :  { %2860 = vmatprep.subr.mxu1 %v391_v58  ;;  %712 = vmatprep.subr.mxu0 %v391_v58  ;;  %v75_v58 = vld [vmem:[%s6200_s0 + $0x168] sm:$0xff] }
  0x3d   :  { %2892 = vmatpush2.msra.mxu1 %v390_v59  ;;  %713 = vmatpush2.msra.mxu0 %v390_v59  ;;  %v431_v59 = vld [vmem:[%s6199_s1 + $0x268] sm:$0xff] }
  0x3e   :  { %2861 = vmatprep.subr.mxu1 %v389_v60  ;;  %714 = vmatprep.subr.mxu0 %v389_v60  ;;  %v496_v60 = vld [vmem:[%s6199_s1 + $0x470] sm:$0xff] }
  0x3f   :  { %2893 = vmatpush2.msra.mxu1 %v388_v61  ;;  %715 = vmatpush2.msra.mxu0 %v388_v61  ;;  %v430_v61 = vld [vmem:[%s6199_s1 + $0x260] sm:$0xff] }
  0x40   :  { %2862 = vmatprep.subr.mxu1 %v387_v62  ;;  %716 = vmatprep.subr.mxu0 %v387_v62  ;;  %v247_v62 = vld [vmem:[%s6200_s0 + $0x6c8] sm:$0xff] }
  0x41   :  { %2894 = vmatpush2.msra.mxu1 %v386_v63  ;;  %826 = vmatprep.mubr.f32.mxu1 %v193_v0  ;;  %v495_v0 = vld [vmem:[%s6199_s1 + $0x468] sm:$0xff] }
  0x42   :  { %717 = vmatpush2.msra.mxu0 %v386_v63  ;;  %718 = vmatprep.mubr.f32.mxu0 %v31_v1  ;;  %v429_v63 = vld [vmem:[%s6199_s1 + $0x258] sm:$0xff] }
  0x43   :  { %827 = vmatmul.mubr.f32.vlgmr.msra.gmra.mxu1 %v192_v2  ;;  %935 = vmatprep.subr.mxu1 %v449_v3  ;;  %v85_v1 = vld [vmem:[%s6200_s0 + $0x1b8] sm:$0xff]  ;;  %v246_v2 = vld [vmem:[%s6200_s0 + $0x6c0] sm:$0xff] }
  0x44   :  { %719 = vmatmul.mubr.f32.vlgmr.msra.gmra.mxu0 %v30_v4  ;;  %936 = vmatpush1.msra.mxu1 %v448_v5  ;;  %v494_v3 = vld [vmem:[%s6199_s1 + $0x460] sm:$0xff]  ;;  %v428_v4 = vld [vmem:[%s6199_s1 + $0x250] sm:$0xff] }
  0x45   :  { %1216 = vmatprep.subr.mxu0 %v513_v6  ;;  %832 = vmatprep.mubr.f32.mxu1 %v202_v7  ;;  %v84_v5 = vld [vmem:[%s6200_s0 + $0x1b0] sm:$0xff]  ;;  %v427_v6 = vld [vmem:[%s6199_s1 + $0x248] sm:$0xff]  ;;  %v493_v7 = vld [vmem:[%s6199_s1 + $0x458] sm:$0xff] }
  0x46   :  { %937 = vmatprep.subr.mxu1 %v447_v8  ;;  %1217 = vmatpush1.msra.mxu0 %v512_v9  ;;  %v426_v8 = vld [vmem:[%s6199_s1 + $0x240] sm:$0xff]  ;;  %v492_v9 = vld [vmem:[%s6199_s1 + $0x450] sm:$0xff] }
  0x47   :  { %724 = vmatprep.mubr.f32.mxu0 %v40_v10  ;;  %833 = vmatmul.mubr.f32.gmra.mxu1 %v201_v11  ;;  %v256_v10 = vld [vmem:[%s6200_s0 + $0x710] sm:$0xff]  ;;  %v425_v11 = vld [vmem:[%s6199_s1 + $0x238] sm:$0xff] }
  0x48   :  { %938 = vmatpush1.msra.mxu1 %v446_v12  ;;  %725 = vmatmul.mubr.f32.gmra.mxu0 %v39_v13  ;;  %v491_v12 = vld [vmem:[%s6199_s1 + $0x448] sm:$0xff]  ;;  %v94_v13 = vld [vmem:[%s6200_s0 + $0x200] sm:$0xff] }
  0x49   :  { %939 = vmatprep.subr.mxu1 %v445_v14  ;;  %1218 = vmatprep.subr.mxu0 %v511_v15  ;;  %v255_v14 = vld [vmem:[%s6200_s0 + $0x708] sm:$0xff]  ;;  %v490_v15 = vld [vmem:[%s6199_s1 + $0x440] sm:$0xff] }
  0x4a   :  { %940 = vmatpush1.msra.mxu1 %v444_v16  ;;  %1219 = vmatpush1.msra.mxu0 %v510_v17  ;;  %v424_v16 = vld [vmem:[%s6199_s1 + $0x230] sm:$0xff]  ;;  %v93_v17 = vld [vmem:[%s6200_s0 + $0x1f8] sm:$0xff] }
  0x4b   :  { %838 = vmatprep.mubr.f32.mxu1 %v211_v18  ;;  %941 = vmatprep.subr.mxu1 %v443_v19  ;;  %v489_v18 = vld [vmem:[%s6199_s1 + $0x438] sm:$0xff]  ;;  %v423_v19 = vld [vmem:[%s6199_s1 + $0x228] sm:$0xff] }
  0x4c   :  { %1220 = vmatprep.subr.mxu0 %v509_v20  ;;  %730 = vmatprep.mubr.f32.mxu0 %v49_v21  ;;  %v488_v20 = vld [vmem:[%s6199_s1 + $0x430] sm:$0xff]  ;;  %v265_v21 = vld [vmem:[%s6200_s0 + $0x758] sm:$0xff] }
  0x4d   :  { %839 = vmatmul.mubr.f32.gmra.mxu1 %v210_v22  ;;  %1221 = vmatpush1.msra.mxu0 %v508_v23  ;;  %v422_v22 = vld [vmem:[%s6199_s1 + $0x220] sm:$0xff]  ;;  %v103_v23 = vld [vmem:[%s6200_s0 + $0x248] sm:$0xff] }
  0x4e   :  { %942 = vmatpush1.msra.mxu1 %v442_v24  ;;  %731 = vmatmul.mubr.f32.gmra.mxu0 %v48_v25  ;;  %v264_v24 = vld [vmem:[%s6200_s0 + $0x750] sm:$0xff]  ;;  %v421_v25 = vld [vmem:[%s6199_s1 + $0x218] sm:$0xff] }
  0x4f   :  { %943 = vmatprep.subr.mxu1 %v441_v26  ;;  %1222 = vmatprep.subr.mxu0 %v507_v27  ;;  %v487_v26 = vld [vmem:[%s6199_s1 + $0x428] sm:$0xff]  ;;  %v102_v27 = vld [vmem:[%s6200_s0 + $0x240] sm:$0xff] }
  0x50   :  { %944 = vmatpush1.msra.mxu1 %v440_v28  ;;  %1223 = vmatpush1.msra.mxu0 %v506_v29  ;;  %v420_v28 = vld [vmem:[%s6199_s1 + $0x210] sm:$0xff]  ;;  %v486_v29 = vld [vmem:[%s6199_s1 + $0x420] sm:$0xff] }
  0x51   :  { %844 = vmatprep.mubr.f32.mxu1 %v220_v30  ;;  %1224 = vmatprep.subr.mxu0 %v505_v31  ;;  %v419_v30 = vld [vmem:[%s6199_s1 + $0x208] sm:$0xff]  ;;  %v485_v31 = vld [vmem:[%s6199_s1 + $0x418] sm:$0xff] }
  0x52   :  { %736 = vmatprep.mubr.f32.mxu0 %v58_v32  ;;  %845 = vmatmul.mubr.f32.gmra.mxu1 %v219_v33  ;;  %v274_v32 = vld [vmem:[%s6200_s0 + $0x7a0] sm:$0xff] }
  0x53   :  { %945 = vmatprep.subr.mxu1 %v439_v34  ;;  %1225 = vmatpush1.msra.mxu0 %v504_v35  ;;  %v418_v33 = vld [vmem:[%s6199_s1 + $0x200] sm:$0xff]  ;;  %v484_v34 = vld [vmem:[%s6199_s1 + $0x410] sm:$0xff] }
  0x54   :  { %737 = vmatmul.mubr.f32.gmra.mxu0 %v57_v36  ;;  %946 = vmatpush1.msra.mxu1 %v438_v37  ;;  %v112_v35 = vld [vmem:[%s6200_s0 + $0x290] sm:$0xff]  ;;  %v273_v36 = vld [vmem:[%s6200_s0 + $0x798] sm:$0xff] }
  0x55   :  { %947 = vmatprep.subr.mxu1 %v437_v38  ;;  %1226 = vmatprep.subr.mxu0 %v503_v39  ;;  %v481_v37 = vld [vmem:[%s6199_s1 + $0x3f8] sm:$0xff]  ;;  %v483_v38 = vld [vmem:[%s6199_s1 + $0x408] sm:$0xff] }
  0x56   :  { %850 = vmatprep.mubr.f32.mxu1 %v229_v40  ;;  %948 = vmatpush1.msra.mxu1 %v436_v41  ;;  %v111_v39 = vld [vmem:[%s6200_s0 + $0x288] sm:$0xff]  ;;  %v480_v40 = vld [vmem:[%s6199_s1 + $0x3f0] sm:$0xff]  ;;  %v482_v41 = vld [vmem:[%s6199_s1 + $0x400] sm:$0xff] }
  0x57   :  { %1227 = vmatpush1.msra.mxu0 %v502_v42  ;;  %742 = vmatprep.mubr.f32.mxu0 %v67_v43  ;;  %v545_v42 = vld [vmem:[%s6199_s1 + $0x5f8] sm:$0xff]  ;;  %v283_v43 = vld [vmem:[%s6200_s0 + $0x7e8] sm:$0xff] }
  0x58   :  { %851 = vmatmul.mubr.f32.gmra.mxu1 %v228_v44  ;;  %949 = vmatprep.subr.mxu1 %v435_v45  ;;  %v479_v44 = vld [vmem:[%s6199_s1 + $0x3e8] sm:$0xff]  ;;  %v544_v45 = vld [vmem:[%s6199_s1 + $0x5f0] sm:$0xff] }
  0x59   :  { %1228 = vmatprep.subr.mxu0 %v501_v46  ;;  %743 = vmatmul.mubr.f32.gmra.mxu0 %v66_v47  ;;  %v121_v46 = vld [vmem:[%s6200_s0 + $0x2d8] sm:$0xff]  ;;  %v282_v47 = vld [vmem:[%s6200_s0 + $0x7e0] sm:$0xff] }
  0x5a   :  { %950 = vmatpush1.msra.mxu1 %v434_v48  ;;  %1229 = vmatpush1.msra.mxu0 %v500_v49  ;;  %v478_v48 = vld [vmem:[%s6199_s1 + $0x3e0] sm:$0xff]  ;;  %v120_v49 = vld [vmem:[%s6200_s0 + $0x2d0] sm:$0xff] }
  0x5b   :  { %951 = vmatprep.subr.mxu1 %v433_v50  ;;  %1230 = vmatprep.subr.mxu0 %v499_v51  ;;  %v477_v50 = vld [vmem:[%s6199_s1 + $0x3d8] sm:$0xff]  ;;  %v543_v51 = vld [vmem:[%s6199_s1 + $0x5e8] sm:$0xff] }
  0x5c   :  { %856 = vmatprep.mubr.f32.mxu1 %v238_v52  ;;  %952 = vmatpush1.msra.mxu1 %v432_v53  ;;  %v476_v52 = vld [vmem:[%s6199_s1 + $0x3d0] sm:$0xff]  ;;  %v542_v53 = vld [vmem:[%s6199_s1 + $0x5e0] sm:$0xff] }
  0x5d   :  { %1231 = vmatpush1.msra.mxu0 %v498_v54  ;;  %748 = vmatprep.mubr.f32.mxu0 %v76_v55  ;;  %v292_v54 = vld [vmem:[%s6200_s0 + $0x830] sm:$0xff]  ;;  %v475_v55 = vld [vmem:[%s6199_s1 + $0x3c8] sm:$0xff] }
  0x5e   :  { %857 = vmatmul.mubr.f32.gmra.mxu1 %v237_v56  ;;  %1232 = vmatprep.subr.mxu0 %v497_v57  ;;  %v541_v56 = vld [vmem:[%s6199_s1 + $0x5d8] sm:$0xff]  ;;  %v130_v57 = vld [vmem:[%s6200_s0 + $0x320] sm:$0xff] }
  0x5f   :  { %749 = vmatmul.mubr.f32.gmra.mxu0 %v75_v58  ;;  %953 = vmatprep.subr.mxu1 %v431_v59  ;;  %v291_v58 = vld [vmem:[%s6200_s0 + $0x828] sm:$0xff]  ;;  %v540_v59 = vld [vmem:[%s6199_s1 + $0x5d0] sm:$0xff] }
  0x60   :  { %1233 = vmatpush1.msra.mxu0 %v496_v60  ;;  %954 = vmatpush1.msra.mxu1 %v430_v61  ;;  %v474_v60 = vld [vmem:[%s6199_s1 + $0x3c0] sm:$0xff]  ;;  %v129_v61 = vld [vmem:[%s6200_s0 + $0x318] sm:$0xff] }
  0x61   :  { %862 = vmatprep.mubr.f32.mxu1 %v247_v62  ;;  %955 = vmatprep.subr.mxu1 %v429_v63  ;;  %v473_v62 = vld [vmem:[%s6199_s1 + $0x3b8] sm:$0xff]  ;;  %v539_v63 = vld [vmem:[%s6199_s1 + $0x5c8] sm:$0xff] }
  0x62   :  { %1234 = vmatprep.subr.mxu0 %v495_v0  ;;  %754 = vmatprep.mubr.f32.mxu0 %v85_v1  ;;  %v472_v0 = vld [vmem:[%s6199_s1 + $0x3b0] sm:$0xff]  ;;  %v538_v1 = vld [vmem:[%s6199_s1 + $0x5c0] sm:$0xff] }
  0x63   :  { %863 = vmatmul.mubr.f32.gmra.mxu1 %v246_v2  ;;  %1235 = vmatpush1.msra.mxu0 %v494_v3  ;;  %v301_v2 = vld [vmem:[%s6200_s0 + $0x878] sm:$0xff] }
  0x64   :  { %956 = vmatpush1.msra.mxu1 %v428_v4  ;;  %755 = vmatmul.mubr.f32.gmra.mxu0 %v84_v5  ;;  %v537_v3 = vld [vmem:[%s6199_s1 + $0x5b8] sm:$0xff]  ;;  %v139_v4 = vld [vmem:[%s6200_s0 + $0x368] sm:$0xff]  ;;  %v300_v5 = vld [vmem:[%s6200_s0 + $0x870] sm:$0xff] }
  0x65   :  { %957 = vmatprep.subr.mxu1 %v427_v6  ;;  %1236 = vmatprep.subr.mxu0 %v493_v7  ;;  %v471_v6 = vld [vmem:[%s6199_s1 + $0x3a8] sm:$0xff]  ;;  %v536_v7 = vld [vmem:[%s6199_s1 + $0x5b0] sm:$0xff] }
  0x66   :  { %958 = vmatpush1.msra.mxu1 %v426_v8  ;;  %1237 = vmatpush1.msra.mxu0 %v492_v9  ;;  %v138_v8 = vld [vmem:[%s6200_s0 + $0x360] sm:$0xff] }
  0x67   :  { %868 = vmatprep.mubr.f32.mxu1 %v256_v10  ;;  %959 = vmatprep.subr.mxu1 %v425_v11  ;;  %v470_v9 = vld [vmem:[%s6199_s1 + $0x3a0] sm:$0xff]  ;;  %v469_v10 = vld [vmem:[%s6199_s1 + $0x398] sm:$0xff]  ;;  %v535_v11 = vld [vmem:[%s6199_s1 + $0x5a8] sm:$0xff] }
  0x68   :  { %1238 = vmatprep.subr.mxu0 %v491_v12  ;;  %760 = vmatprep.mubr.f32.mxu0 %v94_v13  ;;  %v310_v12 = vld [vmem:[%s6200_s0 + $0x8c0] sm:$0xff]  ;;  %v468_v13 = vld [vmem:[%s6199_s1 + $0x390] sm:$0xff] }
  0x69   :  { %869 = vmatmul.mubr.f32.gmra.mxu1 %v255_v14  ;;  %1239 = vmatpush1.msra.mxu0 %v490_v15  ;;  %v534_v14 = vld [vmem:[%s6199_s1 + $0x5a0] sm:$0xff]  ;;  %v148_v15 = vld [vmem:[%s6200_s0 + $0x3b0] sm:$0xff] }
  0x6a   :  { %960 = vmatpush1.msra.mxu1 %v424_v16  ;;  %761 = vmatmul.mubr.f32.gmra.mxu0 %v93_v17  ;;  %v309_v16 = vld [vmem:[%s6200_s0 + $0x8b8] sm:$0xff]  ;;  %v467_v17 = vld [vmem:[%s6199_s1 + $0x388] sm:$0xff] }
  0x6b   :  { %1240 = vmatprep.subr.mxu0 %v489_v18  ;;  %961 = vmatprep.subr.mxu1 %v423_v19  ;;  %v533_v18 = vld [vmem:[%s6199_s1 + $0x598] sm:$0xff]  ;;  %v147_v19 = vld [vmem:[%s6200_s0 + $0x3a8] sm:$0xff] }
  0x6c   :  { %1241 = vmatpush1.msra.mxu0 %v488_v20  ;;  %874 = vmatprep.mubr.f32.mxu1 %v265_v21  ;;  %v466_v20 = vld [vmem:[%s6199_s1 + $0x380] sm:$0xff]  ;;  %v532_v21 = vld [vmem:[%s6199_s1 + $0x590] sm:$0xff] }
  0x6d   :  { %962 = vmatpush1.msra.mxu1 %v422_v22  ;;  %766 = vmatprep.mubr.f32.mxu0 %v103_v23  ;;  %v465_v22 = vld [vmem:[%s6199_s1 + $0x378] sm:$0xff]  ;;  %v531_v23 = vld [vmem:[%s6199_s1 + $0x588] sm:$0xff] }
  0x6e   :  { %875 = vmatmul.mubr.f32.gmra.mxu1 %v264_v24  ;;  %963 = vmatprep.subr.mxu1 %v421_v25  ;;  %v319_v24 = vld [vmem:[%s6200_s0 + $0x908] sm:$0xff]  ;;  %v464_v25 = vld [vmem:[%s6199_s1 + $0x370] sm:$0xff] }
  0x6f   :  { %1242 = vmatprep.subr.mxu0 %v487_v26  ;;  %767 = vmatmul.mubr.f32.gmra.mxu0 %v102_v27  ;;  %v530_v26 = vld [vmem:[%s6199_s1 + $0x580] sm:$0xff]  ;;  %v157_v27 = vld [vmem:[%s6200_s0 + $0x3f8] sm:$0xff] }
  0x70   :  { %964 = vmatpush1.msra.mxu1 %v420_v28  ;;  %1243 = vmatpush1.msra.mxu0 %v486_v29  ;;  %v318_v28 = vld [vmem:[%s6200_s0 + $0x900] sm:$0xff]  ;;  %v529_v29 = vld [vmem:[%s6199_s1 + $0x578] sm:$0xff] }
  0x71   :  { %965 = vmatprep.subr.mxu1 %v419_v30  ;;  %1244 = vmatprep.subr.mxu0 %v485_v31  ;;  %v156_v30 = vld [vmem:[%s6200_s0 + $0x3f0] sm:$0xff]  ;;  %v463_v31 = vld [vmem:[%s6199_s1 + $0x368] sm:$0xff] }
  0x72   :  { %880 = vmatprep.mubr.f32.mxu1 %v274_v32  ;;  %966 = vmatpush1.msra.mxu1 %v418_v33  ;;  %v528_v32 = vld [vmem:[%s6199_s1 + $0x570] sm:$0xff]  ;;  %v462_v33 = vld [vmem:[%s6199_s1 + $0x360] sm:$0xff] }
  0x73   :  { %1245 = vmatpush1.msra.mxu0 %v484_v34  ;;  %772 = vmatprep.mubr.f32.mxu0 %v112_v35  ;;  %v328_v34 = vld [vmem:[%s6200_s0 + $0x950] sm:$0xff]  ;;  %v461_v35 = vld [vmem:[%s6199_s1 + $0x358] sm:$0xff] }
  0x74   :  { %881 = vmatmul.mubr.f32.gmra.mxu1 %v273_v36  ;;  %967 = vmatprep.subr.mxu1 %v481_v37  ;;  %v527_v36 = vld [vmem:[%s6199_s1 + $0x568] sm:$0xff]  ;;  %v166_v37 = vld [vmem:[%s6200_s0 + $0x440] sm:$0xff] }
  0x75   :  { %1246 = vmatprep.subr.mxu0 %v483_v38  ;;  %773 = vmatmul.mubr.f32.gmra.mxu0 %v111_v39  ;;  %v327_v38 = vld [vmem:[%s6200_s0 + $0x948] sm:$0xff]  ;;  %v526_v39 = vld [vmem:[%s6199_s1 + $0x560] sm:$0xff] }
  0x76   :  { %968 = vmatpush2.msra.mxu1 %v480_v40  ;;  %1247 = vmatpush1.msra.mxu0 %v482_v41  ;;  %v460_v40 = vld [vmem:[%s6199_s1 + $0x350] sm:$0xff]  ;;  %v165_v41 = vld [vmem:[%s6200_s0 + $0x438] sm:$0xff] }
  0x77   :  { %1248 = vmatprep.subr.mxu0 %v545_v42  ;;  %886 = vmatprep.mubr.f32.mxu1 %v283_v43  ;;  %v459_v42 = vld [vmem:[%s6199_s1 + $0x348] sm:$0xff]  ;;  %v525_v43 = vld [vmem:[%s6199_s1 + $0x558] sm:$0xff] }
  0x78   :  { %969 = vmatprep.subr.mxu1 %v479_v44  ;;  %1249 = vmatpush2.msra.mxu0 %v544_v45  ;;  %v458_v44 = vld [vmem:[%s6199_s1 + $0x340] sm:$0xff]  ;;  %v524_v45 = vld [vmem:[%s6199_s1 + $0x550] sm:$0xff] }
  0x79   :  { %778 = vmatprep.mubr.f32.mxu0 %v121_v46  ;;  %887 = vmatmul.mubr.f32.gmra.mxu1 %v282_v47  ;;  %v337_v46 = vld [vmem:[%s6200_s0 + $0x998] sm:$0xff] }
  0x7a   :  { %970 = vmatpush2.msra.mxu1 %v478_v48  ;;  %779 = vmatmul.mubr.f32.gmra.mxu0 %v120_v49  ;;  %v457_v47 = vld [vmem:[%s6199_s1 + $0x338] sm:$0xff]  ;;  %v523_v48 = vld [vmem:[%s6199_s1 + $0x548] sm:$0xff] }
  0x7b   :  { %971 = vmatprep.subr.mxu1 %v477_v50  ;;  %1250 = vmatprep.subr.mxu0 %v543_v51  ;;  %v175_v49 = vld [vmem:[%s6200_s0 + $0x488] sm:$0xff]  ;;  %v336_v50 = vld [vmem:[%s6200_s0 + $0x990] sm:$0xff]  ;;  %v522_v51 = vld [vmem:[%s6199_s1 + $0x540] sm:$0xff] }
  0x7c   :  { %972 = vmatpush2.msra.mxu1 %v476_v52  ;;  %1251 = vmatpush2.msra.mxu0 %v542_v53  ;;  %v456_v52 = vld [vmem:[%s6199_s1 + $0x330] sm:$0xff]  ;;  %v174_v53 = vld [vmem:[%s6200_s0 + $0x480] sm:$0xff] }
  0x7d   :  { %892 = vmatprep.mubr.f32.mxu1 %v292_v54  ;;  %973 = vmatprep.subr.mxu1 %v475_v55  ;;  %v521_v54 = vld [vmem:[%s6199_s1 + $0x538] sm:$0xff]  ;;  %v455_v55 = vld [vmem:[%s6199_s1 + $0x328] sm:$0xff] }
  0x7e   :  { %1252 = vmatprep.subr.mxu0 %v541_v56  ;;  %784 = vmatprep.mubr.f32.mxu0 %v130_v57  ;;  %v520_v56 = vld [vmem:[%s6199_s1 + $0x530] sm:$0xff]  ;;  %v346_v57 = vld [vmem:[%s6200_s0 + $0x9e0] sm:$0xff] }
  0x7f   :  { %893 = vmatmul.mubr.f32.gmra.mxu1 %v291_v58  ;;  %1253 = vmatpush2.msra.mxu0 %v540_v59  ;;  %v454_v58 = vld [vmem:[%s6199_s1 + $0x320] sm:$0xff]  ;;  %v519_v59 = vld [vmem:[%s6199_s1 + $0x528] sm:$0xff] }
  0x80   :  { %974 = vmatpush2.msra.mxu1 %v474_v60  ;;  %785 = vmatmul.mubr.f32.gmra.mxu0 %v129_v61  ;;  %v184_v60 = vld [vmem:[%s6200_s0 + $0x4d0] sm:$0xff]  ;;  %v345_v61 = vld [vmem:[%s6200_s0 + $0x9d8] sm:$0xff] }
  0x81   :  { %975 = vmatprep.subr.mxu1 %v473_v62  ;;  %1254 = vmatprep.subr.mxu0 %v539_v63  ;;  %v453_v62 = vld [vmem:[%s6199_s1 + $0x318] sm:$0xff]  ;;  %v518_v63 = vld [vmem:[%s6199_s1 + $0x520] sm:$0xff] }
  0x82   :  { %976 = vmatpush2.msra.mxu1 %v472_v0  ;;  %1255 = vmatpush2.msra.mxu0 %v538_v1  ;;  %v183_v0 = vld [vmem:[%s6200_s0 + $0x4c8] sm:$0xff]  ;;  %v452_v1 = vld [vmem:[%s6199_s1 + $0x310] sm:$0xff] }
  0x83   :  { %898 = vmatprep.mubr.f32.mxu1 %v301_v2  ;;  %1256 = vmatprep.subr.mxu0 %v537_v3  ;;  %v517_v2 = vld [vmem:[%s6199_s1 + $0x518] sm:$0xff]  ;;  %v451_v3 = vld [vmem:[%s6199_s1 + $0x308] sm:$0xff] }
  0x84   :  { %790 = vmatprep.mubr.f32.mxu0 %v139_v4  ;;  %899 = vmatmul.mubr.f32.gmra.mxu1 %v300_v5  ;;  %v516_v4 = vld [vmem:[%s6199_s1 + $0x510] sm:$0xff]  ;;  %v450_v5 = vld [vmem:[%s6199_s1 + $0x300] sm:$0xff] }
  0x85   :  { %977 = vmatprep.subr.mxu1 %v471_v6  ;;  %1257 = vmatpush2.msra.mxu0 %v536_v7  ;;  %v33_v6 = vld [vmem:[%s6200_s0 + $0x18] sm:$0xff]  ;;  %v515_v7 = vld [vmem:[%s6199_s1 + $0x508] sm:$0xff] }
  0x86   :  { %791 = vmatmul.mubr.f32.gmra.mxu0 %v138_v8  ;;  %978 = vmatpush2.msra.mxu1 %v470_v9  ;;  %v32_v8 = vld [vmem:[%s6200_s0 + $0x10] sm:$0xff]  ;;  %v514_v9 = vld [vmem:[%s6199_s1 + $0x500] sm:$0xff] }
  0x87   :  { %979 = vmatprep.subr.mxu1 %v469_v10  ;;  %1258 = vmatprep.subr.mxu0 %v535_v11  ;;  %v35_v10 = vld [vmem:[%s6200_s0 + $0x28] sm:$0xff]  ;;  %v577_v11 = vld [vmem:[%s6199_s1 + $0x6f8] sm:$0xff] }
  0x88   :  { %904 = vmatprep.mubr.f32.mxu1 %v310_v12  ;;  %980 = vmatpush2.msra.mxu1 %v468_v13  ;;  %v34_v12 = vld [vmem:[%s6200_s0 + $0x20] sm:$0xff]  ;;  %v576_v13 = vld [vmem:[%s6199_s1 + $0x6f0] sm:$0xff] }
  0x89   :  { %1259 = vmatpush2.msra.mxu0 %v534_v14  ;;  %796 = vmatprep.mubr.f32.mxu0 %v148_v15  ;;  %v641_v14 = vld [vmem:[%s6199_s1 + $0x8f8] sm:$0xff]  ;;  %v42_v15 = vld [vmem:[%s6200_s0 + $0x60] sm:$0xff] }
  0x8a   :  { %905 = vmatmul.mubr.f32.gmra.mxu1 %v309_v16  ;;  %981 = vmatprep.subr.mxu1 %v467_v17  ;;  %v640_v16 = vld [vmem:[%s6199_s1 + $0x8f0] sm:$0xff]  ;;  %v41_v17 = vld [vmem:[%s6200_s0 + $0x58] sm:$0xff] }
  0x8b   :  { %1260 = vmatprep.subr.mxu0 %v533_v18  ;;  %797 = vmatmul.mubr.f32.gmra.mxu0 %v147_v19  ;;  %v44_v18 = vld [vmem:[%s6200_s0 + $0x70] sm:$0xff]  ;;  %v575_v19 = vld [vmem:[%s6199_s1 + $0x6e8] sm:$0xff] }
  0x8c   :  { %982 = vmatpush2.msra.mxu1 %v466_v20  ;;  %1261 = vmatpush2.msra.mxu0 %v532_v21  ;;  %v43_v20 = vld [vmem:[%s6200_s0 + $0x68] sm:$0xff]  ;;  %v574_v21 = vld [vmem:[%s6199_s1 + $0x6e0] sm:$0xff] }
  0x8d   :  { %983 = vmatprep.subr.mxu1 %v465_v22  ;;  %1262 = vmatprep.subr.mxu0 %v531_v23  ;;  %v51_v22 = vld [vmem:[%s6200_s0 + $0xa8] sm:$0xff]  ;;  %v53_v23 = vld [vmem:[%s6200_s0 + $0xb8] sm:$0xff] }
  0x8e   :  { %910 = vmatprep.mubr.f32.mxu1 %v319_v24  ;;  %984 = vmatpush2.msra.mxu1 %v464_v25  ;;  %v50_v24 = vld [vmem:[%s6200_s0 + $0xa0] sm:$0xff]  ;;  %v573_v25 = vld [vmem:[%s6199_s1 + $0x6d8] sm:$0xff] }
  0x8f   :  { %1263 = vmatpush2.msra.mxu0 %v530_v26  ;;  %802 = vmatprep.mubr.f32.mxu0 %v157_v27  ;;  %v572_v26 = vld [vmem:[%s6199_s1 + $0x6d0] sm:$0xff] }
  0x90   :  { %911 = vmatmul.mubr.f32.gmra.mxu1 %v318_v28  ;;  %1264 = vmatprep.subr.mxu0 %v529_v29  ;;  %v60_v27 = vld [vmem:[%s6200_s0 + $0xf0] sm:$0xff]  ;;  %v639_v29 = vld [vmem:[%s6199_s1 + $0x8e8] sm:$0xff] }
  0x91   :  { %803 = vmatmul.mubr.f32.gmra.mxu0 %v156_v30  ;;  %985 = vmatprep.subr.mxu1 %v463_v31  ;;  %v52_v28 = vld [vmem:[%s6200_s0 + $0xb0] sm:$0xff]  ;;  %v62_v30 = vld [vmem:[%s6200_s0 + $0x100] sm:$0xff] }
  0x92   :  { %1265 = vmatpush2.msra.mxu0 %v528_v32  ;;  %986 = vmatpush2.msra.mxu1 %v462_v33  ;;  %v638_v31 = vld [vmem:[%s6199_s1 + $0x8e0] sm:$0xff]  ;;  %v59_v32 = vld [vmem:[%s6200_s0 + $0xe8] sm:$0xff] }
  0x93   :  { %916 = vmatprep.mubr.f32.mxu1 %v328_v34  ;;  %987 = vmatprep.subr.mxu1 %v461_v35  ;;  %v571_v33 = vld [vmem:[%s6199_s1 + $0x6c8] sm:$0xff]  ;;  %v69_v34 = vld [vmem:[%s6200_s0 + $0x138] sm:$0xff]  ;;  %v570_v35 = vld [vmem:[%s6199_s1 + $0x6c0] sm:$0xff] }
  0x94   :  { %1266 = vmatprep.subr.mxu0 %v527_v36  ;;  %808 = vmatprep.mubr.f32.mxu0 %v166_v37  ;;  %v61_v36 = vld [vmem:[%s6200_s0 + $0xf8] sm:$0xff] }
  0x95   :  { %917 = vmatmul.mubr.f32.gmra.mxu1 %v327_v38  ;;  %1267 = vmatpush2.msra.mxu0 %v526_v39  ;;  %v569_v37 = vld [vmem:[%s6199_s1 + $0x6b8] sm:$0xff]  ;;  %v71_v38 = vld [vmem:[%s6200_s0 + $0x148] sm:$0xff]  ;;  %v568_v39 = vld [vmem:[%s6199_s1 + $0x6b0] sm:$0xff] }
  0x96   :  { %988 = vmatpush2.msra.mxu1 %v460_v40  ;;  %809 = vmatmul.mubr.f32.gmra.mxu0 %v165_v41  ;;  %v68_v40 = vld [vmem:[%s6200_s0 + $0x130] sm:$0xff]  ;;  %v637_v41 = vld [vmem:[%s6199_s1 + $0x8d8] sm:$0xff] }
  0x97   :  { %989 = vmatprep.subr.mxu1 %v459_v42  ;;  %1268 = vmatprep.subr.mxu0 %v525_v43  ;;  %v78_v42 = vld [vmem:[%s6200_s0 + $0x180] sm:$0xff]  ;;  %v636_v43 = vld [vmem:[%s6199_s1 + $0x8d0] sm:$0xff] }
  0x98   :  { %990 = vmatpush2.msra.mxu1 %v458_v44  ;;  %1269 = vmatpush2.msra.mxu0 %v524_v45  ;;  %v70_v44 = vld [vmem:[%s6200_s0 + $0x140] sm:$0xff]  ;;  %v567_v45 = vld [vmem:[%s6199_s1 + $0x6a8] sm:$0xff] }
  0x99   :  { %922 = vmatprep.mubr.f32.mxu1 %v337_v46  ;;  %991 = vmatprep.subr.mxu1 %v457_v47  ;;  %v80_v46 = vld [vmem:[%s6200_s0 + $0x190] sm:$0xff]  ;;  %v566_v47 = vld [vmem:[%s6199_s1 + $0x6a0] sm:$0xff] }
  0x9a   :  { %1270 = vmatprep.subr.mxu0 %v523_v48  ;;  %814 = vmatprep.mubr.f32.mxu0 %v175_v49  ;;  %v77_v48 = vld [vmem:[%s6200_s0 + $0x178] sm:$0xff] }
  0x9b   :  { %923 = vmatmul.mubr.f32.gmra.mxu1 %v336_v50  ;;  %1271 = vmatpush2.msra.mxu0 %v522_v51  ;;  %v565_v49 = vld [vmem:[%s6199_s1 + $0x698] sm:$0xff]  ;;  %v87_v50 = vld [vmem:[%s6200_s0 + $0x1c8] sm:$0xff]  ;;  %v564_v51 = vld [vmem:[%s6199_s1 + $0x690] sm:$0xff] }
  0x9c   :  { %992 = vmatpush2.msra.mxu1 %v456_v52  ;;  %815 = vmatmul.mubr.f32.gmra.mxu0 %v174_v53  ;;  %v79_v52 = vld [vmem:[%s6200_s0 + $0x188] sm:$0xff] }
  0x9d   :  { %1272 = vmatprep.subr.mxu0 %v521_v54  ;;  %993 = vmatprep.subr.mxu1 %v455_v55  ;;  %v635_v53 = vld [vmem:[%s6199_s1 + $0x8c8] sm:$0xff]  ;;  %v89_v54 = vld [vmem:[%s6200_s0 + $0x1d8] sm:$0xff]  ;;  %v634_v55 = vld [vmem:[%s6199_s1 + $0x8c0] sm:$0xff] }
  0x9e   :  { %1273 = vmatpush2.msra.mxu0 %v520_v56  ;;  %928 = vmatprep.mubr.f32.mxu1 %v346_v57  ;;  %v86_v56 = vld [vmem:[%s6200_s0 + $0x1c0] sm:$0xff]  ;;  %v563_v57 = vld [vmem:[%s6199_s1 + $0x688] sm:$0xff] }
  0x9f   :  { %994 = vmatpush2.msra.mxu1 %v454_v58  ;;  %1274 = vmatprep.subr.mxu0 %v519_v59  ;;  %v96_v58 = vld [vmem:[%s6200_s0 + $0x210] sm:$0xff]  ;;  %v562_v59 = vld [vmem:[%s6199_s1 + $0x680] sm:$0xff] }
  0xa0   :  { %820 = vmatprep.mubr.f32.mxu0 %v184_v60  ;;  %929 = vmatmul.mubr.f32.gmra.mxu1 %v345_v61  ;;  %v88_v60 = vld [vmem:[%s6200_s0 + $0x1d0] sm:$0xff]  ;;  %v561_v61 = vld [vmem:[%s6199_s1 + $0x678] sm:$0xff] }
  0xa1   :  { %995 = vmatprep.subr.mxu1 %v453_v62  ;;  %1275 = vmatpush2.msra.mxu0 %v518_v63  ;;  %v98_v62 = vld [vmem:[%s6200_s0 + $0x220] sm:$0xff]  ;;  %v560_v63 = vld [vmem:[%s6199_s1 + $0x670] sm:$0xff] }
  0xa2   :  { %821 = vmatmul.mubr.f32.gmra.mxu0 %v183_v0  ;;  %996 = vmatpush2.msra.mxu1 %v452_v1  ;;  %v95_v0 = vld [vmem:[%s6200_s0 + $0x208] sm:$0xff]  ;;  %v633_v1 = vld [vmem:[%s6199_s1 + $0x8b8] sm:$0xff] }
  0xa3   :  { %1276 = vmatprep.subr.mxu0 %v517_v2  ;;  %997 = vmatprep.subr.mxu1 %v451_v3  ;;  %v105_v2 = vld [vmem:[%s6200_s0 + $0x258] sm:$0xff]  ;;  %v632_v3 = vld [vmem:[%s6199_s1 + $0x8b0] sm:$0xff] }
  0xa4   :  { %1277 = vmatpush2.msra.mxu0 %v516_v4  ;;  %998 = vmatpush2.msra.mxu1 %v450_v5  ;;  %v97_v4 = vld [vmem:[%s6200_s0 + $0x218] sm:$0xff]  ;;  %v559_v5 = vld [vmem:[%s6199_s1 + $0x668] sm:$0xff] }
  0xa5   :  { %999 = vmatprep.mubr.f32.mxu1 %v33_v6  ;;  %1278 = vmatprep.subr.mxu0 %v515_v7  ;;  %v107_v6 = vld [vmem:[%s6200_s0 + $0x268] sm:$0xff]  ;;  %v558_v7 = vld [vmem:[%s6199_s1 + $0x660] sm:$0xff] }
  0xa6   :  { %1000 = vmatmul.mubr.f32.vlgmr.msra.gmra.mxu1 %v32_v8  ;;  %1279 = vmatpush2.msra.mxu0 %v514_v9  ;;  %v104_v8 = vld [vmem:[%s6200_s0 + $0x250] sm:$0xff]  ;;  %v557_v9 = vld [vmem:[%s6199_s1 + $0x658] sm:$0xff] }
  0xa7   :  { %1280 = vmatprep.mubr.f32.mxu0 %v35_v10  ;;  %1497 = vmatprep.subr.mxu1 %v577_v11  ;;  %v114_v10 = vld [vmem:[%s6200_s0 + $0x2a0] sm:$0xff]  ;;  %v556_v11 = vld [vmem:[%s6199_s1 + $0x650] sm:$0xff] }
  0xa8   :  { %1281 = vmatmul.mubr.f32.vlgmr.msra.gmra.mxu0 %v34_v12  ;;  %1498 = vmatpush1.msra.mxu1 %v576_v13  ;;  %v106_v12 = vld [vmem:[%s6200_s0 + $0x260] sm:$0xff]  ;;  %v631_v13 = vld [vmem:[%s6199_s1 + $0x8a8] sm:$0xff] }
  0xa9   :  { %1778 = vmatprep.subr.mxu0 %v641_v14  ;;  %1005 = vmatprep.mubr.f32.mxu1 %v42_v15  ;;  %v116_v14 = vld [vmem:[%s6200_s0 + $0x2b0] sm:$0xff]  ;;  %v630_v15 = vld [vmem:[%s6199_s1 + $0x8a0] sm:$0xff] }
  0xaa   :  { %1779 = vmatpush1.msra.mxu0 %v640_v16  ;;  %1006 = vmatmul.mubr.f32.gmra.mxu1 %v41_v17  ;;  %v113_v16 = vld [vmem:[%s6200_s0 + $0x298] sm:$0xff]  ;;  %v555_v17 = vld [vmem:[%s6199_s1 + $0x648] sm:$0xff] }
  0xab   :  { %1286 = vmatprep.mubr.f32.mxu0 %v44_v18  ;;  %1499 = vmatprep.subr.mxu1 %v575_v19  ;;  %v123_v18 = vld [vmem:[%s6200_s0 + $0x2e8] sm:$0xff]  ;;  %v554_v19 = vld [vmem:[%s6199_s1 + $0x640] sm:$0xff] }
  0xac   :  { %1287 = vmatmul.mubr.f32.gmra.mxu0 %v43_v20  ;;  %1500 = vmatpush1.msra.mxu1 %v574_v21  ;;  %v115_v20 = vld [vmem:[%s6200_s0 + $0x2a8] sm:$0xff]  ;;  %v553_v21 = vld [vmem:[%s6199_s1 + $0x638] sm:$0xff] }
  0xad   :  { %1011 = vmatprep.mubr.f32.mxu1 %v51_v22  ;;  %1292 = vmatprep.mubr.f32.mxu0 %v53_v23  ;;  %v125_v22 = vld [vmem:[%s6200_s0 + $0x2f8] sm:$0xff]  ;;  %v552_v23 = vld [vmem:[%s6199_s1 + $0x630] sm:$0xff] }
  0xae   :  { %1012 = vmatmul.mubr.f32.gmra.mxu1 %v50_v24  ;;  %1501 = vmatprep.subr.mxu1 %v573_v25  ;;  %v122_v24 = vld [vmem:[%s6200_s0 + $0x2e0] sm:$0xff]  ;;  %v629_v25 = vld [vmem:[%s6199_s1 + $0x898] sm:$0xff] }
  0xaf   :  { %1502 = vmatpush1.msra.mxu1 %v572_v26  ;;  %1017 = vmatprep.mubr.f32.mxu1 %v60_v27  ;;  %v132_v26 = vld [vmem:[%s6200_s0 + $0x330] sm:$0xff] }
  0xb0   :  { %1293 = vmatmul.mubr.f32.gmra.mxu0 %v52_v28  ;;  %1780 = vmatprep.subr.mxu0 %v639_v29  ;;  %v628_v27 = vld [vmem:[%s6199_s1 + $0x890] sm:$0xff]  ;;  %v551_v29 = vld [vmem:[%s6199_s1 + $0x628] sm:$0xff] }
  0xb1   :  { %1298 = vmatprep.mubr.f32.mxu0 %v62_v30  ;;  %1781 = vmatpush1.msra.mxu0 %v638_v31  ;;  %v124_v28 = vld [vmem:[%s6200_s0 + $0x2f0] sm:$0xff]  ;;  %v134_v30 = vld [vmem:[%s6200_s0 + $0x340] sm:$0xff] }
  0xb2   :  { %1018 = vmatmul.mubr.f32.gmra.mxu1 %v59_v32  ;;  %1503 = vmatprep.subr.mxu1 %v571_v33  ;;  %v550_v31 = vld [vmem:[%s6199_s1 + $0x620] sm:$0xff]  ;;  %v131_v32 = vld [vmem:[%s6200_s0 + $0x328] sm:$0xff]  ;;  %v549_v33 = vld [vmem:[%s6199_s1 + $0x618] sm:$0xff] }
  0xb3   :  { %1023 = vmatprep.mubr.f32.mxu1 %v69_v34  ;;  %1504 = vmatpush1.msra.mxu1 %v570_v35  ;;  %v141_v34 = vld [vmem:[%s6200_s0 + $0x378] sm:$0xff]  ;;  %v548_v35 = vld [vmem:[%s6199_s1 + $0x610] sm:$0xff] }
  0xb4   :  { %1299 = vmatmul.mubr.f32.gmra.mxu0 %v61_v36  ;;  %1505 = vmatprep.subr.mxu1 %v569_v37  ;;  %v133_v36 = vld [vmem:[%s6200_s0 + $0x338] sm:$0xff]  ;;  %v627_v37 = vld [vmem:[%s6199_s1 + $0x888] sm:$0xff] }
  0xb5   :  { %1304 = vmatprep.mubr.f32.mxu0 %v71_v38  ;;  %1506 = vmatpush1.msra.mxu1 %v568_v39  ;;  %v143_v38 = vld [vmem:[%s6200_s0 + $0x388] sm:$0xff]  ;;  %v626_v39 = vld [vmem:[%s6199_s1 + $0x880] sm:$0xff] }
  0xb6   :  { %1024 = vmatmul.mubr.f32.gmra.mxu1 %v68_v40  ;;  %1782 = vmatprep.subr.mxu0 %v637_v41  ;;  %v140_v40 = vld [vmem:[%s6200_s0 + $0x370] sm:$0xff]  ;;  %v547_v41 = vld [vmem:[%s6199_s1 + $0x608] sm:$0xff] }
  0xb7   :  { %1029 = vmatprep.mubr.f32.mxu1 %v78_v42  ;;  %1783 = vmatpush1.msra.mxu0 %v636_v43  ;;  %v150_v42 = vld [vmem:[%s6200_s0 + $0x3c0] sm:$0xff] }
  0xb8   :  { %1305 = vmatmul.mubr.f32.gmra.mxu0 %v70_v44  ;;  %1507 = vmatprep.subr.mxu1 %v567_v45  ;;  %v546_v43 = vld [vmem:[%s6199_s1 + $0x600] sm:$0xff]  ;;  %v609_v45 = vld [vmem:[%s6199_s1 + $0x7f8] sm:$0xff] }
  0xb9   :  { %1310 = vmatprep.mubr.f32.mxu0 %v80_v46  ;;  %1508 = vmatpush1.msra.mxu1 %v566_v47  ;;  %v142_v44 = vld [vmem:[%s6200_s0 + $0x380] sm:$0xff]  ;;  %v152_v46 = vld [vmem:[%s6200_s0 + $0x3d0] sm:$0xff] }
  0xba   :  { %1030 = vmatmul.mubr.f32.gmra.mxu1 %v77_v48  ;;  %1509 = vmatprep.subr.mxu1 %v565_v49  ;;  %v608_v47 = vld [vmem:[%s6199_s1 + $0x7f0] sm:$0xff]  ;;  %v149_v48 = vld [vmem:[%s6200_s0 + $0x3b8] sm:$0xff] }
  0xbb   :  { %1035 = vmatprep.mubr.f32.mxu1 %v87_v50  ;;  %1510 = vmatpush1.msra.mxu1 %v564_v51  ;;  %v625_v49 = vld [vmem:[%s6199_s1 + $0x878] sm:$0xff]  ;;  %v159_v50 = vld [vmem:[%s6200_s0 + $0x408] sm:$0xff]  ;;  %v624_v51 = vld [vmem:[%s6199_s1 + $0x870] sm:$0xff] }
  0xbc   :  { %1311 = vmatmul.mubr.f32.gmra.mxu0 %v79_v52  ;;  %1784 = vmatprep.subr.mxu0 %v635_v53  ;;  %v151_v52 = vld [vmem:[%s6200_s0 + $0x3c8] sm:$0xff] }
  0xbd   :  { %1316 = vmatprep.mubr.f32.mxu0 %v89_v54  ;;  %1785 = vmatpush1.msra.mxu0 %v634_v55  ;;  %v607_v53 = vld [vmem:[%s6199_s1 + $0x7e8] sm:$0xff]  ;;  %v161_v54 = vld [vmem:[%s6200_s0 + $0x418] sm:$0xff]  ;;  %v606_v55 = vld [vmem:[%s6199_s1 + $0x7e0] sm:$0xff] }
  0xbe   :  { %1036 = vmatmul.mubr.f32.gmra.mxu1 %v86_v56  ;;  %1511 = vmatprep.subr.mxu1 %v563_v57  ;;  %v158_v56 = vld [vmem:[%s6200_s0 + $0x400] sm:$0xff]  ;;  %v605_v57 = vld [vmem:[%s6199_s1 + $0x7d8] sm:$0xff] }
  0xbf   :  { %1041 = vmatprep.mubr.f32.mxu1 %v96_v58  ;;  %1512 = vmatpush1.msra.mxu1 %v562_v59  ;;  %v168_v58 = vld [vmem:[%s6200_s0 + $0x450] sm:$0xff] }
  0xc0   :  { %1317 = vmatmul.mubr.f32.gmra.mxu0 %v88_v60  ;;  %1513 = vmatprep.subr.mxu1 %v561_v61  ;;  %v604_v59 = vld [vmem:[%s6199_s1 + $0x7d0] sm:$0xff]  ;;  %v623_v61 = vld [vmem:[%s6199_s1 + $0x868] sm:$0xff] }
  0xc1   :  { %1322 = vmatprep.mubr.f32.mxu0 %v98_v62  ;;  %1514 = vmatpush1.msra.mxu1 %v560_v63  ;;  %v160_v60 = vld [vmem:[%s6200_s0 + $0x410] sm:$0xff]  ;;  %v170_v62 = vld [vmem:[%s6200_s0 + $0x460] sm:$0xff] }
  0xc2   :  { %1042 = vmatmul.mubr.f32.gmra.mxu1 %v95_v0  ;;  %1786 = vmatprep.subr.mxu0 %v633_v1  ;;  %v622_v63 = vld [vmem:[%s6199_s1 + $0x860] sm:$0xff]  ;;  %v167_v0 = vld [vmem:[%s6200_s0 + $0x448] sm:$0xff] }
  0xc3   :  { %1047 = vmatprep.mubr.f32.mxu1 %v105_v2  ;;  %1787 = vmatpush1.msra.mxu0 %v632_v3  ;;  %v603_v1 = vld [vmem:[%s6199_s1 + $0x7c8] sm:$0xff]  ;;  %v177_v2 = vld [vmem:[%s6200_s0 + $0x498] sm:$0xff]  ;;  %v602_v3 = vld [vmem:[%s6199_s1 + $0x7c0] sm:$0xff] }
  0xc4   :  { %1323 = vmatmul.mubr.f32.gmra.mxu0 %v97_v4  ;;  %1515 = vmatprep.subr.mxu1 %v559_v5  ;;  %v169_v4 = vld [vmem:[%s6200_s0 + $0x458] sm:$0xff] }
  0xc5   :  { %1328 = vmatprep.mubr.f32.mxu0 %v107_v6  ;;  %1516 = vmatpush1.msra.mxu1 %v558_v7  ;;  %v601_v5 = vld [vmem:[%s6199_s1 + $0x7b8] sm:$0xff]  ;;  %v179_v6 = vld [vmem:[%s6200_s0 + $0x4a8] sm:$0xff]  ;;  %v600_v7 = vld [vmem:[%s6199_s1 + $0x7b0] sm:$0xff] }
  0xc6   :  { %1048 = vmatmul.mubr.f32.gmra.mxu1 %v104_v8  ;;  %1517 = vmatprep.subr.mxu1 %v557_v9  ;;  %v176_v8 = vld [vmem:[%s6200_s0 + $0x490] sm:$0xff]  ;;  %v621_v9 = vld [vmem:[%s6199_s1 + $0x858] sm:$0xff] }
  0xc7   :  { %1053 = vmatprep.mubr.f32.mxu1 %v114_v10  ;;  %1518 = vmatpush1.msra.mxu1 %v556_v11  ;;  %v186_v10 = vld [vmem:[%s6200_s0 + $0x4e0] sm:$0xff]  ;;  %v620_v11 = vld [vmem:[%s6199_s1 + $0x850] sm:$0xff] }
  0xc8   :  { %1329 = vmatmul.mubr.f32.gmra.mxu0 %v106_v12  ;;  %1788 = vmatprep.subr.mxu0 %v631_v13  ;;  %v178_v12 = vld [vmem:[%s6200_s0 + $0x4a0] sm:$0xff]  ;;  %v599_v13 = vld [vmem:[%s6199_s1 + $0x7a8] sm:$0xff] }
  0xc9   :  { %1334 = vmatprep.mubr.f32.mxu0 %v116_v14  ;;  %1789 = vmatpush1.msra.mxu0 %v630_v15  ;;  %v188_v14 = vld [vmem:[%s6200_s0 + $0x4f0] sm:$0xff]  ;;  %v598_v15 = vld [vmem:[%s6199_s1 + $0x7a0] sm:$0xff] }
  0xca   :  { %1054 = vmatmul.mubr.f32.gmra.mxu1 %v113_v16  ;;  %1519 = vmatprep.subr.mxu1 %v555_v17  ;;  %v185_v16 = vld [vmem:[%s6200_s0 + $0x4d8] sm:$0xff] }
  0xcb   :  { %1059 = vmatprep.mubr.f32.mxu1 %v123_v18  ;;  %1520 = vmatpush1.msra.mxu1 %v554_v19  ;;  %v597_v17 = vld [vmem:[%s6199_s1 + $0x798] sm:$0xff]  ;;  %v195_v18 = vld [vmem:[%s6200_s0 + $0x528] sm:$0xff]  ;;  %v596_v19 = vld [vmem:[%s6199_s1 + $0x790] sm:$0xff] }
  0xcc   :  { %1335 = vmatmul.mubr.f32.gmra.mxu0 %v115_v20  ;;  %1521 = vmatprep.subr.mxu1 %v553_v21  ;;  %v187_v20 = vld [vmem:[%s6200_s0 + $0x4e8] sm:$0xff] }
  0xcd   :  { %1340 = vmatprep.mubr.f32.mxu0 %v125_v22  ;;  %1522 = vmatpush1.msra.mxu1 %v552_v23  ;;  %v619_v21 = vld [vmem:[%s6199_s1 + $0x848] sm:$0xff]  ;;  %v197_v22 = vld [vmem:[%s6200_s0 + $0x538] sm:$0xff]  ;;  %v618_v23 = vld [vmem:[%s6199_s1 + $0x840] sm:$0xff] }
  0xce   :  { %1060 = vmatmul.mubr.f32.gmra.mxu1 %v122_v24  ;;  %1790 = vmatprep.subr.mxu0 %v629_v25  ;;  %v194_v24 = vld [vmem:[%s6200_s0 + $0x520] sm:$0xff]  ;;  %v595_v25 = vld [vmem:[%s6199_s1 + $0x788] sm:$0xff] }
  0xcf   :  { %1065 = vmatprep.mubr.f32.mxu1 %v132_v26  ;;  %1791 = vmatpush1.msra.mxu0 %v628_v27  ;;  %v204_v26 = vld [vmem:[%s6200_s0 + $0x570] sm:$0xff]  ;;  %v594_v27 = vld [vmem:[%s6199_s1 + $0x780] sm:$0xff] }
  0xd0   :  { %1341 = vmatmul.mubr.f32.gmra.mxu0 %v124_v28  ;;  %1523 = vmatprep.subr.mxu1 %v551_v29  ;;  %v196_v28 = vld [vmem:[%s6200_s0 + $0x530] sm:$0xff]  ;;  %v593_v29 = vld [vmem:[%s6199_s1 + $0x778] sm:$0xff] }
  0xd1   :  { %1346 = vmatprep.mubr.f32.mxu0 %v134_v30  ;;  %1524 = vmatpush1.msra.mxu1 %v550_v31  ;;  %v206_v30 = vld [vmem:[%s6200_s0 + $0x580] sm:$0xff]  ;;  %v592_v31 = vld [vmem:[%s6199_s1 + $0x770] sm:$0xff] }
  0xd2   :  { %1066 = vmatmul.mubr.f32.gmra.mxu1 %v131_v32  ;;  %1525 = vmatprep.subr.mxu1 %v549_v33  ;;  %v203_v32 = vld [vmem:[%s6200_s0 + $0x568] sm:$0xff]  ;;  %v617_v33 = vld [vmem:[%s6199_s1 + $0x838] sm:$0xff] }
  0xd3   :  { %1071 = vmatprep.mubr.f32.mxu1 %v141_v34  ;;  %1526 = vmatpush1.msra.mxu1 %v548_v35  ;;  %v213_v34 = vld [vmem:[%s6200_s0 + $0x5b8] sm:$0xff]  ;;  %v616_v35 = vld [vmem:[%s6199_s1 + $0x830] sm:$0xff] }
  0xd4   :  { %1347 = vmatmul.mubr.f32.gmra.mxu0 %v133_v36  ;;  %1792 = vmatprep.subr.mxu0 %v627_v37  ;;  %v205_v36 = vld [vmem:[%s6200_s0 + $0x578] sm:$0xff]  ;;  %v591_v37 = vld [vmem:[%s6199_s1 + $0x768] sm:$0xff] }
  0xd5   :  { %1352 = vmatprep.mubr.f32.mxu0 %v143_v38  ;;  %1793 = vmatpush1.msra.mxu0 %v626_v39  ;;  %v215_v38 = vld [vmem:[%s6200_s0 + $0x5c8] sm:$0xff]  ;;  %v590_v39 = vld [vmem:[%s6199_s1 + $0x760] sm:$0xff] }
  0xd6   :  { %1072 = vmatmul.mubr.f32.gmra.mxu1 %v140_v40  ;;  %1527 = vmatprep.subr.mxu1 %v547_v41  ;;  %v212_v40 = vld [vmem:[%s6200_s0 + $0x5b0] sm:$0xff]  ;;  %v589_v41 = vld [vmem:[%s6199_s1 + $0x758] sm:$0xff] }
  0xd7   :  { %1077 = vmatprep.mubr.f32.mxu1 %v150_v42  ;;  %1528 = vmatpush1.msra.mxu1 %v546_v43  ;;  %v222_v42 = vld [vmem:[%s6200_s0 + $0x600] sm:$0xff]  ;;  %v588_v43 = vld [vmem:[%s6199_s1 + $0x750] sm:$0xff] }
  0xd8   :  { %1353 = vmatmul.mubr.f32.gmra.mxu0 %v142_v44  ;;  %1529 = vmatprep.subr.mxu1 %v609_v45  ;;  %v214_v44 = vld [vmem:[%s6200_s0 + $0x5c0] sm:$0xff]  ;;  %v615_v45 = vld [vmem:[%s6199_s1 + $0x828] sm:$0xff] }
  0xd9   :  { %1358 = vmatprep.mubr.f32.mxu0 %v152_v46  ;;  %1530 = vmatpush2.msra.mxu1 %v608_v47  ;;  %v224_v46 = vld [vmem:[%s6200_s0 + $0x610] sm:$0xff]  ;;  %v614_v47 = vld [vmem:[%s6199_s1 + $0x820] sm:$0xff] }
  0xda   :  { %1078 = vmatmul.mubr.f32.gmra.mxu1 %v149_v48  ;;  %1794 = vmatprep.subr.mxu0 %v625_v49  ;;  %v221_v48 = vld [vmem:[%s6200_s0 + $0x5f8] sm:$0xff]  ;;  %v587_v49 = vld [vmem:[%s6199_s1 + $0x748] sm:$0xff] }
  0xdb   :  { %1083 = vmatprep.mubr.f32.mxu1 %v159_v50  ;;  %1795 = vmatpush1.msra.mxu0 %v624_v51  ;;  %v231_v50 = vld [vmem:[%s6200_s0 + $0x648] sm:$0xff]  ;;  %v586_v51 = vld [vmem:[%s6199_s1 + $0x740] sm:$0xff] }
  0xdc   :  { %1359 = vmatmul.mubr.f32.gmra.mxu0 %v151_v52  ;;  %1531 = vmatprep.subr.mxu1 %v607_v53  ;;  %v223_v52 = vld [vmem:[%s6200_s0 + $0x608] sm:$0xff]  ;;  %v585_v53 = vld [vmem:[%s6199_s1 + $0x738] sm:$0xff] }
  0xdd   :  { %1364 = vmatprep.mubr.f32.mxu0 %v161_v54  ;;  %1532 = vmatpush2.msra.mxu1 %v606_v55  ;;  %v233_v54 = vld [vmem:[%s6200_s0 + $0x658] sm:$0xff]  ;;  %v584_v55 = vld [vmem:[%s6199_s1 + $0x730] sm:$0xff] }
  0xde   :  { %1084 = vmatmul.mubr.f32.gmra.mxu1 %v158_v56  ;;  %1533 = vmatprep.subr.mxu1 %v605_v57  ;;  %v230_v56 = vld [vmem:[%s6200_s0 + $0x640] sm:$0xff]  ;;  %v613_v57 = vld [vmem:[%s6199_s1 + $0x818] sm:$0xff] }
  0xdf   :  { %1089 = vmatprep.mubr.f32.mxu1 %v168_v58  ;;  %1534 = vmatpush2.msra.mxu1 %v604_v59  ;;  %v240_v58 = vld [vmem:[%s6200_s0 + $0x690] sm:$0xff] }
  0xe0   :  { %1365 = vmatmul.mubr.f32.gmra.mxu0 %v160_v60  ;;  %1796 = vmatprep.subr.mxu0 %v623_v61  ;;  %v612_v59 = vld [vmem:[%s6199_s1 + $0x810] sm:$0xff]  ;;  %v583_v61 = vld [vmem:[%s6199_s1 + $0x728] sm:$0xff] }
  0xe1   :  { %1370 = vmatprep.mubr.f32.mxu0 %v170_v62  ;;  %1797 = vmatpush1.msra.mxu0 %v622_v63  ;;  %v232_v60 = vld [vmem:[%s6200_s0 + $0x650] sm:$0xff]  ;;  %v242_v62 = vld [vmem:[%s6200_s0 + $0x6a0] sm:$0xff] }
  0xe2   :  { %1090 = vmatmul.mubr.f32.gmra.mxu1 %v167_v0  ;;  %1535 = vmatprep.subr.mxu1 %v603_v1  ;;  %v582_v63 = vld [vmem:[%s6199_s1 + $0x720] sm:$0xff]  ;;  %v239_v0 = vld [vmem:[%s6200_s0 + $0x688] sm:$0xff]  ;;  %v581_v1 = vld [vmem:[%s6199_s1 + $0x718] sm:$0xff] }
  0xe3   :  { %1095 = vmatprep.mubr.f32.mxu1 %v177_v2  ;;  %1536 = vmatpush2.msra.mxu1 %v602_v3  ;;  %v249_v2 = vld [vmem:[%s6200_s0 + $0x6d8] sm:$0xff]  ;;  %v580_v3 = vld [vmem:[%s6199_s1 + $0x710] sm:$0xff] }
  0xe4   :  { %1371 = vmatmul.mubr.f32.gmra.mxu0 %v169_v4  ;;  %1537 = vmatprep.subr.mxu1 %v601_v5  ;;  %v241_v4 = vld [vmem:[%s6200_s0 + $0x698] sm:$0xff]  ;;  %v611_v5 = vld [vmem:[%s6199_s1 + $0x808] sm:$0xff] }
  0xe5   :  { %1376 = vmatprep.mubr.f32.mxu0 %v179_v6  ;;  %1538 = vmatpush2.msra.mxu1 %v600_v7  ;;  %v251_v6 = vld [vmem:[%s6200_s0 + $0x6e8] sm:$0xff]  ;;  %v610_v7 = vld [vmem:[%s6199_s1 + $0x800] sm:$0xff] }
  0xe6   :  { %1096 = vmatmul.mubr.f32.gmra.mxu1 %v176_v8  ;;  %1798 = vmatprep.subr.mxu0 %v621_v9  ;;  %v248_v8 = vld [vmem:[%s6200_s0 + $0x6d0] sm:$0xff] }
  0xe7   :  { %1101 = vmatprep.mubr.f32.mxu1 %v186_v10  ;;  %1799 = vmatpush1.msra.mxu0 %v620_v11  ;;  %v579_v10 = vld [vmem:[%s6199_s1 + $0x708] sm:$0xff]  ;;  %v258_v11 = vld [vmem:[%s6200_s0 + $0x720] sm:$0xff] }
  0xe8   :  { %1377 = vmatmul.mubr.f32.gmra.mxu0 %v178_v12  ;;  %1539 = vmatprep.subr.mxu1 %v599_v13  ;;  %v578_v13 = vld [vmem:[%s6199_s1 + $0x700] sm:$0xff] }
  0xe9   :  { %1382 = vmatprep.mubr.f32.mxu0 %v188_v14  ;;  %1540 = vmatpush2.msra.mxu1 %v598_v15  ;;  %v250_v14 = vld [vmem:[%s6200_s0 + $0x6e0] sm:$0xff] }
  0xea   :  { %1102 = vmatmul.mubr.f32.gmra.mxu1 %v185_v16  ;;  %1541 = vmatprep.subr.mxu1 %v597_v17  ;;  %v260_v16 = vld [vmem:[%s6200_s0 + $0x730] sm:$0xff] }
  0xeb   :  { %1107 = vmatprep.mubr.f32.mxu1 %v195_v18  ;;  %1542 = vmatpush2.msra.mxu1 %v596_v19  ;;  %v257_v18 = vld [vmem:[%s6200_s0 + $0x718] sm:$0xff] }
  0xec   :  { %1383 = vmatmul.mubr.f32.gmra.mxu0 %v187_v20  ;;  %1800 = vmatprep.subr.mxu0 %v619_v21  ;;  %v267_v20 = vld [vmem:[%s6200_s0 + $0x768] sm:$0xff] }
  0xed   :  { %1388 = vmatprep.mubr.f32.mxu0 %v197_v22  ;;  %1801 = vmatpush1.msra.mxu0 %v618_v23  ;;  %v259_v22 = vld [vmem:[%s6200_s0 + $0x728] sm:$0xff] }
  0xee   :  { %1108 = vmatmul.mubr.f32.gmra.mxu1 %v194_v24  ;;  %1543 = vmatprep.subr.mxu1 %v595_v25  ;;  %v269_v24 = vld [vmem:[%s6200_s0 + $0x778] sm:$0xff] }
  0xef   :  { %1113 = vmatprep.mubr.f32.mxu1 %v204_v26  ;;  %1544 = vmatpush2.msra.mxu1 %v594_v27  ;;  %v266_v26 = vld [vmem:[%s6200_s0 + $0x760] sm:$0xff]  ;;  %v276_v27 = vld [vmem:[%s6200_s0 + $0x7b0] sm:$0xff] }
  0xf0   :  { %1389 = vmatmul.mubr.f32.gmra.mxu0 %v196_v28  ;;  %1545 = vmatprep.subr.mxu1 %v593_v29  ;;  %v268_v28 = vld [vmem:[%s6200_s0 + $0x770] sm:$0xff] }
  0xf1   :  { %1394 = vmatprep.mubr.f32.mxu0 %v206_v30  ;;  %1546 = vmatpush2.msra.mxu1 %v592_v31  ;;  %v278_v30 = vld [vmem:[%s6200_s0 + $0x7c0] sm:$0xff] }
  0xf2   :  { %1114 = vmatmul.mubr.f32.gmra.mxu1 %v203_v32  ;;  %1802 = vmatprep.subr.mxu0 %v617_v33  ;;  %v275_v32 = vld [vmem:[%s6200_s0 + $0x7a8] sm:$0xff] }
  0xf3   :  { %1119 = vmatprep.mubr.f32.mxu1 %v213_v34  ;;  %1803 = vmatpush1.msra.mxu0 %v616_v35  ;;  %v285_v34 = vld [vmem:[%s6200_s0 + $0x7f8] sm:$0xff] }
  0xf4   :  { %1395 = vmatmul.mubr.f32.gmra.mxu0 %v205_v36  ;;  %1547 = vmatprep.subr.mxu1 %v591_v37  ;;  %v277_v36 = vld [vmem:[%s6200_s0 + $0x7b8] sm:$0xff]  ;;  %v287_v37 = vld [vmem:[%s6200_s0 + $0x808] sm:$0xff] }
  0xf5   :  { %1400 = vmatprep.mubr.f32.mxu0 %v215_v38  ;;  %1548 = vmatpush2.msra.mxu1 %v590_v39  ;;  %v284_v39 = vld [vmem:[%s6200_s0 + $0x7f0] sm:$0xff] }
  0xf6   :  { %1120 = vmatmul.mubr.f32.gmra.mxu1 %v212_v40  ;;  %1549 = vmatprep.subr.mxu1 %v589_v41  ;;  %v294_v40 = vld [vmem:[%s6200_s0 + $0x840] sm:$0xff] }
  0xf7   :  { %1125 = vmatprep.mubr.f32.mxu1 %v222_v42  ;;  %1550 = vmatpush2.msra.mxu1 %v588_v43  ;;  %v286_v43 = vld [vmem:[%s6200_s0 + $0x800] sm:$0xff] }
  0xf8   :  { %1401 = vmatmul.mubr.f32.gmra.mxu0 %v214_v44  ;;  %1804 = vmatprep.subr.mxu0 %v615_v45  ;;  %v296_v44 = vld [vmem:[%s6200_s0 + $0x850] sm:$0xff] }
  0xf9   :  { %1406 = vmatprep.mubr.f32.mxu0 %v224_v46  ;;  %1805 = vmatpush1.msra.mxu0 %v614_v47  ;;  %v293_v46 = vld [vmem:[%s6200_s0 + $0x838] sm:$0xff]  ;;  %v303_v47 = vld [vmem:[%s6200_s0 + $0x888] sm:$0xff] }
  0xfa   :  { %1126 = vmatmul.mubr.f32.gmra.mxu1 %v221_v48  ;;  %1551 = vmatprep.subr.mxu1 %v587_v49  ;;  %v295_v49 = vld [vmem:[%s6200_s0 + $0x848] sm:$0xff] }
  0xfb   :  { %1131 = vmatprep.mubr.f32.mxu1 %v231_v50  ;;  %1552 = vmatpush2.msra.mxu1 %v586_v51  ;;  %v305_v51 = vld [vmem:[%s6200_s0 + $0x898] sm:$0xff] }
  0xfc   :  { %1407 = vmatmul.mubr.f32.gmra.mxu0 %v223_v52  ;;  %1553 = vmatprep.subr.mxu1 %v585_v53  ;;  %v302_v53 = vld [vmem:[%s6200_s0 + $0x880] sm:$0xff] }
  0xfd   :  { %1412 = vmatprep.mubr.f32.mxu0 %v233_v54  ;;  %1554 = vmatpush2.msra.mxu1 %v584_v55  ;;  %v312_v55 = vld [vmem:[%s6200_s0 + $0x8d0] sm:$0xff] }
  0xfe   :  { %1132 = vmatmul.mubr.f32.gmra.mxu1 %v230_v56  ;;  %1806 = vmatprep.subr.mxu0 %v613_v57  ;;  %v304_v56 = vld [vmem:[%s6200_s0 + $0x890] sm:$0xff]  ;;  %v314_v57 = vld [vmem:[%s6200_s0 + $0x8e0] sm:$0xff] }
  0xff   :  { %1137 = vmatprep.mubr.f32.mxu1 %v240_v58  ;;  %1807 = vmatpush1.msra.mxu0 %v612_v59  ;;  %v311_v59 = vld [vmem:[%s6200_s0 + $0x8c8] sm:$0xff] }
 0x100   :  { %1413 = vmatmul.mubr.f32.gmra.mxu0 %v232_v60  ;;  %1555 = vmatprep.subr.mxu1 %v583_v61  ;;  %v321_v61 = vld [vmem:[%s6200_s0 + $0x918] sm:$0xff] }
 0x101   :  { %1418 = vmatprep.mubr.f32.mxu0 %v242_v62  ;;  %1556 = vmatpush2.msra.mxu1 %v582_v63  ;;  %v313_v63 = vld [vmem:[%s6200_s0 + $0x8d8] sm:$0xff] }
 0x102   :  { %1138 = vmatmul.mubr.f32.gmra.mxu1 %v239_v0  ;;  %1557 = vmatprep.subr.mxu1 %v581_v1  ;;  %v323_v1 = vld [vmem:[%s6200_s0 + $0x928] sm:$0xff] }
 0x103   :  { %1143 = vmatprep.mubr.f32.mxu1 %v249_v2  ;;  %v4302_v9 = vpop.f32.mrf.mxu1  ;;  %1558 = vmatpush2.msra.mxu1 %v580_v3  ;;  %v320_v2 = vld [vmem:[%s6200_s0 + $0x910] sm:$0xff] }
 0x104   :  { %1419 = vmatmul.mubr.f32.gmra.mxu0 %v241_v4  ;;  %v4310_v12 = vpop.f32.mrf.mxu0  ;;  %1808 = vmatprep.subr.mxu0 %v611_v5  ;;  %v330_v4 = vld [vmem:[%s6200_s0 + $0x960] sm:$0xff] }
 0x105   :  { %1424 = vmatprep.mubr.f32.mxu0 %v251_v6  ;;  %v4318_v15 = vpop.f32.mrf.mxu1  ;;  %1809 = vmatpush1.msra.mxu0 %v610_v7  ;;  %v322_v6 = vld [vmem:[%s6200_s0 + $0x920] sm:$0xff] }
 0x106   :  { %1144 = vmatmul.mubr.f32.gmra.mxu1 %v248_v8  ;;  %v4323_v17 = vpop.f32.mrf.mxu0  ;;  %1559 = vmatprep.subr.mxu1 %v579_v10  ;;  %v332_v8 = vld [vmem:[%s6200_s0 + $0x970] sm:$0xff] }
 0x107   :  { %1149 = vmatprep.mubr.f32.mxu1 %v258_v11  ;;  %v4328_v19 = vpop.f32.mrf.mxu1  ;;  %1560 = vmatpush2.msra.mxu1 %v578_v13  ;;  %v329_v11 = vld [vmem:[%s6200_s0 + $0x958] sm:$0xff]  ;;  %v339_v13 = vld [vmem:[%s6200_s0 + $0x9a8] sm:$0xff] }
 0x108   :  { %1425 = vmatmul.mubr.f32.gmra.mxu0 %v250_v14  ;;  %v4333_v21 = vpop.f32.mrf.mxu0  ;;  %v331_v14 = vld [vmem:[%s6200_s0 + $0x968] sm:$0xff] }
 0x109   :  { %1430 = vmatprep.mubr.f32.mxu0 %v260_v16  ;;  %v4338_v23 = vpop.f32.mrf.mxu1 }
 0x10a   :  { %1150 = vmatmul.mubr.f32.gmra.mxu1 %v257_v18  ;;  %v4343_v25 = vpop.f32.mrf.mxu0  ;;  %v341_v18 = vld [vmem:[%s6200_s0 + $0x9b8] sm:$0xff] }
 0x10b   :  { %1155 = vmatprep.mubr.f32.mxu1 %v267_v20 }
 0x10c   :  { %1431 = vmatmul.mubr.f32.gmra.mxu0 %v259_v22  ;;  %v338_v22 = vld [vmem:[%s6200_s0 + $0x9a0] sm:$0xff] }
 0x10d   :  { %1436 = vmatprep.mubr.f32.mxu0 %v269_v24  ;;  %v4354_v29 = vpop.f32.mrf.mxu1 }
 0x10e   :  { %1156 = vmatmul.mubr.f32.gmra.mxu1 %v266_v26  ;;  %v4359_v31 = vpop.f32.mrf.mxu0  ;;  %v348_v26 = vld [vmem:[%s6200_s0 + $0x9f0] sm:$0xff] }
 0x10f   :  { %1161 = vmatprep.mubr.f32.mxu1 %v276_v27  ;;  %v4364_v33 = vpop.f32.mrf.mxu1 }
 0x110   :  { %1437 = vmatmul.mubr.f32.gmra.mxu0 %v268_v28  ;;  %v4369_v35 = vpop.f32.mrf.mxu0  ;;  %v340_v28 = vld [vmem:[%s6200_s0 + $0x9b0] sm:$0xff] }
 0x111   :  { %1442 = vmatprep.mubr.f32.mxu0 %v278_v30  ;;  %v350_v30 = vld [vmem:[%s6200_s0 + $0xa00] sm:$0xff] }
 0x112   :  { %1162 = vmatmul.mubr.f32.gmra.mxu1 %v275_v32  ;;  %v4377_v38 = vpop.f32.mrf.mxu1 }
 0x113   :  { %1167 = vmatprep.mubr.f32.mxu1 %v285_v34  ;;  %v347_v34 = vld [vmem:[%s6200_s0 + $0x9e8] sm:$0xff] }
 0x114   :  { %1443 = vmatmul.mubr.f32.gmra.mxu0 %v277_v36  ;;  %v4385_v41 = vpop.f32.mrf.mxu0  ;;  %v4387_v42 = vpop.f32.mrf.mxu1 }
 0x115   :  { %1448 = vmatprep.mubr.f32.mxu0 %v287_v37  ;;  %v37_v37 = vld [vmem:[%s6200_s0 + $0x38] sm:$0xff] }
 0x116   :  { %1168 = vmatmul.mubr.f32.gmra.mxu1 %v284_v39  ;;  %v4395_v45 = vpop.f32.mrf.mxu0 }
 0x117   :  { %1173 = vmatprep.mubr.f32.mxu1 %v294_v40  ;;  %v349_v40 = vld [vmem:[%s6200_s0 + $0x9f8] sm:$0xff] }
 0x118   :  { %1449 = vmatmul.mubr.f32.gmra.mxu0 %v286_v43  ;;  %v4403_v48 = vpop.f32.mrf.mxu1 }
 0x119   :  { %1454 = vmatprep.mubr.f32.mxu0 %v296_v44  ;;  %v4408_v50 = vpop.f32.mrf.mxu0  ;;  %v36_v44 = vld [vmem:[%s6200_s0 + $0x30] sm:$0xff] }
 0x11a   :  { %1174 = vmatmul.mubr.f32.gmra.mxu1 %v293_v46  ;;  %v4413_v52 = vpop.f32.mrf.mxu1  ;;  %v46_v46 = vld [vmem:[%s6200_s0 + $0x80] sm:$0xff] }
 0x11b   :  { %1179 = vmatprep.mubr.f32.mxu1 %v303_v47  ;;  %v4418_v54 = vpop.f32.mrf.mxu0 }
 0x11c   :  { %1455 = vmatmul.mubr.f32.gmra.mxu0 %v295_v49  ;;  %v6205_v49 = vmov 0.0  }
 0x11d   :  { %1460 = vmatprep.mubr.f32.mxu0 %v305_v51  ;;  %v38_v51 = vld [vmem:[%s6200_s0 + $0x40] sm:$0xff] }
 0x11e   :  { %1180 = vmatmul.mubr.f32.gmra.mxu1 %v302_v53  ;;  %v4429_v58 = vpop.f32.mrf.mxu1 }
 0x11f   :  { %1185 = vmatprep.mubr.f32.mxu1 %v312_v55  ;;  %v4434_v60 = vpop.f32.mrf.mxu0 }
 0x120   :  { %1461 = vmatmul.mubr.f32.gmra.mxu0 %v304_v56  ;;  %v4439_v62 = vpop.f32.mrf.mxu1  ;;  %v45_v56 = vld [vmem:[%s6200_s0 + $0x78] sm:$0xff] }
 0x121   :  { %1466 = vmatprep.mubr.f32.mxu0 %v314_v57  ;;  %v4444_v0 = vpop.f32.mrf.mxu0 }
 0x122   :  { %1186 = vmatmul.mubr.f32.gmra.mxu1 %v311_v59  ;;  %v55_v59 = vld [vmem:[%s6200_s0 + $0xc8] sm:$0xff] }
 0x123   :  { %1191 = vmatprep.mubr.f32.mxu1 %v321_v61  ;;  %v4452_v3 = vpop.f32.mrf.mxu1  ;;  %v47_v61 = vld [vmem:[%s6200_s0 + $0x88] sm:$0xff] }
 0x124   :  { %6254 = vst [vmem:[#allocation5_spill] sm:$0xff] %v4452_v3  ;;  %1467 = vmatmul.mubr.f32.gmra.mxu0 %v313_v63  ;;  %v4457_v5 = vpop.f32.mrf.mxu0 }
 0x125   :  { %1472 = vmatprep.mubr.f32.mxu0 %v323_v1  ;;  %v4462_v7 = vpop.f32.mrf.mxu1 }
 0x126   :  { %6255 = vst [vmem:[#allocation6_spill] sm:$0xff] %v4462_v7  ;;  %1192 = vmatmul.mubr.f32.gmra.mxu1 %v320_v2  ;;  %v4467_v10 = vpop.f32.mrf.mxu0  ;;  %v54_v2 = vld [vmem:[%s6200_s0 + $0xc0] sm:$0xff] }
 0x127   :  { %1197 = vmatprep.mubr.f32.mxu1 %v330_v4 }
 0x128   :  { %1473 = vmatmul.mubr.f32.gmra.mxu0 %v322_v6  ;;  %v64_v6 = vld [vmem:[%s6200_s0 + $0x110] sm:$0xff] }
 0x129   :  { %1478 = vmatprep.mubr.f32.mxu0 %v332_v8  ;;  %v4478_v16 = vpop.f32.mrf.mxu1 }
 0x12a   :  { %6256 = vst [vmem:[#allocation7_spill] sm:$0xff] %v4478_v16  ;;  %1198 = vmatmul.mubr.f32.gmra.mxu1 %v329_v11  ;;  %v4483_v20 = vpop.f32.mrf.mxu0  ;;  %v56_v11 = vld [vmem:[%s6200_s0 + $0xd0] sm:$0xff] }
 0x12b   :  { %1203 = vmatprep.mubr.f32.mxu1 %v339_v13  ;;  %v4488_v24 = vpop.f32.mrf.mxu1  ;;  %v63_v13 = vld [vmem:[%s6200_s0 + $0x108] sm:$0xff] }
 0x12c   :  { %6257 = vst [vmem:[#allocation8_spill] sm:$0xff] %v4488_v24  ;;  %1479 = vmatmul.mubr.f32.gmra.mxu0 %v331_v14  ;;  %v4493_v27 = vpop.f32.mrf.mxu0  ;;  %v163_v24 = vld [vmem:[%s6200_s0 + $0x428] sm:$0xff] }
 0x12d   :  { %1484 = vmatprep.mubr.f32.mxu0 %v341_v18  ;;  %v73_v18 = vld [vmem:[%s6200_s0 + $0x158] sm:$0xff] }
 0x12e   :  { %1204 = vmatmul.mubr.f32.gmra.mxu1 %v338_v22  ;;  %v4501_v32 = vpop.f32.mrf.mxu1 }
 0x12f   :  { %6258 = vst [vmem:[#allocation9_spill] sm:$0xff] %v4501_v32  ;;  %1209 = vmatprep.mubr.f32.mxu1 %v348_v26  ;;  %v4506_v36 = vpop.f32.mrf.mxu0  ;;  %v65_v26 = vld [vmem:[%s6200_s0 + $0x118] sm:$0xff] }
 0x130   :  { %1485 = vmatmul.mubr.f32.gmra.mxu0 %v340_v28  ;;  %v4511_v39 = vpop.f32.mrf.mxu1 }
 0x131   :  { %6259 = vst [vmem:[#allocation10_spill] sm:$0xff] %v4511_v39  ;;  %1490 = vmatprep.mubr.f32.mxu0 %v350_v30  ;;  %v4516_v43 = vpop.f32.mrf.mxu0 }
 0x132   :  { %1210 = vmatmul.mubr.f32.gmra.mxu1 %v347_v34  ;;  %v72_v34 = vld [vmem:[%s6200_s0 + $0x150] sm:$0xff] }
 0x133   :  { %1561 = vmatprep.mubr.f32.mxu1 %v37_v37  ;;  %v82_v37 = vld [vmem:[%s6200_s0 + $0x1a0] sm:$0xff] }
 0x134   :  { %1491 = vmatmul.mubr.f32.gmra.mxu0 %v349_v40  ;;  %v4524_v47 = vpop.f32.mrf.mxu1 }
 0x135   :  { %6260 = vst [vmem:[#allocation11_spill] sm:$0xff] %v4524_v47  ;;  %1842 = vmatprep.mubr.f32.mxu0 %v6205_v49  ;;  %v4530_v53 = vpop.f32.mrf.mxu0 }
 0x136   :  { %1562 = vmatmul.mubr.f32.vlgmr.msra.gmra.mxu1 %v36_v44  ;;  %v4532_v55 = vpop.f32.mrf.mxu1  ;;  %v74_v44 = vld [vmem:[%s6200_s0 + $0x160] sm:$0xff] }
 0x137   :  { %6261 = vst [vmem:[#allocation12_spill] sm:$0xff] %v4532_v55  ;;  %1567 = vmatprep.mubr.f32.mxu1 %v46_v46  ;;  %v4537_v57 = vpop.f32.mrf.mxu0 }
 0x138   :  { %1843 = vmatmul.mubr.f32.vlgmr.msra.gmra.mxu0 %v38_v51 }
 0x139   :  { %1848 = vmatprep.mubr.f32.mxu0 %v6205_v49  ;;  %v4546_v63 = vpop.f32.mrf.mxu1 }
 0x13a   :  { %6262 = vst [vmem:[#allocation13_spill] sm:$0xff] %v4546_v63  ;;  %1568 = vmatmul.mubr.f32.gmra.mxu1 %v45_v56  ;;  %v4548_v1 = vpop.f32.mrf.mxu0  ;;  %v81_v56 = vld [vmem:[%s6200_s0 + $0x198] sm:$0xff]  ;;  %v642_v63 = vld [vmem:[%s6201_s2] sm:$0x3] }
 0x13b   :  { %1573 = vmatprep.mubr.f32.mxu1 %v55_v59  ;;  %v4553_v4 = vpop.f32.mrf.mxu1  ;;  %v91_v59 = vld [vmem:[%s6200_s0 + $0x1e8] sm:$0xff] }
 0x13c   :  { %6263 = vst [vmem:[#allocation14_spill] sm:$0xff] %v4553_v4  ;;  %1849 = vmatmul.mubr.f32.gmra.mxu0 %v47_v61  ;;  %v4558_v8 = vpop.f32.mrf.mxu0  ;;  %v135_v4 = vld [vmem:[%s6200_s0 + $0x348] sm:$0xff] }
 0x13d   :  { %1854 = vmatprep.mubr.f32.mxu0 %v6205_v49 }
 0x13e   :  { %1574 = vmatmul.mubr.f32.gmra.mxu1 %v54_v2  ;;  %v83_v2 = vld [vmem:[%s6200_s0 + $0x1a8] sm:$0xff] }
 0x13f   :  { %1579 = vmatprep.mubr.f32.mxu1 %v64_v6  ;;  %v4567_v14 = vpop.f32.mrf.mxu1 }
 0x140   :  { %6264 = vst [vmem:[#allocation15_spill] sm:$0xff] %v4567_v14  ;;  %1855 = vmatmul.mubr.f32.gmra.mxu0 %v56_v11  ;;  %v4572_v22 = vpop.f32.mrf.mxu0  ;;  %v90_v11 = vld [vmem:[%s6200_s0 + $0x1e0] sm:$0xff]  ;;  %v136_v14 = vld [vmem:[%s6200_s0 + $0x350] sm:$0xff] }
 0x141   :  { %1860 = vmatprep.mubr.f32.mxu0 %v6205_v49  ;;  %v4578_v28 = vpop.f32.mrf.mxu1 }
 0x142   :  { %6265 = vst [vmem:[#allocation16_spill] sm:$0xff] %v4578_v28  ;;  %1580 = vmatmul.mubr.f32.gmra.mxu1 %v63_v13  ;;  %v4580_v30 = vpop.f32.mrf.mxu0  ;;  %v127_v28 = vld [vmem:[%s6200_s0 + $0x308] sm:$0xff] }
 0x143   :  { %1585 = vmatprep.mubr.f32.mxu1 %v73_v18  ;;  %v100_v18 = vld [vmem:[%s6200_s0 + $0x230] sm:$0xff] }
 0x144   :  { %1861 = vmatmul.mubr.f32.gmra.mxu0 %v65_v26  ;;  %v4588_v40 = vpop.f32.mrf.mxu1 }
 0x145   :  { %6266 = vst [vmem:[#allocation17_spill] sm:$0xff] %v4588_v40  ;;  %1866 = vmatprep.mubr.f32.mxu0 %v6205_v49 }
 0x146   :  { %1586 = vmatmul.mubr.f32.gmra.mxu1 %v72_v34  ;;  %v4594_v46 = vpop.f32.mrf.mxu0  ;;  %v4596_v51 = vpop.f32.mrf.mxu1  ;;  %v92_v34 = vld [vmem:[%s6200_s0 + $0x1f0] sm:$0xff] }
 0x147   :  { %6267 = vst [vmem:[#allocation18_spill] sm:$0xff] %v4596_v51  ;;  %1591 = vmatprep.mubr.f32.mxu1 %v82_v37 }
 0x148   :  { %1867 = vmatmul.mubr.f32.gmra.mxu0 %v74_v44  ;;  %v4604_v61 = vpop.f32.mrf.mxu0  ;;  %v99_v44 = vld [vmem:[%s6200_s0 + $0x228] sm:$0xff] }
 0x149   :  { %1872 = vmatprep.mubr.f32.mxu0 %v6205_v49 }
 0x14a   :  { %1592 = vmatmul.mubr.f32.gmra.mxu1 %v81_v56  ;;  %v4610_v6 = vpop.f32.mrf.mxu1  ;;  %v109_v56 = vld [vmem:[%s6200_s0 + $0x278] sm:$0xff] }
 0x14b   :  { %6268 = vst [vmem:[#allocation19_spill] sm:$0xff] %v4610_v6  ;;  %1597 = vmatprep.mubr.f32.mxu1 %v91_v59  ;;  %v4615_v13 = vpop.f32.mrf.mxu0 }
 0x14c   :  { %1873 = vmatmul.mubr.f32.gmra.mxu0 %v83_v2  ;;  %v4620_v26 = vpop.f32.mrf.mxu1  ;;  %v101_v2 = vld [vmem:[%s6200_s0 + $0x238] sm:$0xff] }
 0x14d   :  { %6269 = vst [vmem:[#allocation20_spill] sm:$0xff] %v4620_v26  ;;  %1878 = vmatprep.mubr.f32.mxu0 %v6205_v49  ;;  %v4626_v37 = vpop.f32.mrf.mxu0 }
 0x14e   :  { %1598 = vmatmul.mubr.f32.gmra.mxu1 %v90_v11 }
 0x14f   :  { %1603 = vmatprep.mubr.f32.mxu1 %v100_v18  ;;  %v108_v18 = vld [vmem:[%s6200_s0 + $0x270] sm:$0xff] }
 0x150   :  { %1879 = vmatmul.mubr.f32.gmra.mxu0 %v92_v34  ;;  %v4634_v59 = vpop.f32.mrf.mxu1 }
 0x151   :  { %6270 = vst [vmem:[#allocation21_spill] sm:$0xff] %v4634_v59  ;;  %1884 = vmatprep.mubr.f32.mxu0 %v6205_v49  ;;  %v4640_v26 = vpop.f32.mrf.mxu0  ;;  %v118_v49 = vld [vmem:[%s6200_s0 + $0x2c0] sm:$0xff]  ;;  %v6272_v59 = vmov 0.0  }
 0x152   :  { %1604 = vmatmul.mubr.f32.gmra.mxu1 %v99_v44  ;;  %v4642_v11 = vpop.f32.mrf.mxu1  ;;  %v110_v44 = vld [vmem:[%s6200_s0 + $0x280] sm:$0xff] }
 0x153   :  { %6271 = vst [vmem:[#allocation22_spill] sm:$0xff] %v4642_v11  ;;  %1609 = vmatprep.mubr.f32.mxu1 %v109_v56  ;;  %v4647_v34 = vpop.f32.mrf.mxu0  ;;  %v6207_v11 = vlaneseq }
 0x154   :  { %1885 = vmatmul.mubr.f32.gmra.mxu0 %v101_v2  ;;  %v117_v2 = vld [vmem:[%s6200_s0 + $0x2b8] sm:$0xff] }
 0x155   :  { %1890 = vmatprep.mubr.f32.mxu0 %v6272_v59  ;;  %v4656_v6 = vpop.f32.mrf.mxu1 }
 0x156   :  { %6273 = vst [vmem:[#allocation23_spill] sm:$0xff] %v4656_v6  ;;  %1610 = vmatmul.mubr.f32.gmra.mxu1 %v108_v18  ;;  %v4658_v56 = vpop.f32.mrf.mxu0  ;;  %v119_v18 = vld [vmem:[%s6200_s0 + $0x2c8] sm:$0xff] }
 0x157   :  { %1615 = vmatprep.mubr.f32.mxu1 %v118_v49  ;;  %v4663_v51 = vpop.f32.mrf.mxu1  ;;  %v4675_v49 = vshrl.u32 %v6207_v11, 7 }
 0x158   :  { %6274 = vst [vmem:[#allocation24_spill] sm:$0xff] %v4663_v51  ;;  %1891 = vmatmul.mubr.f32.gmra.mxu0 %v110_v44  ;;  %v4665_v40 = vpop.f32.mrf.mxu0  ;;  %v126_v44 = vld [vmem:[%s6200_s0 + $0x300] sm:$0xff] }
 0x159   :  { %1896 = vmatprep.mubr.f32.mxu0 %v6272_v59  ;;  %6275 = vst [vmem:[#allocation25_spill] sm:$0xff] %v4675_v49 }
 0x15a   :  { %1616 = vmatmul.mubr.f32.gmra.mxu1 %v117_v2  ;;  %v128_v2 = vld [vmem:[%s6200_s0 + $0x310] sm:$0xff] }
 0x15b   :  { %1621 = vmatprep.mubr.f32.mxu1 %v127_v28  ;;  %v4677_v6 = vpop.f32.mrf.mxu1 }
 0x15c   :  { %6276 = vst [vmem:[#allocation26_spill] sm:$0xff] %v4677_v6  ;;  %1897 = vmatmul.mubr.f32.gmra.mxu0 %v119_v18  ;;  %v4682_v51 = vpop.f32.mrf.mxu0  ;;  %v4696_v6 = vsub.s32 0, %v4675_v49  ;;  %v4699_v18 = vsub.s32 1, %v4675_v49 }
 0x15d   :  { %1902 = vmatprep.mubr.f32.mxu0 %v6272_v59  ;;  %v4691_v28 = vpop.f32.mrf.mxu1 }
 0x15e   :  { %6277 = vst [vmem:[#allocation27_spill] sm:$0xff] %v4691_v28  ;;  %1622 = vmatmul.mubr.f32.gmra.mxu1 %v126_v44  ;;  %v4693_v11 = vpop.f32.mrf.mxu0  ;;  %6278 = vst [vmem:[#allocation28_spill] sm:$0xff] %v4696_v6  ;;  %v145_v44 = vld [vmem:[%s6200_s0 + $0x398] sm:$0xff]  ;;  %v4721_v47 = vrot.slane %v642_v63, %v4696_v6 }
 0x15f   :  { %6279 = vst [vmem:[#allocation29_spill] sm:$0xff] %v4699_v18  ;;  %1627 = vmatprep.mubr.f32.mxu1 %v136_v14  ;;  %v137_v14 = vld [vmem:[%s6200_s0 + $0x358] sm:$0xff] }
 0x160   :  { %1903 = vmatmul.mubr.f32.gmra.mxu0 %v128_v2  ;;  %v4707_v28 = vpop.f32.mrf.mxu1  ;;  %v4724_v2 = vrot.slane %v642_v63, %v4699_v18  ;;  %v146_v63 = vld [vmem:[%s6200_s0 + $0x3a0] sm:$0xff]  ;;  %v153_v6 = vld [vmem:[%s6200_s0 + $0x3d8] sm:$0xff]  ;;  %v727_v16 = vadd.f32 %v4333_v21, %v4721_v47 }
 0x161   :  { %6280 = vst [vmem:[#allocation30_spill] sm:$0xff] %v4707_v28  ;;  %1908 = vmatprep.mubr.f32.mxu0 %v6272_v59  ;;  %v144_v28 = vld [vmem:[%s6200_s0 + $0x390] sm:$0xff]  ;;  %v162_v21 = vld [vmem:[%s6200_s0 + $0x420] sm:$0xff] }
 0x162   :  { %1628 = vmatmul.mubr.f32.gmra.mxu1 %v135_v4  ;;  %v4716_v49 = vpop.f32.mrf.mxu0  ;;  %v4718_v55 = vpop.f32.mrf.mxu1  ;;  %v154_v4 = vld [vmem:[%s6200_s0 + $0x3e0] sm:$0xff] }
 0x163   :  { %6281 = vst [vmem:[#allocation31_spill] sm:$0xff] %v4718_v55  ;;  %1633 = vmatprep.mubr.f32.mxu1 %v145_v44  ;;  %v721_v55 = vadd.f32 %v4310_v12, %v4721_v47 }
 0x164   :  { %1909 = vmatmul.mubr.f32.gmra.mxu0 %v137_v14  ;;  %v4729_v39 = vpop.f32.mrf.mxu0  ;;  %v723_v14 = vadd.f32 %v4323_v17, %v4724_v2  ;;  %v155_v17 = vld [vmem:[%s6200_s0 + $0x3e8] sm:$0xff] }
 0x165   :  { %1914 = vmatprep.mubr.f32.mxu0 %v6272_v59 }
 0x166   :  { %v1001_v44 = vpop.f32.mrf.mxu1  ;;  %1634 = vmatmul.mubr.f32.gmra.mxu1 %v144_v28 }
 0x167   :  { %v1002_v18 = vadd.f32 %v1001_v44, %v721_v55  ;;  %1639 = vmatprep.mubr.f32.mxu1 %v154_v4 }
 0x168   :  { %v1282_v32 = vpop.f32.mrf.mxu0  ;;  %1915 = vmatmul.mubr.f32.gmra.mxu0 %v146_v63  ;;  %v1003_v12 = vpop.f32.mrf.mxu1  ;;  %v729_v63 = vadd.f32 %v4343_v25, %v4724_v2 }
 0x169   :  { %v4750_v28 = vadd.f32 %v1282_v32, %v1002_v18  ;;  %v1004_v7 = vadd.f32 %v1003_v12, %v723_v14  ;;  %1920 = vmatprep.mubr.f32.mxu0 %v6272_v59  ;;  %v172_v14 = vld [vmem:[%s6200_s0 + $0x470] sm:$0xff] }
 0x16a   :  { %v1284_v55 = vpop.f32.mrf.mxu0  ;;  %v1007_v4 = vpop.f32.mrf.mxu1  ;;  %1640 = vmatmul.mubr.f32.gmra.mxu1 %v153_v6  ;;  %v733_v6 = vadd.f32 %v4359_v31, %v4721_v47  ;;  %v171_v31 = vld [vmem:[%s6200_s0 + $0x468] sm:$0xff] }
 0x16b   :  { %v4758_v44 = vadd.f32 %v1284_v55, %v1004_v7  ;;  %v1008_v3 = vadd.f32 %v1007_v4, %v727_v16  ;;  %1645 = vmatprep.mubr.f32.mxu1 %v163_v24  ;;  %v164_v7 = vld [vmem:[%s6200_s0 + $0x430] sm:$0xff] }
 0x16c   :  { %v1288_v32 = vpop.f32.mrf.mxu0  ;;  %1921 = vmatmul.mubr.f32.gmra.mxu0 %v155_v17  ;;  %v1009_v18 = vpop.f32.mrf.mxu1  ;;  %v735_v17 = vadd.f32 %v4369_v35, %v4724_v2 }
 0x16d   :  { %v4768_v12 = vadd.f32 %v1288_v32, %v1008_v3  ;;  %v1010_v25 = vadd.f32 %v1009_v18, %v729_v63  ;;  %1926 = vmatprep.mubr.f32.mxu0 %v6272_v59  ;;  %v181_v32 = vld [vmem:[%s6200_s0 + $0x4b8] sm:$0xff] }
 0x16e   :  { %v1290_v16 = vpop.f32.mrf.mxu0  ;;  %v1013_v24 = vpop.f32.mrf.mxu1  ;;  %1646 = vmatmul.mubr.f32.gmra.mxu1 %v162_v21  ;;  %v739_v21 = vadd.f32 %v4385_v41, %v4721_v47  ;;  %v180_v41 = vld [vmem:[%s6200_s0 + $0x4b0] sm:$0xff] }
 0x16f   :  { %v4776_v55 = vadd.f32 %v1290_v16, %v1010_v25  ;;  %v1014_v4 = vadd.f32 %v1013_v24, %v733_v6  ;;  %1651 = vmatprep.mubr.f32.mxu1 %v172_v14  ;;  %v173_v14 = vld [vmem:[%s6200_s0 + $0x478] sm:$0xff] }
 0x170   :  { %v1294_v3 = vpop.f32.mrf.mxu0  ;;  %1927 = vmatmul.mubr.f32.gmra.mxu0 %v164_v7  ;;  %v1015_v63 = vpop.f32.mrf.mxu1  ;;  %v741_v7 = vadd.f32 %v4395_v45, %v4724_v2 }
 0x171   :  { %v4786_v18 = vadd.f32 %v1294_v3, %v1014_v4  ;;  %v1016_v35 = vadd.f32 %v1015_v63, %v735_v17  ;;  %1932 = vmatprep.mubr.f32.mxu0 %v6272_v59  ;;  %v190_v3 = vld [vmem:[%s6200_s0 + $0x500] sm:$0xff] }
 0x172   :  { %v1296_v6 = vpop.f32.mrf.mxu0  ;;  %v1019_v25 = vpop.f32.mrf.mxu1  ;;  %1652 = vmatmul.mubr.f32.gmra.mxu1 %v171_v31  ;;  %v745_v31 = vadd.f32 %v4408_v50, %v4721_v47  ;;  %v189_v50 = vld [vmem:[%s6200_s0 + $0x4f8] sm:$0xff] }
 0x173   :  { %v4794_v16 = vadd.f32 %v1296_v6, %v1016_v35  ;;  %v1020_v24 = vadd.f32 %v1019_v25, %v739_v21  ;;  %1657 = vmatprep.mubr.f32.mxu1 %v181_v32  ;;  %v182_v32 = vld [vmem:[%s6200_s0 + $0x4c0] sm:$0xff] }
 0x174   :  { %v1300_v17 = vpop.f32.mrf.mxu0  ;;  %1933 = vmatmul.mubr.f32.gmra.mxu0 %v173_v14  ;;  %v1021_v4 = vpop.f32.mrf.mxu1  ;;  %v747_v14 = vadd.f32 %v4418_v54, %v4724_v2 }
 0x175   :  { %v4804_v63 = vadd.f32 %v1300_v17, %v1020_v24  ;;  %v1022_v45 = vadd.f32 %v1021_v4, %v741_v7  ;;  %1938 = vmatprep.mubr.f32.mxu0 %v6272_v59  ;;  %v199_v17 = vld [vmem:[%s6200_s0 + $0x548] sm:$0xff] }
 0x176   :  { %v1302_v21 = vpop.f32.mrf.mxu0  ;;  %v1025_v35 = vpop.f32.mrf.mxu1  ;;  %1658 = vmatmul.mubr.f32.gmra.mxu1 %v180_v41  ;;  %v751_v41 = vadd.f32 %v4434_v60, %v4721_v47  ;;  %v198_v60 = vld [vmem:[%s6200_s0 + $0x540] sm:$0xff] }
 0x177   :  { %v4812_v6 = vadd.f32 %v1302_v21, %v1022_v45  ;;  %v1026_v25 = vadd.f32 %v1025_v35, %v745_v31  ;;  %1663 = vmatprep.mubr.f32.mxu1 %v190_v3  ;;  %v191_v3 = vld [vmem:[%s6200_s0 + $0x508] sm:$0xff] }
 0x178   :  { %v1306_v7 = vpop.f32.mrf.mxu0  ;;  %1939 = vmatmul.mubr.f32.gmra.mxu0 %v182_v32  ;;  %v1027_v24 = vpop.f32.mrf.mxu1  ;;  %v753_v32 = vadd.f32 %v4444_v0, %v4724_v2 }
 0x179   :  { %v4822_v4 = vadd.f32 %v1306_v7, %v1026_v25  ;;  %v1028_v54 = vadd.f32 %v1027_v24, %v747_v14  ;;  %1944 = vmatprep.mubr.f32.mxu0 %v6272_v59  ;;  %v208_v7 = vld [vmem:[%s6200_s0 + $0x590] sm:$0xff] }
 0x17a   :  { %v1308_v31 = vpop.f32.mrf.mxu0  ;;  %v1031_v45 = vpop.f32.mrf.mxu1  ;;  %1664 = vmatmul.mubr.f32.gmra.mxu1 %v189_v50  ;;  %v757_v50 = vadd.f32 %v4457_v5, %v4721_v47  ;;  %v207_v5 = vld [vmem:[%s6200_s0 + $0x588] sm:$0xff] }
 0x17b   :  { %v4830_v21 = vadd.f32 %v1308_v31, %v1028_v54  ;;  %v1032_v35 = vadd.f32 %v1031_v45, %v751_v41  ;;  %1669 = vmatprep.mubr.f32.mxu1 %v199_v17  ;;  %v200_v17 = vld [vmem:[%s6200_s0 + $0x550] sm:$0xff] }
 0x17c   :  { %v1312_v14 = vpop.f32.mrf.mxu0  ;;  %1945 = vmatmul.mubr.f32.gmra.mxu0 %v191_v3  ;;  %v1033_v25 = vpop.f32.mrf.mxu1  ;;  %v759_v3 = vadd.f32 %v4467_v10, %v4724_v2 }
 0x17d   :  { %v4840_v24 = vadd.f32 %v1312_v14, %v1032_v35  ;;  %v1034_v0 = vadd.f32 %v1033_v25, %v753_v32  ;;  %1950 = vmatprep.mubr.f32.mxu0 %v6272_v59  ;;  %v217_v14 = vld [vmem:[%s6200_s0 + $0x5d8] sm:$0xff] }
 0x17e   :  { %v1314_v41 = vpop.f32.mrf.mxu0  ;;  %v1037_v54 = vpop.f32.mrf.mxu1  ;;  %1670 = vmatmul.mubr.f32.gmra.mxu1 %v198_v60  ;;  %v763_v60 = vadd.f32 %v4483_v20, %v4721_v47  ;;  %v216_v20 = vld [vmem:[%s6200_s0 + $0x5d0] sm:$0xff] }
 0x17f   :  { %v4848_v31 = vadd.f32 %v1314_v41, %v1034_v0  ;;  %v1038_v45 = vadd.f32 %v1037_v54, %v757_v50  ;;  %1675 = vmatprep.mubr.f32.mxu1 %v208_v7  ;;  %v209_v7 = vld [vmem:[%s6200_s0 + $0x598] sm:$0xff] }
 0x180   :  { %v1318_v32 = vpop.f32.mrf.mxu0  ;;  %1951 = vmatmul.mubr.f32.gmra.mxu0 %v200_v17  ;;  %v1039_v35 = vpop.f32.mrf.mxu1  ;;  %v765_v17 = vadd.f32 %v4493_v27, %v4724_v2 }
 0x181   :  { %v4858_v25 = vadd.f32 %v1318_v32, %v1038_v45  ;;  %v1040_v10 = vadd.f32 %v1039_v35, %v759_v3  ;;  %1956 = vmatprep.mubr.f32.mxu0 %v6272_v59  ;;  %v226_v32 = vld [vmem:[%s6200_s0 + $0x620] sm:$0xff] }
 0x182   :  { %v1320_v50 = vpop.f32.mrf.mxu0  ;;  %v1043_v0 = vpop.f32.mrf.mxu1  ;;  %1676 = vmatmul.mubr.f32.gmra.mxu1 %v207_v5  ;;  %v769_v5 = vadd.f32 %v4506_v36, %v4721_v47  ;;  %v225_v36 = vld [vmem:[%s6200_s0 + $0x618] sm:$0xff] }
 0x183   :  { %v4866_v41 = vadd.f32 %v1320_v50, %v1040_v10  ;;  %v1044_v54 = vadd.f32 %v1043_v0, %v763_v60  ;;  %1681 = vmatprep.mubr.f32.mxu1 %v217_v14  ;;  %v218_v14 = vld [vmem:[%s6200_s0 + $0x5e0] sm:$0xff] }
 0x184   :  { %v1324_v3 = vpop.f32.mrf.mxu0  ;;  %1957 = vmatmul.mubr.f32.gmra.mxu0 %v209_v7  ;;  %v1045_v45 = vpop.f32.mrf.mxu1  ;;  %v771_v7 = vadd.f32 %v4516_v43, %v4724_v2 }
 0x185   :  { %v4876_v35 = vadd.f32 %v1324_v3, %v1044_v54  ;;  %v1046_v27 = vadd.f32 %v1045_v45, %v765_v17  ;;  %1962 = vmatprep.mubr.f32.mxu0 %v6272_v59  ;;  %v235_v3 = vld [vmem:[%s6200_s0 + $0x668] sm:$0xff] }
 0x186   :  { %v1326_v60 = vpop.f32.mrf.mxu0  ;;  %v1049_v10 = vpop.f32.mrf.mxu1  ;;  %1682 = vmatmul.mubr.f32.gmra.mxu1 %v216_v20  ;;  %v775_v20 = vadd.f32 %v4530_v53, %v4721_v47  ;;  %v234_v53 = vld [vmem:[%s6200_s0 + $0x660] sm:$0xff] }
 0x187   :  { %v4884_v50 = vadd.f32 %v1326_v60, %v1046_v27  ;;  %v1050_v0 = vadd.f32 %v1049_v10, %v769_v5  ;;  %1687 = vmatprep.mubr.f32.mxu1 %v226_v32  ;;  %v227_v32 = vld [vmem:[%s6200_s0 + $0x628] sm:$0xff] }
 0x188   :  { %v1330_v17 = vpop.f32.mrf.mxu0  ;;  %1963 = vmatmul.mubr.f32.gmra.mxu0 %v218_v14  ;;  %v1051_v54 = vpop.f32.mrf.mxu1  ;;  %v777_v14 = vadd.f32 %v4537_v57, %v4724_v2 }
 0x189   :  { %v4894_v45 = vadd.f32 %v1330_v17, %v1050_v0  ;;  %v1052_v43 = vadd.f32 %v1051_v54, %v771_v7  ;;  %1968 = vmatprep.mubr.f32.mxu0 %v6272_v59  ;;  %v244_v17 = vld [vmem:[%s6200_s0 + $0x6b0] sm:$0xff] }
 0x18a   :  { %v1332_v5 = vpop.f32.mrf.mxu0  ;;  %v1055_v27 = vpop.f32.mrf.mxu1  ;;  %1688 = vmatmul.mubr.f32.gmra.mxu1 %v225_v36  ;;  %v781_v36 = vadd.f32 %v4548_v1, %v4721_v47  ;;  %v243_v1 = vld [vmem:[%s6200_s0 + $0x6a8] sm:$0xff] }
 0x18b   :  { %v4902_v60 = vadd.f32 %v1332_v5, %v1052_v43  ;;  %v1056_v10 = vadd.f32 %v1055_v27, %v775_v20  ;;  %1693 = vmatprep.mubr.f32.mxu1 %v235_v3  ;;  %v236_v3 = vld [vmem:[%s6200_s0 + $0x670] sm:$0xff] }
 0x18c   :  { %v1336_v7 = vpop.f32.mrf.mxu0  ;;  %1969 = vmatmul.mubr.f32.gmra.mxu0 %v227_v32  ;;  %v1057_v0 = vpop.f32.mrf.mxu1  ;;  %v783_v32 = vadd.f32 %v4558_v8, %v4724_v2 }
 0x18d   :  { %v4912_v54 = vadd.f32 %v1336_v7, %v1056_v10  ;;  %v1058_v57 = vadd.f32 %v1057_v0, %v777_v14  ;;  %1974 = vmatprep.mubr.f32.mxu0 %v6272_v59  ;;  %v253_v7 = vld [vmem:[%s6200_s0 + $0x6f8] sm:$0xff] }
 0x18e   :  { %v1338_v20 = vpop.f32.mrf.mxu0  ;;  %v1061_v43 = vpop.f32.mrf.mxu1  ;;  %1694 = vmatmul.mubr.f32.gmra.mxu1 %v234_v53  ;;  %v787_v53 = vadd.f32 %v4572_v22, %v4721_v47  ;;  %v252_v22 = vld [vmem:[%s6200_s0 + $0x6f0] sm:$0xff] }
 0x18f   :  { %v4920_v5 = vadd.f32 %v1338_v20, %v1058_v57  ;;  %v1062_v27 = vadd.f32 %v1061_v43, %v781_v36  ;;  %1699 = vmatprep.mubr.f32.mxu1 %v244_v17  ;;  %v245_v17 = vld [vmem:[%s6200_s0 + $0x6b8] sm:$0xff] }
 0x190   :  { %v1342_v14 = vpop.f32.mrf.mxu0  ;;  %1975 = vmatmul.mubr.f32.gmra.mxu0 %v236_v3  ;;  %v1063_v10 = vpop.f32.mrf.mxu1  ;;  %v789_v3 = vadd.f32 %v4580_v30, %v4724_v2 }
 0x191   :  { %v4930_v0 = vadd.f32 %v1342_v14, %v1062_v27  ;;  %v1064_v8 = vadd.f32 %v1063_v10, %v783_v32  ;;  %1980 = vmatprep.mubr.f32.mxu0 %v6272_v59  ;;  %v262_v14 = vld [vmem:[%s6200_s0 + $0x740] sm:$0xff] }
 0x192   :  { %v1344_v36 = vpop.f32.mrf.mxu0  ;;  %v1067_v57 = vpop.f32.mrf.mxu1  ;;  %1700 = vmatmul.mubr.f32.gmra.mxu1 %v243_v1  ;;  %v793_v1 = vadd.f32 %v4594_v46, %v4721_v47  ;;  %v261_v46 = vld [vmem:[%s6200_s0 + $0x738] sm:$0xff] }
 0x193   :  { %v4938_v20 = vadd.f32 %v1344_v36, %v1064_v8  ;;  %v1068_v43 = vadd.f32 %v1067_v57, %v787_v53  ;;  %1705 = vmatprep.mubr.f32.mxu1 %v253_v7  ;;  %v254_v7 = vld [vmem:[%s6200_s0 + $0x700] sm:$0xff] }
 0x194   :  { %v1348_v32 = vpop.f32.mrf.mxu0  ;;  %1981 = vmatmul.mubr.f32.gmra.mxu0 %v245_v17  ;;  %v1069_v27 = vpop.f32.mrf.mxu1  ;;  %v795_v17 = vadd.f32 %v4604_v61, %v4724_v2 }
 0x195   :  { %v4948_v10 = vadd.f32 %v1348_v32, %v1068_v43  ;;  %v1070_v30 = vadd.f32 %v1069_v27, %v789_v3  ;;  %1986 = vmatprep.mubr.f32.mxu0 %v6272_v59  ;;  %v271_v32 = vld [vmem:[%s6200_s0 + $0x788] sm:$0xff] }
 0x196   :  { %v1350_v53 = vpop.f32.mrf.mxu0  ;;  %v1073_v8 = vpop.f32.mrf.mxu1  ;;  %1706 = vmatmul.mubr.f32.gmra.mxu1 %v252_v22  ;;  %v799_v22 = vadd.f32 %v4615_v13, %v4721_v47  ;;  %v270_v13 = vld [vmem:[%s6200_s0 + $0x780] sm:$0xff] }
 0x197   :  { %v4956_v36 = vadd.f32 %v1350_v53, %v1070_v30  ;;  %v1074_v57 = vadd.f32 %v1073_v8, %v793_v1  ;;  %1711 = vmatprep.mubr.f32.mxu1 %v262_v14  ;;  %v263_v14 = vld [vmem:[%s6200_s0 + $0x748] sm:$0xff] }
 0x198   :  { %v1354_v3 = vpop.f32.mrf.mxu0  ;;  %1987 = vmatmul.mubr.f32.gmra.mxu0 %v254_v7  ;;  %v1075_v43 = vpop.f32.mrf.mxu1  ;;  %v801_v7 = vadd.f32 %v4626_v37, %v4724_v2 }
 0x199   :  { %v4966_v27 = vadd.f32 %v1354_v3, %v1074_v57  ;;  %v1076_v61 = vadd.f32 %v1075_v43, %v795_v17  ;;  %1992 = vmatprep.mubr.f32.mxu0 %v6272_v59  ;;  %v280_v3 = vld [vmem:[%s6200_s0 + $0x7d0] sm:$0xff] }
 0x19a   :  { %v1356_v1 = vpop.f32.mrf.mxu0  ;;  %v1079_v30 = vpop.f32.mrf.mxu1  ;;  %1712 = vmatmul.mubr.f32.gmra.mxu1 %v261_v46  ;;  %v805_v46 = vadd.f32 %v4640_v26, %v4721_v47  ;;  %v279_v26 = vld [vmem:[%s6200_s0 + $0x7c8] sm:$0xff] }
 0x19b   :  { %6282 = vst [vmem:[#allocation32_spill] sm:$0xff] %v4966_v27  ;;  %v4974_v53 = vadd.f32 %v1356_v1, %v1076_v61  ;;  %v1080_v8 = vadd.f32 %v1079_v30, %v799_v22  ;;  %1717 = vmatprep.mubr.f32.mxu1 %v271_v32  ;;  %v272_v32 = vld [vmem:[%s6200_s0 + $0x790] sm:$0xff] }
 0x19c   :  { %v1360_v17 = vpop.f32.mrf.mxu0  ;;  %1993 = vmatmul.mubr.f32.gmra.mxu0 %v263_v14  ;;  %v1081_v57 = vpop.f32.mrf.mxu1  ;;  %v807_v14 = vadd.f32 %v4647_v34, %v4724_v2 }
 0x19d   :  { %6283 = vst [vmem:[#allocation33_spill] sm:$0xff] %v4974_v53  ;;  %v4984_v43 = vadd.f32 %v1360_v17, %v1080_v8  ;;  %v1082_v37 = vadd.f32 %v1081_v57, %v801_v7  ;;  %1998 = vmatprep.mubr.f32.mxu0 %v6272_v59  ;;  %v289_v17 = vld [vmem:[%s6200_s0 + $0x818] sm:$0xff] }
 0x19e   :  { %v1362_v22 = vpop.f32.mrf.mxu0  ;;  %v1085_v61 = vpop.f32.mrf.mxu1  ;;  %1718 = vmatmul.mubr.f32.gmra.mxu1 %v270_v13  ;;  %v811_v13 = vadd.f32 %v4658_v56, %v4721_v47  ;;  %v288_v56 = vld [vmem:[%s6200_s0 + $0x810] sm:$0xff] }
 0x19f   :  { %6284 = vst [vmem:[#allocation34_spill] sm:$0xff] %v4984_v43  ;;  %v4992_v1 = vadd.f32 %v1362_v22, %v1082_v37  ;;  %v1086_v30 = vadd.f32 %v1085_v61, %v805_v46  ;;  %1723 = vmatprep.mubr.f32.mxu1 %v280_v3  ;;  %v281_v3 = vld [vmem:[%s6200_s0 + $0x7d8] sm:$0xff] }
 0x1a0   :  { %v1366_v7 = vpop.f32.mrf.mxu0  ;;  %1999 = vmatmul.mubr.f32.gmra.mxu0 %v272_v32  ;;  %v1087_v8 = vpop.f32.mrf.mxu1  ;;  %v813_v32 = vadd.f32 %v4665_v40, %v4724_v2 }
 0x1a1   :  { %6285 = vst [vmem:[#allocation35_spill] sm:$0xff] %v4992_v1  ;;  %v5002_v57 = vadd.f32 %v1366_v7, %v1086_v30  ;;  %v1088_v34 = vadd.f32 %v1087_v8, %v807_v14  ;;  %2004 = vmatprep.mubr.f32.mxu0 %v6272_v59  ;;  %v298_v7 = vld [vmem:[%s6200_s0 + $0x860] sm:$0xff] }
 0x1a2   :  { %v1368_v46 = vpop.f32.mrf.mxu0  ;;  %v1091_v37 = vpop.f32.mrf.mxu1  ;;  %1724 = vmatmul.mubr.f32.gmra.mxu1 %v279_v26  ;;  %v817_v26 = vadd.f32 %v4682_v51, %v4721_v47  ;;  %v297_v51 = vld [vmem:[%s6200_s0 + $0x858] sm:$0xff] }
 0x1a3   :  { %6286 = vst [vmem:[#allocation36_spill] sm:$0xff] %v5002_v57  ;;  %v5010_v22 = vadd.f32 %v1368_v46, %v1088_v34  ;;  %v1092_v61 = vadd.f32 %v1091_v37, %v811_v13  ;;  %1729 = vmatprep.mubr.f32.mxu1 %v289_v17  ;;  %v290_v17 = vld [vmem:[%s6200_s0 + $0x820] sm:$0xff] }
 0x1a4   :  { %v1372_v14 = vpop.f32.mrf.mxu0  ;;  %2005 = vmatmul.mubr.f32.gmra.mxu0 %v281_v3  ;;  %v1093_v30 = vpop.f32.mrf.mxu1  ;;  %v819_v3 = vadd.f32 %v4693_v11, %v4724_v2 }
 0x1a5   :  { %6287 = vst [vmem:[#allocation37_spill] sm:$0xff] %v5010_v22  ;;  %v5020_v8 = vadd.f32 %v1372_v14, %v1092_v61  ;;  %v1094_v40 = vadd.f32 %v1093_v30, %v813_v32  ;;  %2010 = vmatprep.mubr.f32.mxu0 %v6272_v59  ;;  %v307_v14 = vld [vmem:[%s6200_s0 + $0x8a8] sm:$0xff] }
 0x1a6   :  { %v1374_v13 = vpop.f32.mrf.mxu0  ;;  %v1097_v34 = vpop.f32.mrf.mxu1  ;;  %1730 = vmatmul.mubr.f32.gmra.mxu1 %v288_v56  ;;  %v823_v56 = vadd.f32 %v4716_v49, %v4721_v47  ;;  %v306_v49 = vld [vmem:[%s6200_s0 + $0x8a0] sm:$0xff] }
 0x1a7   :  { %6288 = vst [vmem:[#allocation38_spill] sm:$0xff] %v5020_v8  ;;  %v5028_v46 = vadd.f32 %v1374_v13, %v1094_v40  ;;  %v1098_v37 = vadd.f32 %v1097_v34, %v817_v26  ;;  %1735 = vmatprep.mubr.f32.mxu1 %v298_v7  ;;  %v299_v7 = vld [vmem:[%s6200_s0 + $0x868] sm:$0xff] }
 0x1a8   :  { %v1378_v32 = vpop.f32.mrf.mxu0  ;;  %2011 = vmatmul.mubr.f32.gmra.mxu0 %v290_v17  ;;  %v1099_v61 = vpop.f32.mrf.mxu1  ;;  %v825_v17 = vadd.f32 %v4729_v39, %v4724_v2 }
 0x1a9   :  { %6289 = vst [vmem:[#allocation39_spill] sm:$0xff] %v5028_v46  ;;  %v5038_v30 = vadd.f32 %v1378_v32, %v1098_v37  ;;  %v1100_v11 = vadd.f32 %v1099_v61, %v819_v3  ;;  %2016 = vmatprep.mubr.f32.mxu0 %v6272_v59  ;;  %v316_v32 = vld [vmem:[%s6200_s0 + $0x8f0] sm:$0xff] }
 0x1aa   :  { %v1380_v26 = vpop.f32.mrf.mxu0  ;;  %v1103_v40 = vpop.f32.mrf.mxu1  ;;  %1736 = vmatmul.mubr.f32.gmra.mxu1 %v297_v51  ;;  %v829_v51 = vadd.f32 %v4302_v9, %v4721_v47  ;;  %v315_v9 = vld [vmem:[%s6200_s0 + $0x8e8] sm:$0xff] }
 0x1ab   :  { %6290 = vst [vmem:[#allocation40_spill] sm:$0xff] %v5038_v30  ;;  %v5046_v13 = vadd.f32 %v1380_v26, %v1100_v11  ;;  %v1104_v34 = vadd.f32 %v1103_v40, %v823_v56  ;;  %1741 = vmatprep.mubr.f32.mxu1 %v307_v14  ;;  %v308_v14 = vld [vmem:[%s6200_s0 + $0x8b0] sm:$0xff] }
 0x1ac   :  { %v1384_v3 = vpop.f32.mrf.mxu0  ;;  %2017 = vmatmul.mubr.f32.gmra.mxu0 %v299_v7  ;;  %v1105_v37 = vpop.f32.mrf.mxu1  ;;  %v831_v7 = vadd.f32 %v4318_v15, %v4724_v2 }
 0x1ad   :  { %6291 = vst [vmem:[#allocation41_spill] sm:$0xff] %v5046_v13  ;;  %v5056_v61 = vadd.f32 %v1384_v3, %v1104_v34  ;;  %v1106_v39 = vadd.f32 %v1105_v37, %v825_v17  ;;  %2022 = vmatprep.mubr.f32.mxu0 %v6272_v59  ;;  %v325_v3 = vld [vmem:[%s6200_s0 + $0x938] sm:$0xff] }
 0x1ae   :  { %v1386_v56 = vpop.f32.mrf.mxu0  ;;  %v1109_v11 = vpop.f32.mrf.mxu1  ;;  %1742 = vmatmul.mubr.f32.gmra.mxu1 %v306_v49  ;;  %v835_v49 = vadd.f32 %v4328_v19, %v4721_v47  ;;  %v324_v19 = vld [vmem:[%s6200_s0 + $0x930] sm:$0xff] }
 0x1af   :  { %6292 = vst [vmem:[#allocation42_spill] sm:$0xff] %v5056_v61  ;;  %v5064_v26 = vadd.f32 %v1386_v56, %v1106_v39  ;;  %v1110_v40 = vadd.f32 %v1109_v11, %v829_v51  ;;  %1747 = vmatprep.mubr.f32.mxu1 %v316_v32  ;;  %v317_v32 = vld [vmem:[%s6200_s0 + $0x8f8] sm:$0xff] }
 0x1b0   :  { %v1390_v17 = vpop.f32.mrf.mxu0  ;;  %2023 = vmatmul.mubr.f32.gmra.mxu0 %v308_v14  ;;  %v1111_v34 = vpop.f32.mrf.mxu1  ;;  %v837_v14 = vadd.f32 %v4338_v23, %v4724_v2 }
 0x1b1   :  { %6293 = vst [vmem:[#allocation43_spill] sm:$0xff] %v5064_v26  ;;  %v5074_v37 = vadd.f32 %v1390_v17, %v1110_v40  ;;  %v1112_v15 = vadd.f32 %v1111_v34, %v831_v7  ;;  %2028 = vmatprep.mubr.f32.mxu0 %v6272_v59  ;;  %v334_v17 = vld [vmem:[%s6200_s0 + $0x980] sm:$0xff] }
 0x1b2   :  { %v1392_v51 = vpop.f32.mrf.mxu0  ;;  %v1115_v39 = vpop.f32.mrf.mxu1  ;;  %1748 = vmatmul.mubr.f32.gmra.mxu1 %v315_v9  ;;  %v841_v9 = vadd.f32 %v4354_v29, %v4721_v47  ;;  %v333_v29 = vld [vmem:[%s6200_s0 + $0x978] sm:$0xff] }
 0x1b3   :  { %6294 = vst [vmem:[#allocation44_spill] sm:$0xff] %v5074_v37  ;;  %v5082_v56 = vadd.f32 %v1392_v51, %v1112_v15  ;;  %v1116_v11 = vadd.f32 %v1115_v39, %v835_v49  ;;  %1753 = vmatprep.mubr.f32.mxu1 %v325_v3  ;;  %v326_v3 = vld [vmem:[%s6200_s0 + $0x940] sm:$0xff] }
 0x1b4   :  { %v1396_v7 = vpop.f32.mrf.mxu0  ;;  %2029 = vmatmul.mubr.f32.gmra.mxu0 %v317_v32  ;;  %v1117_v40 = vpop.f32.mrf.mxu1  ;;  %v843_v32 = vadd.f32 %v4364_v33, %v4724_v2 }
 0x1b5   :  { %6295 = vst [vmem:[#allocation45_spill] sm:$0xff] %v5082_v56  ;;  %v5092_v34 = vadd.f32 %v1396_v7, %v1116_v11  ;;  %v1118_v23 = vadd.f32 %v1117_v40, %v837_v14  ;;  %2034 = vmatprep.mubr.f32.mxu0 %v6272_v59  ;;  %v343_v7 = vld [vmem:[%s6200_s0 + $0x9c8] sm:$0xff] }
 0x1b6   :  { %v1398_v49 = vpop.f32.mrf.mxu0  ;;  %v1121_v15 = vpop.f32.mrf.mxu1  ;;  %1754 = vmatmul.mubr.f32.gmra.mxu1 %v324_v19  ;;  %v847_v19 = vadd.f32 %v4377_v38, %v4721_v47  ;;  %v342_v38 = vld [vmem:[%s6200_s0 + $0x9c0] sm:$0xff] }
 0x1b7   :  { %6296 = vst [vmem:[#allocation46_spill] sm:$0xff] %v5092_v34  ;;  %v5100_v51 = vadd.f32 %v1398_v49, %v1118_v23  ;;  %v1122_v39 = vadd.f32 %v1121_v15, %v841_v9  ;;  %1759 = vmatprep.mubr.f32.mxu1 %v334_v17  ;;  %v335_v17 = vld [vmem:[%s6200_s0 + $0x988] sm:$0xff] }
 0x1b8   :  { %v1402_v14 = vpop.f32.mrf.mxu0  ;;  %2035 = vmatmul.mubr.f32.gmra.mxu0 %v326_v3  ;;  %v1123_v11 = vpop.f32.mrf.mxu1  ;;  %v849_v3 = vadd.f32 %v4387_v42, %v4724_v2 }
 0x1b9   :  { %6297 = vst [vmem:[#allocation47_spill] sm:$0xff] %v5100_v51  ;;  %v5110_v40 = vadd.f32 %v1402_v14, %v1122_v39  ;;  %v1124_v33 = vadd.f32 %v1123_v11, %v843_v32  ;;  %2040 = vmatprep.mubr.f32.mxu0 %v6272_v59  ;;  %v352_v14 = vld [vmem:[%s6200_s0 + $0xa10] sm:$0xff] }
 0x1ba   :  { %v1404_v9 = vpop.f32.mrf.mxu0  ;;  %v1127_v23 = vpop.f32.mrf.mxu1  ;;  %1760 = vmatmul.mubr.f32.gmra.mxu1 %v333_v29  ;;  %v853_v29 = vadd.f32 %v4403_v48, %v4721_v47  ;;  %v351_v48 = vld [vmem:[%s6200_s0 + $0xa08] sm:$0xff] }
 0x1bb   :  { %6298 = vst [vmem:[#allocation48_spill] sm:$0xff] %v5110_v40  ;;  %v5118_v49 = vadd.f32 %v1404_v9, %v1124_v33  ;;  %v1128_v15 = vadd.f32 %v1127_v23, %v847_v19  ;;  %1765 = vmatprep.mubr.f32.mxu1 %v343_v7  ;;  %v344_v7 = vld [vmem:[%s6200_s0 + $0x9d0] sm:$0xff] }
 0x1bc   :  { %v1408_v32 = vpop.f32.mrf.mxu0  ;;  %2041 = vmatmul.mubr.f32.gmra.mxu0 %v335_v17  ;;  %v1129_v39 = vpop.f32.mrf.mxu1  ;;  %v855_v17 = vadd.f32 %v4413_v52, %v4724_v2  ;;  %v353_v52 = vld [vmem:[%s6200_s0 + $0xa18] sm:$0xff] }
 0x1bd   :  { %6299 = vst [vmem:[#allocation49_spill] sm:$0xff] %v5118_v49  ;;  %v5128_v11 = vadd.f32 %v1408_v32, %v1128_v15  ;;  %v1130_v42 = vadd.f32 %v1129_v39, %v849_v3  ;;  %2046 = vmatprep.mubr.f32.mxu0 %v6272_v59  ;;  %v859_v32 = vadd.f32 %v4429_v58, %v4721_v47 }
 0x1be   :  { %v1410_v19 = vpop.f32.mrf.mxu0  ;;  %v1133_v33 = vpop.f32.mrf.mxu1  ;;  %1766 = vmatmul.mubr.f32.gmra.mxu1 %v342_v38 }
 0x1bf   :  { %6300 = vst [vmem:[#allocation50_spill] sm:$0xff] %v5128_v11  ;;  %v5136_v9 = vadd.f32 %v1410_v19, %v1130_v42  ;;  %v1134_v23 = vadd.f32 %v1133_v33, %v853_v29  ;;  %1771 = vmatprep.mubr.f32.mxu1 %v352_v14  ;;  %v861_v42 = vadd.f32 %v4439_v62, %v4724_v2  ;;  %v6306_v11 = vld [vmem:[#allocation6_spill] sm:$0xff] }
 0x1c0   :  { %v1414_v3 = vpop.f32.mrf.mxu0  ;;  %2047 = vmatmul.mubr.f32.gmra.mxu0 %v344_v7  ;;  %v1135_v15 = vpop.f32.mrf.mxu1 }
 0x1c1   :  { %6301 = vst [vmem:[#allocation51_spill] sm:$0xff] %v5136_v9  ;;  %v5143_v39 = vadd.f32 %v1414_v3, %v1134_v23  ;;  %v1136_v38 = vadd.f32 %v1135_v15, %v855_v17  ;;  %2052 = vmatprep.mubr.f32.mxu0 %v6272_v59  ;;  %v6304_v17 = vld [vmem:[#allocation5_spill] sm:$0xff] }
 0x1c2   :  { %v1416_v14 = vpop.f32.mrf.mxu0  ;;  %v1139_v29 = vpop.f32.mrf.mxu1  ;;  %1772 = vmatmul.mubr.f32.gmra.mxu1 %v351_v48  ;;  %v865_v23 = vadd.f32 %v6304_v17, %v4721_v47  ;;  %v867_v48 = vadd.f32 %v6306_v11, %v4724_v2 }
 0x1c3   :  { %6302 = vst [vmem:[#allocation52_spill] sm:$0xff] %v5143_v39  ;;  %v5151_v7 = vadd.f32 %v1416_v14, %v1136_v38  ;;  %v1140_v19 = vadd.f32 %v1139_v29, %v859_v32  ;;  %v6308_v32 = vld [vmem:[#allocation7_spill] sm:$0xff] }
 0x1c4   :  { %v1420_v33 = vpop.f32.mrf.mxu0  ;;  %2053 = vmatmul.mubr.f32.gmra.mxu0 %v353_v52  ;;  %v1141_v58 = vpop.f32.mrf.mxu1  ;;  %v871_v52 = vadd.f32 %v6308_v32, %v4721_v47 }
 0x1c5   :  { %6303 = vst [vmem:[#allocation53_spill] sm:$0xff] %v5151_v7  ;;  %v5155_v3 = vadd.f32 %v1420_v33, %v1140_v19  ;;  %v1142_v15 = vadd.f32 %v1141_v58, %v861_v42  ;;  %v6310_v42 = vld [vmem:[#allocation8_spill] sm:$0xff] }
 0x1c6   :  { %v1422_v39 = vpop.f32.mrf.mxu0  ;;  %v1145_v9 = vpop.f32.mrf.mxu1  ;;  %v873_v33 = vadd.f32 %v6310_v42, %v4724_v2 }
 0x1c7   :  { %6305 = vst [vmem:[#allocation5_spill] sm:$0xff] %v5155_v3  ;;  %v5159_v49 = vadd.f32 %v1422_v39, %v1142_v15  ;;  %v1146_v62 = vadd.f32 %v1145_v9, %v865_v23  ;;  %v6312_v9 = vld [vmem:[#allocation9_spill] sm:$0xff] }
 0x1c8   :  { %v1426_v38 = vpop.f32.mrf.mxu0  ;;  %v1147_v14 = vpop.f32.mrf.mxu1  ;;  %v877_v23 = vadd.f32 %v6312_v9, %v4721_v47 }
 0x1c9   :  { %6307 = vst [vmem:[#allocation6_spill] sm:$0xff] %v5159_v49  ;;  %v5163_v29 = vadd.f32 %v1426_v38, %v1146_v62  ;;  %v1148_v7 = vadd.f32 %v1147_v14, %v867_v48  ;;  %v6314_v48 = vld [vmem:[#allocation10_spill] sm:$0xff] }
 0x1ca   :  { %v1428_v17 = vpop.f32.mrf.mxu0  ;;  %v1151_v19 = vpop.f32.mrf.mxu1  ;;  %v879_v38 = vadd.f32 %v6314_v48, %v4724_v2 }
 0x1cb   :  { %6309 = vst [vmem:[#allocation7_spill] sm:$0xff] %v5163_v29  ;;  %v5167_v58 = vadd.f32 %v1428_v17, %v1148_v7  ;;  %v1152_v3 = vadd.f32 %v1151_v19, %v871_v52  ;;  %v6316_v52 = vld [vmem:[#allocation11_spill] sm:$0xff] }
 0x1cc   :  { %v1432_v11 = vpop.f32.mrf.mxu0  ;;  %v1153_v39 = vpop.f32.mrf.mxu1  ;;  %v883_v17 = vadd.f32 %v6316_v52, %v4721_v47 }
 0x1cd   :  { %6311 = vst [vmem:[#allocation8_spill] sm:$0xff] %v5167_v58  ;;  %v5171_v15 = vadd.f32 %v1432_v11, %v1152_v3  ;;  %v1154_v49 = vadd.f32 %v1153_v39, %v873_v33  ;;  %v6318_v33 = vld [vmem:[#allocation12_spill] sm:$0xff] }
 0x1ce   :  { %v1434_v32 = vpop.f32.mrf.mxu0  ;;  %v1157_v62 = vpop.f32.mrf.mxu1  ;;  %v885_v11 = vadd.f32 %v6318_v33, %v4724_v2 }
 0x1cf   :  { %6313 = vst [vmem:[#allocation9_spill] sm:$0xff] %v5171_v15  ;;  %v5175_v14 = vadd.f32 %v1434_v32, %v1154_v49  ;;  %v1158_v29 = vadd.f32 %v1157_v62, %v877_v23  ;;  %v6320_v23 = vld [vmem:[#allocation13_spill] sm:$0xff] }
 0x1d0   :  { %v1438_v42 = vpop.f32.mrf.mxu0  ;;  %v1159_v7 = vpop.f32.mrf.mxu1  ;;  %v889_v32 = vadd.f32 %v6320_v23, %v4721_v47 }
 0x1d1   :  { %6315 = vst [vmem:[#allocation10_spill] sm:$0xff] %v5175_v14  ;;  %v5179_v19 = vadd.f32 %v1438_v42, %v1158_v29  ;;  %v1160_v58 = vadd.f32 %v1159_v7, %v879_v38  ;;  %v6322_v38 = vld [vmem:[#allocation14_spill] sm:$0xff] }
 0x1d2   :  { %v1440_v9 = vpop.f32.mrf.mxu0  ;;  %v1163_v3 = vpop.f32.mrf.mxu1  ;;  %v891_v42 = vadd.f32 %v6322_v38, %v4724_v2 }
 0x1d3   :  { %6317 = vst [vmem:[#allocation11_spill] sm:$0xff] %v5179_v19  ;;  %v5183_v39 = vadd.f32 %v1440_v9, %v1160_v58  ;;  %v1164_v15 = vadd.f32 %v1163_v3, %v883_v17  ;;  %v6324_v17 = vld [vmem:[#allocation15_spill] sm:$0xff] }
 0x1d4   :  { %v1444_v48 = vpop.f32.mrf.mxu0  ;;  %v1165_v49 = vpop.f32.mrf.mxu1  ;;  %v895_v9 = vadd.f32 %v6324_v17, %v4721_v47 }
 0x1d5   :  { %6319 = vst [vmem:[#allocation12_spill] sm:$0xff] %v5183_v39  ;;  %v5187_v62 = vadd.f32 %v1444_v48, %v1164_v15  ;;  %v1166_v14 = vadd.f32 %v1165_v49, %v885_v11  ;;  %v6326_v11 = vld [vmem:[#allocation16_spill] sm:$0xff] }
 0x1d6   :  { %v1446_v52 = vpop.f32.mrf.mxu0  ;;  %v1169_v29 = vpop.f32.mrf.mxu1  ;;  %v897_v48 = vadd.f32 %v6326_v11, %v4724_v2 }
 0x1d7   :  { %6321 = vst [vmem:[#allocation13_spill] sm:$0xff] %v5187_v62  ;;  %v5191_v7 = vadd.f32 %v1446_v52, %v1166_v14  ;;  %v1170_v19 = vadd.f32 %v1169_v29, %v889_v32  ;;  %v6328_v32 = vld [vmem:[#allocation17_spill] sm:$0xff] }
 0x1d8   :  { %v1450_v33 = vpop.f32.mrf.mxu0  ;;  %v1171_v58 = vpop.f32.mrf.mxu1  ;;  %v901_v52 = vadd.f32 %v6328_v32, %v4721_v47 }
 0x1d9   :  { %6323 = vst [vmem:[#allocation14_spill] sm:$0xff] %v5191_v7  ;;  %v5195_v3 = vadd.f32 %v1450_v33, %v1170_v19  ;;  %v1172_v39 = vadd.f32 %v1171_v58, %v891_v42  ;;  %v6330_v42 = vld [vmem:[#allocation18_spill] sm:$0xff] }
 0x1da   :  { %v1452_v23 = vpop.f32.mrf.mxu0  ;;  %v1175_v15 = vpop.f32.mrf.mxu1  ;;  %v903_v33 = vadd.f32 %v6330_v42, %v4724_v2 }
 0x1db   :  { %6325 = vst [vmem:[#allocation15_spill] sm:$0xff] %v5195_v3  ;;  %v5199_v49 = vadd.f32 %v1452_v23, %v1172_v39  ;;  %v1176_v62 = vadd.f32 %v1175_v15, %v895_v9  ;;  %v6332_v9 = vld [vmem:[#allocation19_spill] sm:$0xff] }
 0x1dc   :  { %v1456_v38 = vpop.f32.mrf.mxu0  ;;  %v1177_v14 = vpop.f32.mrf.mxu1  ;;  %v907_v23 = vadd.f32 %v6332_v9, %v4721_v47 }
 0x1dd   :  { %6327 = vst [vmem:[#allocation16_spill] sm:$0xff] %v5199_v49  ;;  %v5203_v29 = vadd.f32 %v1456_v38, %v1176_v62  ;;  %v1178_v7 = vadd.f32 %v1177_v14, %v897_v48  ;;  %v6334_v48 = vld [vmem:[#allocation20_spill] sm:$0xff] }
 0x1de   :  { %v1458_v17 = vpop.f32.mrf.mxu0  ;;  %v1181_v19 = vpop.f32.mrf.mxu1  ;;  %v909_v38 = vadd.f32 %v6334_v48, %v4724_v2 }
 0x1df   :  { %6329 = vst [vmem:[#allocation17_spill] sm:$0xff] %v5203_v29  ;;  %v5207_v58 = vadd.f32 %v1458_v17, %v1178_v7  ;;  %v1182_v3 = vadd.f32 %v1181_v19, %v901_v52  ;;  %v6336_v52 = vld [vmem:[#allocation21_spill] sm:$0xff] }
 0x1e0   :  { %v1462_v11 = vpop.f32.mrf.mxu0  ;;  %v1183_v39 = vpop.f32.mrf.mxu1  ;;  %v913_v17 = vadd.f32 %v6336_v52, %v4721_v47 }
 0x1e1   :  { %6331 = vst [vmem:[#allocation18_spill] sm:$0xff] %v5207_v58  ;;  %v5211_v15 = vadd.f32 %v1462_v11, %v1182_v3  ;;  %v1184_v49 = vadd.f32 %v1183_v39, %v903_v33  ;;  %v6338_v33 = vld [vmem:[#allocation22_spill] sm:$0xff] }
 0x1e2   :  { %v1464_v32 = vpop.f32.mrf.mxu0  ;;  %v1187_v62 = vpop.f32.mrf.mxu1  ;;  %v915_v11 = vadd.f32 %v6338_v33, %v4724_v2 }
 0x1e3   :  { %6333 = vst [vmem:[#allocation19_spill] sm:$0xff] %v5211_v15  ;;  %v5215_v14 = vadd.f32 %v1464_v32, %v1184_v49  ;;  %v1188_v29 = vadd.f32 %v1187_v62, %v907_v23  ;;  %v6340_v23 = vld [vmem:[#allocation23_spill] sm:$0xff] }
 0x1e4   :  { %v1468_v42 = vpop.f32.mrf.mxu0  ;;  %v1189_v7 = vpop.f32.mrf.mxu1  ;;  %v919_v32 = vadd.f32 %v6340_v23, %v4721_v47 }
 0x1e5   :  { %6335 = vst [vmem:[#allocation20_spill] sm:$0xff] %v5215_v14  ;;  %v5219_v19 = vadd.f32 %v1468_v42, %v1188_v29  ;;  %v1190_v58 = vadd.f32 %v1189_v7, %v909_v38  ;;  %v6342_v38 = vld [vmem:[#allocation24_spill] sm:$0xff] }
 0x1e6   :  { %v1470_v9 = vpop.f32.mrf.mxu0  ;;  %v1193_v3 = vpop.f32.mrf.mxu1  ;;  %v921_v42 = vadd.f32 %v6342_v38, %v4724_v2 }
 0x1e7   :  { %6337 = vst [vmem:[#allocation21_spill] sm:$0xff] %v5219_v19  ;;  %v5223_v39 = vadd.f32 %v1470_v9, %v1190_v58  ;;  %v1194_v15 = vadd.f32 %v1193_v3, %v913_v17  ;;  %v6344_v17 = vld [vmem:[#allocation26_spill] sm:$0xff] }
 0x1e8   :  { %v1474_v48 = vpop.f32.mrf.mxu0  ;;  %v1195_v49 = vpop.f32.mrf.mxu1  ;;  %v925_v9 = vadd.f32 %v6344_v17, %v4721_v47 }
 0x1e9   :  { %6339 = vst [vmem:[#allocation22_spill] sm:$0xff] %v5223_v39  ;;  %v5227_v62 = vadd.f32 %v1474_v48, %v1194_v15  ;;  %v1196_v14 = vadd.f32 %v1195_v49, %v915_v11  ;;  %v6346_v11 = vld [vmem:[#allocation27_spill] sm:$0xff] }
 0x1ea   :  { %v1476_v52 = vpop.f32.mrf.mxu0  ;;  %v1199_v29 = vpop.f32.mrf.mxu1  ;;  %v927_v48 = vadd.f32 %v6346_v11, %v4724_v2 }
 0x1eb   :  { %6341 = vst [vmem:[#allocation23_spill] sm:$0xff] %v5227_v62  ;;  %v5231_v7 = vadd.f32 %v1476_v52, %v1196_v14  ;;  %v1200_v19 = vadd.f32 %v1199_v29, %v919_v32  ;;  %v6348_v32 = vld [vmem:[#allocation30_spill] sm:$0xff] }
 0x1ec   :  { %v1480_v33 = vpop.f32.mrf.mxu0  ;;  %v1201_v58 = vpop.f32.mrf.mxu1  ;;  %v931_v52 = vadd.f32 %v6348_v32, %v4721_v47 }
 0x1ed   :  { %6343 = vst [vmem:[#allocation24_spill] sm:$0xff] %v5231_v7  ;;  %v5235_v3 = vadd.f32 %v1480_v33, %v1200_v19  ;;  %v1202_v39 = vadd.f32 %v1201_v58, %v921_v42  ;;  %v6350_v42 = vld [vmem:[#allocation31_spill] sm:$0xff] }
 0x1ee   :  { %v1482_v23 = vpop.f32.mrf.mxu0  ;;  %v1205_v15 = vpop.f32.mrf.mxu1  ;;  %v933_v33 = vadd.f32 %v6350_v42, %v4724_v2 }
 0x1ef   :  { %6345 = vst [vmem:[#allocation26_spill] sm:$0xff] %v5235_v3  ;;  %v5239_v49 = vadd.f32 %v1482_v23, %v1202_v39  ;;  %v1206_v62 = vadd.f32 %v1205_v15, %v925_v9 }
 0x1f0   :  { %v1486_v38 = vpop.f32.mrf.mxu0  ;;  %v1207_v14 = vpop.f32.mrf.mxu1 }
 0x1f1   :  { %6347 = vst [vmem:[#allocation27_spill] sm:$0xff] %v5239_v49  ;;  %v5243_v29 = vadd.f32 %v1486_v38, %v1206_v62  ;;  %v1208_v7 = vadd.f32 %v1207_v14, %v927_v48 }
 0x1f2   :  { %v1488_v17 = vpop.f32.mrf.mxu0  ;;  %v1211_v19 = vpop.f32.mrf.mxu1 }
 0x1f3   :  { %6349 = vst [vmem:[#allocation30_spill] sm:$0xff] %v5243_v29  ;;  %v5247_v58 = vadd.f32 %v1488_v17, %v1208_v7  ;;  %v1212_v3 = vadd.f32 %v1211_v19, %v931_v52 }
 0x1f4   :  { %v1492_v11 = vpop.f32.mrf.mxu0  ;;  %v1213_v39 = vpop.f32.mrf.mxu1 }
 0x1f5   :  { %6351 = vst [vmem:[#allocation31_spill] sm:$0xff] %v5247_v58  ;;  %v5249_v23 = vadd.f32 %v1492_v11, %v1212_v3  ;;  %v1214_v9 = vadd.f32 %v1213_v39, %v933_v33 }
 0x1f6   :  { %v1494_v15 = vpop.f32.mrf.mxu0  ;;  %v1563_v49 = vpop.f32.mrf.mxu1 }
 0x1f7   :  { %6352 = vst [vmem:[#allocation54_spill] sm:$0xff] %v5249_v23  ;;  %v5251_v40 = vadd.f32 %v1494_v15, %v1214_v9  ;;  %v1564_v47 = vadd.f32 %v1563_v49, %v4750_v28 }
 0x1f8   :  { %v1844_v62 = vpop.f32.mrf.mxu0  ;;  %v1565_v48 = vpop.f32.mrf.mxu1 }
 0x1f9   :  { %6353 = vst [vmem:[#allocation55_spill] sm:$0xff] %v5251_v40  ;;  %v5254_v38 = vadd.f32 %v1844_v62, %v1564_v47  ;;  %v1566_v2 = vadd.f32 %v1565_v48, %v4758_v44 }
 0x1fa   :  { %v1846_v7 = vpop.f32.mrf.mxu0  ;;  %v1569_v14 = vpop.f32.mrf.mxu1 }
 0x1fb   :  { %v5257_v32 = vadd.f32 %v1846_v7, %v1566_v2  ;;  %v1570_v3 = vadd.f32 %v1569_v14, %v4768_v12 }
 0x1fc   :  { %v1850_v52 = vpop.f32.mrf.mxu0  ;;  %v1571_v17 = vpop.f32.mrf.mxu1 }
 0x1fd   :  { %6354 = vst [vmem:[#allocation56_spill] sm:$0xff] %v5257_v32  ;;  %v5260_v19 = vadd.f32 %v1850_v52, %v1570_v3  ;;  %v1572_v42 = vadd.f32 %v1571_v17, %v4776_v55 }
 0x1fe   :  { %v1852_v33 = vpop.f32.mrf.mxu0  ;;  %v1575_v28 = vpop.f32.mrf.mxu1 }
 0x1ff   :  { %6355 = vst [vmem:[#allocation57_spill] sm:$0xff] %v5260_v19  ;;  %v5263_v49 = vadd.f32 %v1852_v33, %v1572_v42  ;;  %v1576_v11 = vadd.f32 %v1575_v28, %v4786_v18 }
 0x200   :  { %v1856_v39 = vpop.f32.mrf.mxu0  ;;  %v1577_v44 = vpop.f32.mrf.mxu1 }
 0x201   :  { %6356 = vst [vmem:[#allocation58_spill] sm:$0xff] %v5263_v49  ;;  %v5266_v9 = vadd.f32 %v1856_v39, %v1576_v11  ;;  %v1578_v15 = vadd.f32 %v1577_v44, %v4794_v16 }
 0x202   :  { %v1858_v47 = vpop.f32.mrf.mxu0  ;;  %v1581_v12 = vpop.f32.mrf.mxu1 }
 0x203   :  { %v1582_v62 = vadd.f32 %v1581_v12, %v4804_v63  ;;  %v5270_v48 = vadd.f32 %v1858_v47, %v1578_v15 }
 0x204   :  { %v1862_v2 = vpop.f32.mrf.mxu0  ;;  %v1583_v55 = vpop.f32.mrf.mxu1 }
 0x205   :  { %v5272_v7 = vadd.f32 %v1862_v2, %v1582_v62  ;;  %v1584_v14 = vadd.f32 %v1583_v55, %v4812_v6  ;;  %v6357_v55 = vlaneseq }
 0x206   :  { %v1864_v3 = vpop.f32.mrf.mxu0  ;;  %v1587_v18 = vpop.f32.mrf.mxu1 }
 0x207   :  { %v5275_v52 = vadd.f32 %v1864_v3, %v1584_v14  ;;  %v1588_v17 = vadd.f32 %v1587_v18, %v4822_v4  ;;  %vm5297_vm0 = vcmp.lt.s32.totalorder %v6357_v55, 256  ;;  %v6358_v14 = vmov 0 }
 0x208   :  { %v1868_v42 = vpop.f32.mrf.mxu0  ;;  %v1589_v16 = vpop.f32.mrf.mxu1  ;;  %v6359_v14 = vsel %vm5297_vm0, 4294967295, %v6358_v14  ;;  %28 = vst.msk [vmem:[#allocation3] sm:$0x3] %vm5297_vm0, %v6272_v59  ;;  %29 = vst.msk [vmem:[#allocation4] sm:$0x3] %vm5297_vm0, %v6272_v59  ;;  %v2251_v27 = vmul.f32 %v5272_v7, %v5272_v7 }
 0x209   :  { %v5278_v33 = vadd.f32 %v1868_v42, %v1588_v17  ;;  %6360 = vst [vmem:[#allocation59_spill] sm:$0xff] %v6359_v14 }
 0x20a   :  { %v5280_v28 = vpop.f32.mrf.mxu0  ;;  %v1593_v63 = vpop.f32.mrf.mxu1 }
 0x20c   :  { %v5282_v11 = vpop.f32.mrf.mxu0  ;;  %v1595_v39 = vpop.f32.mrf.mxu1 }
 0x20e   :  { %v5284_v44 = vpop.f32.mrf.mxu0  ;;  %v1599_v15 = vpop.f32.mrf.mxu1 }
 0x210   :  { %v5286_v6 = vpop.f32.mrf.mxu0  ;;  %v1601_v47 = vpop.f32.mrf.mxu1 }
 0x212   :  { %v5288_v12 = vpop.f32.mrf.mxu0  ;;  %v5290_v62 = vpop.f32.mrf.mxu1 }
 0x214   :  { %v5292_v4 = vpop.f32.mrf.mxu0  ;;  %v5294_v2 = vpop.f32.mrf.mxu1 }
 0x216   :  { %v5301_v3 = vpop.f32.mrf.mxu0  ;;  %v5303_v18 = vpop.f32.mrf.mxu1 }
 0x218   :  { %v5311_v17 = vpop.f32.mrf.mxu0  ;;  %v5313_v42 = vpop.f32.mrf.mxu1 }
 0x21a   :  { %v5315_v55 = vpop.f32.mrf.mxu0  ;;  %v5317_v40 = vpop.f32.mrf.mxu1 }
 0x21c   :  { %v5319_v23 = vpop.f32.mrf.mxu0  ;;  %v5321_v58 = vpop.f32.mrf.mxu1 }
 0x21e   :  { %v5323_v29 = vpop.f32.mrf.mxu0  ;;  %v5325_v51 = vpop.f32.mrf.mxu1 }
 0x220   :  { %v5327_v34 = vpop.f32.mrf.mxu0  ;;  %v5329_v14 = vpop.f32.mrf.mxu1 }
 0x222   :  { %v5331_v59 = vpop.f32.mrf.mxu0  ;;  %v5333_v56 = vpop.f32.mrf.mxu1 }
 0x224   :  { %v5335_v37 = vpop.f32.mrf.mxu0  ;;  %v5337_v26 = vpop.f32.mrf.mxu1 }
 0x225   :  { %6361 = vst [vmem:[#allocation60_spill] sm:$0xff] %v5335_v37 }
 0x226   :  { %v5339_v61 = vpop.f32.mrf.mxu0  ;;  %v5341_v13 = vpop.f32.mrf.mxu1 }
 0x227   :  { %6362 = vst [vmem:[#allocation61_spill] sm:$0xff] %v5339_v61  ;;  %6363 = vst [vmem:[#allocation62_spill] sm:$0xff] %v5341_v13  ;;  %v2179_v13 = vadd.f32 %v5263_v49, %v5257_v32 }
 0x228   :  { %v5343_v30 = vpop.f32.mrf.mxu0  ;;  %v5345_v46 = vpop.f32.mrf.mxu1 }
 0x229   :  { %6364 = vst [vmem:[#allocation63_spill] sm:$0xff] %v5343_v30  ;;  %6365 = vst [vmem:[#allocation64_spill] sm:$0xff] %v5345_v46  ;;  %v2247_v30 = vmul.f32 %v5260_v19, %v5260_v19 }
 0x22a   :  { %v5347_v8 = vpop.f32.mrf.mxu0  ;;  %v5349_v22 = vpop.f32.mrf.mxu1 }
 0x22b   :  { %6366 = vst [vmem:[#allocation65_spill] sm:$0xff] %v5347_v8  ;;  %6367 = vst [vmem:[#allocation66_spill] sm:$0xff] %v5349_v22  ;;  %v2246_v22 = vmul.f32 %v5257_v32, %v5257_v32 }
 0x22c   :  { %v5351_v57 = vpop.f32.mrf.mxu0  ;;  %v5353_v1 = vpop.f32.mrf.mxu1 }
 0x22d   :  { %6368 = vst [vmem:[#allocation67_spill] sm:$0xff] %v5351_v57  ;;  %6369 = vst [vmem:[#allocation68_spill] sm:$0xff] %v5353_v1  ;;  %v2248_v57 = vmul.f32 %v5263_v49, %v5263_v49  ;;  %v1590_v1 = vadd.f32 %v1589_v16, %v4830_v21  ;;  %v2138_v21 = vadd.f32 %v5260_v19, %v5254_v38 }
 0x22e   :  { %v5355_v43 = vpop.f32.mrf.mxu0  ;;  %v5357_v53 = vpop.f32.mrf.mxu1  ;;  %v1602_v19 = vadd.f32 %v1601_v47, %v4866_v41  ;;  %v1608_v41 = vadd.f32 %v5294_v2, %v4884_v50  ;;  %v1612_v50 = vadd.f32 %v5303_v18, %v4894_v45  ;;  %v1618_v18 = vadd.f32 %v5317_v40, %v4912_v54 }
 0x22f   :  { %6370 = vst [vmem:[#allocation69_spill] sm:$0xff] %v5355_v43  ;;  %6371 = vst [vmem:[#allocation70_spill] sm:$0xff] %v5357_v53  ;;  %v2245_v43 = vmul.f32 %v5254_v38, %v5254_v38  ;;  %v1594_v53 = vadd.f32 %v1593_v63, %v4840_v24  ;;  %v2250_v24 = vmul.f32 %v5270_v48, %v5270_v48 }
 0x230   :  { %v5359_v37 = vpop.f32.mrf.mxu0  ;;  %v5361_v61 = vpop.f32.mrf.mxu1  ;;  %v5453_v45 = vadd.f32 %v5301_v3, %v1608_v41  ;;  %v5470_v54 = vadd.f32 %v5311_v17, %v1612_v50 }
 0x231   :  { %6372 = vst [vmem:[#allocation71_spill] sm:$0xff] %v5359_v37  ;;  %6373 = vst [vmem:[#allocation72_spill] sm:$0xff] %v5361_v61  ;;  %v2317_v16 = vadd.f32 %v2247_v30, %v2245_v43  ;;  %v2139_v43 = vadd.f32 %v2138_v21, %v5266_v9  ;;  %v2252_v30 = vmul.f32 %v5275_v52, %v5275_v52 }
 0x232   :  { %v5365_v46 = vpop.f32.mrf.mxu0  ;;  %v5367_v8 = vpop.f32.mrf.mxu1  ;;  %v5404_v49 = vadd.f32 %v5282_v11, %v1594_v53  ;;  %v2253_v53 = vmul.f32 %v5278_v33, %v5278_v33  ;;  %6382 = vst [vmem:[#allocation81_spill] sm:$0xff] %v5453_v45  ;;  %6383 = vst [vmem:[#allocation82_spill] sm:$0xff] %v5470_v54  ;;  %v2260_v17 = vmul.f32 %v5453_v45, %v5453_v45 }
 0x233   :  { %6374 = vst [vmem:[#allocation73_spill] sm:$0xff] %v5365_v46  ;;  %6375 = vst [vmem:[#allocation74_spill] sm:$0xff] %v5367_v8  ;;  %v2249_v46 = vmul.f32 %v5266_v9, %v5266_v9  ;;  %v1596_v8 = vadd.f32 %v1595_v39, %v4848_v31  ;;  %v5397_v31 = vadd.f32 %v5280_v28, %v1590_v1 }
 0x234   :  { %v5375_v37 = vpop.f32.mrf.mxu0  ;;  %v5377_v61 = vpop.f32.mrf.mxu1  ;;  %v1600_v39 = vadd.f32 %v1599_v15, %v4858_v25  ;;  %v2180_v1 = vadd.f32 %v2179_v13, %v5270_v48  ;;  %v1606_v25 = vadd.f32 %v5290_v62, %v4876_v35  ;;  %v2140_v21 = vadd.f32 %v2139_v43, %v5272_v7 }
 0x235   :  { %6376 = vst [vmem:[#allocation75_spill] sm:$0xff] %v5375_v37  ;;  %6377 = vst [vmem:[#allocation76_spill] sm:$0xff] %v5377_v61  ;;  %v2358_v61 = vadd.f32 %v2248_v57, %v2246_v22  ;;  %v2318_v22 = vadd.f32 %v2317_v16, %v2249_v46  ;;  %v5413_v28 = vadd.f32 %v5284_v44, %v1596_v8 }
 0x236   :  { %v5390_v63 = vpop.f32.mrf.mxu0  ;;  %v5392_v37 = vpop.f32.mrf.mxu1  ;;  %v2181_v8 = vadd.f32 %v2180_v1, %v5275_v52  ;;  %v2254_v44 = vmul.f32 %v5397_v31, %v5397_v31  ;;  %v5430_v35 = vadd.f32 %v5286_v6, %v1600_v39  ;;  %v2255_v47 = vmul.f32 %v5404_v49, %v5404_v49 }
 0x237   :  { %6378 = vst [vmem:[#allocation77_spill] sm:$0xff] %v5413_v28  ;;  %v2359_v15 = vadd.f32 %v2358_v61, %v2250_v24  ;;  %v2319_v13 = vadd.f32 %v2318_v22, %v2251_v27  ;;  %v5435_v62 = vadd.f32 %v5288_v12, %v1602_v19  ;;  %v2141_v16 = vadd.f32 %v2140_v21, %v5278_v33 }
 0x238   :  { %v5407_v32 = vpop.f32.mrf.mxu0  ;;  %v5409_v57 = vpop.f32.mrf.mxu1  ;;  %6379 = vst [vmem:[#allocation78_spill] sm:$0xff] %v5430_v35  ;;  %v2256_v6 = vmul.f32 %v5413_v28, %v5413_v28  ;;  %v5447_v24 = vadd.f32 %v5292_v4, %v1606_v25  ;;  %v1614_v39 = vadd.f32 %v5313_v42, %v4902_v60  ;;  %v2182_v12 = vadd.f32 %v2181_v8, %v5397_v31 }
 0x239   :  { %v2360_v61 = vadd.f32 %v2359_v15, %v2252_v30  ;;  %6380 = vst [vmem:[#allocation79_spill] sm:$0xff] %v5435_v62  ;;  %v2320_v19 = vadd.f32 %v2319_v13, %v2253_v53  ;;  %v2142_v4 = vadd.f32 %v2141_v16, %v5404_v49  ;;  %v2257_v1 = vmul.f32 %v5430_v35, %v5430_v35 }
 0x23a   :  { %v5422_v11 = vpop.f32.mrf.mxu0  ;;  %v5424_v46 = vpop.f32.mrf.mxu1  ;;  %6381 = vst [vmem:[#allocation80_spill] sm:$0xff] %v5447_v24  ;;  %v1620_v60 = vadd.f32 %v5321_v58, %v4920_v5  ;;  %v2183_v3 = vadd.f32 %v2182_v12, %v5413_v28  ;;  %v2258_v25 = vmul.f32 %v5435_v62, %v5435_v62  ;;  %v2259_v53 = vmul.f32 %v5447_v24, %v5447_v24 }
 0x23b   :  { %v2361_v22 = vadd.f32 %v2360_v61, %v2254_v44  ;;  %v2321_v42 = vadd.f32 %v2320_v19, %v2255_v47  ;;  %v5479_v41 = vadd.f32 %v5315_v55, %v1614_v39  ;;  %v1624_v5 = vadd.f32 %v5325_v51, %v4930_v0 }
 0x23c   :  { %v5439_v2 = vpop.f32.mrf.mxu0  ;;  %v5441_v27 = vpop.f32.mrf.mxu1  ;;  %v2143_v58 = vadd.f32 %v2142_v4, %v5430_v35  ;;  %v5487_v13 = vadd.f32 %v5319_v23, %v1618_v18  ;;  %v1626_v8 = vadd.f32 %v5329_v14, %v4938_v20  ;;  %v2184_v47 = vadd.f32 %v2183_v3, %v5435_v62 }
 0x23d   :  { %v2362_v21 = vadd.f32 %v2361_v22, %v2256_v6  ;;  %6384 = vst [vmem:[#allocation83_spill] sm:$0xff] %v5479_v41  ;;  %v2322_v55 = vadd.f32 %v2321_v42, %v2257_v1  ;;  %v5497_v0 = vadd.f32 %v5323_v29, %v1620_v60  ;;  %v1630_v51 = vadd.f32 %v5333_v56, %v4948_v10  ;;  %v6391_v42 = vld [vmem:[#allocation60_spill] sm:$0xff] }
 0x23e   :  { %v5457_v43 = vpop.f32.mrf.mxu0  ;;  %v5459_v30 = vpop.f32.mrf.mxu1  ;;  %6385 = vst [vmem:[#allocation84_spill] sm:$0xff] %v5487_v13  ;;  %v2144_v23 = vadd.f32 %v2143_v58, %v5447_v24  ;;  %v2261_v16 = vmul.f32 %v5470_v54, %v5470_v54  ;;  %v1632_v20 = vadd.f32 %v5337_v26, %v4956_v36  ;;  %v2185_v29 = vadd.f32 %v2184_v47, %v5453_v45  ;;  %v6389_v36 = vld [vmem:[#allocation32_spill] sm:$0xff]  ;;  %v6390_v26 = vld [vmem:[#allocation62_spill] sm:$0xff]  ;;  %v6395_v58 = vld [vmem:[#allocation61_spill] sm:$0xff] }
 0x23f   :  { %6386 = vst [vmem:[#allocation85_spill] sm:$0xff] %v5497_v0  ;;  %v2363_v50 = vadd.f32 %v2362_v21, %v2258_v25  ;;  %v2323_v39 = vadd.f32 %v2322_v55, %v2259_v53  ;;  %v2262_v19 = vmul.f32 %v5479_v41, %v5479_v41  ;;  %v5514_v10 = vadd.f32 %v5327_v34, %v1624_v5  ;;  %v6393_v25 = vld [vmem:[#allocation33_spill] sm:$0xff]  ;;  %v6394_v21 = vld [vmem:[#allocation64_spill] sm:$0xff]  ;;  %v6398_v55 = vld [vmem:[#allocation66_spill] sm:$0xff] }
 0x240   :  { %v5472_v40 = vpop.f32.mrf.mxu0  ;;  %v5474_v15 = vpop.f32.mrf.mxu1  ;;  %v2263_v12 = vmul.f32 %v5487_v13, %v5487_v13  ;;  %v5519_v18 = vadd.f32 %v5331_v59, %v1626_v8  ;;  %v1636_v22 = vadd.f32 %v6390_v26, %v6389_v36  ;;  %v2145_v60 = vadd.f32 %v2144_v23, %v5470_v54  ;;  %v6397_v8 = vld [vmem:[#allocation34_spill] sm:$0xff] }
 0x241   :  { %6387 = vst [vmem:[#allocation86_spill] sm:$0xff] %v5514_v10  ;;  %v2364_v56 = vadd.f32 %v2363_v50, %v2260_v17  ;;  %v2264_v34 = vmul.f32 %v5497_v0, %v5497_v0  ;;  %v5531_v3 = vadd.f32 %v6391_v42, %v1630_v51  ;;  %v1638_v53 = vadd.f32 %v6394_v21, %v6393_v25  ;;  %v6399_v42 = vld [vmem:[#allocation35_spill] sm:$0xff] }
 0x242   :  { %v5491_v44 = vpop.f32.mrf.mxu0  ;;  %v5493_v61 = vpop.f32.mrf.mxu1  ;;  %6388 = vst [vmem:[#allocation87_spill] sm:$0xff] %v5519_v18  ;;  %v2324_v59 = vadd.f32 %v2323_v39, %v2261_v16  ;;  %v2186_v5 = vadd.f32 %v2185_v29, %v5479_v41  ;;  %v5537_v17 = vadd.f32 %v6395_v58, %v1632_v20  ;;  %v1642_v47 = vadd.f32 %v6398_v55, %v6397_v8  ;;  %v6400_v16 = vld [vmem:[#allocation68_spill] sm:$0xff]  ;;  %v6401_v25 = vld [vmem:[#allocation63_spill] sm:$0xff]  ;;  %v6404_v8 = vld [vmem:[#allocation70_spill] sm:$0xff] }
 0x243   :  { %6392 = vst [vmem:[#allocation32_spill] sm:$0xff] %v5531_v3  ;;  %v2365_v36 = vadd.f32 %v2364_v56, %v2262_v19  ;;  %v2146_v51 = vadd.f32 %v2145_v60, %v5487_v13  ;;  %v2265_v26 = vmul.f32 %v5514_v10, %v5514_v10  ;;  %v1644_v39 = vadd.f32 %v6400_v16, %v6399_v42  ;;  %v6403_v58 = vld [vmem:[#allocation36_spill] sm:$0xff] }
 0x244   :  { %v5506_v14 = vpop.f32.mrf.mxu0  ;;  %v5508_v6 = vpop.f32.mrf.mxu1  ;;  %6396 = vst [vmem:[#allocation62_spill] sm:$0xff] %v5537_v17  ;;  %v2325_v29 = vadd.f32 %v2324_v59, %v2263_v12  ;;  %v2266_v20 = vmul.f32 %v5519_v18, %v5519_v18  ;;  %v5553_v21 = vadd.f32 %v6401_v25, %v1636_v22  ;;  %v1648_v55 = vadd.f32 %v6404_v8, %v6403_v58  ;;  %v6405_v12 = vld [vmem:[#allocation65_spill] sm:$0xff]  ;;  %v6406_v25 = vld [vmem:[#allocation67_spill] sm:$0xff]  ;;  %v6408_v13 = vld [vmem:[#allocation72_spill] sm:$0xff] }
 0x245   :  { %v2187_v56 = vadd.f32 %v2186_v5, %v5497_v0  ;;  %v2366_v60 = vadd.f32 %v2365_v36, %v2264_v34  ;;  %v2267_v42 = vmul.f32 %v5531_v3, %v5531_v3  ;;  %v5565_v59 = vadd.f32 %v6405_v12, %v1638_v53  ;;  %v6407_v8 = vld [vmem:[#allocation37_spill] sm:$0xff] }
 0x246   :  { %v5523_v4 = vpop.f32.mrf.mxu0  ;;  %v5525_v1 = vpop.f32.mrf.mxu1  ;;  %6402 = vst [vmem:[#allocation60_spill] sm:$0xff] %v5553_v21  ;;  %v2147_v16 = vadd.f32 %v2146_v51, %v5514_v10  ;;  %v2268_v22 = vmul.f32 %v5537_v17, %v5537_v17  ;;  %v5571_v58 = vadd.f32 %v6406_v25, %v1642_v47  ;;  %v1650_v54 = vadd.f32 %v6408_v13, %v6407_v8  ;;  %v6409_v53 = vld [vmem:[#allocation69_spill] sm:$0xff]  ;;  %v6410_v51 = vld [vmem:[#allocation38_spill] sm:$0xff]  ;;  %v6412_v25 = vld [vmem:[#allocation71_spill] sm:$0xff] }
 0x247   :  { %v2326_v5 = vadd.f32 %v2325_v29, %v2265_v26  ;;  %v2188_v36 = vadd.f32 %v2187_v56, %v5519_v18  ;;  %v5581_v12 = vadd.f32 %v6409_v53, %v1644_v39  ;;  %v6411_v10 = vld [vmem:[#allocation74_spill] sm:$0xff]  ;;  %v2367_v24 = vadd.f32 %v2366_v60, %v2266_v20  ;;  %v6413_v13 = vld [vmem:[#allocation39_spill] sm:$0xff]  ;;  %v6414_v8 = vld [vmem:[#allocation76_spill] sm:$0xff] }
 0x248   :  { %v5541_v50 = vpop.f32.mrf.mxu0  ;;  %v5543_v23 = vpop.f32.mrf.mxu1  ;;  %v1654_v0 = vadd.f32 %v6411_v10, %v6410_v51  ;;  %v2269_v47 = vmul.f32 %v5553_v21, %v5553_v21  ;;  %v5588_v62 = vadd.f32 %v6412_v25, %v1648_v55  ;;  %v1656_v35 = vadd.f32 %v6414_v8, %v6413_v13  ;;  %v6415_v60 = vld [vmem:[#allocation73_spill] sm:$0xff]  ;;  %v6416_v51 = vld [vmem:[#allocation40_spill] sm:$0xff] }
 0x249   :  { %v2148_v39 = vadd.f32 %v2147_v16, %v5531_v3  ;;  %v2327_v29 = vadd.f32 %v2326_v5, %v2267_v42  ;;  %v2189_v56 = vadd.f32 %v2188_v36, %v5537_v17  ;;  %v2270_v10 = vmul.f32 %v5565_v59, %v5565_v59  ;;  %v6417_v5 = vld [vmem:[#allocation75_spill] sm:$0xff] }
 0x24a   :  { %v5557_v41 = vpop.f32.mrf.mxu0  ;;  %v5559_v19 = vpop.f32.mrf.mxu1  ;;  %v2368_v20 = vadd.f32 %v2367_v24, %v2268_v22  ;;  %v2271_v55 = vmul.f32 %v5571_v58, %v5571_v58  ;;  %v5603_v53 = vadd.f32 %v6415_v60, %v1650_v54  ;;  %v1660_v25 = vadd.f32 %v5392_v37, %v6416_v51  ;;  %v6418_v22 = vld [vmem:[#allocation41_spill] sm:$0xff]  ;;  %v6420_v51 = vld [vmem:[#allocation42_spill] sm:$0xff] }
 0x24b   :  { %v2149_v42 = vadd.f32 %v2148_v39, %v5553_v21  ;;  %v2272_v16 = vmul.f32 %v5581_v12, %v5581_v12  ;;  %v5615_v24 = vadd.f32 %v6417_v5, %v1654_v0  ;;  %v1662_v36 = vadd.f32 %v5409_v57, %v6418_v22  ;;  %v6421_v57 = vld [vmem:[#allocation43_spill] sm:$0xff] }
 0x24c   :  { %v5575_v45 = vpop.f32.mrf.mxu0  ;;  %v5577_v34 = vpop.f32.mrf.mxu1  ;;  %v2328_v54 = vadd.f32 %v2327_v29, %v2269_v47  ;;  %v2273_v60 = vmul.f32 %v5588_v62, %v5588_v62  ;;  %v5622_v37 = vadd.f32 %v5390_v63, %v1656_v35  ;;  %v1666_v17 = vadd.f32 %v5424_v46, %v6420_v51  ;;  %v6423_v46 = vld [vmem:[#allocation44_spill] sm:$0xff] }
 0x24d   :  { %v2190_v0 = vadd.f32 %v2189_v56, %v5565_v59  ;;  %v2369_v5 = vadd.f32 %v2368_v20, %v2270_v10  ;;  %v2150_v3 = vadd.f32 %v2149_v42, %v5571_v58  ;;  %v1668_v47 = vadd.f32 %v5441_v27, %v6421_v57 }
 0x24e   :  { %v5592_v28 = vpop.f32.mrf.mxu0  ;;  %v5594_v26 = vpop.f32.mrf.mxu1  ;;  %6419 = vst [vmem:[#allocation33_spill] sm:$0xff] %v5622_v37  ;;  %v2329_v29 = vadd.f32 %v2328_v54, %v2271_v55  ;;  %v2274_v63 = vmul.f32 %v5603_v53, %v5603_v53  ;;  %v5637_v35 = vadd.f32 %v5407_v32, %v1660_v25  ;;  %v1672_v22 = vadd.f32 %v5459_v30, %v6423_v46 }
 0x24f   :  { %v2191_v56 = vadd.f32 %v2190_v0, %v5581_v12  ;;  %v2370_v10 = vadd.f32 %v2369_v5, %v2272_v16  ;;  %v2275_v27 = vmul.f32 %v5615_v24, %v5615_v24  ;;  %v5649_v20 = vadd.f32 %v5422_v11, %v1662_v36  ;;  %v6424_v11 = vld [vmem:[#allocation45_spill] sm:$0xff] }
 0x250   :  { %v5607_v13 = vpop.f32.mrf.mxu0  ;;  %v5609_v8 = vpop.f32.mrf.mxu1  ;;  %6422 = vst [vmem:[#allocation64_spill] sm:$0xff] %v5637_v35  ;;  %v2151_v55 = vadd.f32 %v2150_v3, %v5588_v62  ;;  %v2330_v32 = vadd.f32 %v2329_v29, %v2273_v60  ;;  %v2276_v25 = vmul.f32 %v5622_v37, %v5622_v37  ;;  %v5655_v30 = vadd.f32 %v5439_v2, %v1666_v17  ;;  %v6425_v3 = vld [vmem:[#allocation46_spill] sm:$0xff] }
 0x251   :  { %v2192_v16 = vadd.f32 %v2191_v56, %v5603_v53  ;;  %v5663_v0 = vadd.f32 %v5457_v43, %v1668_v47  ;;  %v1674_v36 = vadd.f32 %v5474_v15, %v6424_v11  ;;  %v1678_v60 = vadd.f32 %v5493_v61, %v6425_v3  ;;  %v6426_v56 = vld [vmem:[#allocation47_spill] sm:$0xff] }
 0x252   :  { %v5626_v39 = vpop.f32.mrf.mxu0  ;;  %v5628_v21 = vpop.f32.mrf.mxu1  ;;  %v2371_v5 = vadd.f32 %v2370_v10, %v2274_v63  ;;  %v2152_v57 = vadd.f32 %v2151_v55, %v5615_v24  ;;  %v2277_v2 = vmul.f32 %v5637_v35, %v5637_v35  ;;  %v5673_v17 = vadd.f32 %v5472_v40, %v1672_v22  ;;  %v6427_v40 = vld [vmem:[#allocation48_spill] sm:$0xff] }
 0x253   :  { %v2331_v43 = vadd.f32 %v2330_v32, %v2275_v27  ;;  %v2193_v47 = vadd.f32 %v2192_v16, %v5622_v37  ;;  %v2278_v15 = vmul.f32 %v5649_v20, %v5649_v20  ;;  %v1680_v61 = vadd.f32 %v5508_v6, %v6426_v56  ;;  %v6430_v56 = vld [vmem:[#allocation50_spill] sm:$0xff] }
 0x254   :  { %v5641_v51 = vpop.f32.mrf.mxu0  ;;  %v5643_v18 = vpop.f32.mrf.mxu1  ;;  %v2372_v63 = vadd.f32 %v2371_v5, %v2276_v25  ;;  %v2153_v10 = vadd.f32 %v2152_v57, %v5637_v35  ;;  %v2279_v55 = vmul.f32 %v5655_v30, %v5655_v30  ;;  %v1684_v22 = vadd.f32 %v5525_v1, %v6427_v40  ;;  %v6429_v25 = vld [vmem:[#allocation49_spill] sm:$0xff] }
 0x255   :  { %v2280_v32 = vmul.f32 %v5663_v0, %v5663_v0  ;;  %v5692_v16 = vadd.f32 %v5491_v44, %v1674_v36  ;;  %v5695_v6 = vadd.f32 %v5506_v14, %v1678_v60  ;;  %v1686_v3 = vadd.f32 %v5543_v23, %v6429_v25  ;;  %v6432_v60 = vld [vmem:[#allocation51_spill] sm:$0xff]  ;;  %v6434_v25 = vld [vmem:[#allocation52_spill] sm:$0xff] }
 0x256   :  { %v5657_v42 = vpop.f32.mrf.mxu0  ;;  %v5659_v54 = vpop.f32.mrf.mxu1  ;;  %v2332_v5 = vadd.f32 %v2331_v43, %v2277_v2  ;;  %v2194_v57 = vadd.f32 %v2193_v47, %v5649_v20  ;;  %v2281_v1 = vmul.f32 %v5673_v17, %v5673_v17  ;;  %v1690_v40 = vadd.f32 %v5559_v19, %v6430_v56 }
 0x257   :  { %6428 = vst [vmem:[#allocation61_spill] sm:$0xff] %v5695_v6  ;;  %v2373_v44 = vadd.f32 %v2372_v63, %v2278_v15  ;;  %v2154_v36 = vadd.f32 %v2153_v10, %v5655_v30  ;;  %v5708_v14 = vadd.f32 %v5523_v4, %v1680_v61  ;;  %v1692_v23 = vadd.f32 %v5577_v34, %v6432_v60 }
 0x258   :  { %v5675_v29 = vpop.f32.mrf.mxu0  ;;  %v1709_v46 = vpop.f32.mrf.mxu1  ;;  %v2333_v2 = vadd.f32 %v2332_v5, %v2279_v55  ;;  %v2195_v43 = vadd.f32 %v2194_v57, %v5663_v0  ;;  %v5714_v47 = vadd.f32 %v5541_v50, %v1684_v22  ;;  %v1696_v19 = vadd.f32 %v5594_v26, %v6434_v25  ;;  %v6435_v26 = vld [vmem:[#allocation53_spill] sm:$0xff] }
 0x259   :  { %6431 = vst [vmem:[#allocation34_spill] sm:$0xff] %v5708_v14  ;;  %v2374_v63 = vadd.f32 %v2373_v44, %v2280_v32  ;;  %v2282_v4 = vmul.f32 %v5692_v16, %v5692_v16  ;;  %v2283_v61 = vmul.f32 %v5695_v6, %v5695_v6  ;;  %v5725_v34 = vadd.f32 %v5557_v41, %v1686_v3  ;;  %v6436_v3 = vld [vmem:[#allocation5_spill] sm:$0xff] }
 0x25a   :  { %v5687_v11 = vpop.f32.mrf.mxu0  ;;  %v1713_v27 = vpop.f32.mrf.mxu1  ;;  %6433 = vst [vmem:[#allocation66_spill] sm:$0xff] %v5714_v47  ;;  %v2155_v10 = vadd.f32 %v2154_v36, %v5673_v17  ;;  %v2334_v50 = vadd.f32 %v2333_v2, %v2281_v1  ;;  %v5729_v55 = vadd.f32 %v5575_v45, %v1690_v40  ;;  %v1698_v22 = vadd.f32 %v5609_v8, %v6435_v26  ;;  %v6437_v36 = vld [vmem:[#allocation6_spill] sm:$0xff] }
 0x25b   :  { %v2196_v57 = vadd.f32 %v2195_v43, %v5692_v16  ;;  %v2284_v44 = vmul.f32 %v5708_v14, %v5708_v14  ;;  %v5739_v41 = vadd.f32 %v5592_v28, %v1692_v23  ;;  %v1702_v1 = vadd.f32 %v5628_v21, %v6436_v3 }
 0x25c   :  { %v5704_v35 = vpop.f32.mrf.mxu0  ;;  %v1715_v37 = vpop.f32.mrf.mxu1  ;;  %v2156_v45 = vadd.f32 %v2155_v10, %v5695_v6  ;;  %v2285_v40 = vmul.f32 %v5714_v47, %v5714_v47  ;;  %v5747_v8 = vadd.f32 %v5607_v13, %v1696_v19  ;;  %v1704_v60 = vadd.f32 %v5643_v18, %v6437_v36  ;;  %v6439_v13 = vld [vmem:[#allocation7_spill] sm:$0xff]  ;;  %v6440_v18 = vld [vmem:[#allocation8_spill] sm:$0xff] }
 0x25d   :  { %v2375_v25 = vadd.f32 %v2374_v63, %v2282_v4  ;;  %v2335_v28 = vadd.f32 %v2334_v50, %v2283_v61  ;;  %v2197_v23 = vadd.f32 %v2196_v57, %v5708_v14  ;;  %v2286_v21 = vmul.f32 %v5725_v34, %v5725_v34 }
 0x25e   :  { %v5718_v56 = vpop.f32.mrf.mxu0  ;;  %v1719_v15 = vpop.f32.mrf.mxu1  ;;  %v2287_v10 = vmul.f32 %v5729_v55, %v5729_v55  ;;  %v5759_v26 = vadd.f32 %v5626_v39, %v1698_v22  ;;  %v1708_v19 = vadd.f32 %v5659_v54, %v6439_v13  ;;  %v1710_v3 = vadd.f32 %v1709_v46, %v6440_v18  ;;  %v6443_v54 = vld [vmem:[#allocation9_spill] sm:$0xff] }
 0x25f   :  { %v2376_v63 = vadd.f32 %v2375_v25, %v2284_v44  ;;  %v2157_v4 = vadd.f32 %v2156_v45, %v5714_v47  ;;  %v2288_v61 = vmul.f32 %v5739_v41, %v5739_v41  ;;  %v5768_v50 = vadd.f32 %v5641_v51, %v1702_v1  ;;  %v6444_v47 = vld [vmem:[#allocation10_spill] sm:$0xff] }
 0x260   :  { %v5733_v5 = vpop.f32.mrf.mxu0  ;;  %v1721_v32 = vpop.f32.mrf.mxu1  ;;  %6438 = vst [vmem:[#allocation35_spill] sm:$0xff] %v5759_v26  ;;  %v2336_v57 = vadd.f32 %v2335_v28, %v2285_v40  ;;  %v2289_v39 = vmul.f32 %v5747_v8, %v5747_v8  ;;  %v5773_v22 = vadd.f32 %v5657_v42, %v1704_v60  ;;  %v1714_v46 = vadd.f32 %v1713_v27, %v6443_v54 }
 0x261   :  { %6441 = vst [vmem:[#allocation68_spill] sm:$0xff] %v5768_v50  ;;  %v2198_v44 = vadd.f32 %v2197_v23, %v5725_v34  ;;  %v2377_v45 = vadd.f32 %v2376_v63, %v2286_v21  ;;  %v2158_v25 = vadd.f32 %v2157_v4, %v5729_v55  ;;  %v1716_v14 = vadd.f32 %v1715_v37, %v6444_v47  ;;  %v6446_v63 = vld [vmem:[#allocation11_spill] sm:$0xff] }
 0x262   :  { %v5751_v2 = vpop.f32.mrf.mxu0  ;;  %v1725_v43 = vpop.f32.mrf.mxu1  ;;  %6442 = vst [vmem:[#allocation63_spill] sm:$0xff] %v5773_v22  ;;  %v2337_v51 = vadd.f32 %v2336_v57, %v2287_v10  ;;  %v2290_v1 = vmul.f32 %v5759_v26, %v5759_v26  ;;  %v5782_v40 = vadd.f32 %v5675_v29, %v1708_v19  ;;  %v5785_v42 = vadd.f32 %v5687_v11, %v1710_v3  ;;  %v6447_v57 = vld [vmem:[#allocation12_spill] sm:$0xff] }
 0x263   :  { %v2199_v28 = vadd.f32 %v2198_v44, %v5739_v41  ;;  %v2378_v23 = vadd.f32 %v2377_v45, %v2288_v61  ;;  %v2291_v21 = vmul.f32 %v5768_v50, %v5768_v50  ;;  %v1720_v37 = vadd.f32 %v1719_v15, %v6446_v63  ;;  %v6448_v44 = vld [vmem:[#allocation13_spill] sm:$0xff] }
 0x264   :  { %v2006_v36 = vpop.f32.mrf.mxu0  ;;  %v1727_v6 = vpop.f32.mrf.mxu1  ;;  %6445 = vst [vmem:[#allocation36_spill] sm:$0xff] %v5782_v40  ;;  %v2159_v47 = vadd.f32 %v2158_v25, %v5747_v8  ;;  %v2338_v10 = vadd.f32 %v2337_v51, %v2289_v39  ;;  %v2292_v29 = vmul.f32 %v5773_v22, %v5773_v22  ;;  %v5795_v19 = vadd.f32 %v5704_v35, %v1714_v46 }
 0x265   :  { %v2200_v4 = vadd.f32 %v2199_v28, %v5759_v26  ;;  %v5799_v61 = vadd.f32 %v5718_v56, %v1716_v14  ;;  %v1722_v54 = vadd.f32 %v1721_v32, %v6447_v57  ;;  %v1726_v15 = vadd.f32 %v1725_v43, %v6448_v44  ;;  %v6449_v14 = vld [vmem:[#allocation14_spill] sm:$0xff]  ;;  %v6450_v32 = vld [vmem:[#allocation15_spill] sm:$0xff] }
 0x266   :  { %v2008_v13 = vpop.f32.mrf.mxu0  ;;  %v1731_v18 = vpop.f32.mrf.mxu1  ;;  %v2379_v45 = vadd.f32 %v2378_v23, %v2290_v1  ;;  %v2160_v39 = vadd.f32 %v2159_v47, %v5768_v50  ;;  %v2293_v25 = vmul.f32 %v5782_v40, %v5782_v40  ;;  %v2294_v35 = vmul.f32 %v5785_v42, %v5785_v42 }
 0x267   :  { %v2339_v63 = vadd.f32 %v2338_v10, %v2291_v21  ;;  %v5809_v28 = vadd.f32 %v5733_v5, %v1720_v37  ;;  %v1728_v56 = vadd.f32 %v1727_v6, %v6449_v14  ;;  %v1732_v57 = vadd.f32 %v1731_v18, %v6450_v32  ;;  %v6451_v6 = vld [vmem:[#allocation16_spill] sm:$0xff] }
 0x268   :  { %v2012_v27 = vpop.f32.mrf.mxu0  ;;  %v1733_v60 = vpop.f32.mrf.mxu1  ;;  %v2201_v43 = vadd.f32 %v2200_v4, %v5773_v22  ;;  %v2380_v1 = vadd.f32 %v2379_v45, %v2292_v29  ;;  %v2161_v23 = vadd.f32 %v2160_v39, %v5782_v40  ;;  %v2295_v47 = vmul.f32 %v5795_v19, %v5795_v19  ;;  %v6452_v45 = vld [vmem:[#allocation17_spill] sm:$0xff] }
 0x269   :  { %v2296_v21 = vmul.f32 %v5799_v61, %v5799_v61  ;;  %v5820_v5 = vadd.f32 %v5751_v2, %v1722_v54  ;;  %v5822_v37 = vadd.f32 %v2006_v36, %v1726_v15  ;;  %v1734_v18 = vadd.f32 %v1733_v60, %v6451_v6  ;;  %v6453_v2 = vld [vmem:[#allocation18_spill] sm:$0xff] }
 0x26a   :  { %v2014_v11 = vpop.f32.mrf.mxu0  ;;  %v1737_v3 = vpop.f32.mrf.mxu1  ;;  %v2340_v10 = vadd.f32 %v2339_v63, %v2293_v25  ;;  %v2202_v29 = vadd.f32 %v2201_v43, %v5785_v42  ;;  %v2381_v4 = vadd.f32 %v2380_v1, %v2294_v35  ;;  %v2297_v40 = vmul.f32 %v5809_v28, %v5809_v28  ;;  %v6454_v25 = vld [vmem:[#allocation19_spill] sm:$0xff] }
 0x26b   :  { %v1738_v39 = vadd.f32 %v1737_v3, %v6452_v45  ;;  %v5829_v22 = vadd.f32 %v2008_v13, %v1728_v56  ;;  %v5831_v26 = vadd.f32 %v2012_v27, %v1732_v57  ;;  %v2162_v54 = vadd.f32 %v2161_v23, %v5795_v19  ;;  %v6455_v57 = vld [vmem:[#allocation20_spill] sm:$0xff] }
 0x26c   :  { %v2018_v46 = vpop.f32.mrf.mxu0  ;;  %v1739_v51 = vpop.f32.mrf.mxu1  ;;  %v2341_v60 = vadd.f32 %v2340_v10, %v2295_v47  ;;  %v2203_v15 = vadd.f32 %v2202_v29, %v5799_v61  ;;  %v2382_v43 = vadd.f32 %v2381_v4, %v2296_v21  ;;  %v2298_v1 = vmul.f32 %v5820_v5, %v5820_v5  ;;  %v6456_v47 = vld [vmem:[#allocation21_spill] sm:$0xff] }
 0x26d   :  { %v1740_v36 = vadd.f32 %v1739_v51, %v6453_v2  ;;  %v2299_v13 = vmul.f32 %v5822_v37, %v5822_v37  ;;  %v5841_v27 = vadd.f32 %v2014_v11, %v1734_v18  ;;  %v2163_v51 = vadd.f32 %v2162_v54, %v5809_v28 }
 0x26e   :  { %v2020_v44 = vpop.f32.mrf.mxu0  ;;  %v1743_v50 = vpop.f32.mrf.mxu1  ;;  %v5844_v56 = vadd.f32 %v2018_v46, %v1738_v39  ;;  %v2342_v29 = vadd.f32 %v2341_v60, %v2297_v40  ;;  %v2300_v21 = vmul.f32 %v5829_v22, %v5829_v22  ;;  %v2301_v4 = vmul.f32 %v5831_v26, %v5831_v26  ;;  %v6459_v39 = vld [vmem:[#allocation22_spill] sm:$0xff] }
 0x26f   :  { %v1744_v35 = vadd.f32 %v1743_v50, %v6454_v25  ;;  %v5852_v45 = vadd.f32 %v2020_v44, %v1740_v36  ;;  %v2204_v11 = vadd.f32 %v2203_v15, %v5820_v5  ;;  %v2164_v46 = vadd.f32 %v2163_v51, %v5822_v37 }
 0x270   :  { %v2024_v14 = vpop.f32.mrf.mxu0  ;;  %v1745_v32 = vpop.f32.mrf.mxu1  ;;  %v2383_v25 = vadd.f32 %v2382_v43, %v2298_v1  ;;  %v2343_v40 = vadd.f32 %v2342_v29, %v2299_v13  ;;  %v2302_v60 = vmul.f32 %v5841_v27, %v5841_v27  ;;  %v2303_v36 = vmul.f32 %v5844_v56, %v5844_v56 }
 0x271   :  { %v1746_v23 = vadd.f32 %v1745_v32, %v6455_v57  ;;  %6457 = vst [vmem:[#allocation70_spill] sm:$0xff] %v5852_v45  ;;  %v5856_v18 = vadd.f32 %v2024_v14, %v1744_v35  ;;  %v2205_v44 = vadd.f32 %v2204_v11, %v5829_v22  ;;  %v2165_v43 = vadd.f32 %v2164_v46, %v5831_v26 }
 0x272   :  { %v2026_v63 = vpop.f32.mrf.mxu0  ;;  %v1749_v3 = vpop.f32.mrf.mxu1  ;;  %v2344_v1 = vadd.f32 %v2343_v40, %v2301_v4  ;;  %v2304_v13 = vmul.f32 %v5852_v45, %v5852_v45  ;;  %v6466_v4 = vld [vmem:[#allocation26_spill] sm:$0xff] }
 0x273   :  { %v1750_v6 = vadd.f32 %v1749_v3, %v6456_v47  ;;  %6458 = vst [vmem:[#allocation65_spill] sm:$0xff] %v5856_v18  ;;  %v6460_v3 = vld [vmem:[#allocation23_spill] sm:$0xff]  ;;  %v5865_v15 = vadd.f32 %v2026_v63, %v1746_v23  ;;  %v2384_v47 = vadd.f32 %v2383_v25, %v2300_v21  ;;  %v6465_v63 = vld [vmem:[#allocation24_spill] sm:$0xff]  ;;  %v2166_v46 = vadd.f32 %v2165_v43, %v5844_v56 }
 0x274   :  { %v2030_v50 = vpop.f32.mrf.mxu0  ;;  %v1751_v10 = vpop.f32.mrf.mxu1  ;;  %v2345_v25 = vadd.f32 %v2344_v1, %v2303_v36 }
 0x275   :  { %v1752_v32 = vadd.f32 %v1751_v10, %v6459_v39  ;;  %6461 = vst [vmem:[#allocation67_spill] sm:$0xff] %v5865_v15  ;;  %v5867_v14 = vadd.f32 %v2030_v50, %v1750_v6  ;;  %v2305_v10 = vmul.f32 %v5856_v18, %v5856_v18  ;;  %v2206_v39 = vadd.f32 %v2205_v44, %v5841_v27 }
 0x276   :  { %v2032_v2 = vpop.f32.mrf.mxu0  ;;  %v1755_v54 = vpop.f32.mrf.mxu1  ;;  %v2385_v21 = vadd.f32 %v2384_v47, %v2302_v60  ;;  %v2306_v40 = vmul.f32 %v5865_v15, %v5865_v15  ;;  %v2167_v44 = vadd.f32 %v2166_v46, %v5856_v18  ;;  %v6471_v46 = vld [vmem:[#allocation30_spill] sm:$0xff] }
 0x277   :  { %v1756_v57 = vadd.f32 %v1755_v54, %v6460_v3  ;;  %6462 = vst [vmem:[#allocation37_spill] sm:$0xff] %v5867_v14  ;;  %v5874_v29 = vadd.f32 %v2032_v2, %v1752_v32  ;;  %v2307_v32 = vmul.f32 %v5867_v14, %v5867_v14  ;;  %v2346_v36 = vadd.f32 %v2345_v25, %v2305_v10 }
 0x278   :  { %v2036_v35 = vpop.f32.mrf.mxu0  ;;  %v1757_v51 = vpop.f32.mrf.mxu1  ;;  %v2386_v43 = vadd.f32 %v2385_v21, %v2304_v13 }
 0x279   :  { %6463 = vst [vmem:[#allocation72_spill] sm:$0xff] %v5874_v29  ;;  %v5876_v11 = vadd.f32 %v2036_v35, %v1756_v57  ;;  %v1758_v23 = vadd.f32 %v1757_v51, %v6465_v63  ;;  %v2207_v35 = vadd.f32 %v2206_v39, %v5852_v45  ;;  %v6469_v51 = vld [vmem:[#allocation27_spill] sm:$0xff]  ;;  %v2308_v1 = vmul.f32 %v5874_v29, %v5874_v29  ;;  %v6491_v45 = vld [vmem:[#allocation82_spill] sm:$0xff] }
 0x27a   :  { %v2038_v6 = vpop.f32.mrf.mxu0  ;;  %v1761_v50 = vpop.f32.mrf.mxu1  ;;  %v2168_v39 = vadd.f32 %v2167_v44, %v5867_v14 }
 0x27b   :  { %6464 = vst [vmem:[#allocation69_spill] sm:$0xff] %v5876_v11  ;;  %v1762_v54 = vadd.f32 %v1761_v50, %v6466_v4  ;;  %v5886_v2 = vadd.f32 %v2038_v6, %v1758_v23  ;;  %v2309_v63 = vmul.f32 %v5876_v11, %v5876_v11  ;;  %v2208_v50 = vadd.f32 %v2207_v35, %v5865_v15 }
 0x27c   :  { %v2042_v3 = vpop.f32.mrf.mxu0  ;;  %v1763_v57 = vpop.f32.mrf.mxu1  ;;  %v2169_v35 = vadd.f32 %v2168_v39, %v5876_v11 }
 0x27d   :  { %6467 = vst [vmem:[#allocation38_spill] sm:$0xff] %v5886_v2  ;;  %v5890_v60 = vadd.f32 %v2042_v3, %v1762_v54  ;;  %v1764_v47 = vadd.f32 %v1763_v57, %v6469_v51  ;;  %v2387_v3 = vadd.f32 %v2386_v43, %v2306_v40  ;;  %v2347_v57 = vadd.f32 %v2346_v36, %v2307_v32  ;;  %v6473_v32 = vld [vmem:[#allocation31_spill] sm:$0xff] }
 0x27e   :  { %v2044_v23 = vpop.f32.mrf.mxu0  ;;  %v1767_v6 = vpop.f32.mrf.mxu1  ;;  %v2310_v13 = vmul.f32 %v5886_v2, %v5886_v2  ;;  %v2209_v51 = vadd.f32 %v2208_v50, %v5874_v29  ;;  %v6474_v29 = vld [vmem:[#allocation54_spill] sm:$0xff] }
 0x27f   :  { %6468 = vst [vmem:[#allocation74_spill] sm:$0xff] %v5890_v60  ;;  %v5899_v4 = vadd.f32 %v2044_v23, %v1764_v47  ;;  %v1768_v54 = vadd.f32 %v1767_v6, %v6471_v46  ;;  %v2311_v10 = vmul.f32 %v5890_v60, %v5890_v60  ;;  %v2388_v44 = vadd.f32 %v2387_v3, %v2308_v1 }
 0x280   :  { %v2048_v21 = vpop.f32.mrf.mxu0  ;;  %v1769_v25 = vpop.f32.mrf.mxu1  ;;  %v2348_v47 = vadd.f32 %v2347_v57, %v2309_v63  ;;  %v2210_v6 = vadd.f32 %v2209_v51, %v5886_v2  ;;  %v2170_v46 = vadd.f32 %v2169_v35, %v5890_v60  ;;  %v6477_v51 = vld [vmem:[#allocation55_spill] sm:$0xff] }
 0x281   :  { %6470 = vst [vmem:[#allocation71_spill] sm:$0xff] %v5899_v4  ;;  %v5908_v15 = vadd.f32 %v2048_v21, %v1768_v54  ;;  %v2312_v40 = vmul.f32 %v5899_v4, %v5899_v4  ;;  %v1770_v43 = vadd.f32 %v1769_v25, %v6473_v32  ;;  %v2389_v54 = vadd.f32 %v2388_v44, %v2310_v13 }
 0x282   :  { %v2050_v36 = vpop.f32.mrf.mxu0  ;;  %v1773_v23 = vpop.f32.mrf.mxu1  ;;  %v2349_v21 = vadd.f32 %v2348_v47, %v2311_v10  ;;  %v2211_v57 = vadd.f32 %v2210_v6, %v5899_v4 }
 0x283   :  { %6472 = vst [vmem:[#allocation39_spill] sm:$0xff] %v5908_v15  ;;  %v2313_v50 = vmul.f32 %v5908_v15, %v5908_v15  ;;  %v1774_v39 = vadd.f32 %v1773_v23, %v6474_v29  ;;  %v5918_v1 = vadd.f32 %v2050_v36, %v1770_v43  ;;  %v2171_v25 = vadd.f32 %v2170_v46, %v5908_v15 }
 0x284   :  { %v2054_v63 = vpop.f32.mrf.mxu0  ;;  %v1775_v3 = vpop.f32.mrf.mxu1  ;;  %v2390_v35 = vadd.f32 %v2389_v54, %v2312_v40 }
 0x285   :  { %6475 = vst [vmem:[#allocation76_spill] sm:$0xff] %v5918_v1  ;;  %v5922_v32 = vadd.f32 %v2054_v63, %v1774_v39  ;;  %v1776_v2 = vadd.f32 %v1775_v3, %v6477_v51  ;;  %v2350_v60 = vadd.f32 %v2349_v21, %v2313_v50  ;;  %v2314_v11 = vmul.f32 %v5918_v1, %v5918_v1 }
 0x286   :  { %v2056_v29 = vpop.f32.mrf.mxu0  ;;  %v2212_v13 = vadd.f32 %v2211_v57, %v5918_v1  ;;  %v2900_v21 = vmov 1966171168  }
 0x287   :  { %6476 = vst [vmem:[#allocation73_spill] sm:$0xff] %v5922_v32  ;;  %v2172_v10 = vadd.f32 %v2171_v25, %v5922_v32  ;;  %v2315_v44 = vmul.f32 %v5922_v32, %v5922_v32  ;;  %v5931_v47 = vadd.f32 %v2056_v29, %v1776_v2  ;;  %v2391_v43 = vadd.f32 %v2390_v35, %v2314_v11 }
 0x288   :  { %v2224_v63 = vunpack.c.l.s4 %v2900_v21 }
 0x289   :  { %6478 = vst [vmem:[#allocation40_spill] sm:$0xff] %v5931_v47  ;;  %v2173_v36 = vrot.slane %v2172_v10, 4  ;;  %v2351_v23 = vadd.f32 %v2350_v60, %v2315_v44  ;;  %v2213_v6 = vadd.f32 %v2212_v13, %v5931_v47  ;;  %v2316_v40 = vmul.f32 %v5931_v47, %v5931_v47 }
 0x28a   :  { %v2225_v60 = vunpack.c.0.s8 %v2224_v63 }
 0x28b   :  { %v2174_v46 = vadd.f32 %v2173_v36, %v2172_v10  ;;  %v2352_v50 = vrot.slane %v2351_v23, 4  ;;  %v2214_v39 = vrot.slane %v2213_v6, 4  ;;  %v2392_v54 = vadd.f32 %v2391_v43, %v2316_v40  ;;  %v6479_v40 = vld [vmem:[#allocation25_spill] sm:$0xff] }
 0x28c   :  { %v2228_v21 = vsub.s32 %v2225_v60, %v6479_v40  ;;  %v2428_v60 = vld [vmem:[%s6202_s3] sm:$0x3] }
 0x28d   :  { %v2175_v3 = vrot.slane %v2174_v46, 2  ;;  %v2353_v57 = vadd.f32 %v2352_v50, %v2351_v23  ;;  %v2215_v25 = vadd.f32 %v2214_v39, %v2213_v6  ;;  %v2393_v51 = vrot.slane %v2392_v54, 4 }
 0x28f   :  { %v2176_v2 = vadd.f32 %v2175_v3, %v2174_v46  ;;  %v2354_v29 = vrot.slane %v2353_v57, 2  ;;  %v2216_v11 = vrot.slane %v2215_v25, 2  ;;  %v2394_v35 = vadd.f32 %v2393_v51, %v2392_v54  ;;  %v2137_v3 = vld [vmem:[#allocation3] sm:$0x3]  ;;  %v2244_v51 = vld [vmem:[#allocation4] sm:$0x3] }
 0x291   :  { %v2177_v44 = vrot.slane %v2176_v2, 1  ;;  %v2355_v13 = vadd.f32 %v2354_v29, %v2353_v57  ;;  %v2217_v32 = vadd.f32 %v2216_v11, %v2215_v25  ;;  %v2395_v1 = vrot.slane %v2394_v35, 2 }
 0x293   :  { %v2356_v47 = vrot.slane %v2355_v13, 1  ;;  %v2218_v10 = vrot.slane %v2217_v32, 1  ;;  %v2396_v36 = vadd.f32 %v2395_v1, %v2394_v35  ;;  %v2178_v15 = vadd.f32 %v2177_v44, %v2176_v2 }
 0x295   :  { %v2219_v43 = vadd.f32 %v2218_v10, %v2217_v32  ;;  %v2397_v4 = vrot.slane %v2396_v36, 1  ;;  %v2357_v23 = vadd.f32 %v2356_v47, %v2355_v13  ;;  %v2432_v10 = vld [vmem:[%s6203_s4] sm:$0x3] }
 0x297   :  { %v2222_v6 = vcombine.low %v2178_v15, %v2219_v43  ;;  %v2398_v50 = vadd.f32 %v2397_v4, %v2396_v36  ;;  %v6481_v43 = vld [vmem:[#allocation28_spill] sm:$0xff] }
 0x299   :  { %v2229_v46 = vrot.slane %v2222_v6, %v2228_v21  ;;  %v2401_v39 = vcombine.low %v2357_v23, %v2398_v50 }
 0x29b   :  { %v2236_v54 = vrot.slane %v2229_v46, %v2228_v21  ;;  %v2408_v63 = vrot.slane %v2401_v39, %v2228_v21  ;;  %v6483_v46 = vld [vmem:[#allocation56_spill] sm:$0xff] }
 0x29d   :  { %v2238_v57 = vadd.f32 %v2236_v54, %v2137_v3  ;;  %v2415_v25 = vrot.slane %v2408_v63, %v2228_v21  ;;  %v6482_v21 = vld [vmem:[#allocation29_spill] sm:$0xff]  ;;  %v6485_v63 = vld [vmem:[#allocation58_spill] sm:$0xff] }
 0x29e   :  { %v6484_v3 = vld [vmem:[#allocation57_spill] sm:$0xff] }
 0x29f   :  { %2243 = vst.msk [vmem:[#allocation3] sm:$0x3] %vm5297_vm0, %v2238_v57  ;;  %v2417_v1 = vadd.f32 %v2415_v25, %v2244_v51 }
 0x2a1   :  { %2418 = vst.msk [vmem:[#allocation4] sm:$0x3] %vm5297_vm0, %v2417_v1 }
 0x2a6   :  { %v2422_v32 = vld [vmem:[#allocation3] sm:$0x3] }
 0x2a7   :  { %v2423_v2 = vmul.f32 0.0034722222, %v2422_v32 }
 0x2a8   :  { %v2424_v47 = vld [vmem:[#allocation4] sm:$0x3] }
 0x2a9   :  { %v2425_v15 = vmul.f32 0.0034722222, %v2424_v47  ;;  %v2426_v4 = vmul.f32 %v2423_v2, %v2423_v2  ;;  %v6486_v47 = vld [vmem:[#allocation77_spill] sm:$0xff] }
 0x2ab   :  { %v2427_v11 = vsub.f32 %v2425_v15, %v2426_v4  ;;  %v6487_v15 = vld [vmem:[#allocation78_spill] sm:$0xff] }
 0x2ad   :  { %v2429_v35 = vadd.f32 1e-05, %v2427_v11 }
 0x2af   :  { %2897 = vrsqrt.f32 %v2429_v35 }
 0x2bc   :  { %v2898_v44 = vpop.eup %2897 }
 0x2bd   :  { %v2431_v13 = vmul.f32 %v2898_v44, %v2428_v60 }
 0x2bf   :  { %v2433_v36 = vmul.f32 %v2431_v13, %v2423_v2  ;;  %v5948_v40 = vrot.slane %v2431_v13, %v6481_v43  ;;  %v5951_v23 = vrot.slane %v2431_v13, %v6482_v21 }
 0x2c1   :  { %v2434_v6 = vsub.f32 %v2432_v10, %v2433_v36  ;;  %v2454_v50 = vmul.f32 %v5948_v40, %v5254_v38  ;;  %v2455_v39 = vmul.f32 %v5951_v23, %v6483_v46  ;;  %v2456_v54 = vmul.f32 %v5948_v40, %v6484_v3 }
 0x2c2   :  { %v2457_v51 = vmul.f32 %v5951_v23, %v6485_v63  ;;  %v2458_v57 = vmul.f32 %v5948_v40, %v5266_v9  ;;  %v2459_v25 = vmul.f32 %v5951_v23, %v5270_v48  ;;  %v2460_v29 = vmul.f32 %v5948_v40, %v5272_v7 }
 0x2c3   :  { %v2461_v38 = vmul.f32 %v5951_v23, %v5275_v52  ;;  %v5970_v1 = vrot.slane %v2434_v6, %v6481_v43  ;;  %v5973_v32 = vrot.slane %v2434_v6, %v6482_v21  ;;  %v2505_v2 = vmul.f32 %v5948_v40, %v5278_v33 }
 0x2c4   :  { %v2506_v9 = vmul.f32 %v5951_v23, %v5397_v31  ;;  %v2507_v48 = vmul.f32 %v5948_v40, %v5404_v49  ;;  %v2508_v7 = vmul.f32 %v5951_v23, %v6486_v47  ;;  %v2509_v52 = vmul.f32 %v5948_v40, %v6487_v15  ;;  %v6488_v15 = vld [vmem:[#allocation79_spill] sm:$0xff] }
 0x2c5   :  { %v2473_v4 = vadd.f32 %v5970_v1, %v2454_v50  ;;  %v2474_v11 = vadd.f32 %v5973_v32, %v2455_v39  ;;  %v2475_v35 = vadd.f32 %v5970_v1, %v2456_v54  ;;  %v2476_v33 = vadd.f32 %v5973_v32, %v2457_v51 }
 0x2c6   :  { %v2477_v60 = vadd.f32 %v5970_v1, %v2458_v57  ;;  %v2478_v31 = vadd.f32 %v5973_v32, %v2459_v25  ;;  %v2479_v49 = vadd.f32 %v5970_v1, %v2460_v29  ;;  %v2480_v44 = vadd.f32 %v5973_v32, %v2461_v38  ;;  %v6489_v38 = vld [vmem:[#allocation80_spill] sm:$0xff] }
 0x2c7   :  { %v2481_v13 = vmax.f32 %v2473_v4, 0.0  ;;  %v2482_v10 = vmax.f32 %v2474_v11, 0.0  ;;  %v2483_v36 = vmax.f32 %v2475_v35, 0.0  ;;  %v2484_v43 = vmax.f32 %v2476_v33, 0.0  ;;  %v6490_v11 = vld [vmem:[#allocation81_spill] sm:$0xff] }
 0x2c8   :  { %v2485_v21 = vmax.f32 %v2477_v60, 0.0  ;;  %v2486_v6 = vmax.f32 %v2478_v31, 0.0  ;;  %v2487_v50 = vmax.f32 %v2479_v49, 0.0  ;;  %v2488_v46 = vmax.f32 %v2480_v44, 0.0 }
 0x2c9   :  { %v2489_v39 = vmax.f32 %v2481_v13, 0.0  ;;  %v2490_v3 = vmax.f32 %v2482_v10, 0.0  ;;  %v2491_v54 = vmax.f32 %v2483_v36, 0.0  ;;  %v2492_v63 = vmax.f32 %v2484_v43, 0.0 }
 0x2ca   :  { %v2493_v51 = vmax.f32 %v2485_v21, 0.0  ;;  %v2494_v57 = vmax.f32 %v2486_v6, 0.0  ;;  %v2495_v47 = vmax.f32 %v2487_v50, 0.0  ;;  %v2496_v25 = vmax.f32 %v2488_v46, 0.0 }
 0x2cb   :  { %v2510_v29 = vmul.f32 %v5951_v23, %v6488_v15  ;;  %v2511_v4 = vmul.f32 %v5948_v40, %v6489_v38  ;;  %v2512_v35 = vmul.f32 %v5951_v23, %v6490_v11  ;;  %v2513_v33 = vadd.f32 %v2505_v2, %v5970_v1 }
 0x2cc   :  { %v2514_v60 = vadd.f32 %v2506_v9, %v5973_v32  ;;  %v2515_v31 = vadd.f32 %v2507_v48, %v5970_v1  ;;  %v2516_v49 = vadd.f32 %v2508_v7, %v5973_v32  ;;  %v2517_v44 = vadd.f32 %v2509_v52, %v5970_v1 }
 0x2cd   :  { %v2518_v13 = vadd.f32 %v2510_v29, %v5973_v32  ;;  %v2519_v10 = vadd.f32 %v2511_v4, %v5970_v1  ;;  %v2520_v36 = vadd.f32 %v2512_v35, %v5973_v32  ;;  %v2521_v43 = vmax.f32 %v2513_v33, 0.0  ;;  %v6492_v35 = vld [vmem:[#allocation83_spill] sm:$0xff] }
 0x2ce   :  { %v2522_v21 = vmax.f32 %v2514_v60, 0.0  ;;  %v2523_v6 = vmax.f32 %v2515_v31, 0.0  ;;  %v2524_v50 = vmax.f32 %v2516_v49, 0.0  ;;  %v2525_v46 = vmax.f32 %v2517_v44, 0.0  ;;  %v6493_v60 = vld [vmem:[#allocation84_spill] sm:$0xff]  ;;  %v6494_v49 = vld [vmem:[#allocation85_spill] sm:$0xff] }
 0x2cf   :  { %v2526_v2 = vmax.f32 %v2518_v13, 0.0  ;;  %v2527_v15 = vmax.f32 %v2519_v10, 0.0  ;;  %v2528_v9 = vmax.f32 %v2520_v36, 0.0  ;;  %v2529_v38 = vmax.f32 %v2489_v39, %v2521_v43  ;;  %v6495_v39 = vld [vmem:[#allocation86_spill] sm:$0xff] }
 0x2d0   :  { %v2530_v48 = vmax.f32 %v2490_v3, %v2522_v21  ;;  %v2531_v11 = vmax.f32 %v2491_v54, %v2523_v6  ;;  %v2532_v7 = vmax.f32 %v2492_v63, %v2524_v50  ;;  %v2533_v14 = vmax.f32 %v2493_v51, %v2525_v46  ;;  %v6496_v54 = vld [vmem:[#allocation87_spill] sm:$0xff]  ;;  %v6497_v51 = vld [vmem:[#allocation32_spill] sm:$0xff] }
 0x2d1   :  { %v2534_v52 = vmax.f32 %v2494_v57, %v2526_v2  ;;  %v2535_v18 = vmax.f32 %v2495_v47, %v2527_v15  ;;  %v2536_v29 = vmax.f32 %v2496_v25, %v2528_v9  ;;  %v2545_v4 = vmul.f32 %v5948_v40, %v6491_v45  ;;  %v6498_v47 = vld [vmem:[#allocation62_spill] sm:$0xff] }
 0x2d2   :  { %v2546_v33 = vmul.f32 %v5951_v23, %v6492_v35  ;;  %v2547_v31 = vmul.f32 %v5948_v40, %v6493_v60  ;;  %v2548_v44 = vmul.f32 %v5951_v23, %v6494_v49  ;;  %v2549_v3 = vmul.f32 %v5948_v40, %v6495_v39 }
 0x2d3   :  { %v2550_v63 = vmul.f32 %v5951_v23, %v6496_v54  ;;  %v2551_v57 = vmul.f32 %v5948_v40, %v6497_v51  ;;  %v2552_v45 = vmul.f32 %v5951_v23, %v6498_v47  ;;  %v2553_v25 = vadd.f32 %v2545_v4, %v5970_v1  ;;  %v6499_v47 = vld [vmem:[#allocation60_spill] sm:$0xff] }
 0x2d4   :  { %v2554_v13 = vadd.f32 %v2546_v33, %v5973_v32  ;;  %v2555_v10 = vadd.f32 %v2547_v31, %v5970_v1  ;;  %v2556_v36 = vadd.f32 %v2548_v44, %v5973_v32  ;;  %v2557_v43 = vadd.f32 %v2549_v3, %v5970_v1 }
 0x2d5   :  { %v2558_v21 = vadd.f32 %v2550_v63, %v5973_v32  ;;  %v2559_v6 = vadd.f32 %v2551_v57, %v5970_v1  ;;  %v2560_v50 = vadd.f32 %v2552_v45, %v5973_v32  ;;  %v2561_v46 = vmax.f32 %v2553_v25, 0.0 }
 0x2d6   :  { %v2562_v2 = vmax.f32 %v2554_v13, 0.0  ;;  %v2563_v15 = vmax.f32 %v2555_v10, 0.0  ;;  %v2564_v9 = vmax.f32 %v2556_v36, 0.0  ;;  %v2565_v35 = vmax.f32 %v2557_v43, 0.0 }
 0x2d7   :  { %v2566_v4 = vmax.f32 %v2558_v21, 0.0  ;;  %v2567_v60 = vmax.f32 %v2559_v6, 0.0  ;;  %v2568_v33 = vmax.f32 %v2560_v50, 0.0  ;;  %v2569_v49 = vmax.f32 %v2529_v38, %v2561_v46 }
 0x2d8   :  { %v2570_v31 = vmax.f32 %v2530_v48, %v2562_v2  ;;  %v2571_v39 = vmax.f32 %v2531_v11, %v2563_v15  ;;  %v2572_v44 = vmax.f32 %v2532_v7, %v2564_v9  ;;  %v2573_v54 = vmax.f32 %v2533_v14, %v2565_v35  ;;  %v6500_v48 = vld [vmem:[#allocation33_spill] sm:$0xff] }
 0x2d9   :  { %v2574_v3 = vmax.f32 %v2534_v52, %v2566_v4  ;;  %v2575_v51 = vmax.f32 %v2535_v18, %v2567_v60  ;;  %v2576_v63 = vmax.f32 %v2536_v29, %v2568_v33  ;;  %v2585_v57 = vmul.f32 %v5948_v40, %v6499_v47 }
 0x2da   :  { %v2586_v45 = vmul.f32 %v5951_v23, %v5565_v59  ;;  %v2587_v25 = vmul.f32 %v5948_v40, %v5571_v58  ;;  %v2588_v13 = vmul.f32 %v5951_v23, %v5581_v12  ;;  %v2589_v38 = vmul.f32 %v5948_v40, %v5588_v62 }
 0x2db   :  { %v2590_v14 = vmul.f32 %v5951_v23, %v5603_v53  ;;  %v2591_v18 = vmul.f32 %v5948_v40, %v5615_v24  ;;  %v2592_v11 = vmul.f32 %v5951_v23, %v6500_v48  ;;  %v2593_v59 = vadd.f32 %v2585_v57, %v5970_v1  ;;  %v6501_v57 = vld [vmem:[#allocation64_spill] sm:$0xff] }
 0x2dc   :  { %v2594_v7 = vadd.f32 %v2586_v45, %v5973_v32  ;;  %v2595_v58 = vadd.f32 %v2587_v25, %v5970_v1  ;;  %v2596_v12 = vadd.f32 %v2588_v13, %v5973_v32  ;;  %v2597_v52 = vadd.f32 %v2589_v38, %v5970_v1 }
 0x2dd   :  { %v2598_v62 = vadd.f32 %v2590_v14, %v5973_v32  ;;  %v2599_v53 = vadd.f32 %v2591_v18, %v5970_v1  ;;  %v2600_v29 = vadd.f32 %v2592_v11, %v5973_v32  ;;  %v2601_v24 = vmax.f32 %v2593_v59, 0.0 }
 0x2de   :  { %v2602_v10 = vmax.f32 %v2594_v7, 0.0  ;;  %v2603_v36 = vmax.f32 %v2595_v58, 0.0  ;;  %v2604_v43 = vmax.f32 %v2596_v12, 0.0  ;;  %v2605_v21 = vmax.f32 %v2597_v52, 0.0 }
 0x2df   :  { %v2606_v6 = vmax.f32 %v2598_v62, 0.0  ;;  %v2607_v50 = vmax.f32 %v2599_v53, 0.0  ;;  %v2608_v46 = vmax.f32 %v2600_v29, 0.0  ;;  %v2609_v2 = vmax.f32 %v2569_v49, %v2601_v24 }
 0x2e0   :  { %v2610_v15 = vmax.f32 %v2570_v31, %v2602_v10  ;;  %v2611_v9 = vmax.f32 %v2571_v39, %v2603_v36  ;;  %v2612_v35 = vmax.f32 %v2572_v44, %v2604_v43  ;;  %v2613_v4 = vmax.f32 %v2573_v54, %v2605_v21  ;;  %v6502_v39 = vld [vmem:[#allocation61_spill] sm:$0xff]  ;;  %v6503_v54 = vld [vmem:[#allocation34_spill] sm:$0xff] }
 0x2e1   :  { %v2614_v60 = vmax.f32 %v2574_v3, %v2606_v6  ;;  %v2615_v33 = vmax.f32 %v2575_v51, %v2607_v50  ;;  %v2616_v47 = vmax.f32 %v2576_v63, %v2608_v46  ;;  %v2625_v45 = vmul.f32 %v5948_v40, %v6501_v57  ;;  %v6504_v6 = vld [vmem:[#allocation66_spill] sm:$0xff] }
 0x2e2   :  { %v2626_v25 = vmul.f32 %v5951_v23, %v5649_v20  ;;  %v2627_v13 = vmul.f32 %v5948_v40, %v5655_v30  ;;  %v2628_v38 = vmul.f32 %v5951_v23, %v5663_v0  ;;  %v2629_v49 = vmul.f32 %v5948_v40, %v5673_v17 }
 0x2e3   :  { %v2630_v31 = vmul.f32 %v5951_v23, %v5692_v16  ;;  %v2631_v44 = vmul.f32 %v5948_v40, %v6502_v39  ;;  %v2632_v3 = vmul.f32 %v5951_v23, %v6503_v54  ;;  %v2633_v20 = vadd.f32 %v2625_v45, %v5970_v1 }
 0x2e4   :  { %v2634_v51 = vadd.f32 %v2626_v25, %v5973_v32  ;;  %v2635_v30 = vadd.f32 %v2627_v13, %v5970_v1  ;;  %v2636_v0 = vadd.f32 %v2628_v38, %v5973_v32  ;;  %v2637_v63 = vadd.f32 %v2629_v49, %v5970_v1 }
 0x2e5   :  { %v2638_v17 = vadd.f32 %v2630_v31, %v5973_v32  ;;  %v2639_v16 = vadd.f32 %v2631_v44, %v5970_v1  ;;  %v2640_v14 = vadd.f32 %v2632_v3, %v5973_v32  ;;  %v2641_v18 = vmax.f32 %v2633_v20, 0.0 }
 0x2e6   :  { %v2642_v48 = vmax.f32 %v2634_v51, 0.0  ;;  %v2643_v11 = vmax.f32 %v2635_v30, 0.0  ;;  %v2644_v59 = vmax.f32 %v2636_v0, 0.0  ;;  %v2645_v7 = vmax.f32 %v2637_v63, 0.0 }
 0x2e7   :  { %v2646_v58 = vmax.f32 %v2638_v17, 0.0  ;;  %v2647_v12 = vmax.f32 %v2639_v16, 0.0  ;;  %v2648_v52 = vmax.f32 %v2640_v14, 0.0  ;;  %v2649_v62 = vmax.f32 %v2609_v2, %v2641_v18 }
 0x2e8   :  { %v2650_v53 = vmax.f32 %v2610_v15, %v2642_v48  ;;  %v2651_v29 = vmax.f32 %v2611_v9, %v2643_v11  ;;  %v2652_v24 = vmax.f32 %v2612_v35, %v2644_v59  ;;  %v2653_v10 = vmax.f32 %v2613_v4, %v2645_v7  ;;  %v6505_v15 = vld [vmem:[#allocation35_spill] sm:$0xff]  ;;  %v6506_v35 = vld [vmem:[#allocation68_spill] sm:$0xff] }
 0x2e9   :  { %v2654_v36 = vmax.f32 %v2614_v60, %v2646_v58  ;;  %v2655_v43 = vmax.f32 %v2615_v33, %v2647_v12  ;;  %v2656_v21 = vmax.f32 %v2616_v47, %v2648_v52  ;;  %v2665_v50 = vmul.f32 %v5948_v40, %v6504_v6  ;;  %v6507_v60 = vld [vmem:[#allocation63_spill] sm:$0xff]  ;;  %v6508_v11 = vld [vmem:[#allocation36_spill] sm:$0xff] }
 0x2ea   :  { %v2666_v46 = vmul.f32 %v5951_v23, %v5725_v34  ;;  %v2667_v57 = vmul.f32 %v5948_v40, %v5729_v55  ;;  %v2668_v45 = vmul.f32 %v5951_v23, %v5739_v41  ;;  %v2669_v2 = vmul.f32 %v5948_v40, %v5747_v8 }
 0x2eb   :  { %v2670_v9 = vmul.f32 %v5951_v23, %v6505_v15  ;;  %v2671_v4 = vmul.f32 %v5948_v40, %v6506_v35  ;;  %v2672_v33 = vmul.f32 %v5951_v23, %v6507_v60  ;;  %v2673_v34 = vadd.f32 %v2665_v50, %v5970_v1 }
 0x2ec   :  { %v2674_v47 = vadd.f32 %v2666_v46, %v5973_v32  ;;  %v2675_v55 = vadd.f32 %v2667_v57, %v5970_v1  ;;  %v2676_v41 = vadd.f32 %v2668_v45, %v5973_v32  ;;  %v2677_v25 = vadd.f32 %v2669_v2, %v5970_v1 }
 0x2ed   :  { %v2678_v8 = vadd.f32 %v2670_v9, %v5973_v32  ;;  %v2679_v13 = vadd.f32 %v2671_v4, %v5970_v1  ;;  %v2680_v38 = vadd.f32 %v2672_v33, %v5973_v32  ;;  %v2681_v49 = vmax.f32 %v2673_v34, 0.0 }
 0x2ee   :  { %v2682_v31 = vmax.f32 %v2674_v47, 0.0  ;;  %v2683_v39 = vmax.f32 %v2675_v55, 0.0  ;;  %v2684_v44 = vmax.f32 %v2676_v41, 0.0  ;;  %v2685_v54 = vmax.f32 %v2677_v25, 0.0  ;;  %v6509_v41 = vld [vmem:[#allocation70_spill] sm:$0xff] }
 0x2ef   :  { %v2686_v3 = vmax.f32 %v2678_v8, 0.0  ;;  %v2687_v20 = vmax.f32 %v2679_v13, 0.0  ;;  %v2688_v51 = vmax.f32 %v2680_v38, 0.0  ;;  %v2689_v30 = vmax.f32 %v2649_v62, %v2681_v49  ;;  %v6510_v8 = vld [vmem:[#allocation65_spill] sm:$0xff]  ;;  %v6511_v38 = vld [vmem:[#allocation67_spill] sm:$0xff] }
 0x2f0   :  { %v2690_v0 = vmax.f32 %v2650_v53, %v2682_v31  ;;  %v2691_v63 = vmax.f32 %v2651_v29, %v2683_v39  ;;  %v2692_v17 = vmax.f32 %v2652_v24, %v2684_v44  ;;  %v2693_v16 = vmax.f32 %v2653_v10, %v2685_v54  ;;  %v6512_v31 = vld [vmem:[#allocation37_spill] sm:$0xff]  ;;  %v6513_v44 = vld [vmem:[#allocation72_spill] sm:$0xff] }
 0x2f1   :  { %v2694_v14 = vmax.f32 %v2654_v36, %v2686_v3  ;;  %v2695_v18 = vmax.f32 %v2655_v43, %v2687_v20  ;;  %v2696_v48 = vmax.f32 %v2656_v21, %v2688_v51  ;;  %v2705_v59 = vmul.f32 %v5948_v40, %v6508_v11 }
 0x2f2   :  { %v2706_v7 = vmul.f32 %v5951_v23, %v5785_v42  ;;  %v2707_v58 = vmul.f32 %v5948_v40, %v5795_v19  ;;  %v2708_v12 = vmul.f32 %v5951_v23, %v5799_v61  ;;  %v2709_v52 = vmul.f32 %v5948_v40, %v5809_v28 }
 0x2f3   :  { %v2710_v62 = vmul.f32 %v5951_v23, %v5820_v5  ;;  %v2711_v53 = vmul.f32 %v5948_v40, %v5822_v37  ;;  %v2712_v29 = vmul.f32 %v5951_v23, %v5829_v22  ;;  %v2713_v42 = vadd.f32 %v2705_v59, %v5970_v1 }
 0x2f4   :  { %v2714_v24 = vadd.f32 %v2706_v7, %v5973_v32  ;;  %v2715_v19 = vadd.f32 %v2707_v58, %v5970_v1  ;;  %v2716_v61 = vadd.f32 %v2708_v12, %v5973_v32  ;;  %v2717_v10 = vadd.f32 %v2709_v52, %v5970_v1 }
 0x2f5   :  { %v2718_v28 = vadd.f32 %v2710_v62, %v5973_v32  ;;  %v2719_v5 = vadd.f32 %v2711_v53, %v5970_v1  ;;  %v2720_v36 = vadd.f32 %v2712_v29, %v5973_v32  ;;  %v2721_v37 = vmax.f32 %v2713_v42, 0.0 }
 0x2f6   :  { %v2722_v43 = vmax.f32 %v2714_v24, 0.0  ;;  %v2723_v21 = vmax.f32 %v2715_v19, 0.0  ;;  %v2724_v22 = vmax.f32 %v2716_v61, 0.0  ;;  %v2725_v6 = vmax.f32 %v2717_v10, 0.0  ;;  %v6514_v24 = vld [vmem:[#allocation69_spill] sm:$0xff]  ;;  %v6515_v61 = vld [vmem:[#allocation38_spill] sm:$0xff] }
 0x2f7   :  { %v2726_v50 = vmax.f32 %v2718_v28, 0.0  ;;  %v2727_v46 = vmax.f32 %v2719_v5, 0.0  ;;  %v2728_v57 = vmax.f32 %v2720_v36, 0.0  ;;  %v2729_v45 = vmax.f32 %v2689_v30, %v2721_v37  ;;  %v6516_v28 = vld [vmem:[#allocation74_spill] sm:$0xff]  ;;  %v6517_v36 = vld [vmem:[#allocation71_spill] sm:$0xff] }
 0x2f8   :  { %v2730_v2 = vmax.f32 %v2690_v0, %v2722_v43  ;;  %v2731_v15 = vmax.f32 %v2691_v63, %v2723_v21  ;;  %v2732_v9 = vmax.f32 %v2692_v17, %v2724_v22  ;;  %v2733_v35 = vmax.f32 %v2693_v16, %v2725_v6  ;;  %v6518_v43 = vld [vmem:[#allocation39_spill] sm:$0xff]  ;;  %v6519_v22 = vld [vmem:[#allocation76_spill] sm:$0xff] }
 0x2f9   :  { %v2734_v4 = vmax.f32 %v2694_v14, %v2726_v50  ;;  %v2735_v60 = vmax.f32 %v2695_v18, %v2727_v46  ;;  %v2736_v33 = vmax.f32 %v2696_v48, %v2728_v57  ;;  %v2745_v34 = vmul.f32 %v5948_v40, %v5831_v26  ;;  %v6520_v50 = vld [vmem:[#allocation73_spill] sm:$0xff]  ;;  %v6521_v57 = vld [vmem:[#allocation40_spill] sm:$0xff] }
 0x2fa   :  { %v2746_v47 = vmul.f32 %v5951_v23, %v5841_v27  ;;  %v2747_v55 = vmul.f32 %v5948_v40, %v5844_v56  ;;  %v2748_v25 = vmul.f32 %v5951_v23, %v6509_v41  ;;  %v2749_v13 = vmul.f32 %v5948_v40, %v6510_v8 }
 0x2fb   :  { %v2750_v49 = vmul.f32 %v5951_v23, %v6511_v38  ;;  %v2751_v39 = vmul.f32 %v5948_v40, %v6512_v31  ;;  %v2752_v26 = vmul.f32 %v5951_v23, %v6513_v44  ;;  %v2753_v27 = vadd.f32 %v2745_v34, %v5970_v1 }
 0x2fc   :  { %v2754_v54 = vadd.f32 %v2746_v47, %v5973_v32  ;;  %v2755_v56 = vadd.f32 %v2747_v55, %v5970_v1  ;;  %v2756_v3 = vadd.f32 %v2748_v25, %v5973_v32  ;;  %v2757_v20 = vadd.f32 %v2749_v13, %v5970_v1 }
 0x2fd   :  { %v2758_v51 = vadd.f32 %v2750_v49, %v5973_v32  ;;  %v2759_v30 = vadd.f32 %v2751_v39, %v5970_v1  ;;  %v2760_v0 = vadd.f32 %v2752_v26, %v5973_v32  ;;  %v2761_v63 = vmax.f32 %v2753_v27, 0.0 }
 0x2fe   :  { %v2762_v17 = vmax.f32 %v2754_v54, 0.0  ;;  %v2763_v16 = vmax.f32 %v2755_v56, 0.0  ;;  %v2764_v14 = vmax.f32 %v2756_v3, 0.0  ;;  %v2765_v18 = vmax.f32 %v2757_v20, 0.0 }
 0x2ff   :  { %v2766_v48 = vmax.f32 %v2758_v51, 0.0  ;;  %v2767_v11 = vmax.f32 %v2759_v30, 0.0  ;;  %v2768_v59 = vmax.f32 %v2760_v0, 0.0  ;;  %v2769_v7 = vmax.f32 %v2729_v45, %v2761_v63 }
 0x300   :  { %v2770_v58 = vmax.f32 %v2730_v2, %v2762_v17  ;;  %v2771_v12 = vmax.f32 %v2731_v15, %v2763_v16  ;;  %v2772_v52 = vmax.f32 %v2732_v9, %v2764_v14  ;;  %v2773_v62 = vmax.f32 %v2733_v35, %v2765_v18 }
 0x301   :  { %v2774_v53 = vmax.f32 %v2734_v4, %v2766_v48  ;;  %v2775_v29 = vmax.f32 %v2735_v60, %v2767_v11  ;;  %v2776_v42 = vmax.f32 %v2736_v33, %v2768_v59  ;;  %v2785_v19 = vmul.f32 %v5948_v40, %v6514_v24 }
 0x302   :  { %v2786_v10 = vmul.f32 %v5951_v23, %v6515_v61  ;;  %v2787_v5 = vmul.f32 %v5948_v40, %v6516_v28  ;;  %v2788_v37 = vmul.f32 %v5951_v23, %v6517_v36  ;;  %v2789_v21 = vmul.f32 %v5948_v40, %v6518_v43 }
 0x303   :  { %v2790_v6 = vmul.f32 %v5951_v23, %v6519_v22  ;;  %v2791_v46 = vmul.f32 %v5948_v40, %v6520_v50  ;;  %v2792_v45 = vmul.f32 %v5951_v23, %v6521_v57  ;;  %v2793_v2 = vadd.f32 %v2785_v19, %v5970_v1 }
 0x304   :  { %v2794_v15 = vadd.f32 %v2786_v10, %v5973_v32  ;;  %v2795_v9 = vadd.f32 %v2787_v5, %v5970_v1  ;;  %v2796_v35 = vadd.f32 %v2788_v37, %v5973_v32  ;;  %v2797_v4 = vadd.f32 %v2789_v21, %v5970_v1 }
 0x305   :  { %v2798_v60 = vadd.f32 %v2790_v6, %v5973_v32  ;;  %v2799_v33 = vadd.f32 %v2791_v46, %v5970_v1  ;;  %v2800_v34 = vadd.f32 %v2792_v45, %v5973_v32  ;;  %v2801_v40 = vmax.f32 %v2793_v2, 0.0 }
 0x306   :  { %v2802_v47 = vmax.f32 %v2794_v15, 0.0  ;;  %v2803_v55 = vmax.f32 %v2795_v9, 0.0  ;;  %v2804_v23 = vmax.f32 %v2796_v35, 0.0  ;;  %v2805_v41 = vmax.f32 %v2797_v4, 0.0 }
 0x307   :  { %v2806_v25 = vmax.f32 %v2798_v60, 0.0  ;;  %v2807_v8 = vmax.f32 %v2799_v33, 0.0  ;;  %v2808_v13 = vmax.f32 %v2800_v34, 0.0  ;;  %v2809_v38 = vmax.f32 %v2769_v7, %v2801_v40 }
 0x308   :  { %v2810_v49 = vmax.f32 %v2770_v58, %v2802_v47  ;;  %v2811_v31 = vmax.f32 %v2771_v12, %v2803_v55  ;;  %v2812_v39 = vmax.f32 %v2772_v52, %v2804_v23  ;;  %v2813_v44 = vmax.f32 %v2773_v62, %v2805_v41 }
 0x309   :  { %v2814_v26 = vmax.f32 %v2774_v53, %v2806_v25  ;;  %v2815_v27 = vmax.f32 %v2775_v29, %v2807_v8  ;;  %v2816_v54 = vmax.f32 %v2776_v42, %v2808_v13  ;;  %2817 = vst [vmem:[%s6204_s5] sm:$0xff] %v2809_v38 }
 0x30a   :  { %2818 = vst [vmem:[%s6204_s5 + $0x8] sm:$0xff] %v2810_v49  ;;  %2819 = vst [vmem:[%s6204_s5 + $0x10] sm:$0xff] %v2811_v31 }
 0x30b   :  { %2820 = vst [vmem:[%s6204_s5 + $0x18] sm:$0xff] %v2812_v39  ;;  %2821 = vst [vmem:[%s6204_s5 + $0x20] sm:$0xff] %v2813_v44 }
 0x30c   :  { %2822 = vst [vmem:[%s6204_s5 + $0x28] sm:$0xff] %v2814_v26  ;;  %2823 = vst [vmem:[%s6204_s5 + $0x30] sm:$0xff] %v2815_v27 }
 0x30d   :  { %2824 = vst [vmem:[%s6204_s5 + $0x38] sm:$0xff] %v2816_v54 }

</bundles_post_ra>
